<compile_context>
chip_gen: v5e
topology: v5e:2x2
jax: 0.10.0
libtpu: 0.0.40
codegen_flags: <defaults>
</compile_context>

<pallas_src>
import functools

import jax
import jax.numpy as jnp
from jax import lax
from jax.experimental import pallas as pl
from jax.experimental.pallas import tpu as pltpu


# Sequence halo: one full bf16 packed tile height (16 rows) so that payload
# stores into the bf16 ping-pong buffers are tile/sublane aligned.
_HALO = 16


def _postnet_kernel(*refs, n_layers, seq, halo, pad, ksize):
    """Fused conv(+folded BN)(+tanh) stack for one batch element.

    refs layout:
      refs[0]                 : x_ref  (seq + 2*halo, C_in0)     bf16 (halo zeroed)
      refs[1 : 1+n]           : w_refs (ksize, C_in_i, C_out_i)  bf16 (BN folded)
      refs[1+n : 1+2n]        : b_refs (1, C_out_i)              f32  (BN folded)
      refs[1+2n]              : o_ref  (seq, C_out_last)
      refs[2+2n], refs[3+2n]  : ping-pong VMEM buffers (seq + 2*halo, hidden) bf16
    """
    x_ref = refs[0]
    w_refs = refs[1:1 + n_layers]
    b_refs = refs[1 + n_layers:1 + 2 * n_layers]
    o_ref = refs[1 + 2 * n_layers]
    buf_a = refs[2 + 2 * n_layers]
    buf_b = refs[3 + 2 * n_layers]

    base = halo - pad  # input row feeding output row 0 at tap k == 0

    def conv(src_ref, w_ref, b_ref):
        # K shifted (seq, C_in) x (C_in, C_out) MXU matmuls, bf16 operands,
        # f32 accumulation (single MXU pass per tap).
        acc = jnp.dot(src_ref[pl.ds(base, seq), :], w_ref[0],
                      preferred_element_type=jnp.float32)
        for k in range(1, ksize):
            acc += jnp.dot(src_ref[pl.ds(base + k, seq), :], w_ref[k],
                           preferred_element_type=jnp.float32)
        return acc + b_ref[...]

    # Zero the halo rows of both ping-pong buffers once per batch element;
    # payload stores never touch them, so they stay valid for every layer.
    hzeros = jnp.zeros((halo, buf_a.shape[1]), buf_a.dtype)
    for buf in (buf_a, buf_b):
        buf[pl.ds(0, halo), :] = hzeros
        buf[pl.ds(halo + seq, halo), :] = hzeros

    src = x_ref
    bufs = (buf_a, buf_b)
    for i in range(n_layers - 1):
        y = jnp.tanh(conv(src, w_refs[i], b_refs[i]))      # f32 VPU/EUP math
        dst = bufs[i % 2]
        dst[pl.ds(halo, seq), :] = y.astype(dst.dtype)     # aligned bf16 store
        src = dst

    # Final layer: bare conv, stored in the output dtype.
    o_ref[...] = conv(src, w_refs[-1], b_refs[-1]).astype(o_ref.dtype)


def _fold_bn_params(params, *, eps=1e-5):
    """Fold eval-mode BatchNorm into conv weights/bias (f32)."""
    ws, bs = [], []
    for p in params:
        w, b = p["w"], p["b"]
        if p["bn"] is not None:
            gamma, beta, mean, var = p["bn"]
            scale = gamma * lax.rsqrt(var + eps)            # (C_out,)
            w = w * scale[None, None, :]
            b = b * scale + (beta - mean * scale)
        ws.append(w.astype(jnp.float32))
        bs.append(b.astype(jnp.float32))
    return ws, bs


def sodium_postnet_pallas(x, params, *, ksize=5, eps=1e-5):
    """x: (batch, features, sequence) float32 -> (batch, features, sequence)."""
    B, F, S = x.shape
    pad = (ksize - 1) // 2
    halo = max(_HALO, pad)
    n = len(params)

    # Fold BN in f32, then cast weights to the MXU-native bf16 operand width.
    # NOTE: channel counts that are multiples of 128 keep the MXU lane-dense;
    # other widths still work but run with partially-filled lanes.
    ws32, bs32 = _fold_bn_params(params, eps=eps)
    ws = [w.astype(jnp.bfloat16) for w in ws32]
    bs = [b.reshape(1, -1) for b in bs32]                   # f32 bias rows
    hidden = ws[0].shape[2]

    # Channels-last, bf16, one-time sequence halo of zeros.
    h = jnp.transpose(x, (0, 2, 1)).astype(jnp.bfloat16)    # (B, S, C)
    h = jnp.pad(h, ((0, 0), (halo, halo), (0, 0)))

    kernel = functools.partial(
        _postnet_kernel, n_layers=n, seq=S, halo=halo, pad=pad, ksize=ksize)

    in_specs = [pl.BlockSpec((None, S + 2 * halo, F), lambda b: (b, 0, 0))]
    in_specs += [pl.BlockSpec(w.shape, lambda b: (0, 0, 0)) for w in ws]
    in_specs += [pl.BlockSpec(bias.shape, lambda b: (0, 0)) for bias in bs]

    out = pl.pallas_call(
        kernel,
        out_shape=jax.ShapeDtypeStruct((B, S, F), x.dtype),
        grid_spec=pltpu.PrefetchScalarGridSpec(
            num_scalar_prefetch=0,
            grid=(B,),
            in_specs=in_specs,
            out_specs=pl.BlockSpec((None, S, F), lambda b: (b, 0, 0)),
            scratch_shapes=[
                pltpu.VMEM((S + 2 * halo, hidden), jnp.bfloat16),
                pltpu.VMEM((S + 2 * halo, hidden), jnp.bfloat16),
            ],
        ),
        compiler_params=pltpu.CompilerParams(
            dimension_semantics=("parallel",)),
    )(h, *ws, *bs)

    return jnp.transpose(out, (0, 2, 1))                    # back to (B, C, S)


def make_params(key, *, num_convolutions=5, features=128, hidden=256, ksize=5):
    """Replicates init_uniform (U[-0.1, 0.1]) + non-trivial BN running stats."""
    params = []
    for i in range(num_convolutions):
        c_in = features if i == 0 else hidden
        c_out = features if i == num_convolutions - 1 else hidden
        key, k1, k2, k3, k4, k5, k6 = jax.random.split(key, 7)
        w = jax.random.uniform(k1, (ksize, c_in, c_out), jnp.float32, -0.1, 0.1)
        b = jax.random.uniform(k2, (c_out,), jnp.float32, -0.1, 0.1)
        if i != num_convolutions - 1:
            gamma = jax.random.uniform(k3, (c_out,), jnp.float32, 0.5, 1.5)
            beta = jax.random.uniform(k4, (c_out,), jnp.float32, -0.1, 0.1)
            mean = 0.1 * jax.random.normal(k5, (c_out,), jnp.float32)
            var = jax.random.uniform(k6, (c_out,), jnp.float32, 0.5, 1.5)
            bn = (gamma, beta, mean, var)
        else:
            bn = None
        params.append({"w": w, "b": b, "bn": bn})
    return params


def _reference(x, ws, bs, *, pad, work_dtype=jnp.float32,
               precision=lax.Precision.HIGHEST):
    """Pure-JAX conv stack with BN already folded into (ws, bs).

    work_dtype=float32 + HIGHEST reproduces the original f32 module;
    work_dtype=bfloat16 + DEFAULT mirrors the kernel's bf16/f32 numerics.
    """
    n = len(ws)
    h = x.astype(work_dtype)
    for i in range(n):
        y = lax.conv_general_dilated(
            h, ws[i].astype(work_dtype), window_strides=(1,),
            padding=[(pad, pad)],
            dimension_numbers=("NCH", "HIO", "NCH"),
            preferred_element_type=jnp.float32,
            precision=precision)
        y = y + bs[i][None, :, None]
        h = jnp.tanh(y).astype(work_dtype) if i < n - 1 else y
    return h


if __name__ == "__main__":
    B, F, H, S, K = 2, 128, 256, 64, 5   # small, lane-dense demo shapes

    key = jax.random.PRNGKey(0)
    key, kx, kp = jax.random.split(key, 3)
    x = jax.random.normal(kx, (B, F, S), dtype=jnp.float32)
    params = make_params(kp, num_convolutions=5, features=F, hidden=H, ksize=K)

    postnet = jax.jit(lambda inp: sodium_postnet_pallas(inp, params, ksize=K))
    out = jax.block_until_ready(postnet(x))
    assert out.shape == (B, F, S)

    pad = (K - 1) // 2
    ws32, bs32 = _fold_bn_params(params, eps=1e-5)

    # Precision-matched reference (bf16 weights/activations, f32 accumulation):
    # isolates halo / bias / layout bugs from the expected bf16 rounding.
    ref_match = _reference(x, [w.astype(jnp.bfloat16) for w in ws32], bs32,
                           pad=pad, work_dtype=jnp.bfloat16,
                           precision=lax.Precision.DEFAULT)
    err_match = float(jnp.max(jnp.abs(out - ref_match)))
    assert err_match < 2e-2, f"mismatch vs bf16-matched reference: {err_match}"

    # Full-precision reference: bf16 kernel should stay within ~1% of f32.
    ref_f32 = _reference(x, ws32, bs32, pad=pad, work_dtype=jnp.float32,
                         precision=lax.Precision.HIGHEST)
    denom = max(1.0, float(jnp.max(jnp.abs(ref_f32))))
    rel_err = float(jnp.max(jnp.abs(out - ref_f32))) / denom
    assert rel_err < 0.08, f"mismatch vs f32 reference: rel_err={rel_err}"

    print("KERNEL_OK")
</pallas_src>

<mosaic_0001>
module attributes {stable_mosaic.version = 11 : i64} {
  func.func @_postnet_kernel(%arg0: i32, %arg1: memref<1x96x128xbf16, #tpu.memory_space<vmem>>, %arg2: memref<5x128x256xbf16, #tpu.memory_space<vmem>>, %arg3: memref<5x256x256xbf16, #tpu.memory_space<vmem>>, %arg4: memref<5x256x256xbf16, #tpu.memory_space<vmem>>, %arg5: memref<5x256x256xbf16, #tpu.memory_space<vmem>>, %arg6: memref<5x256x128xbf16, #tpu.memory_space<vmem>>, %arg7: memref<1x256xf32, #tpu.memory_space<vmem>>, %arg8: memref<1x256xf32, #tpu.memory_space<vmem>>, %arg9: memref<1x256xf32, #tpu.memory_space<vmem>>, %arg10: memref<1x256xf32, #tpu.memory_space<vmem>>, %arg11: memref<1x128xf32, #tpu.memory_space<vmem>>, %arg12: memref<1x64x128xf32, #tpu.memory_space<vmem>>, %arg13: memref<96x256xbf16, #tpu.memory_space<vmem>>, %arg14: memref<96x256xbf16, #tpu.memory_space<vmem>>) attributes {dimension_semantics = [#tpu.dimension_semantics<parallel>], iteration_bounds = array<i64: 2>, scalar_prefetch = 0 : i64, scratch_operands = 2 : i64, tpu.core_type = #tpu.core_type<tc>, window_params = [{transform_indices = @transform_0, window_bounds = array<i64: 1, 96, 128>}, {pipeline_mode = #tpu.pipeline_mode<synchronous>, transform_indices = @transform_1, window_bounds = array<i64: 5, 128, 256>}, {pipeline_mode = #tpu.pipeline_mode<synchronous>, transform_indices = @transform_2, window_bounds = array<i64: 5, 256, 256>}, {pipeline_mode = #tpu.pipeline_mode<synchronous>, transform_indices = @transform_3, window_bounds = array<i64: 5, 256, 256>}, {pipeline_mode = #tpu.pipeline_mode<synchronous>, transform_indices = @transform_4, window_bounds = array<i64: 5, 256, 256>}, {pipeline_mode = #tpu.pipeline_mode<synchronous>, transform_indices = @transform_5, window_bounds = array<i64: 5, 256, 128>}, {pipeline_mode = #tpu.pipeline_mode<synchronous>, transform_indices = @transform_6, window_bounds = array<i64: 1, 256>}, {pipeline_mode = #tpu.pipeline_mode<synchronous>, transform_indices = @transform_7, window_bounds = array<i64: 1, 256>}, {pipeline_mode = #tpu.pipeline_mode<synchronous>, transform_indices = @transform_8, window_bounds = array<i64: 1, 256>}, {pipeline_mode = #tpu.pipeline_mode<synchronous>, transform_indices = @transform_9, window_bounds = array<i64: 1, 256>}, {pipeline_mode = #tpu.pipeline_mode<synchronous>, transform_indices = @transform_10, window_bounds = array<i64: 1, 128>}, {transform_indices = @transform_11, window_bounds = array<i64: 1, 64, 128>}]} {
    %cst = arith.constant 0.000000e+00 : bf16
    %0 = vector.broadcast %cst : bf16 to vector<16x256xbf16>
    %c0 = arith.constant 0 : index
    %c0_0 = arith.constant 0 : index
    %1 = vector.load %arg13[%c0, %c0_0] : memref<96x256xbf16, #tpu.memory_space<vmem>>, vector<16x256xbf16>
    tpu.vector_store %arg13[%c0, %c0_0], %0 {strides = array<i32>} : memref<96x256xbf16, #tpu.memory_space<vmem>>, vector<16x256xbf16>,
    %c80 = arith.constant 80 : index
    %c0_1 = arith.constant 0 : index
    %2 = vector.load %arg13[%c80, %c0_1] : memref<96x256xbf16, #tpu.memory_space<vmem>>, vector<16x256xbf16>
    tpu.vector_store %arg13[%c80, %c0_1], %0 {strides = array<i32>} : memref<96x256xbf16, #tpu.memory_space<vmem>>, vector<16x256xbf16>,
    %c0_2 = arith.constant 0 : index
    %c0_3 = arith.constant 0 : index
    %3 = vector.load %arg14[%c0_2, %c0_3] : memref<96x256xbf16, #tpu.memory_space<vmem>>, vector<16x256xbf16>
    tpu.vector_store %arg14[%c0_2, %c0_3], %0 {strides = array<i32>} : memref<96x256xbf16, #tpu.memory_space<vmem>>, vector<16x256xbf16>,
    %c80_4 = arith.constant 80 : index
    %c0_5 = arith.constant 0 : index
    %4 = vector.load %arg14[%c80_4, %c0_5] : memref<96x256xbf16, #tpu.memory_space<vmem>>, vector<16x256xbf16>
    tpu.vector_store %arg14[%c80_4, %c0_5], %0 {strides = array<i32>} : memref<96x256xbf16, #tpu.memory_space<vmem>>, vector<16x256xbf16>,
    %c0_6 = arith.constant 0 : index
    %c14 = arith.constant 14 : index
    %c0_7 = arith.constant 0 : index
    %5 = vector.load %arg1[%c0_6, %c14, %c0_7] : memref<1x96x128xbf16, #tpu.memory_space<vmem>>, vector<1x64x128xbf16>
    %6 = vector.shape_cast %5 : vector<1x64x128xbf16> to vector<64x128xbf16>
    %c0_8 = arith.constant 0 : index
    %c0_9 = arith.constant 0 : index
    %c0_10 = arith.constant 0 : index
    %7 = vector.load %arg2[%c0_8, %c0_9, %c0_10] : memref<5x128x256xbf16, #tpu.memory_space<vmem>>, vector<1x128x256xbf16>
    %8 = vector.shape_cast %7 : vector<1x128x256xbf16> to vector<128x256xbf16>
    %cst_11 = arith.constant dense<0.000000e+00> : vector<64x256xf32>
    %9 = tpu.matmul %6, %8, %cst_11 {dimension_numbers = #tpu.dot_dimension_numbers<[1], [0], [0], [1], [0, 0, 1, 1], [], []>} : vector<64x128xbf16>, vector<128x256xbf16>, vector<64x256xf32> -> vector<64x256xf32>
    %c0_12 = arith.constant 0 : index
    %c15 = arith.constant 15 : index
    %c0_13 = arith.constant 0 : index
    %10 = vector.load %arg1[%c0_12, %c15, %c0_13] : memref<1x96x128xbf16, #tpu.memory_space<vmem>>, vector<1x64x128xbf16>
    %11 = vector.shape_cast %10 : vector<1x64x128xbf16> to vector<64x128xbf16>
    %c1 = arith.constant 1 : index
    %c0_14 = arith.constant 0 : index
    %c0_15 = arith.constant 0 : index
    %12 = vector.load %arg2[%c1, %c0_14, %c0_15] : memref<5x128x256xbf16, #tpu.memory_space<vmem>>, vector<1x128x256xbf16>
    %13 = vector.shape_cast %12 : vector<1x128x256xbf16> to vector<128x256xbf16>
    %cst_16 = arith.constant dense<0.000000e+00> : vector<64x256xf32>
    %14 = tpu.matmul %11, %13, %cst_16 {dimension_numbers = #tpu.dot_dimension_numbers<[1], [0], [0], [1], [0, 0, 1, 1], [], []>} : vector<64x128xbf16>, vector<128x256xbf16>, vector<64x256xf32> -> vector<64x256xf32>
    %15 = arith.addf %9, %14 : vector<64x256xf32>
    %c0_17 = arith.constant 0 : index
    %c16 = arith.constant 16 : index
    %c0_18 = arith.constant 0 : index
    %16 = vector.load %arg1[%c0_17, %c16, %c0_18] : memref<1x96x128xbf16, #tpu.memory_space<vmem>>, vector<1x64x128xbf16>
    %17 = vector.shape_cast %16 : vector<1x64x128xbf16> to vector<64x128xbf16>
    %c2 = arith.constant 2 : index
    %c0_19 = arith.constant 0 : index
    %c0_20 = arith.constant 0 : index
    %18 = vector.load %arg2[%c2, %c0_19, %c0_20] : memref<5x128x256xbf16, #tpu.memory_space<vmem>>, vector<1x128x256xbf16>
    %19 = vector.shape_cast %18 : vector<1x128x256xbf16> to vector<128x256xbf16>
    %cst_21 = arith.constant dense<0.000000e+00> : vector<64x256xf32>
    %20 = tpu.matmul %17, %19, %cst_21 {dimension_numbers = #tpu.dot_dimension_numbers<[1], [0], [0], [1], [0, 0, 1, 1], [], []>} : vector<64x128xbf16>, vector<128x256xbf16>, vector<64x256xf32> -> vector<64x256xf32>
    %21 = arith.addf %15, %20 : vector<64x256xf32>
    %c0_22 = arith.constant 0 : index
    %c17 = arith.constant 17 : index
    %c0_23 = arith.constant 0 : index
    %22 = vector.load %arg1[%c0_22, %c17, %c0_23] : memref<1x96x128xbf16, #tpu.memory_space<vmem>>, vector<1x64x128xbf16>
    %23 = vector.shape_cast %22 : vector<1x64x128xbf16> to vector<64x128xbf16>
    %c3 = arith.constant 3 : index
    %c0_24 = arith.constant 0 : index
    %c0_25 = arith.constant 0 : index
    %24 = vector.load %arg2[%c3, %c0_24, %c0_25] : memref<5x128x256xbf16, #tpu.memory_space<vmem>>, vector<1x128x256xbf16>
    %25 = vector.shape_cast %24 : vector<1x128x256xbf16> to vector<128x256xbf16>
    %cst_26 = arith.constant dense<0.000000e+00> : vector<64x256xf32>
    %26 = tpu.matmul %23, %25, %cst_26 {dimension_numbers = #tpu.dot_dimension_numbers<[1], [0], [0], [1], [0, 0, 1, 1], [], []>} : vector<64x128xbf16>, vector<128x256xbf16>, vector<64x256xf32> -> vector<64x256xf32>
    %27 = arith.addf %21, %26 : vector<64x256xf32>
    %c0_27 = arith.constant 0 : index
    %c18 = arith.constant 18 : index
    %c0_28 = arith.constant 0 : index
    %28 = vector.load %arg1[%c0_27, %c18, %c0_28] : memref<1x96x128xbf16, #tpu.memory_space<vmem>>, vector<1x64x128xbf16>
    %29 = vector.shape_cast %28 : vector<1x64x128xbf16> to vector<64x128xbf16>
    %c4 = arith.constant 4 : index
    %c0_29 = arith.constant 0 : index
    %c0_30 = arith.constant 0 : index
    %30 = vector.load %arg2[%c4, %c0_29, %c0_30] : memref<5x128x256xbf16, #tpu.memory_space<vmem>>, vector<1x128x256xbf16>
    %31 = vector.shape_cast %30 : vector<1x128x256xbf16> to vector<128x256xbf16>
    %cst_31 = arith.constant dense<0.000000e+00> : vector<64x256xf32>
    %32 = tpu.matmul %29, %31, %cst_31 {dimension_numbers = #tpu.dot_dimension_numbers<[1], [0], [0], [1], [0, 0, 1, 1], [], []>} : vector<64x128xbf16>, vector<128x256xbf16>, vector<64x256xf32> -> vector<64x256xf32>
    %33 = arith.addf %27, %32 : vector<64x256xf32>
    %c0_32 = arith.constant 0 : index
    %c0_33 = arith.constant 0 : index
    %34 = vector.load %arg7[%c0_32, %c0_33] : memref<1x256xf32, #tpu.memory_space<vmem>>, vector<1x256xf32>
    %35 = vector.broadcast %34 : vector<1x256xf32> to vector<64x256xf32>
    %36 = arith.addf %33, %35 : vector<64x256xf32>
    %37 = math.tanh %36 : vector<64x256xf32>
    %38 = arith.truncf %37 : vector<64x256xf32> to vector<64x256xbf16>
    %c16_34 = arith.constant 16 : index
    %c0_35 = arith.constant 0 : index
    %39 = vector.load %arg13[%c16_34, %c0_35] : memref<96x256xbf16, #tpu.memory_space<vmem>>, vector<64x256xbf16>
    tpu.vector_store %arg13[%c16_34, %c0_35], %38 {strides = array<i32>} : memref<96x256xbf16, #tpu.memory_space<vmem>>, vector<64x256xbf16>,
    %c14_36 = arith.constant 14 : index
    %c0_37 = arith.constant 0 : index
    %40 = vector.load %arg13[%c14_36, %c0_37] : memref<96x256xbf16, #tpu.memory_space<vmem>>, vector<64x256xbf16>
    %c0_38 = arith.constant 0 : index
    %c0_39 = arith.constant 0 : index
    %c0_40 = arith.constant 0 : index
    %41 = vector.load %arg3[%c0_38, %c0_39, %c0_40] : memref<5x256x256xbf16, #tpu.memory_space<vmem>>, vector<1x256x256xbf16>
    %42 = vector.shape_cast %41 : vector<1x256x256xbf16> to vector<256x256xbf16>
    %cst_41 = arith.constant dense<0.000000e+00> : vector<64x256xf32>
    %43 = tpu.matmul %40, %42, %cst_41 {dimension_numbers = #tpu.dot_dimension_numbers<[1], [0], [0], [1], [0, 0, 1, 1], [], []>} : vector<64x256xbf16>, vector<256x256xbf16>, vector<64x256xf32> -> vector<64x256xf32>
    %c15_42 = arith.constant 15 : index
    %c0_43 = arith.constant 0 : index
    %44 = vector.load %arg13[%c15_42, %c0_43] : memref<96x256xbf16, #tpu.memory_space<vmem>>, vector<64x256xbf16>
    %c1_44 = arith.constant 1 : index
    %c0_45 = arith.constant 0 : index
    %c0_46 = arith.constant 0 : index
    %45 = vector.load %arg3[%c1_44, %c0_45, %c0_46] : memref<5x256x256xbf16, #tpu.memory_space<vmem>>, vector<1x256x256xbf16>
    %46 = vector.shape_cast %45 : vector<1x256x256xbf16> to vector<256x256xbf16>
    %cst_47 = arith.constant dense<0.000000e+00> : vector<64x256xf32>
    %47 = tpu.matmul %44, %46, %cst_47 {dimension_numbers = #tpu.dot_dimension_numbers<[1], [0], [0], [1], [0, 0, 1, 1], [], []>} : vector<64x256xbf16>, vector<256x256xbf16>, vector<64x256xf32> -> vector<64x256xf32>
    %48 = arith.addf %43, %47 : vector<64x256xf32>
    %c16_48 = arith.constant 16 : index
    %c0_49 = arith.constant 0 : index
    %49 = vector.load %arg13[%c16_48, %c0_49] : memref<96x256xbf16, #tpu.memory_space<vmem>>, vector<64x256xbf16>
    %c2_50 = arith.constant 2 : index
    %c0_51 = arith.constant 0 : index
    %c0_52 = arith.constant 0 : index
    %50 = vector.load %arg3[%c2_50, %c0_51, %c0_52] : memref<5x256x256xbf16, #tpu.memory_space<vmem>>, vector<1x256x256xbf16>
    %51 = vector.shape_cast %50 : vector<1x256x256xbf16> to vector<256x256xbf16>
    %cst_53 = arith.constant dense<0.000000e+00> : vector<64x256xf32>
    %52 = tpu.matmul %49, %51, %cst_53 {dimension_numbers = #tpu.dot_dimension_numbers<[1], [0], [0], [1], [0, 0, 1, 1], [], []>} : vector<64x256xbf16>, vector<256x256xbf16>, vector<64x256xf32> -> vector<64x256xf32>
    %53 = arith.addf %48, %52 : vector<64x256xf32>
    %c17_54 = arith.constant 17 : index
    %c0_55 = arith.constant 0 : index
    %54 = vector.load %arg13[%c17_54, %c0_55] : memref<96x256xbf16, #tpu.memory_space<vmem>>, vector<64x256xbf16>
    %c3_56 = arith.constant 3 : index
    %c0_57 = arith.constant 0 : index
    %c0_58 = arith.constant 0 : index
    %55 = vector.load %arg3[%c3_56, %c0_57, %c0_58] : memref<5x256x256xbf16, #tpu.memory_space<vmem>>, vector<1x256x256xbf16>
    %56 = vector.shape_cast %55 : vector<1x256x256xbf16> to vector<256x256xbf16>
    %cst_59 = arith.constant dense<0.000000e+00> : vector<64x256xf32>
    %57 = tpu.matmul %54, %56, %cst_59 {dimension_numbers = #tpu.dot_dimension_numbers<[1], [0], [0], [1], [0, 0, 1, 1], [], []>} : vector<64x256xbf16>, vector<256x256xbf16>, vector<64x256xf32> -> vector<64x256xf32>
    %58 = arith.addf %53, %57 : vector<64x256xf32>
    %c18_60 = arith.constant 18 : index
    %c0_61 = arith.constant 0 : index
    %59 = vector.load %arg13[%c18_60, %c0_61] : memref<96x256xbf16, #tpu.memory_space<vmem>>, vector<64x256xbf16>
    %c4_62 = arith.constant 4 : index
    %c0_63 = arith.constant 0 : index
    %c0_64 = arith.constant 0 : index
    %60 = vector.load %arg3[%c4_62, %c0_63, %c0_64] : memref<5x256x256xbf16, #tpu.memory_space<vmem>>, vector<1x256x256xbf16>
    %61 = vector.shape_cast %60 : vector<1x256x256xbf16> to vector<256x256xbf16>
    %cst_65 = arith.constant dense<0.000000e+00> : vector<64x256xf32>
    %62 = tpu.matmul %59, %61, %cst_65 {dimension_numbers = #tpu.dot_dimension_numbers<[1], [0], [0], [1], [0, 0, 1, 1], [], []>} : vector<64x256xbf16>, vector<256x256xbf16>, vector<64x256xf32> -> vector<64x256xf32>
    %63 = arith.addf %58, %62 : vector<64x256xf32>
    %c0_66 = arith.constant 0 : index
    %c0_67 = arith.constant 0 : index
    %64 = vector.load %arg8[%c0_66, %c0_67] : memref<1x256xf32, #tpu.memory_space<vmem>>, vector<1x256xf32>
    %65 = vector.broadcast %64 : vector<1x256xf32> to vector<64x256xf32>
    %66 = arith.addf %63, %65 : vector<64x256xf32>
    %67 = math.tanh %66 : vector<64x256xf32>
    %68 = arith.truncf %67 : vector<64x256xf32> to vector<64x256xbf16>
    %c16_68 = arith.constant 16 : index
    %c0_69 = arith.constant 0 : index
    %69 = vector.load %arg14[%c16_68, %c0_69] : memref<96x256xbf16, #tpu.memory_space<vmem>>, vector<64x256xbf16>
    tpu.vector_store %arg14[%c16_68, %c0_69], %68 {strides = array<i32>} : memref<96x256xbf16, #tpu.memory_space<vmem>>, vector<64x256xbf16>,
    %c14_70 = arith.constant 14 : index
    %c0_71 = arith.constant 0 : index
    %70 = vector.load %arg14[%c14_70, %c0_71] : memref<96x256xbf16, #tpu.memory_space<vmem>>, vector<64x256xbf16>
    %c0_72 = arith.constant 0 : index
    %c0_73 = arith.constant 0 : index
    %c0_74 = arith.constant 0 : index
    %71 = vector.load %arg4[%c0_72, %c0_73, %c0_74] : memref<5x256x256xbf16, #tpu.memory_space<vmem>>, vector<1x256x256xbf16>
    %72 = vector.shape_cast %71 : vector<1x256x256xbf16> to vector<256x256xbf16>
    %cst_75 = arith.constant dense<0.000000e+00> : vector<64x256xf32>
    %73 = tpu.matmul %70, %72, %cst_75 {dimension_numbers = #tpu.dot_dimension_numbers<[1], [0], [0], [1], [0, 0, 1, 1], [], []>} : vector<64x256xbf16>, vector<256x256xbf16>, vector<64x256xf32> -> vector<64x256xf32>
    %c15_76 = arith.constant 15 : index
    %c0_77 = arith.constant 0 : index
    %74 = vector.load %arg14[%c15_76, %c0_77] : memref<96x256xbf16, #tpu.memory_space<vmem>>, vector<64x256xbf16>
    %c1_78 = arith.constant 1 : index
    %c0_79 = arith.constant 0 : index
    %c0_80 = arith.constant 0 : index
    %75 = vector.load %arg4[%c1_78, %c0_79, %c0_80] : memref<5x256x256xbf16, #tpu.memory_space<vmem>>, vector<1x256x256xbf16>
    %76 = vector.shape_cast %75 : vector<1x256x256xbf16> to vector<256x256xbf16>
    %cst_81 = arith.constant dense<0.000000e+00> : vector<64x256xf32>
    %77 = tpu.matmul %74, %76, %cst_81 {dimension_numbers = #tpu.dot_dimension_numbers<[1], [0], [0], [1], [0, 0, 1, 1], [], []>} : vector<64x256xbf16>, vector<256x256xbf16>, vector<64x256xf32> -> vector<64x256xf32>
    %78 = arith.addf %73, %77 : vector<64x256xf32>
    %c16_82 = arith.constant 16 : index
    %c0_83 = arith.constant 0 : index
    %79 = vector.load %arg14[%c16_82, %c0_83] : memref<96x256xbf16, #tpu.memory_space<vmem>>, vector<64x256xbf16>
    %c2_84 = arith.constant 2 : index
    %c0_85 = arith.constant 0 : index
    %c0_86 = arith.constant 0 : index
    %80 = vector.load %arg4[%c2_84, %c0_85, %c0_86] : memref<5x256x256xbf16, #tpu.memory_space<vmem>>, vector<1x256x256xbf16>
    %81 = vector.shape_cast %80 : vector<1x256x256xbf16> to vector<256x256xbf16>
    %cst_87 = arith.constant dense<0.000000e+00> : vector<64x256xf32>
    %82 = tpu.matmul %79, %81, %cst_87 {dimension_numbers = #tpu.dot_dimension_numbers<[1], [0], [0], [1], [0, 0, 1, 1], [], []>} : vector<64x256xbf16>, vector<256x256xbf16>, vector<64x256xf32> -> vector<64x256xf32>
    %83 = arith.addf %78, %82 : vector<64x256xf32>
    %c17_88 = arith.constant 17 : index
    %c0_89 = arith.constant 0 : index
    %84 = vector.load %arg14[%c17_88, %c0_89] : memref<96x256xbf16, #tpu.memory_space<vmem>>, vector<64x256xbf16>
    %c3_90 = arith.constant 3 : index
    %c0_91 = arith.constant 0 : index
    %c0_92 = arith.constant 0 : index
    %85 = vector.load %arg4[%c3_90, %c0_91, %c0_92] : memref<5x256x256xbf16, #tpu.memory_space<vmem>>, vector<1x256x256xbf16>
    %86 = vector.shape_cast %85 : vector<1x256x256xbf16> to vector<256x256xbf16>
    %cst_93 = arith.constant dense<0.000000e+00> : vector<64x256xf32>
    %87 = tpu.matmul %84, %86, %cst_93 {dimension_numbers = #tpu.dot_dimension_numbers<[1], [0], [0], [1], [0, 0, 1, 1], [], []>} : vector<64x256xbf16>, vector<256x256xbf16>, vector<64x256xf32> -> vector<64x256xf32>
    %88 = arith.addf %83, %87 : vector<64x256xf32>
    %c18_94 = arith.constant 18 : index
    %c0_95 = arith.constant 0 : index
    %89 = vector.load %arg14[%c18_94, %c0_95] : memref<96x256xbf16, #tpu.memory_space<vmem>>, vector<64x256xbf16>
    %c4_96 = arith.constant 4 : index
    %c0_97 = arith.constant 0 : index
    %c0_98 = arith.constant 0 : index
    %90 = vector.load %arg4[%c4_96, %c0_97, %c0_98] : memref<5x256x256xbf16, #tpu.memory_space<vmem>>, vector<1x256x256xbf16>
    %91 = vector.shape_cast %90 : vector<1x256x256xbf16> to vector<256x256xbf16>
    %cst_99 = arith.constant dense<0.000000e+00> : vector<64x256xf32>
    %92 = tpu.matmul %89, %91, %cst_99 {dimension_numbers = #tpu.dot_dimension_numbers<[1], [0], [0], [1], [0, 0, 1, 1], [], []>} : vector<64x256xbf16>, vector<256x256xbf16>, vector<64x256xf32> -> vector<64x256xf32>
    %93 = arith.addf %88, %92 : vector<64x256xf32>
    %c0_100 = arith.constant 0 : index
    %c0_101 = arith.constant 0 : index
    %94 = vector.load %arg9[%c0_100, %c0_101] : memref<1x256xf32, #tpu.memory_space<vmem>>, vector<1x256xf32>
    %95 = vector.broadcast %94 : vector<1x256xf32> to vector<64x256xf32>
    %96 = arith.addf %93, %95 : vector<64x256xf32>
    %97 = math.tanh %96 : vector<64x256xf32>
    %98 = arith.truncf %97 : vector<64x256xf32> to vector<64x256xbf16>
    %c16_102 = arith.constant 16 : index
    %c0_103 = arith.constant 0 : index
    %99 = vector.load %arg13[%c16_102, %c0_103] : memref<96x256xbf16, #tpu.memory_space<vmem>>, vector<64x256xbf16>
    tpu.vector_store %arg13[%c16_102, %c0_103], %98 {strides = array<i32>} : memref<96x256xbf16, #tpu.memory_space<vmem>>, vector<64x256xbf16>,
    %c14_104 = arith.constant 14 : index
    %c0_105 = arith.constant 0 : index
    %100 = vector.load %arg13[%c14_104, %c0_105] : memref<96x256xbf16, #tpu.memory_space<vmem>>, vector<64x256xbf16>
    %c0_106 = arith.constant 0 : index
    %c0_107 = arith.constant 0 : index
    %c0_108 = arith.constant 0 : index
    %101 = vector.load %arg5[%c0_106, %c0_107, %c0_108] : memref<5x256x256xbf16, #tpu.memory_space<vmem>>, vector<1x256x256xbf16>
    %102 = vector.shape_cast %101 : vector<1x256x256xbf16> to vector<256x256xbf16>
    %cst_109 = arith.constant dense<0.000000e+00> : vector<64x256xf32>
    %103 = tpu.matmul %100, %102, %cst_109 {dimension_numbers = #tpu.dot_dimension_numbers<[1], [0], [0], [1], [0, 0, 1, 1], [], []>} : vector<64x256xbf16>, vector<256x256xbf16>, vector<64x256xf32> -> vector<64x256xf32>
    %c15_110 = arith.constant 15 : index
    %c0_111 = arith.constant 0 : index
    %104 = vector.load %arg13[%c15_110, %c0_111] : memref<96x256xbf16, #tpu.memory_space<vmem>>, vector<64x256xbf16>
    %c1_112 = arith.constant 1 : index
    %c0_113 = arith.constant 0 : index
    %c0_114 = arith.constant 0 : index
    %105 = vector.load %arg5[%c1_112, %c0_113, %c0_114] : memref<5x256x256xbf16, #tpu.memory_space<vmem>>, vector<1x256x256xbf16>
    %106 = vector.shape_cast %105 : vector<1x256x256xbf16> to vector<256x256xbf16>
    %cst_115 = arith.constant dense<0.000000e+00> : vector<64x256xf32>
    %107 = tpu.matmul %104, %106, %cst_115 {dimension_numbers = #tpu.dot_dimension_numbers<[1], [0], [0], [1], [0, 0, 1, 1], [], []>} : vector<64x256xbf16>, vector<256x256xbf16>, vector<64x256xf32> -> vector<64x256xf32>
    %108 = arith.addf %103, %107 : vector<64x256xf32>
    %c16_116 = arith.constant 16 : index
    %c0_117 = arith.constant 0 : index
    %109 = vector.load %arg13[%c16_116, %c0_117] : memref<96x256xbf16, #tpu.memory_space<vmem>>, vector<64x256xbf16>
    %c2_118 = arith.constant 2 : index
    %c0_119 = arith.constant 0 : index
    %c0_120 = arith.constant 0 : index
    %110 = vector.load %arg5[%c2_118, %c0_119, %c0_120] : memref<5x256x256xbf16, #tpu.memory_space<vmem>>, vector<1x256x256xbf16>
    %111 = vector.shape_cast %110 : vector<1x256x256xbf16> to vector<256x256xbf16>
    %cst_121 = arith.constant dense<0.000000e+00> : vector<64x256xf32>
    %112 = tpu.matmul %109, %111, %cst_121 {dimension_numbers = #tpu.dot_dimension_numbers<[1], [0], [0], [1], [0, 0, 1, 1], [], []>} : vector<64x256xbf16>, vector<256x256xbf16>, vector<64x256xf32> -> vector<64x256xf32>
    %113 = arith.addf %108, %112 : vector<64x256xf32>
    %c17_122 = arith.constant 17 : index
    %c0_123 = arith.constant 0 : index
    %114 = vector.load %arg13[%c17_122, %c0_123] : memref<96x256xbf16, #tpu.memory_space<vmem>>, vector<64x256xbf16>
    %c3_124 = arith.constant 3 : index
    %c0_125 = arith.constant 0 : index
    %c0_126 = arith.constant 0 : index
    %115 = vector.load %arg5[%c3_124, %c0_125, %c0_126] : memref<5x256x256xbf16, #tpu.memory_space<vmem>>, vector<1x256x256xbf16>
    %116 = vector.shape_cast %115 : vector<1x256x256xbf16> to vector<256x256xbf16>
    %cst_127 = arith.constant dense<0.000000e+00> : vector<64x256xf32>
    %117 = tpu.matmul %114, %116, %cst_127 {dimension_numbers = #tpu.dot_dimension_numbers<[1], [0], [0], [1], [0, 0, 1, 1], [], []>} : vector<64x256xbf16>, vector<256x256xbf16>, vector<64x256xf32> -> vector<64x256xf32>
    %118 = arith.addf %113, %117 : vector<64x256xf32>
    %c18_128 = arith.constant 18 : index
    %c0_129 = arith.constant 0 : index
    %119 = vector.load %arg13[%c18_128, %c0_129] : memref<96x256xbf16, #tpu.memory_space<vmem>>, vector<64x256xbf16>
    %c4_130 = arith.constant 4 : index
    %c0_131 = arith.constant 0 : index
    %c0_132 = arith.constant 0 : index
    %120 = vector.load %arg5[%c4_130, %c0_131, %c0_132] : memref<5x256x256xbf16, #tpu.memory_space<vmem>>, vector<1x256x256xbf16>
    %121 = vector.shape_cast %120 : vector<1x256x256xbf16> to vector<256x256xbf16>
    %cst_133 = arith.constant dense<0.000000e+00> : vector<64x256xf32>
    %122 = tpu.matmul %119, %121, %cst_133 {dimension_numbers = #tpu.dot_dimension_numbers<[1], [0], [0], [1], [0, 0, 1, 1], [], []>} : vector<64x256xbf16>, vector<256x256xbf16>, vector<64x256xf32> -> vector<64x256xf32>
    %123 = arith.addf %118, %122 : vector<64x256xf32>
    %c0_134 = arith.constant 0 : index
    %c0_135 = arith.constant 0 : index
    %124 = vector.load %arg10[%c0_134, %c0_135] : memref<1x256xf32, #tpu.memory_space<vmem>>, vector<1x256xf32>
    %125 = vector.broadcast %124 : vector<1x256xf32> to vector<64x256xf32>
    %126 = arith.addf %123, %125 : vector<64x256xf32>
    %127 = math.tanh %126 : vector<64x256xf32>
    %128 = arith.truncf %127 : vector<64x256xf32> to vector<64x256xbf16>
    %c16_136 = arith.constant 16 : index
    %c0_137 = arith.constant 0 : index
    %129 = vector.load %arg14[%c16_136, %c0_137] : memref<96x256xbf16, #tpu.memory_space<vmem>>, vector<64x256xbf16>
    tpu.vector_store %arg14[%c16_136, %c0_137], %128 {strides = array<i32>} : memref<96x256xbf16, #tpu.memory_space<vmem>>, vector<64x256xbf16>,
    %c14_138 = arith.constant 14 : index
    %c0_139 = arith.constant 0 : index
    %130 = vector.load %arg14[%c14_138, %c0_139] : memref<96x256xbf16, #tpu.memory_space<vmem>>, vector<64x256xbf16>
    %c0_140 = arith.constant 0 : index
    %c0_141 = arith.constant 0 : index
    %c0_142 = arith.constant 0 : index
    %131 = vector.load %arg6[%c0_140, %c0_141, %c0_142] : memref<5x256x128xbf16, #tpu.memory_space<vmem>>, vector<1x256x128xbf16>
    %132 = vector.shape_cast %131 : vector<1x256x128xbf16> to vector<256x128xbf16>
    %cst_143 = arith.constant dense<0.000000e+00> : vector<64x128xf32>
    %133 = tpu.matmul %130, %132, %cst_143 {dimension_numbers = #tpu.dot_dimension_numbers<[1], [0], [0], [1], [0, 0, 1, 1], [], []>} : vector<64x256xbf16>, vector<256x128xbf16>, vector<64x128xf32> -> vector<64x128xf32>
    %c15_144 = arith.constant 15 : index
    %c0_145 = arith.constant 0 : index
    %134 = vector.load %arg14[%c15_144, %c0_145] : memref<96x256xbf16, #tpu.memory_space<vmem>>, vector<64x256xbf16>
    %c1_146 = arith.constant 1 : index
    %c0_147 = arith.constant 0 : index
    %c0_148 = arith.constant 0 : index
    %135 = vector.load %arg6[%c1_146, %c0_147, %c0_148] : memref<5x256x128xbf16, #tpu.memory_space<vmem>>, vector<1x256x128xbf16>
    %136 = vector.shape_cast %135 : vector<1x256x128xbf16> to vector<256x128xbf16>
    %cst_149 = arith.constant dense<0.000000e+00> : vector<64x128xf32>
    %137 = tpu.matmul %134, %136, %cst_149 {dimension_numbers = #tpu.dot_dimension_numbers<[1], [0], [0], [1], [0, 0, 1, 1], [], []>} : vector<64x256xbf16>, vector<256x128xbf16>, vector<64x128xf32> -> vector<64x128xf32>
    %138 = arith.addf %133, %137 : vector<64x128xf32>
    %c16_150 = arith.constant 16 : index
    %c0_151 = arith.constant 0 : index
    %139 = vector.load %arg14[%c16_150, %c0_151] : memref<96x256xbf16, #tpu.memory_space<vmem>>, vector<64x256xbf16>
    %c2_152 = arith.constant 2 : index
    %c0_153 = arith.constant 0 : index
    %c0_154 = arith.constant 0 : index
    %140 = vector.load %arg6[%c2_152, %c0_153, %c0_154] : memref<5x256x128xbf16, #tpu.memory_space<vmem>>, vector<1x256x128xbf16>
    %141 = vector.shape_cast %140 : vector<1x256x128xbf16> to vector<256x128xbf16>
    %cst_155 = arith.constant dense<0.000000e+00> : vector<64x128xf32>
    %142 = tpu.matmul %139, %141, %cst_155 {dimension_numbers = #tpu.dot_dimension_numbers<[1], [0], [0], [1], [0, 0, 1, 1], [], []>} : vector<64x256xbf16>, vector<256x128xbf16>, vector<64x128xf32> -> vector<64x128xf32>
    %143 = arith.addf %138, %142 : vector<64x128xf32>
    %c17_156 = arith.constant 17 : index
    %c0_157 = arith.constant 0 : index
    %144 = vector.load %arg14[%c17_156, %c0_157] : memref<96x256xbf16, #tpu.memory_space<vmem>>, vector<64x256xbf16>
    %c3_158 = arith.constant 3 : index
    %c0_159 = arith.constant 0 : index
    %c0_160 = arith.constant 0 : index
    %145 = vector.load %arg6[%c3_158, %c0_159, %c0_160] : memref<5x256x128xbf16, #tpu.memory_space<vmem>>, vector<1x256x128xbf16>
    %146 = vector.shape_cast %145 : vector<1x256x128xbf16> to vector<256x128xbf16>
    %cst_161 = arith.constant dense<0.000000e+00> : vector<64x128xf32>
    %147 = tpu.matmul %144, %146, %cst_161 {dimension_numbers = #tpu.dot_dimension_numbers<[1], [0], [0], [1], [0, 0, 1, 1], [], []>} : vector<64x256xbf16>, vector<256x128xbf16>, vector<64x128xf32> -> vector<64x128xf32>
    %148 = arith.addf %143, %147 : vector<64x128xf32>
    %c18_162 = arith.constant 18 : index
    %c0_163 = arith.constant 0 : index
    %149 = vector.load %arg14[%c18_162, %c0_163] : memref<96x256xbf16, #tpu.memory_space<vmem>>, vector<64x256xbf16>
    %c4_164 = arith.constant 4 : index
    %c0_165 = arith.constant 0 : index
    %c0_166 = arith.constant 0 : index
    %150 = vector.load %arg6[%c4_164, %c0_165, %c0_166] : memref<5x256x128xbf16, #tpu.memory_space<vmem>>, vector<1x256x128xbf16>
    %151 = vector.shape_cast %150 : vector<1x256x128xbf16> to vector<256x128xbf16>
    %cst_167 = arith.constant dense<0.000000e+00> : vector<64x128xf32>
    %152 = tpu.matmul %149, %151, %cst_167 {dimension_numbers = #tpu.dot_dimension_numbers<[1], [0], [0], [1], [0, 0, 1, 1], [], []>} : vector<64x256xbf16>, vector<256x128xbf16>, vector<64x128xf32> -> vector<64x128xf32>
    %153 = arith.addf %148, %152 : vector<64x128xf32>
    %c0_168 = arith.constant 0 : index
    %c0_169 = arith.constant 0 : index
    %154 = vector.load %arg11[%c0_168, %c0_169] : memref<1x128xf32, #tpu.memory_space<vmem>>, vector<1x128xf32>
    %155 = vector.broadcast %154 : vector<1x128xf32> to vector<64x128xf32>
    %156 = arith.addf %153, %155 : vector<64x128xf32>
    %c0_170 = arith.constant 0 : index
    %c0_171 = arith.constant 0 : index
    %c0_172 = arith.constant 0 : index
    %157 = vector.load %arg12[%c0_170, %c0_171, %c0_172] : memref<1x64x128xf32, #tpu.memory_space<vmem>>, vector<1x64x128xf32>
    %158 = vector.shape_cast %157 : vector<1x64x128xf32> to vector<64x128xf32>
    %159 = vector.shape_cast %156 : vector<64x128xf32> to vector<1x64x128xf32>
    tpu.vector_store %arg12[%c0_170, %c0_171, %c0_172], %159 {strides = array<i32>} : memref<1x64x128xf32, #tpu.memory_space<vmem>>, vector<1x64x128xf32>,
    return
  }
  func.func @transform_0(%arg0: i32) -> (i32, i32, i32) {
    %c0_i32 = arith.constant 0 : i32
    %c0_i32_0 = arith.constant 0 : i32
    %c0_i32_1 = arith.constant 0 : i32
    return %arg0, %c0_i32, %c0_i32_0 : i32, i32, i32
  }
  func.func @transform_1(%arg0: i32) -> (i32, i32, i32) {
    %c0_i32 = arith.constant 0 : i32
    %c0_i32_0 = arith.constant 0 : i32
    %c0_i32_1 = arith.constant 0 : i32
    %c0_i32_2 = arith.constant 0 : i32
    return %c0_i32, %c0_i32_0, %c0_i32_1 : i32, i32, i32
  }
  func.func @transform_2(%arg0: i32) -> (i32, i32, i32) {
    %c0_i32 = arith.constant 0 : i32
    %c0_i32_0 = arith.constant 0 : i32
    %c0_i32_1 = arith.constant 0 : i32
    %c0_i32_2 = arith.constant 0 : i32
    return %c0_i32, %c0_i32_0, %c0_i32_1 : i32, i32, i32
  }
  func.func @transform_3(%arg0: i32) -> (i32, i32, i32) {
    %c0_i32 = arith.constant 0 : i32
    %c0_i32_0 = arith.constant 0 : i32
    %c0_i32_1 = arith.constant 0 : i32
    %c0_i32_2 = arith.constant 0 : i32
    return %c0_i32, %c0_i32_0, %c0_i32_1 : i32, i32, i32
  }
  func.func @transform_4(%arg0: i32) -> (i32, i32, i32) {
    %c0_i32 = arith.constant 0 : i32
    %c0_i32_0 = arith.constant 0 : i32
    %c0_i32_1 = arith.constant 0 : i32
    %c0_i32_2 = arith.constant 0 : i32
    return %c0_i32, %c0_i32_0, %c0_i32_1 : i32, i32, i32
  }
  func.func @transform_5(%arg0: i32) -> (i32, i32, i32) {
    %c0_i32 = arith.constant 0 : i32
    %c0_i32_0 = arith.constant 0 : i32
    %c0_i32_1 = arith.constant 0 : i32
    %c0_i32_2 = arith.constant 0 : i32
    return %c0_i32, %c0_i32_0, %c0_i32_1 : i32, i32, i32
  }
  func.func @transform_6(%arg0: i32) -> (i32, i32) {
    %c0_i32 = arith.constant 0 : i32
    %c0_i32_0 = arith.constant 0 : i32
    %c0_i32_1 = arith.constant 0 : i32
    return %c0_i32, %c0_i32_0 : i32, i32
  }
  func.func @transform_7(%arg0: i32) -> (i32, i32) {
    %c0_i32 = arith.constant 0 : i32
    %c0_i32_0 = arith.constant 0 : i32
    %c0_i32_1 = arith.constant 0 : i32
    return %c0_i32, %c0_i32_0 : i32, i32
  }
  func.func @transform_8(%arg0: i32) -> (i32, i32) {
    %c0_i32 = arith.constant 0 : i32
    %c0_i32_0 = arith.constant 0 : i32
    %c0_i32_1 = arith.constant 0 : i32
    return %c0_i32, %c0_i32_0 : i32, i32
  }
  func.func @transform_9(%arg0: i32) -> (i32, i32) {
    %c0_i32 = arith.constant 0 : i32
    %c0_i32_0 = arith.constant 0 : i32
    %c0_i32_1 = arith.constant 0 : i32
    return %c0_i32, %c0_i32_0 : i32, i32
  }
  func.func @transform_10(%arg0: i32) -> (i32, i32) {
    %c0_i32 = arith.constant 0 : i32
    %c0_i32_0 = arith.constant 0 : i32
    %c0_i32_1 = arith.constant 0 : i32
    return %c0_i32, %c0_i32_0 : i32, i32
  }
  func.func @transform_11(%arg0: i32) -> (i32, i32, i32) {
    %c0_i32 = arith.constant 0 : i32
    %c0_i32_0 = arith.constant 0 : i32
    %c0_i32_1 = arith.constant 0 : i32
    return %arg0, %c0_i32, %c0_i32_0 : i32, i32, i32
  }
}

</mosaic_0001>

<bundles_post_ra>
// kernel: _lambda_.1
= control target key start
LH: loop header
LB: loop body
LE: loop exit
PB: predicated region body
PF: predicated region fallthrough
CT: control target
= control target key end

     0   :  { %s15745_s0 = inlined_call_operand.vmem [shape: bf16[2,96,128], index: 0, kind: input, shape index: {}]   ;;  %s15746_s1 = inlined_call_operand.hbm [shape: bf16[5,128,256], index: 1, kind: input, shape index: {}]   ;;  %s15747_s2 = inlined_call_operand.hbm [shape: bf16[5,256,256], index: 2, kind: input, shape index: {}]   ;;  %s15748_s3 = inlined_call_operand.hbm [shape: bf16[5,256,256], index: 3, kind: input, shape index: {}]   ;;  %s15749_s4 = inlined_call_operand.hbm [shape: bf16[5,256,256], index: 4, kind: input, shape index: {}]   ;;  %s15750_s5 = inlined_call_operand.hbm [shape: bf16[5,256,128], index: 5, kind: input, shape index: {}]   ;;  %s15751_s6 = inlined_call_operand.vmem [shape: f32[1,256], index: 6, kind: input, shape index: {}]   ;;  %s15752_s7 = inlined_call_operand.vmem [shape: f32[1,256], index: 7, kind: input, shape index: {}]   ;;  %s15753_s8 = inlined_call_operand.vmem [shape: f32[1,256], index: 8, kind: input, shape index: {}]   ;;  %s15754_s9 = inlined_call_operand.vmem [shape: f32[1,256], index: 9, kind: input, shape index: {}]   ;;  %s15755_s10 = inlined_call_operand.vmem [shape: f32[1,128], index: 10, kind: input, shape index: {}]   ;;  %s15756_s11 = inlined_call_operand.hbm [shape: f32[2,64,128], index: 11, kind: output, shape index: {}]  }
   0x1   :  { %15762 = sst [smem:[#allocation42_spill]] %s15747_s2 }
   0x2   :  { %15763 = sst [smem:[#allocation43_spill]] %s15749_s4 }
   0x3   :  { %16 = vsyncpa [#allocation5], 0 }
   0x4   :  { %17 = vsyncpa [#allocation8], 0 }
   0x5   :  { %18 = vsyncpa [#allocation11], 0 }
   0x6   :  { %19 = vsyncpa [#allocation6], 0 }
   0x7   :  { %21 = vsyncpa [#allocation6 + $0x1], 0  ;;  %s12918_s17 = smov 0   ;;  %s12920_s18 = smov 0  }
   0x8   :  { %s12922_s19 = smov 0   ;;  %s12924_s20 = smov 0  }
   0x9 LB: > { %15764 = sst [smem:[#allocation18_spill]] %s12832_s17  ;;  %s12939_s21 = sadd.s32 4294967295, %s12844_s20   ;;  %s12844_s20 = sphi %s12924_s20, %s15897_s20   ;;  %s12840_s19 = sphi %s12922_s19, %s15899_s19   ;;  %s12836_s18 = sphi %s12920_s18, %s15901_s18   ;;  %s12832_s17 = sphi %s12918_s17, %s15900_s17  }
   0xa   : > { %15765 = sst [smem:[#allocation19_spill]] %s12840_s19  ;;  %s8987_s22 = sadd.s32 4294967294, %s12844_s20  }
   0xb   : > { %s12943_s23 = sadd.s32 1, %s12844_s20   ;;  %s270_s24 = sadd.s32 1, %s12840_s19 }
   0xc   : > { %15766 = sst [smem:[#allocation20_spill]] %s12943_s23  ;;  %s267_s25 = ssub.s32 %s12844_s20, %s12943_s23 }
   0xd   : > { %p280_p0 = scmp.ne.s32.totalorder %s12840_s19, %s12836_s18  ;;  %p268_p1 = scmp.eq.s32.totalorder %s267_s25, 0 }
   0xe   : > { %p281_p2 = scmp.eq.s32.totalorder %s12939_s21, 1  ;;  %p286_p3 = scmp.ne.s32.totalorder %s12836_s18, %s12832_s17 }
   0xf   : > { %p287_p4 = scmp.eq.s32.totalorder %s8987_s22, 1  ;;  %p8988_p7 = scmp.ge.s32.totalorder %s12844_s20, 1 }
  0x10   : > { %s12954_s26 = scalar_select %p268_p1, %s12840_s19, %s270_s24  }
  0x11   : > { %p12956_p5 = por %p281_p2, %p280_p0  ;;  %p12960_p6 = por %p287_p4, %p286_p3 }
  0x12   : > { %15767 = sst [smem:[#allocation21_spill]] %s12954_s26  ;;  %p294_p8 = scmp.lt.s32.totalorder %s12844_s20, 3 }
  0x13   : > { %s15769_s28 = scalar_select %p12960_p6, 1, 0 }
  0x14   : > { %p12429_p9 = scmp.eq.s32.totalorder %s12939_s21, 0  ;;  %p12967_p10 = pnand %p8988_p7, %p294_p8 }
  0x15   : > { %15770 = sst [smem:[#allocation22_spill]] %s15769_s28  ;;  %s12846_s24 = smov [#allocation7]  }
  0x16   : > { %s15772_s2 = sld [smem:[#allocation42_spill]]  ;;  %p12409_p11 = pneg %p12967_p10 }
  0x17   : > { %s15773_s4 = sld [smem:[#allocation43_spill]]  ;;  %s321_s25 = sshll.u32 %s12846_s24, 4  ;;  %s322_s25 = int_to_ptr.vmem [resolvable:$true] %s321_s25 }
  0x18   : > { %p12981_p12 = pnand %p12429_p9, %p12409_p11  ;;  %s12847_s30 = smov 128  }
  0x19   : > { %s12848_s12 = smov 8   ;;  %s333_s23 = sshll.u32 %s15748_s3, 4  ;;  %s334_s23 = int_to_ptr.hbm [resolvable:$true] %s333_s23 }
  0x1a   : > { %s12850_s28 = smov [#allocation4]   ;;  %s361_s15 = sshll.u32 %s15750_s5, 4  ;;  %s362_s15 = int_to_ptr.hbm [resolvable:$true] %s361_s15 }
  0x1b   : > { %s307_s17 = sshll.u32 %s12850_s28, 4  ;;  %s12854_s24 = smov 4   ;;  %s308_s17 = int_to_ptr.vmem [resolvable:$true] %s307_s17 }
  0x1c   : > { %s319_s13 = sshll.u32 %s15772_s2, 4  ;;  %s12849_s2 = smov [#allocation10]   ;;  %s320_s13 = int_to_ptr.hbm [resolvable:$true] %s319_s13 }
  0x1d   : > { %s347_s16 = sshll.u32 %s15773_s4, 4  ;;  %s349_s26 = sshll.u32 %s12849_s2, 4  ;;  %s348_s16 = int_to_ptr.hbm [resolvable:$true] %s347_s16  ;;  %s350_s26 = int_to_ptr.vmem [resolvable:$true] %s349_s26 }
  0x1e   : > { %12415 = dma.hbm_to_vmem [thread:$0]  (!%p12981_p12), %s320_s13, 20480, %s322_s25, [#allocation8], %s12847_s30, %s12847_s30, %s12848_s12  }
  0x1f   : > { %s305_s4 = sshll.u32 %s15746_s1, 4  ;;  %s12851_s2 = smov [#allocation9]   ;;  %s306_s4 = int_to_ptr.hbm [resolvable:$true] %s305_s4 }
  0x20   : > { %12421 = dma.hbm_to_vmem [thread:$0]  (!%p12981_p12), %s348_s16, 20480, %s350_s26, [#allocation11], %s12847_s30, %s12847_s30, %s12848_s12  }
  0x21   : > { %12412 = dma.hbm_to_vmem [thread:$0]  (!%p12981_p12), %s306_s4, 10240, %s308_s17, [#allocation5], %s12847_s30, %s12847_s30, %s12848_s12  }
  0x22   : > { %s335_s13 = sshll.u32 %s12851_s2, 4  ;;  %s12852_s26 = smov [#allocation12]   ;;  %s336_s13 = int_to_ptr.vmem [resolvable:$true] %s335_s13 }
  0x23   : > { %12418 = dma.hbm_to_vmem [thread:$0]  (!%p12981_p12), %s334_s23, 20480, %s336_s13, [#allocation8], %s12847_s30, %s12847_s30, %s12848_s12  }
  0x24   : > { %s363_s19 = sshll.u32 %s12852_s26, 4  ;;  %s12853_s16 = smov 64   ;;  %s364_s19 = int_to_ptr.vmem [resolvable:$true] %s363_s19 }
  0x25   : > { %12424 = dma.hbm_to_vmem [thread:$0]  (!%p12981_p12), %s362_s15, 10240, %s364_s19, [#allocation11], %s12853_s16, %s12853_s16, %s12854_s24  }
  0x26   : > { %402 = sbr.rel (%p12967_p10) target bundleno = 2004 (0x7d4), region = 64 }
  0x2b   : > { %12808 = dma.done.wait (%p12429_p9), [#allocation5], 10240  }
  0x2c   : > { %12810 = vsyncadd (%p12429_p9), [#allocation5], 4294957056 }
  0x2d   : > { %12812 = dma.done.wait (%p12429_p9), [#allocation8], 40960  }
  0x2e   : > { %12814 = vsyncadd (%p12429_p9), [#allocation8], 4294926336 }
  0x2f   : > { %12816 = dma.done.wait (%p12429_p9), [#allocation11], 30720  }
  0x30   : > { %12818 = vsyncadd (%p12429_p9), [#allocation11], 4294936576  ;;  %p463_p13 = scmp.lt.s32.totalorder %s12939_s21, 1  ;;  %v9061_v0 = vld [vmem:[#allocation4 + $0xf0] sm:$0xf]  ;;  %vm733_vm1 = vcmask 1044480  }
  0x31   : > { %v11707_v1 = vld [vmem:[#allocation4 + $0xf4] sm:$0xf0]  ;;  %v11706_v2 = vld [vmem:[#allocation4 + $0xf4] sm:$0xf]  ;;  %v9063_v4 = vld [vmem:[#allocation4 + $0xf8] sm:$0xf0] }
  0x32   : > { %v9062_v3 = vor.u32 %v11707_v1, %v9061_v0  ;;  %v9125_v5 = vld [vmem:[#allocation4 + $0x70] sm:$0xf]  ;;  %v11691_v6 = vld [vmem:[#allocation4 + $0x74] sm:$0xf0]  ;;  %v9066_v7 = vor.u32 %v11706_v2, %v9063_v4  ;;  %v11690_v9 = vld [vmem:[#allocation4 + $0x74] sm:$0xf] }
  0x33   : > { %v9126_v8 = vor.u32 %v11691_v6, %v9125_v5  ;;  %v9127_v10 = vld [vmem:[#allocation4 + $0x78] sm:$0xf0]  ;;  %v9053_v11 = vld [vmem:[#allocation4 + $0xe0] sm:$0xf]  ;;  %v11705_v13 = vld [vmem:[#allocation4 + $0xe4] sm:$0xf0] }
  0x34   : > { %672 = vmatpush.bf16.msra.mxu0 %v9062_v3  ;;  %v9130_v12 = vor.u32 %v11690_v9, %v9127_v10  ;;  %v11704_v14 = vld [vmem:[#allocation4 + $0xe4] sm:$0xf]  ;;  %v9055_v15 = vld [vmem:[#allocation4 + $0xe8] sm:$0xf0]  ;;  %701 = vmatpush.bf16.msra.mxu1 %v9066_v7  ;;  %v9054_v16 = vor.u32 %v11705_v13, %v9053_v11  ;;  %v9117_v18 = vld [vmem:[#allocation4 + $0x60] sm:$0xf] }
  0x35   : > { %827 = vmatpush.bf16.msra.mxu2 %v9126_v8  ;;  %v9058_v17 = vor.u32 %v11704_v14, %v9055_v15  ;;  %v11689_v19 = vld [vmem:[#allocation4 + $0x64] sm:$0xf0]  ;;  %v11688_v20 = vld [vmem:[#allocation4 + $0x64] sm:$0xf]  ;;  %v9119_v22 = vld [vmem:[#allocation4 + $0x68] sm:$0xf0] }
  0x36   : > { %856 = vmatpush.bf16.msra.mxu3 %v9130_v12  ;;  %v9118_v21 = vor.u32 %v11689_v19, %v9117_v18  ;;  %v9045_v23 = vld [vmem:[#allocation4 + $0xd0] sm:$0xf]  ;;  %v11703_v24 = vld [vmem:[#allocation4 + $0xd4] sm:$0xf0]  ;;  %v9122_v25 = vor.u32 %v11688_v20, %v9119_v22  ;;  %v11702_v26 = vld [vmem:[#allocation4 + $0xd4] sm:$0xf] }
  0x37   : > { %v9047_v27 = vld [vmem:[#allocation4 + $0xd8] sm:$0xf0]  ;;  %v9109_v28 = vld [vmem:[#allocation4 + $0x50] sm:$0xf]  ;;  %v9046_v29 = vor.u32 %v11703_v24, %v9045_v23  ;;  %v11687_v30 = vld [vmem:[#allocation4 + $0x54] sm:$0xf0] }
  0x38   : > { %673 = vmatpush.bf16.msra.mxu0 %v9054_v16  ;;  %v11686_v31 = vld [vmem:[#allocation4 + $0x54] sm:$0xf]  ;;  %v9111_v32 = vld [vmem:[#allocation4 + $0x58] sm:$0xf0]  ;;  %702 = vmatpush.bf16.msra.mxu1 %v9058_v17  ;;  %v9050_v33 = vor.u32 %v11702_v26, %v9047_v27  ;;  %v9110_v34 = vor.u32 %v11687_v30, %v9109_v28  ;;  %v9037_v35 = vld [vmem:[#allocation4 + $0xc0] sm:$0xf] }
  0x39   : > { %828 = vmatpush.bf16.msra.mxu2 %v9118_v21  ;;  %v11701_v36 = vld [vmem:[#allocation4 + $0xc4] sm:$0xf0]  ;;  %v11700_v37 = vld [vmem:[#allocation4 + $0xc4] sm:$0xf]  ;;  %v9114_v38 = vor.u32 %v11686_v31, %v9111_v32  ;;  %v9039_v39 = vld [vmem:[#allocation4 + $0xc8] sm:$0xf0] }
  0x3a   : > { %857 = vmatpush.bf16.msra.mxu3 %v9122_v25  ;;  %v9101_v40 = vld [vmem:[#allocation4 + $0x40] sm:$0xf]  ;;  %v11685_v41 = vld [vmem:[#allocation4 + $0x44] sm:$0xf0]  ;;  %v11684_v42 = vld [vmem:[#allocation4 + $0x44] sm:$0xf]  ;;  %v9038_v44 = vor.u32 %v11701_v36, %v9037_v35  ;;  %v9042_v45 = vor.u32 %v11700_v37, %v9039_v39 }
  0x3b   : > { %v9103_v43 = vld [vmem:[#allocation4 + $0x48] sm:$0xf0]  ;;  %s13022_s4 = scalar_select %p463_p13, %s12939_s21, 1  ;;  %v9102_v46 = vor.u32 %v11685_v41, %v9101_v40  ;;  %v9029_v47 = vld [vmem:[#allocation4 + $0xb0] sm:$0xf]  ;;  %vm1329_vm3 = vcmask 1046528  }
  0x3c   : > { %674 = vmatpush.bf16.msra.mxu0 %v9046_v29  ;;  %703 = vmatpush.bf16.msra.mxu1 %v9050_v33  ;;  %v11699_v48 = vld [vmem:[#allocation4 + $0xb4] sm:$0xf0]  ;;  %v11698_v49 = vld [vmem:[#allocation4 + $0xb4] sm:$0xf]  ;;  %v9106_v50 = vor.u32 %v11684_v42, %v9103_v43  ;;  %v9031_v51 = vld [vmem:[#allocation4 + $0xb8] sm:$0xf0] }
  0x3d   : > { %829 = vmatpush.bf16.msra.mxu2 %v9110_v34  ;;  %v9093_v52 = vld [vmem:[#allocation4 + $0x30] sm:$0xf]  ;;  %v11683_v53 = vld [vmem:[#allocation4 + $0x34] sm:$0xf0]  ;;  %v11682_v54 = vld [vmem:[#allocation4 + $0x34] sm:$0xf]  ;;  %v9030_v56 = vor.u32 %v11699_v48, %v9029_v47  ;;  %v9034_v57 = vor.u32 %v11698_v49, %v9031_v51 }
  0x3e   : > { %858 = vmatpush.bf16.msra.mxu3 %v9114_v38  ;;  %v9095_v55 = vld [vmem:[#allocation4 + $0x38] sm:$0xf0]  ;;  %s12386_s17 = smul.u32 48, %s13022_s4  ;;  %v9094_v58 = vor.u32 %v11683_v53, %v9093_v52  ;;  %v9021_v59 = vld [vmem:[#allocation4 + $0xa0] sm:$0xf]  ;;  %s460_s26 = sand.u32 1, %s12836_s18  }
  0x3f   : > { %v11697_v60 = vld [vmem:[#allocation4 + $0xa4] sm:$0xf0]  ;;  %v11696_v61 = vld [vmem:[#allocation4 + $0xa4] sm:$0xf]  ;;  %v9098_v62 = vor.u32 %v11682_v54, %v9095_v55  ;;  %v9023_v63 = vld [vmem:[#allocation4 + $0xa8] sm:$0xf0] }
  0x40   : > { %675 = vmatpush.bf16.msra.mxu0 %v9038_v44  ;;  %704 = vmatpush.bf16.msra.mxu1 %v9042_v45  ;;  %v9085_v0 = vld [vmem:[#allocation4 + $0x20] sm:$0xf]  ;;  %v11681_v1 = vld [vmem:[#allocation4 + $0x24] sm:$0xf0]  ;;  %v11680_v2 = vld [vmem:[#allocation4 + $0x24] sm:$0xf]  ;;  %s13028_s29 = scalar_lea.vmem %s15745_s0, %s12386_s17  ;;  %v9022_v5 = vor.u32 %v11697_v60, %v9021_v59  ;;  %v9026_v9 = vor.u32 %v11696_v61, %v9023_v63 }
  0x41   : > { %830 = vmatpush.bf16.msra.mxu2 %v9102_v46  ;;  %v9087_v3 = vld [vmem:[#allocation4 + $0x28] sm:$0xf0]  ;;  %v9013_v4 = vld [vmem:[#allocation4 + $0x90] sm:$0xf]  ;;  %v11695_v6 = vld [vmem:[#allocation4 + $0x94] sm:$0xf0]  ;;  %v9086_v10 = vor.u32 %v11681_v1, %v9085_v0 }
  0x42   : > { %859 = vmatpush.bf16.msra.mxu3 %v9106_v50  ;;  %v11694_v7 = vld [vmem:[#allocation4 + $0x94] sm:$0xf]  ;;  %v9015_v8 = vld [vmem:[#allocation4 + $0x98] sm:$0xf0]  ;;  %v9077_v11 = vld [vmem:[#allocation4 + $0x10] sm:$0xf]  ;;  %v9090_v14 = vor.u32 %v11680_v2, %v9087_v3  ;;  %v9014_v22 = vor.u32 %v11695_v6, %v9013_v4 }
  0x43   : > { %v11679_v12 = vld [vmem:[#allocation4 + $0x14] sm:$0xf0]  ;;  %v11678_v13 = vld [vmem:[#allocation4 + $0x14] sm:$0xf]  ;;  %v9079_v15 = vld [vmem:[#allocation4 + $0x18] sm:$0xf0]  ;;  %v9018_v23 = vor.u32 %v11694_v7, %v9015_v8 }
  0x44   : > { %676 = vmatpush.bf16.msra.mxu0 %v9030_v56  ;;  %705 = vmatpush.bf16.msra.mxu1 %v9034_v57  ;;  %v12369_v16 = vld [vmem:[%s13028_s29 + $0x4] sm:$0x8]  ;;  %v12382_v17 = vld [vmem:[%s13028_s29 + $0x4] sm:$0xf0]   ;;  %v9005_v18 = vld [vmem:[#allocation4 + $0x80] sm:$0xf]  ;;  %v9078_v24 = vor.u32 %v11679_v12, %v9077_v11  ;;  %v9082_v33 = vor.u32 %v11678_v13, %v9079_v15 }
  0x45   : > { %831 = vmatpush.bf16.msra.mxu2 %v9094_v58  ;;  %v11693_v19 = vld [vmem:[#allocation4 + $0x84] sm:$0xf0]  ;;  %v13033_v20 = vld [vmem:[%s13028_s29 + $0xc] sm:$0xff]   ;;  %v12370_v21 = vor.u32 %v12382_v17, %v12369_v16  ;;  %v11692_v25 = vld [vmem:[#allocation4 + $0x84] sm:$0xf]  ;;  %s9001_s19 = sshll.u32 %s460_s26, 6 }
  0x46   : > { %860 = vmatpush.bf16.msra.mxu3 %v9098_v62  ;;  %v9007_v26 = vld [vmem:[#allocation4 + $0x88] sm:$0xf0]  ;;  %v9069_v27 = vld [vmem:[#allocation4] sm:$0xf]  ;;  %v11677_v28 = vld [vmem:[#allocation4 + $0x4] sm:$0xf0]  ;;  %v9006_v42 = vor.u32 %v11693_v19, %v9005_v18 }
  0x47   : > { %v545_v29 = vshrl.u32 %v12370_v21, 16  ;;  %v548_v30 = vshll.u32 %v12370_v21, 16  ;;  %v553_v31 = vshrl.u32 %v13033_v20, 16  ;;  %v556_v32 = vshll.u32 %v13033_v20, 16  ;;  %v11676_v34 = vld [vmem:[#allocation4 + $0x4] sm:$0xf] }
  0x48   : > { %677 = vmatpush.bf16.msra.mxu0 %v9022_v5  ;;  %706 = vmatpush.bf16.msra.mxu1 %v9026_v9  ;;  %v9071_v35 = vld [vmem:[#allocation4 + $0x8] sm:$0xf0]  ;;  %v9189_v36 = vld [vmem:[#allocation4 + $0x170] sm:$0xf]  ;;  %v11723_v41 = vld [vmem:[#allocation4 + $0x174] sm:$0xf0]  ;;  %v9010_v43 = vor.u32 %v11692_v25, %v9007_v26  ;;  %v9070_v44 = vor.u32 %v11677_v28, %v9069_v27 }
  0x49   : > { %832 = vmatpush.bf16.msra.mxu2 %v9086_v10  ;;  %v547_v37 = vrot.slane %v545_v29, 3  ;;  %v550_v38 = vrot.slane %v548_v30, 4  ;;  %v555_v39 = vrot.slane %v553_v31, 3  ;;  %v558_v40 = vrot.slane %v556_v32, 4  ;;  %v11722_v45 = vld [vmem:[#allocation4 + $0x174] sm:$0xf] }
  0x4a   : > { %861 = vmatpush.bf16.msra.mxu3 %v9090_v14  ;;  %vm543_vm0 = vsmask.f32 4352  ;;  %v9191_v46 = vld [vmem:[#allocation4 + $0x178] sm:$0xf0]  ;;  %v734_v49 = vrot.slane %v12370_v21, 3  ;;  %v735_v50 = vrot.slane %v13033_v20, 3  ;;  %v9074_v51 = vor.u32 %v11676_v34, %v9071_v35 }
  0x4b   : > { %v551_v47 = vor.u32 %v550_v38, %v547_v37  ;;  %v13037_v48 = vor.u32 %v558_v40, %v555_v39  ;;  %v9190_v52 = vor.u32 %v11723_v41, %v9189_v36  ;;  %v9194_v53 = vor.u32 %v11722_v45, %v9191_v46  ;;  %v9181_v54 = vld [vmem:[#allocation4 + $0x160] sm:$0xf]  ;;  %v11721_v55 = vld [vmem:[#allocation4 + $0x164] sm:$0xf0]  ;;  %v11720_v56 = vld [vmem:[#allocation4 + $0x164] sm:$0xf] }
  0x4c   : > { %678 = vmatpush.bf16.msra.mxu0 %v9014_v22  ;;  %707 = vmatpush.bf16.msra.mxu1 %v9018_v23  ;;  %v9183_v58 = vld [vmem:[#allocation4 + $0x168] sm:$0xf0]  ;;  %v13043_v59 = vld [vmem:[%s13028_s29 + $0x14] sm:$0xff]   ;;  %v736_v60 = vsel %vm733_vm1, %v734_v49, %v735_v50  ;;  %v9173_v61 = vld [vmem:[#allocation4 + $0x150] sm:$0xf]  ;;  %v9182_v62 = vor.u32 %v11721_v55, %v9181_v54  ;;  %s15670_s4 = scalar_lea.vmem [#allocation13], %s9001_s19 }
  0x4d   : > { %833 = vmatpush.bf16.msra.mxu2 %v9078_v24  ;;  %v560_v57 = vsel %vm543_vm0, %v551_v47, %v13037_v48  ;;  %v11719_v63 = vld [vmem:[#allocation4 + $0x154] sm:$0xf0]  ;;  %v11718_v0 = vld [vmem:[#allocation4 + $0x154] sm:$0xf]  ;;  %v9175_v1 = vld [vmem:[#allocation4 + $0x158] sm:$0xf0]  ;;  %v9186_v2 = vor.u32 %v11720_v56, %v9183_v58 }
  0x4e   : > { %862 = vmatpush.bf16.msra.mxu3 %v9082_v33  ;;  %v9265_v3 = vld [vmem:[#allocation4 + $0x1f0] sm:$0xf]  ;;  %v11742_v4 = vld [vmem:[#allocation4 + $0x1f4] sm:$0xf0]  ;;  %v11741_v5 = vld [vmem:[#allocation4 + $0x1f4] sm:$0xf]  ;;  %v9174_v15 = vor.u32 %v11719_v63, %v9173_v61  ;;  %v9178_v19 = vor.u32 %v11718_v0, %v9175_v1 }
  0x4f   : > { %v562_v6 = vshrl.u32 %v13043_v59, 16  ;;  %v565_v7 = vshll.u32 %v13043_v59, 16  ;;  %v13051_v8 = vld [vmem:[%s13028_s29 + $0x18] sm:$0xff]   ;;  %v9266_v10 = vor.u32 %v11742_v4, %v9265_v3  ;;  %v13055_v12 = vld [vmem:[%s13028_s29 + $0x20] sm:$0xff]   ;;  %v11717_v17 = vld [vmem:[#allocation4 + $0x144] sm:$0xf0] }
  0x50   : > { %679 = vmatpush.bf16.msra.mxu0 %v9006_v42  ;;  %708 = vmatpush.bf16.msra.mxu1 %v9010_v43  ;;  %v12828_v9 = vld [vmem:[%s13028_s29 + $0x1c] sm:$0xf]  ;;  %v12829_v13 = vld [vmem:[%s13028_s29 + $0x1c] sm:$0xf0]   ;;  %v11716_v18 = vld [vmem:[#allocation4 + $0x144] sm:$0xf] }
  0x51   : > { %834 = vmatpush.bf16.msra.mxu2 %v9070_v44  ;;  %v9267_v11 = vld [vmem:[#allocation4 + $0x1f8] sm:$0xf0]  ;;  %v9165_v16 = vld [vmem:[#allocation4 + $0x140] sm:$0xf]  ;;  %v9167_v21 = vld [vmem:[#allocation4 + $0x148] sm:$0xf0]  ;;  %v13060_v42 = vor.u32 %v12829_v13, %v12828_v9 }
  0x52   : > { %863 = vmatpush.bf16.msra.mxu3 %v9074_v51  ;;  %v9270_v14 = vor.u32 %v11741_v5, %v9267_v11  ;;  %v9257_v22 = vld [vmem:[#allocation4 + $0x1e0] sm:$0xf]  ;;  %v11740_v23 = vld [vmem:[#allocation4 + $0x1e4] sm:$0xf0]  ;;  %v564_v24 = vrot.slane %v562_v6, 3  ;;  %v567_v25 = vrot.slane %v565_v7, 4  ;;  %v9166_v32 = vor.u32 %v11717_v17, %v9165_v16 }
  0x53   : > { %680 = vmatmul.bf16.vlgmr.msra.gmra.mxu0 %v560_v57  ;;  %709 = vmatmul.bf16.vlgmr.msra.gmra.mxu1 %v560_v57  ;;  %v9258_v26 = vor.u32 %v11740_v23, %v9257_v22  ;;  %v11739_v27 = vld [vmem:[#allocation4 + $0x1e4] sm:$0xf]  ;;  %v9259_v28 = vld [vmem:[#allocation4 + $0x1e8] sm:$0xf0]  ;;  %v9157_v29 = vld [vmem:[#allocation4 + $0x130] sm:$0xf]  ;;  %v9170_v36 = vor.u32 %v11716_v18, %v9167_v21 }
  0x54   : > { %990 = vmatpush.bf16.msrb.mxu0 %v9190_v52  ;;  %1019 = vmatpush.bf16.msrb.mxu1 %v9194_v53  ;;  %v11715_v30 = vld [vmem:[#allocation4 + $0x134] sm:$0xf0]  ;;  %v9262_v31 = vor.u32 %v11739_v27, %v9259_v28  ;;  %v9249_v33 = vld [vmem:[#allocation4 + $0x1d0] sm:$0xf]  ;;  %v11737_v35 = vld [vmem:[#allocation4 + $0x1d4] sm:$0xf]  ;;  %v13058_v41 = vor.u32 %v567_v25, %v564_v24 }
  0x55   : > { %835 = vmatmul.bf16.vlgmr.msra.gmra.mxu2 %v736_v60  ;;  %864 = vmatmul.bf16.vlgmr.msra.gmra.mxu3 %v736_v60  ;;  %v11738_v34 = vld [vmem:[#allocation4 + $0x1d4] sm:$0xf0]  ;;  %v9251_v38 = vld [vmem:[#allocation4 + $0x1d8] sm:$0xf0]  ;;  %v9241_v39 = vld [vmem:[#allocation4 + $0x1c0] sm:$0xf]  ;;  %v9158_v47 = vor.u32 %v11715_v30, %v9157_v29 }
  0x56   : > { %1234 = vmatpush.bf16.msrb.mxu2 %v9266_v10  ;;  %1263 = vmatpush.bf16.msrb.mxu3 %v9270_v14  ;;  %v9250_v37 = vor.u32 %v11738_v34, %v9249_v33  ;;  %v11736_v40 = vld [vmem:[#allocation4 + $0x1c4] sm:$0xf0]  ;;  %v11714_v43 = vld [vmem:[#allocation4 + $0x134] sm:$0xf]  ;;  %v9159_v44 = vld [vmem:[#allocation4 + $0x138] sm:$0xf0]  ;;  %v9254_v45 = vor.u32 %v11737_v35, %v9251_v38  ;;  %v569_v56 = vsel %vm543_vm0, %v13037_v48, %v13058_v41  ;;  %v537_v34 = vunpack.c.h.b16 %v13055_v12 }
  0x57   : > { %v737_v46 = vrot.slane %v13043_v59, 3  ;;  %v9149_v49 = vld [vmem:[#allocation4 + $0x120] sm:$0xf]  ;;  %v9242_v51 = vor.u32 %v11736_v40, %v9241_v39  ;;  %v9162_v52 = vor.u32 %v11714_v43, %v9159_v44  ;;  %v11713_v53 = vld [vmem:[#allocation4 + $0x124] sm:$0xf0]  ;;  %v571_v57 = vshrl.u32 %v13060_v42, 16 }
  0x58   : > { %991 = vmatpush.bf16.msrb.mxu0 %v9182_v62  ;;  %1020 = vmatpush.bf16.msrb.mxu1 %v9186_v2  ;;  %v11735_v54 = vld [vmem:[#allocation4 + $0x1c4] sm:$0xf]  ;;  %v9243_v55 = vld [vmem:[#allocation4 + $0x1c8] sm:$0xf0]  ;;  %v574_v58 = vshll.u32 %v13060_v42, 16  ;;  %v9150_v63 = vor.u32 %v11713_v53, %v9149_v49  ;;  %s12343_s17 = sshll.u32 %s12939_s21, 6 }
  0x59   : > { %v11712_v60 = vld [vmem:[#allocation4 + $0x124] sm:$0xf]  ;;  %v9151_v61 = vld [vmem:[#allocation4 + $0x128] sm:$0xf0]  ;;  %v738_v62 = vsel %vm733_vm1, %v735_v50, %v737_v46  ;;  %v9246_v0 = vor.u32 %v11735_v54, %v9243_v55  ;;  %v9233_v48 = vld [vmem:[#allocation4 + $0x1b0] sm:$0xf] }
  0x5a   : > { %1235 = vmatpush.bf16.msrb.mxu2 %v9258_v26  ;;  %1264 = vmatpush.bf16.msrb.mxu3 %v9262_v31  ;;  %v9154_v1 = vor.u32 %v11712_v60, %v9151_v61  ;;  %v11734_v2 = vld [vmem:[#allocation4 + $0x1b4] sm:$0xf0]  ;;  %v11733_v3 = vld [vmem:[#allocation4 + $0x1b4] sm:$0xf]  ;;  %v573_v4 = vrot.slane %v571_v57, 3  ;;  %v576_v5 = vrot.slane %v574_v58, 4 }
  0x5b   : > { %v9234_v6 = vor.u32 %v11734_v2, %v9233_v48  ;;  %v9235_v7 = vld [vmem:[#allocation4 + $0x1b8] sm:$0xf0]  ;;  %v9141_v20 = vld [vmem:[#allocation4 + $0x110] sm:$0xf]  ;;  %v11711_v9 = vld [vmem:[#allocation4 + $0x114] sm:$0xf0] }
  0x5c   : > { %992 = vmatpush.bf16.msrb.mxu0 %v9174_v15  ;;  %1021 = vmatpush.bf16.msrb.mxu1 %v9178_v19  ;;  %v11710_v50 = vld [vmem:[#allocation4 + $0x114] sm:$0xf]  ;;  %v9142_v10 = vor.u32 %v11711_v9, %v9141_v20  ;;  %v9143_v11 = vld [vmem:[#allocation4 + $0x118] sm:$0xf0]  ;;  %v9238_v13 = vor.u32 %v11733_v3, %v9235_v7  ;;  %v9225_v14 = vld [vmem:[#allocation4 + $0x1a0] sm:$0xf]  ;;  %v577_v33 = vor.u32 %v576_v5, %v573_v4 }
  0x5d   : > { %v11732_v15 = vld [vmem:[#allocation4 + $0x1a4] sm:$0xf0]  ;;  %v9146_v16 = vor.u32 %v11710_v50, %v9143_v11  ;;  %v11731_v18 = vld [vmem:[#allocation4 + $0x1a4] sm:$0xf]  ;;  %v9227_v19 = vld [vmem:[#allocation4 + $0x1a8] sm:$0xf0] }
  0x5e   : > { %1236 = vmatpush.bf16.msrb.mxu2 %v9250_v37  ;;  %1265 = vmatpush.bf16.msrb.mxu3 %v9254_v45  ;;  %v9226_v17 = vor.u32 %v11732_v15, %v9225_v14  ;;  %v9133_v21 = vld [vmem:[#allocation4 + $0x100] sm:$0xf]  ;;  %v11709_v22 = vld [vmem:[#allocation4 + $0x104] sm:$0xf0]  ;;  %v11708_v23 = vld [vmem:[#allocation4 + $0x104] sm:$0xf]  ;;  %v9230_v27 = vor.u32 %v11731_v18, %v9227_v19  ;;  %v578_v44 = vsel %vm543_vm0, %v13058_v41, %v577_v33 }
  0x5f   : > { %v9135_v24 = vld [vmem:[#allocation4 + $0x108] sm:$0xf0]  ;;  %v9217_v25 = vld [vmem:[#allocation4 + $0x190] sm:$0xf]  ;;  %v11730_v26 = vld [vmem:[#allocation4 + $0x194] sm:$0xf0]  ;;  %v9134_v28 = vor.u32 %v11709_v22, %v9133_v21  ;;  %v542_v45 = vpack.c.b16 %v537_v34, %v537_v34 }
  0x60   : > { %993 = vmatpush.bf16.msrb.mxu0 %v9166_v32  ;;  %1022 = vmatpush.bf16.msrb.mxu1 %v9170_v36  ;;  %v9138_v29 = vor.u32 %v11708_v23, %v9135_v24  ;;  %v9218_v30 = vor.u32 %v11730_v26, %v9217_v25  ;;  %v11729_v31 = vld [vmem:[#allocation4 + $0x194] sm:$0xf]  ;;  %v9219_v32 = vld [vmem:[#allocation4 + $0x198] sm:$0xf0]  ;;  %v9209_v35 = vld [vmem:[#allocation4 + $0x180] sm:$0xf] }
  0x61   : > { %v11728_v36 = vld [vmem:[#allocation4 + $0x184] sm:$0xf0]  ;;  %v739_v37 = vrot.slane %v13060_v42, 3  ;;  %v9222_v38 = vor.u32 %v11729_v31, %v9219_v32  ;;  %v11727_v40 = vld [vmem:[#allocation4 + $0x184] sm:$0xf]  ;;  %v580_v42 = vshrl.u32 %v542_v45, 16 }
  0x62   : > { %1237 = vmatpush.bf16.msrb.mxu2 %v9242_v51  ;;  %1266 = vmatpush.bf16.msrb.mxu3 %v9246_v0  ;;  %v9210_v39 = vor.u32 %v11728_v36, %v9209_v35  ;;  %v9211_v43 = vld [vmem:[#allocation4 + $0x188] sm:$0xf0]  ;;  %v485_v49 = vld [vmem:[%s13028_s29 + $0x24] sm:$0x7]  ;;  %v9329_v54 = vld [vmem:[#allocation4 + $0x270] sm:$0xf] }
  0x63   : > { %685 = vmatmul.bf16.gmra.mxu0 %v569_v56  ;;  %714 = vmatmul.bf16.gmra.mxu1 %v569_v56  ;;  %v9214_v51 = vor.u32 %v11727_v40, %v9211_v43  ;;  %v731_v53 = vunpack.c.l.b16 %v485_v49  ;;  %v11758_v55 = vld [vmem:[#allocation4 + $0x274] sm:$0xf0]  ;;  %v11757_v56 = vld [vmem:[#allocation4 + $0x274] sm:$0xf]  ;;  %v9331_v57 = vld [vmem:[#allocation4 + $0x278] sm:$0xf0] }
  0x64   : > { %994 = vmatpush.bf16.msrb.mxu0 %v9158_v47  ;;  %1023 = vmatpush.bf16.msrb.mxu1 %v9162_v52  ;;  %v740_v47 = vsel %vm733_vm1, %v737_v46, %v739_v37  ;;  %v583_v52 = vshll.u32 %v542_v45, 16  ;;  %v9330_v41 = vor.u32 %v11758_v55, %v9329_v54  ;;  %v9321_v59 = vld [vmem:[#allocation4 + $0x260] sm:$0xf]  ;;  %v11756_v58 = vld [vmem:[#allocation4 + $0x264] sm:$0xf0]  ;;  %v9334_v46 = vor.u32 %v11757_v56, %v9331_v57  ;;  %v13085_v7 = vld [vmem:[%s13028_s29 + $0x10] sm:$0xff] }
  0x65   : > { %840 = vmatmul.bf16.gmra.mxu2 %v738_v62  ;;  %869 = vmatmul.bf16.gmra.mxu3 %v738_v62  ;;  %v11755_v60 = vld [vmem:[#allocation4 + $0x264] sm:$0xf]  ;;  %v9323_v61 = vld [vmem:[#allocation4 + $0x268] sm:$0xf0]  ;;  %v582_v62 = vrot.slane %v580_v42, 3  ;;  %v9322_v0 = vor.u32 %v11756_v58, %v9321_v59  ;;  %v1122_v23 = vshll.u32 %v13085_v7, 16 }
  0x66   : > { %1238 = vmatpush.bf16.msrb.mxu2 %v9234_v6  ;;  %1267 = vmatpush.bf16.msrb.mxu3 %v9238_v13  ;;  %v9326_v48 = vor.u32 %v11755_v60, %v9323_v61  ;;  %v12360_v6 = vld [vmem:[%s13028_s29 + $0x8] sm:$0xff]   ;;  %v9313_v9 = vld [vmem:[#allocation4 + $0x250] sm:$0xf]  ;;  %v11754_v50 = vld [vmem:[#allocation4 + $0x254] sm:$0xf0]  ;;  %v1126_v40 = vshrl.u32 %v13085_v7, 16 }
  0x67   : > { %v1117_v20 = vshll.u32 %v12360_v6, 16  ;;  %v9314_v11 = vor.u32 %v11754_v50, %v9313_v9  ;;  %v9315_v13 = vld [vmem:[#allocation4 + $0x258] sm:$0xf0]  ;;  %v9305_v14 = vld [vmem:[#allocation4 + $0x240] sm:$0xf]  ;;  %v1115_v21 = vshrl.u32 %v12360_v6, 16 }
  0x68   : > { %995 = vmatpush.bf16.msrb.mxu0 %v9150_v63  ;;  %1024 = vmatpush.bf16.msrb.mxu1 %v9154_v1  ;;  %v585_v63 = vrot.slane %v583_v52, 4  ;;  %v732_v1 = vpack.c.b16 %v731_v53, %v731_v53  ;;  %v11752_v15 = vld [vmem:[#allocation4 + $0x244] sm:$0xf0]  ;;  %v9307_v18 = vld [vmem:[#allocation4 + $0x248] sm:$0xf0]  ;;  %v1124_v26 = vrot.slane %v1122_v23, 1 }
  0x69   : > { %v9306_v19 = vor.u32 %v11752_v15, %v9305_v14  ;;  %v1119_v22 = vrot.slane %v1117_v20, 1  ;;  %vm1113_vm2 = vsmask.f32 7424  ;;  %v11749_v31 = vld [vmem:[#allocation4 + $0x234] sm:$0xf]  ;;  %v13097_v42 = vld [vmem:[%s13028_s29 + $0x20] sm:$0xff] }
  0x6a   : > { %1239 = vmatpush.bf16.msrb.mxu2 %v9226_v17  ;;  %1268 = vmatpush.bf16.msrb.mxu3 %v9230_v27  ;;  %v586_v2 = vor.u32 %v585_v63, %v582_v62  ;;  %v741_v3 = vrot.slane %v732_v1, 3  ;;  %v11751_v17 = vld [vmem:[#allocation4 + $0x244] sm:$0xf]  ;;  %v9289_v34 = vld [vmem:[#allocation4 + $0x220] sm:$0xf]  ;;  %v1128_v45 = vor.u32 %v1126_v40, %v1124_v26  ;;  %v12361_v49 = vld [vmem:[%s13028_s29 + $0x10] sm:$0xff]  }
  0x6b   : > { %v9310_v24 = vor.u32 %v11751_v17, %v9307_v18  ;;  %v1120_v25 = vor.u32 %v1119_v22, %v1115_v21  ;;  %v11748_v35 = vld [vmem:[#allocation4 + $0x224] sm:$0xf0]  ;;  %v9281_v52 = vld [vmem:[#allocation4 + $0x210] sm:$0xf]  ;;  %v11746_v53 = vld [vmem:[#allocation4 + $0x214] sm:$0xf0] }
  0x6c   : > { %996 = vmatpush.bf16.msrb.mxu0 %v9142_v10  ;;  %1025 = vmatpush.bf16.msrb.mxu1 %v9146_v16  ;;  %v587_v4 = vsel %vm543_vm0, %v577_v33, %v586_v2  ;;  %v742_v5 = vsel %vm733_vm1, %v739_v37, %v741_v3  ;;  %v11753_v10 = vld [vmem:[#allocation4 + $0x254] sm:$0xf]  ;;  %v9299_v33 = vld [vmem:[#allocation4 + $0x238] sm:$0xf0]  ;;  %v11747_v37 = vld [vmem:[#allocation4 + $0x224] sm:$0xf]  ;;  %v9282_v55 = vor.u32 %v11746_v53, %v9281_v52 }
  0x6d   : > { %v9318_v16 = vor.u32 %v11753_v10, %v9315_v13  ;;  %v1125_v27 = vsel %vm1113_vm2, %v1120_v25, %v1124_v26  ;;  %v9302_v36 = vor.u32 %v11749_v31, %v9299_v33  ;;  %v11745_v54 = vld [vmem:[#allocation4 + $0x214] sm:$0xf]  ;;  %v9283_v56 = vld [vmem:[#allocation4 + $0x218] sm:$0xf0]  ;;  %v11744_v57 = vld [vmem:[#allocation4 + $0x204] sm:$0xf0] }
  0x6e   : > { %1240 = vmatpush.bf16.msrb.mxu2 %v9218_v30  ;;  %1269 = vmatpush.bf16.msrb.mxu3 %v9222_v38  ;;  %v11750_v30 = vld [vmem:[#allocation4 + $0x234] sm:$0xf0]  ;;  %v9291_v38 = vld [vmem:[#allocation4 + $0x228] sm:$0xf0]  ;;  %v9286_v59 = vor.u32 %v11745_v54, %v9283_v56  ;;  %v11743_v58 = vld [vmem:[#allocation4 + $0x204] sm:$0xf] }
  0x6f   : > { %v1138_v62 = vshll.u32 %v13097_v42, 16  ;;  %v12364_v10 = vld [vmem:[%s13028_s29 + $0x8] sm:$0xf0]  ;;  %v1331_v14 = vrot.slane %v13085_v7, 1  ;;  %s8872_s22 = sshll.u32 %s15670_s4, 4  ;;  %s8860_s21 = scalar_lea.sflag [#allocation6], %s460_s26  ;;  %s8873_s22 = int_to_ptr.vmem [resolvable:$true] %s8872_s22 }
  0x70   : > { %997 = vmatpush.bf16.msrb.mxu0 %v9134_v28  ;;  %1026 = vmatpush.bf16.msrb.mxu1 %v9138_v29  ;;  %v13090_v28 = vld [vmem:[%s13028_s29 + $0x18] sm:$0xff]  ;;  %v9297_v29 = vld [vmem:[#allocation4 + $0x230] sm:$0xf]  ;;  %s12783_s14 = scalar_lea.hbm %s15756_s11, 128 }
  0x71   : > { %v9298_v32 = vor.u32 %v11750_v30, %v9297_v29  ;;  %v1130_v43 = vshll.u32 %v13090_v28, 16  ;;  %v1134_v61 = vshrl.u32 %v13090_v28, 16  ;;  %v1140_v1 = vrot.slane %v1138_v62, 1 }
  0x72   : > { %1241 = vmatpush.bf16.msrb.mxu2 %v9210_v39  ;;  %1270 = vmatpush.bf16.msrb.mxu3 %v9214_v51  ;;  %v9290_v39 = vor.u32 %v11748_v35, %v9289_v34 }
  0x73   : > { %690 = vmatmul.bf16.gmra.mxu0 %v578_v44  ;;  %719 = vmatmul.bf16.gmra.mxu1 %v578_v44  ;;  %v9294_v44 = vor.u32 %v11747_v37, %v9291_v38 }
  0x74   : > { %1423 = vmatpush.bf16.msra.mxu0 %v9330_v41  ;;  %1452 = vmatpush.bf16.msra.mxu1 %v9334_v46  ;;  %v9273_v41 = vld [vmem:[#allocation4 + $0x200] sm:$0xf]  ;;  %v9275_v46 = vld [vmem:[#allocation4 + $0x208] sm:$0xf0] }
  0x75   : > { %845 = vmatmul.bf16.gmra.mxu2 %v740_v47  ;;  %874 = vmatmul.bf16.gmra.mxu3 %v740_v47  ;;  %v1132_v47 = vrot.slane %v1130_v43, 1  ;;  %v9274_v60 = vor.u32 %v11744_v57, %v9273_v41  ;;  %v9278_v63 = vor.u32 %v11743_v58, %v9275_v46  ;;  %v9393_v46 = vld [vmem:[#allocation7 + $0x170] sm:$0xf] }
  0x77   : > { %v1133_v51 = vsel %vm1113_vm2, %v1128_v45, %v1132_v47 }
  0x78   : > { %1424 = vmatpush.bf16.msra.mxu0 %v9322_v0  ;;  %1453 = vmatpush.bf16.msra.mxu1 %v9326_v48  ;;  %v1136_v0 = vor.u32 %v1134_v61, %v1132_v47  ;;  %v1072_v48 = vld [vmem:[%s13028_s29 + $0x28] sm:$0x1]  ;;  %v9457_v61 = vld [vmem:[#allocation7 + $0x1f0] sm:$0xf] }
  0x79   : > { %v1107_v3 = vunpack.c.l.b16 %v1072_v48 }
  0x7a   : > { %v1141_v2 = vsel %vm1113_vm2, %v1136_v0, %v1140_v1 }
  0x7c   : > { %1425 = vmatpush.bf16.msra.mxu0 %v9314_v11  ;;  %1454 = vmatpush.bf16.msra.mxu1 %v9318_v16  ;;  %v12365_v11 = vld [vmem:[%s13028_s29 + $0x8] sm:$0xe]  ;;  %s8871_s29 = scalar_lea.hbm %s15756_s11, %s12343_s17 }
  0x7d   : > { %v12366_v13 = vor.u32 %v12365_v11, %v12364_v10  ;;  %s8874_s30 = sshll.u32 %s8871_s29, 4  ;;  %s8875_s30 = int_to_ptr.hbm [resolvable:$true] %s8874_s30 }
  0x7e   : > { %s12777_s12 = sshra.s32 %s8875_s30, 4  ;;  %s12778_s12 = int_to_ptr.hbm [resolvable:$true] %s12777_s12 }
  0x7f   : > { %s12779_s2 = scalar_lea.hbm %s12778_s12, 64  ;;  %p12784_p3 = scmp.lt.s32.totalorder %s12778_s12, %s15756_s11 }
  0x80   : > { %1426 = vmatpush.bf16.msra.mxu0 %v9306_v19  ;;  %1455 = vmatpush.bf16.msra.mxu1 %v9310_v24  ;;  %v1333_v19 = vrot.slane %v13090_v28, 1  ;;  %p12780_p0 = scmp.ne.s32.totalorder %s12778_s12, %s12779_s2  ;;  %p12785_p4 = scmp.lt.s32.totalorder %s12783_s14, %s12779_s2 }
  0x82   : > { %v1334_v22 = vsel %vm1329_vm3, %v1331_v14, %v1333_v19  ;;  %p12781_p1 = pnand %p12780_p0, %p12956_p5  ;;  %p12786_p7 = por %p12785_p4, %p12784_p3 }
  0x83   : > { %695 = vmatmul.bf16.gmra.mxu0 %v587_v4  ;;  %724 = vmatmul.bf16.gmra.mxu1 %v587_v4  ;;  %v1112_v4 = vpack.c.b16 %v1107_v3, %v1107_v3  ;;  %v9395_v3 = vld [vmem:[#allocation7 + $0x178] sm:$0xf0] }
  0x84   : > { %1427 = vmatpush.bf16.msra.mxu0 %v9298_v32  ;;  %1456 = vmatpush.bf16.msra.mxu1 %v9302_v36  ;;  %p12782_p2 = pneg %p12781_p1 }
  0x85   : > { %850 = vmatmul.bf16.gmra.mxu2 %v742_v5  ;;  %879 = vmatmul.bf16.gmra.mxu3 %v742_v5  ;;  %v1142_v5 = vshrl.u32 %v13097_v42, 16  ;;  %v1337_v37 = vrot.slane %v1112_v4, 1 }
  0x86   : > { %p12787_p8 = pnand %p12786_p7, %p12782_p2 }
  0x87   : > { %v1144_v20 = vor.u32 %v1142_v5, %v1140_v1 }
  0x88   : > { %1428 = vmatpush.bf16.msra.mxu0 %v9290_v39  ;;  %1457 = vmatpush.bf16.msra.mxu1 %v9294_v44 }
  0x8c   : > { %1429 = vmatpush.bf16.msra.mxu0 %v9282_v55  ;;  %1458 = vmatpush.bf16.msra.mxu1 %v9286_v59 }
  0x90   : > { %1430 = vmatpush.bf16.msra.mxu0 %v9274_v60  ;;  %1459 = vmatpush.bf16.msra.mxu1 %v9278_v63  ;;  %v11806_v60 = vld [vmem:[#allocation7 + $0x174] sm:$0xf0] }
  0x91   : > { %v9394_v62 = vor.u32 %v11806_v60, %v9393_v46  ;;  %v11822_v63 = vld [vmem:[#allocation7 + $0x1f4] sm:$0xf0]  ;;  %v9451_v46 = vld [vmem:[#allocation7 + $0x1e8] sm:$0xf0] }
  0x92   : > { %v9458_v0 = vor.u32 %v11822_v63, %v9457_v61 }
  0x93   : > { %998 = vmatmul.bf16.vlgmr.msrb.gmra.mxu0 %v12360_v6  ;;  %1027 = vmatmul.bf16.vlgmr.msrb.gmra.mxu1 %v12360_v6  ;;  %v1146_v6 = vshll.u32 %v1112_v4, 16  ;;  %v11821_v4 = vld [vmem:[#allocation7 + $0x1f4] sm:$0xf] }
  0x94   : > { %1919 = vmatpush.bf16.msra.mxu2 %v9394_v62  ;;  %1948 = vmatpush.bf16.msra.mxu3 %v9458_v0 }
  0x95   : > { %1242 = vmatmul.bf16.vlgmr.msrb.gmra.mxu2 %v1125_v27  ;;  %1271 = vmatmul.bf16.vlgmr.msrb.gmra.mxu3 %v1125_v27  ;;  %v1148_v9 = vrot.slane %v1146_v6, 1  ;;  %v1335_v27 = vrot.slane %v13097_v42, 1  ;;  %v9459_v6 = vld [vmem:[#allocation7 + $0x1f8] sm:$0xf0] }
  0x96   : > { %v9462_v10 = vor.u32 %v11821_v4, %v9459_v6  ;;  %v9377_v4 = vld [vmem:[#allocation7 + $0x150] sm:$0xf] }
  0x97   : > { %v1149_v50 = vsel %vm1113_vm2, %v1144_v20, %v1148_v9  ;;  %v1336_v31 = vsel %vm1329_vm3, %v1333_v19, %v1335_v27  ;;  %v1338_v39 = vsel %vm1329_vm3, %v1335_v27, %v1337_v37  ;;  %v9385_v20 = vld [vmem:[#allocation7 + $0x160] sm:$0xf]  ;;  %v11804_v9 = vld [vmem:[#allocation7 + $0x164] sm:$0xf0]  ;;  %v11803_v27 = vld [vmem:[#allocation7 + $0x164] sm:$0xf] }
  0x98   : > { %v9386_v11 = vor.u32 %v11804_v9, %v9385_v20  ;;  %2006 = vmatpush.bf16.msrb.mxu1 %v9462_v10  ;;  %v11819_v37 = vld [vmem:[#allocation7 + $0x1e4] sm:$0xf]  ;;  %v9441_v6 = vld [vmem:[#allocation7 + $0x1d0] sm:$0xf] }
  0x99   : > { %v9454_v60 = vor.u32 %v11819_v37, %v9451_v46  ;;  %v11817_v37 = vld [vmem:[#allocation7 + $0x1d4] sm:$0xf] }
  0x9a   : > { %1920 = vmatpush.bf16.msra.mxu2 %v9386_v11  ;;  %v11818_v11 = vld [vmem:[#allocation7 + $0x1d4] sm:$0xf0] }
  0x9c   : > { %2007 = vmatpush.bf16.msrb.mxu1 %v9454_v60  ;;  %v9369_v60 = vld [vmem:[#allocation7 + $0x140] sm:$0xf] }
  0xa3   : > { %1003 = vmatmul.bf16.gmra.mxu0 %v12361_v49  ;;  %1032 = vmatmul.bf16.gmra.mxu1 %v12361_v49 }
  0xa5   : > { %1247 = vmatmul.bf16.gmra.mxu2 %v1133_v51  ;;  %1276 = vmatmul.bf16.gmra.mxu3 %v1133_v51 }
  0xb3   : > { %1008 = vmatmul.bf16.gmra.mxu0 %v13051_v8  ;;  %1037 = vmatmul.bf16.gmra.mxu1 %v13051_v8  ;;  %v1330_v8 = vrot.slane %v12366_v13, 1  ;;  %v9449_v13 = vld [vmem:[#allocation7 + $0x1e0] sm:$0xf] }
  0xb5   : > { %1252 = vmatmul.bf16.gmra.mxu2 %v1141_v2  ;;  %1281 = vmatmul.bf16.gmra.mxu3 %v1141_v2  ;;  %v1332_v16 = vsel %vm1329_vm3, %v1330_v8, %v1331_v14  ;;  %v11805_v2 = vld [vmem:[#allocation7 + $0x174] sm:$0xf]  ;;  %v11820_v8 = vld [vmem:[#allocation7 + $0x1e4] sm:$0xf0] }
  0xb6   : > { %v9398_v5 = vor.u32 %v11805_v2, %v9395_v3  ;;  %v12855_v2 = vmov 0  }
  0xb7   : > { %470 = vst [vmem:[#allocation2 + $0x8] sm:$0xff] %v12855_v2 }
  0xb8   : > { %1977 = vmatpush.bf16.msrb.mxu0 %v9398_v5  ;;  %471 = vst [vmem:[#allocation2 + $0x50] sm:$0xff] %v12855_v2  ;;  %v11802_v5 = vld [vmem:[#allocation7 + $0x154] sm:$0xf0] }
  0xb9   : > { %474 = vst [vmem:[#allocation3 + $0x8] sm:$0xff] %v12855_v2  ;;  %v9378_v10 = vor.u32 %v11802_v5, %v9377_v4  ;;  %v11816_v4 = vld [vmem:[#allocation7 + $0x1c4] sm:$0xf0]  ;;  %v11799_v5 = vld [vmem:[#allocation7 + $0x144] sm:$0xf] }
  0xba   : > { %475 = vst [vmem:[#allocation3 + $0x50] sm:$0xff] %v12855_v2 }
  0xbb   : > { %1921 = vmatpush.bf16.msra.mxu2 %v9378_v10 }
  0xc3   : > { %1013 = vmatmul.bf16.gmra.mxu0 %v13055_v12  ;;  %1042 = vmatmul.bf16.gmra.mxu1 %v13055_v12 }
  0xc5   : > { %1257 = vmatmul.bf16.gmra.mxu2 %v1149_v50  ;;  %1286 = vmatmul.bf16.gmra.mxu3 %v1149_v50 }
  0xd0   : > { %v13112_v15 = vpop.f32.mrf.mxu0  ;;  %v13115_v17 = vpop.f32.mrf.mxu1 }
  0xd3   : > { %1431 = vmatmul.bf16.vlgmr.msra.gmra.mxu0 %v1332_v16  ;;  %1460 = vmatmul.bf16.vlgmr.msra.gmra.mxu1 %v1332_v16  ;;  %v9450_v16 = vor.u32 %v11820_v8, %v9449_v13  ;;  %v11801_v13 = vld [vmem:[#allocation7 + $0x154] sm:$0xf]  ;;  %v9379_v8 = vld [vmem:[#allocation7 + $0x158] sm:$0xf0] }
  0xd5   : > { %1949 = vmatpush.bf16.msra.mxu3 %v9450_v16 }
  0xd8   : > { %v13117_v18 = vpop.f32.mrf.mxu0  ;;  %v13119_v12 = vpop.f32.mrf.mxu1 }
  0xd9   : > { %v13127_v23 = vpop.f32.mrf.mxu2  ;;  %v13129_v24 = vpop.f32.mrf.mxu3 }
  0xe0   : > { %v13122_v21 = vpop.f32.mrf.mxu0  ;;  %v13125_v7 = vpop.f32.mrf.mxu1 }
  0xe1   : > { %v13136_v29 = vpop.f32.mrf.mxu2  ;;  %v13138_v28 = vpop.f32.mrf.mxu3 }
  0xe3   : > { %1436 = vmatmul.bf16.gmra.mxu0 %v1334_v22  ;;  %1465 = vmatmul.bf16.gmra.mxu1 %v1334_v22 }
  0xe8   : > { %v13131_v25 = vpop.f32.mrf.mxu0  ;;  %v13133_v26 = vpop.f32.mrf.mxu1 }
  0xe9   : > { %v13147_v34 = vpop.f32.mrf.mxu2  ;;  %v13151_v36 = vpop.f32.mrf.mxu3 }
  0xf0   : > { %v13140_v30 = vpop.f32.mrf.mxu0  ;;  %v13143_v32 = vpop.f32.mrf.mxu1 }
  0xf1   : > { %v13158_v43 = vpop.f32.mrf.mxu2  ;;  %v13160_v44 = vpop.f32.mrf.mxu3 }
  0xf3   : > { %1441 = vmatmul.bf16.gmra.mxu0 %v1336_v31  ;;  %1470 = vmatmul.bf16.gmra.mxu1 %v1336_v31  ;;  %v9387_v31 = vld [vmem:[#allocation7 + $0x168] sm:$0xf0] }
  0xf8   : > { %v13145_v33 = vpop.f32.mrf.mxu0  ;;  %v13149_v35 = vpop.f32.mrf.mxu1 }
  0xf9   : > { %v13166_v49 = vpop.f32.mrf.mxu2  ;;  %v13168_v51 = vpop.f32.mrf.mxu3 }
 0x100   : > { %v13153_v38 = vpop.f32.mrf.mxu0  ;;  %v13156_v40 = vpop.f32.mrf.mxu1 }
 0x101   : > { %v13174_v53 = vpop.f32.mrf.mxu2  ;;  %v13176_v54 = vpop.f32.mrf.mxu3 }
 0x103   : > { %1446 = vmatmul.bf16.gmra.mxu0 %v1338_v39  ;;  %1475 = vmatmul.bf16.gmra.mxu1 %v1338_v39  ;;  %v9390_v39 = vor.u32 %v11803_v27, %v9387_v31  ;;  %v9442_v27 = vor.u32 %v11818_v11, %v9441_v6  ;;  %v9382_v31 = vor.u32 %v11801_v13, %v9379_v8  ;;  %v9435_v6 = vld [vmem:[#allocation7 + $0x1c8] sm:$0xf0]  ;;  %v9361_v8 = vld [vmem:[#allocation7 + $0x130] sm:$0xf] }
 0x105   : > { %1978 = vmatpush.bf16.msrb.mxu0 %v9390_v39  ;;  %v9443_v39 = vld [vmem:[#allocation7 + $0x1d8] sm:$0xf0]  ;;  %1950 = vmatpush.bf16.msra.mxu3 %v9442_v27  ;;  %v11798_v27 = vld [vmem:[#allocation7 + $0x134] sm:$0xf0] }
 0x106   : > { %v9446_v46 = vor.u32 %v11817_v37, %v9443_v39  ;;  %v11797_v37 = vld [vmem:[#allocation7 + $0x134] sm:$0xf]  ;;  %v9363_v39 = vld [vmem:[#allocation7 + $0x138] sm:$0xf0] }
 0x108   : > { %v13162_v45 = vpop.f32.mrf.mxu0  ;;  %v13164_v47 = vpop.f32.mrf.mxu1  ;;  %2008 = vmatpush.bf16.msrb.mxu1 %v9446_v46  ;;  %v9366_v46 = vor.u32 %v11797_v37, %v9363_v39 }
 0x109   : > { %15775 = vst [vmem:[#allocation23_spill] sm:$0xff] %v13164_v47  ;;  %v13184_v57 = vpop.f32.mrf.mxu2  ;;  %v13188_v58 = vpop.f32.mrf.mxu3  ;;  %1979 = vmatpush.bf16.msrb.mxu0 %v9382_v31  ;;  %v9433_v47 = vld [vmem:[#allocation7 + $0x1c0] sm:$0xf] }
 0x110   : > { %v13170_v42 = vpop.f32.mrf.mxu0  ;;  %v13172_v52 = vpop.f32.mrf.mxu1 }
 0x111   : > { %v13194_v50 = vpop.f32.mrf.mxu2  ;;  %v13196_v14 = vpop.f32.mrf.mxu3 }
 0x112   : > { %15776 = vst [vmem:[#allocation24_spill] sm:$0xff] %v13196_v14  ;;  %v11800_v14 = vld [vmem:[#allocation7 + $0x144] sm:$0xf0] }
 0x118   : > { %v13178_v55 = vpop.f32.mrf.mxu0  ;;  %v13180_v56 = vpop.f32.mrf.mxu1 }
 0x119   : > { %v13202_v61 = vpop.f32.mrf.mxu2  ;;  %v13204_v62 = vpop.f32.mrf.mxu3 }
 0x120   : > { %v13182_v41 = vpop.f32.mrf.mxu0  ;;  %v13186_v59 = vpop.f32.mrf.mxu1 }
 0x121   : > { %v13210_v3 = vpop.f32.mrf.mxu2  ;;  %v13212_v20 = vpop.f32.mrf.mxu3 }
 0x128   : > { %v13190_v1 = vpop.f32.mrf.mxu0  ;;  %v13192_v48 = vpop.f32.mrf.mxu1 }
 0x129   : > { %v13220_v13 = vpop.f32.mrf.mxu2  ;;  %v13224_v31 = vpop.f32.mrf.mxu3 }
 0x130   : > { %v13198_v19 = vpop.f32.mrf.mxu0  ;;  %v13200_v22 = vpop.f32.mrf.mxu1 }
 0x131   : > { %15777 = vst [vmem:[#allocation25_spill] sm:$0xff] %v13200_v22 }
 0x138   : > { %v13206_v63 = vpop.f32.mrf.mxu0  ;;  %v13208_v0 = vpop.f32.mrf.mxu1 }
 0x139   : > { %15778 = vst [vmem:[#allocation26_spill] sm:$0xff] %v13206_v63  ;;  %v9434_v63 = vor.u32 %v11816_v4, %v9433_v47  ;;  %v9362_v47 = vor.u32 %v11798_v27, %v9361_v8  ;;  %v9427_v4 = vld [vmem:[#allocation7 + $0x1b8] sm:$0xf0]  ;;  %v11796_v8 = vld [vmem:[#allocation7 + $0x124] sm:$0xf0] }
 0x13a   : > { %15779 = vst [vmem:[#allocation27_spill] sm:$0xff] %v13208_v0  ;;  %v9371_v0 = vld [vmem:[#allocation7 + $0x148] sm:$0xf0] }
 0x13b   : > { %v9374_v22 = vor.u32 %v11799_v5, %v9371_v0  ;;  %1951 = vmatpush.bf16.msra.mxu3 %v9434_v63  ;;  %v11814_v0 = vld [vmem:[#allocation7 + $0x1b4] sm:$0xf0]  ;;  %v1497_v63 = vld [vmem:[%s15751_s6] sm:$0x3] }
 0x13c   : > { %v13236_v37 = vperm.slane %v1497_v63, 0 }
 0x13d   : > { %1980 = vmatpush.bf16.msrb.mxu0 %v9374_v22  ;;  %v866_v22 = vadd.f32 %v13129_v24, %v13115_v17  ;;  %v9355_v17 = vld [vmem:[#allocation7 + $0x128] sm:$0xf0] }
 0x140   : > { %v13214_v9 = vpop.f32.mrf.mxu0  ;;  %v13216_v16 = vpop.f32.mrf.mxu1 }
 0x141   : > { %15780 = vst [vmem:[#allocation28_spill] sm:$0xff] %v13214_v9  ;;  %v9370_v9 = vor.u32 %v11800_v14, %v9369_v60  ;;  %v9425_v14 = vld [vmem:[#allocation7 + $0x1b0] sm:$0xf]  ;;  %v11813_v60 = vld [vmem:[#allocation7 + $0x1b4] sm:$0xf]  ;;  %1981 = vmatpush.bf16.msrb.mxu0 %v9366_v46  ;;  %v13239_v46 = vperm.slane %v1497_v63, 1  ;;  %v13243_v63 = vpop.f32.mrf.mxu2 }
 0x142   : > { %15781 = vst [vmem:[#allocation29_spill] sm:$0xff] %v13216_v16  ;;  %v11815_v16 = vld [vmem:[#allocation7 + $0x1c4] sm:$0xf]  ;;  %v9430_v5 = vor.u32 %v11813_v60, %v9427_v4 }
 0x143   : > { %1922 = vmatpush.bf16.msra.mxu2 %v9370_v9  ;;  %v9438_v10 = vor.u32 %v11815_v16, %v9435_v6  ;;  %v837_v9 = vadd.f32 %v13127_v23, %v13112_v15  ;;  %v9426_v16 = vor.u32 %v11814_v0, %v9425_v14  ;;  %v9417_v15 = vld [vmem:[#allocation7 + $0x1a0] sm:$0xf]  ;;  %v1049_v23 = vadd.f32 %v13172_v52, %v866_v22  ;;  %v11812_v14 = vld [vmem:[#allocation7 + $0x1a4] sm:$0xf0]  ;;  %v11795_v0 = vld [vmem:[#allocation7 + $0x124] sm:$0xf] }
 0x144   : > { %v9358_v39 = vor.u32 %v11795_v0, %v9355_v17  ;;  %v11811_v60 = vld [vmem:[#allocation7 + $0x1a4] sm:$0xf]  ;;  %v9347_v0 = vld [vmem:[#allocation7 + $0x118] sm:$0xf0] }
 0x145   : > { %2009 = vmatpush.bf16.msrb.mxu1 %v9438_v10  ;;  %v1048_v6 = vadd.f32 %v13170_v42, %v837_v9  ;;  %1952 = vmatpush.bf16.msra.mxu3 %v9426_v16  ;;  %v9353_v10 = vld [vmem:[#allocation7 + $0x120] sm:$0xf]  ;;  %v9419_v42 = vld [vmem:[#allocation7 + $0x1a8] sm:$0xf0]  ;;  %v1293_v9 = vadd.f32 %v13204_v62, %v1049_v23  ;;  %v839_v62 = vadd.f32 %v13136_v29, %v13117_v18  ;;  %v11792_v29 = vld [vmem:[#allocation7 + $0x104] sm:$0xf0] }
 0x146   : > { %v9354_v27 = vor.u32 %v11796_v8, %v9353_v10  ;;  %v9422_v52 = vor.u32 %v11811_v60, %v9419_v42  ;;  %1982 = vmatpush.bf16.msrb.mxu0 %v9358_v39  ;;  %v11794_v10 = vld [vmem:[#allocation7 + $0x114] sm:$0xf0]  ;;  %v868_v39 = vadd.f32 %v13138_v28, %v13119_v12  ;;  %v13248_v60 = vpop.f32.mrf.mxu3  ;;  %v9337_v18 = vld [vmem:[#allocation7 + $0x100] sm:$0xf]  ;;  %v11808_v12 = vld [vmem:[#allocation7 + $0x184] sm:$0xf0] }
 0x147   : > { %1923 = vmatpush.bf16.msra.mxu2 %v9362_v47  ;;  %v1292_v24 = vadd.f32 %v13202_v61, %v1048_v6  ;;  %v9418_v47 = vor.u32 %v11812_v14, %v9417_v15  ;;  %v9409_v61 = vld [vmem:[#allocation7 + $0x190] sm:$0xf]  ;;  %v11810_v15 = vld [vmem:[#allocation7 + $0x194] sm:$0xf0]  ;;  %v11793_v14 = vld [vmem:[#allocation7 + $0x114] sm:$0xf] }
 0x148   : > { %v13218_v11 = vpop.f32.mrf.mxu0  ;;  %v13222_v2 = vpop.f32.mrf.mxu1  ;;  %v9350_v17 = vor.u32 %v11793_v14, %v9347_v0  ;;  %v11791_v28 = vld [vmem:[#allocation7 + $0x104] sm:$0xf] }
 0x149   : > { %2010 = vmatpush.bf16.msrb.mxu1 %v9430_v5  ;;  %1953 = vmatpush.bf16.msra.mxu3 %v9418_v47  ;;  %v9345_v5 = vld [vmem:[#allocation7 + $0x110] sm:$0xf]  ;;  %v9411_v47 = vld [vmem:[#allocation7 + $0x198] sm:$0xf0] }
 0x14a   : > { %v9346_v8 = vor.u32 %v11794_v10, %v9345_v5  ;;  %1983 = vmatpush.bf16.msrb.mxu0 %v9350_v17  ;;  %v9339_v5 = vld [vmem:[#allocation7 + $0x108] sm:$0xf0]  ;;  %v842_v17 = vadd.f32 %v13147_v34, %v13122_v21 }
 0x14b   : > { %1924 = vmatpush.bf16.msra.mxu2 %v9354_v27  ;;  %v9410_v27 = vor.u32 %v11810_v15, %v9409_v61  ;;  %v1551_v21 = vld [vmem:[#allocation2 + $0x8] sm:$0x88] }
 0x14d   : > { %2011 = vmatpush.bf16.msrb.mxu1 %v9422_v52  ;;  %1954 = vmatpush.bf16.msra.mxu3 %v9410_v27  ;;  %v9401_v52 = vld [vmem:[#allocation7 + $0x180] sm:$0xf] }
 0x14e   : > { %v9402_v61 = vor.u32 %v11808_v12, %v9401_v52  ;;  %v1635_v12 = vunpack.c.l.b16 %v1551_v21 }
 0x14f   : > { %1925 = vmatpush.bf16.msra.mxu2 %v9346_v8  ;;  %v11807_v8 = vld [vmem:[#allocation7 + $0x184] sm:$0xf] }
 0x150   : > { %v1432_v16 = vpop.f32.mrf.mxu0  ;;  %v1461_v22 = vpop.f32.mrf.mxu1 }
 0x151   : > { %v1481_v4 = vadd.f32 %v1432_v16, %v1292_v24  ;;  %v1482_v6 = vadd.f32 %v1461_v22, %v1293_v9  ;;  %v11809_v24 = vld [vmem:[#allocation7 + $0x194] sm:$0xf]  ;;  %v1050_v16 = vadd.f32 %v13178_v55, %v839_v62  ;;  %v9338_v22 = vor.u32 %v11792_v29, %v9337_v18  ;;  %v9403_v55 = vld [vmem:[#allocation7 + $0x188] sm:$0xf0]  ;;  %1955 = vmatpush.bf16.msra.mxu3 %v9402_v61  ;;  %v1282_v18 = vpop.f32.mrf.mxu3 }
 0x152   : > { %v9414_v9 = vor.u32 %v11809_v24, %v9411_v47  ;;  %v9406_v0 = vor.u32 %v11807_v8, %v9403_v55  ;;  %v871_v47 = vadd.f32 %v13151_v36, %v13125_v7  ;;  %v844_v7 = vadd.f32 %v13158_v43, %v13131_v25 }
 0x153   : > { %v1503_v23 = vadd.f32 %v13236_v37, %v1481_v4  ;;  %v1504_v42 = vadd.f32 %v13239_v46, %v1482_v6  ;;  %v1051_v4 = vadd.f32 %v13180_v56, %v868_v39  ;;  %v1294_v10 = vadd.f32 %v13210_v3, %v1050_v16  ;;  %1926 = vmatpush.bf16.msra.mxu2 %v9338_v22 }
 0x154   : > { %2012 = vmatpush.bf16.msrb.mxu1 %v9414_v9  ;;  %v9342_v6 = vor.u32 %v11791_v28, %v9339_v5  ;;  %v1052_v39 = vadd.f32 %v13182_v41, %v842_v17  ;;  %v1053_v16 = vadd.f32 %v13186_v59, %v871_v47  ;;  %v873_v41 = vadd.f32 %v13160_v44, %v13133_v26 }
 0x155   : > { %12485 = vtanh.f32 %v1503_v23  ;;  %v1295_v15 = vadd.f32 %v13212_v20, %v1051_v4  ;;  %v876_v25 = vadd.f32 %v13168_v51, %v13143_v32  ;;  %v849_v43 = vadd.f32 %v13174_v53, %v13145_v33 }
 0x156   : > { %12487 = vtanh.f32 %v1504_v42  ;;  %1984 = vmatpush.bf16.msrb.mxu0 %v9342_v6  ;;  %v1253_v42 = vpop.f32.mrf.mxu2  ;;  %v1296_v29 = vadd.f32 %v13220_v13, %v1052_v39  ;;  %v1297_v34 = vadd.f32 %v13224_v31, %v1053_v16  ;;  %v847_v13 = vadd.f32 %v13166_v49, %v13140_v30 }
 0x157   : > { %v878_v26 = vadd.f32 %v13176_v54, %v13149_v35  ;;  %v852_v6 = vadd.f32 %v13184_v57, %v13153_v38  ;;  %v1054_v30 = vadd.f32 %v13190_v1, %v844_v7  ;;  %v881_v8 = vadd.f32 %v13188_v58, %v13156_v40  ;;  %v15782_v1 = vld [vmem:[#allocation25_spill] sm:$0xff] }
 0x158   : > { %v1434_v14 = vpop.f32.mrf.mxu0  ;;  %v1463_v23 = vpop.f32.mrf.mxu1  ;;  %2013 = vmatpush.bf16.msrb.mxu1 %v9406_v0  ;;  %v1055_v32 = vadd.f32 %v13192_v48, %v873_v41  ;;  %v854_v57 = vadd.f32 %v13194_v50, %v13162_v45  ;;  %v1056_v58 = vadd.f32 %v13198_v19, %v847_v13  ;;  %v1057_v48 = vadd.f32 %v15782_v1, %v876_v25 }
 0x159   : > { %v1483_v62 = vadd.f32 %v1434_v14, %v1294_v10  ;;  %v1484_v56 = vadd.f32 %v1463_v23, %v1295_v15  ;;  %v1636_v10 = vunpack.c.h.b16 %v1551_v21  ;;  %v1298_v35 = vadd.f32 %v13243_v63, %v1054_v30  ;;  %v1284_v55 = vpop.f32.mrf.mxu3  ;;  %v15783_v15 = vld [vmem:[#allocation26_spill] sm:$0xff] }
 0x15a   : > { %v1299_v40 = vadd.f32 %v13248_v60, %v1055_v32  ;;  %v1058_v14 = vadd.f32 %v15783_v15, %v849_v43  ;;  %v15785_v60 = vld [vmem:[#allocation23_spill] sm:$0xff]  ;;  %v13338_v25 = vadd.f32 %v13218_v11, %v854_v57  ;;  %v11790_v30 = vld [vmem:[#allocation7 + $0xf4] sm:$0xf0]  ;;  %v9587_v57 = vld [vmem:[#allocation7 + $0xf8] sm:$0xf0] }
 0x15b   : > { %v12486_v27 = vpop.eup %12485  ;;  %v1505_v3 = vadd.f32 %v13236_v37, %v1483_v62  ;;  %v1506_v20 = vadd.f32 %v13239_v46, %v1484_v56 }
 0x15c   : > { %v12488_v24 = vpop.eup %12487 }
 0x15d   : > { %v1535_v9 = vpack.c.bf16 %v12488_v24, %v12486_v27  ;;  %12489 = vtanh.f32 %v1505_v3  ;;  %v15784_v27 = vld [vmem:[#allocation27_spill] sm:$0xff]  ;;  %v15786_v24 = vld [vmem:[#allocation24_spill] sm:$0xff] }
 0x15e   : > { %12491 = vtanh.f32 %v1506_v20  ;;  %v1255_v51 = vpop.f32.mrf.mxu2  ;;  %v1059_v17 = vadd.f32 %v15784_v27, %v878_v26  ;;  %v883_v47 = vadd.f32 %v15786_v24, %v15785_v60  ;;  %v1300_v20 = vadd.f32 %v1253_v42, %v1056_v58 }
 0x15f   : > { %1543 = vst [vmem:[#allocation2 + $0x10] sm:$0xff] %v1535_v9  ;;  %v1637_v59 = vunpack.c.l.b16 %v1535_v9  ;;  %v1638_v31 = vunpack.c.h.b16 %v1535_v9  ;;  %v13312_v21 = vadd.f32 %v1255_v51, %v1058_v14 }
 0x160   : > { %v1437_v52 = vpop.f32.mrf.mxu0  ;;  %v1466_v4 = vpop.f32.mrf.mxu1  ;;  %v13341_v43 = vadd.f32 %v13222_v2, %v883_v47  ;;  %v9523_v2 = vld [vmem:[#allocation7 + $0x78] sm:$0xf0] }
 0x161   : > { %v1485_v36 = vadd.f32 %v1437_v52, %v1296_v29  ;;  %v1486_v22 = vadd.f32 %v1466_v4, %v1297_v34  ;;  %v13287_v33 = vpack.c.b16 %v1637_v59, %v1635_v12  ;;  %v13293_v54 = vpack.c.b16 %v1638_v31, %v1636_v10  ;;  %v11774_v10 = vld [vmem:[#allocation7 + $0x74] sm:$0xf0] }
 0x162   : > { %v1301_v29 = vadd.f32 %v1282_v18, %v1057_v48  ;;  %v13314_v34 = vadd.f32 %v1284_v55, %v1059_v17 }
 0x163   : > { %v12490_v28 = vpop.eup %12489  ;;  %v1507_v5 = vadd.f32 %v13236_v37, %v1485_v36  ;;  %v1508_v44 = vadd.f32 %v13239_v46, %v1486_v22  ;;  %v1664_v45 = vshrl.u32 %v13287_v33, 16  ;;  %v1667_v50 = vshll.u32 %v13287_v33, 16  ;;  %v15787_v22 = vld [vmem:[#allocation28_spill] sm:$0xff] }
 0x164   : > { %v12492_v61 = vpop.eup %12491  ;;  %v1681_v9 = vshrl.u32 %v13293_v54, 16  ;;  %v1684_v36 = vshll.u32 %v13293_v54, 16  ;;  %v2040_v4 = vrot.slane %v13287_v33, 3  ;;  %v2043_v18 = vrot.slane %v13293_v54, 3  ;;  %v11789_v54 = vld [vmem:[#allocation7 + $0xf4] sm:$0xf] }
 0x165   : > { %v13282_v49 = vpack.c.bf16 %v12492_v61, %v12490_v28  ;;  %12493 = vtanh.f32 %v1507_v5  ;;  %v13321_v42 = vrot.slane %v1664_v45, 3  ;;  %v13323_v41 = vrot.slane %v1667_v50, 4  ;;  %v9521_v5 = vld [vmem:[#allocation7 + $0x70] sm:$0xf] }
 0x166   : > { %12495 = vtanh.f32 %v1508_v44  ;;  %v13327_v12 = vadd.f32 %v15787_v22, %v852_v6  ;;  %v13332_v13 = vrot.slane %v1681_v9, 3  ;;  %v9522_v44 = vor.u32 %v11774_v10, %v9521_v5  ;;  %v9585_v6 = vld [vmem:[#allocation7 + $0xf0] sm:$0xf]  ;;  %v13343_v32 = vpop.f32.mrf.mxu2  ;;  %v9513_v9 = vld [vmem:[#allocation7 + $0x60] sm:$0xf] }
 0x167   : > { %1544 = vst [vmem:[#allocation2 + $0x18] sm:$0xff] %v13282_v49  ;;  %v1639_v38 = vunpack.c.l.b16 %v13282_v49  ;;  %v1640_v53 = vunpack.c.h.b16 %v13282_v49  ;;  %v11773_v49 = vld [vmem:[#allocation7 + $0x74] sm:$0xf]  ;;  %v1686_v1 = vrot.slane %v1684_v36, 4  ;;  %v9590_v55 = vor.u32 %v11789_v54, %v9587_v57  ;;  %v9577_v10 = vld [vmem:[#allocation7 + $0xe0] sm:$0xf] }
 0x168   : > { %v1439_v63 = vpop.f32.mrf.mxu0  ;;  %v1468_v62 = vpop.f32.mrf.mxu1  ;;  %2226 = vmatpush.bf16.msrb.mxu2 %v9522_v44  ;;  %v9526_v48 = vor.u32 %v11773_v49, %v9523_v2  ;;  %v11787_v49 = vld [vmem:[#allocation7 + $0xe4] sm:$0xf]  ;;  %v9505_v2 = vld [vmem:[#allocation7 + $0x50] sm:$0xf]  ;;  %v11770_v54 = vld [vmem:[#allocation7 + $0x54] sm:$0xf0] }
 0x169   : > { %v1487_v0 = vadd.f32 %v1439_v63, %v1298_v35  ;;  %v13301_v23 = vpack.c.b16 %v1639_v38, %v1637_v59  ;;  %v13303_v56 = vpack.c.b16 %v1640_v53, %v1638_v31  ;;  %v1488_v3 = vadd.f32 %v1468_v62, %v1299_v40  ;;  %v15788_v31 = vld [vmem:[#allocation29_spill] sm:$0xff]  ;;  %v13353_v40 = vpop.f32.mrf.mxu3  ;;  %2313 = vmatpush.bf16.msra.mxu1 %v9590_v55 }
 0x16a   : > { %v13335_v61 = vadd.f32 %v15788_v31, %v881_v8  ;;  %v9586_v8 = vor.u32 %v11790_v30, %v9585_v6  ;;  %2284 = vmatpush.bf16.msra.mxu0 %v9526_v48  ;;  %v11788_v31 = vld [vmem:[#allocation7 + $0xe4] sm:$0xf0]  ;;  %v9569_v57 = vld [vmem:[#allocation7 + $0xd0] sm:$0xf] }
 0x16b   : > { %v12494_v19 = vpop.eup %12493  ;;  %v1509_v39 = vadd.f32 %v13236_v37, %v1487_v0  ;;  %v1510_v52 = vadd.f32 %v13239_v46, %v1488_v3  ;;  %v9578_v30 = vor.u32 %v11788_v31, %v9577_v10  ;;  %v11767_v31 = vld [vmem:[#allocation7 + $0x44] sm:$0xf] }
 0x16c   : > { %v12496_v16 = vpop.eup %12495  ;;  %2255 = vmatpush.bf16.msrb.mxu3 %v9586_v8 }
 0x16d   : > { %v13317_v7 = vpack.c.bf16 %v12496_v16, %v12494_v19  ;;  %12497 = vtanh.f32 %v1509_v39  ;;  %v11772_v16 = vld [vmem:[#allocation7 + $0x64] sm:$0xf0] }
 0x16e   : > { %12499 = vtanh.f32 %v1510_v52  ;;  %v9514_v5 = vor.u32 %v11772_v16, %v9513_v9  ;;  %v9561_v9 = vld [vmem:[#allocation7 + $0xc0] sm:$0xf]  ;;  %v11784_v16 = vld [vmem:[#allocation7 + $0xc4] sm:$0xf0] }
 0x16f   : > { %1545 = vst [vmem:[#allocation2 + $0x20] sm:$0xff] %v13317_v7  ;;  %v1641_v59 = vunpack.c.l.b16 %v13317_v7  ;;  %v1642_v28 = vunpack.c.h.b16 %v13317_v7 }
 0x170   : > { %v1442_v26 = vpop.f32.mrf.mxu0  ;;  %v1471_v35 = vpop.f32.mrf.mxu1  ;;  %2227 = vmatpush.bf16.msrb.mxu2 %v9514_v5  ;;  %2256 = vmatpush.bf16.msrb.mxu3 %v9578_v30  ;;  %v1305_v5 = vadd.f32 %v13353_v40, %v13335_v61 }
 0x171   : > { %v1489_v33 = vadd.f32 %v1442_v26, %v1300_v20  ;;  %v13347_v51 = vpack.c.b16 %v1641_v59, %v1639_v38  ;;  %v13351_v11 = vpack.c.b16 %v1642_v28, %v1640_v53  ;;  %v1490_v58 = vadd.f32 %v1471_v35, %v1301_v29 }
 0x172   : > { %v1670_v20 = vor.u32 %v13323_v41, %v13321_v42  ;;  %v11771_v42 = vld [vmem:[#allocation7 + $0x64] sm:$0xf] }
 0x173   : > { %v12498_v63 = vpop.eup %12497  ;;  %v1511_v15 = vadd.f32 %v13236_v37, %v1489_v33  ;;  %v1672_v38 = vshrl.u32 %v13347_v51, 16  ;;  %v1675_v14 = vshll.u32 %v13347_v51, 16  ;;  %v1689_v53 = vshrl.u32 %v13351_v11, 16  ;;  %v9579_v33 = vld [vmem:[#allocation7 + $0xe8] sm:$0xf0] }
 0x174   : > { %v12500_v0 = vpop.eup %12499  ;;  %v1512_v62 = vadd.f32 %v13239_v46, %v1490_v58  ;;  %v1692_v27 = vshll.u32 %v13351_v11, 16  ;;  %v2041_v17 = vrot.slane %v13347_v51, 3  ;;  %v2044_v3 = vrot.slane %v13351_v11, 3 }
 0x175   : > { %v13363_v45 = vpack.c.bf16 %v12500_v0, %v12498_v63  ;;  %12501 = vtanh.f32 %v1511_v15  ;;  %v1674_v50 = vrot.slane %v1672_v38, 3  ;;  %v1677_v19 = vrot.slane %v1675_v14, 4  ;;  %v11786_v63 = vld [vmem:[#allocation7 + $0xd4] sm:$0xf0]  ;;  %v11769_v15 = vld [vmem:[#allocation7 + $0x54] sm:$0xf]  ;;  %v1289_v14 = vpop.f32.mrf.mxu3 }
 0x176   : > { %12503 = vtanh.f32 %v1512_v62  ;;  %v1691_v60 = vrot.slane %v1689_v53, 3  ;;  %v1694_v24 = vrot.slane %v1692_v27, 4  ;;  %v13368_v47 = vsel %vm733_vm1, %v2040_v4, %v2041_v17  ;;  %v11785_v27 = vld [vmem:[#allocation7 + $0xd4] sm:$0xf] }
 0x177   : > { %1546 = vst [vmem:[#allocation2 + $0x28] sm:$0xff] %v13363_v45  ;;  %v13373_v39 = vor.u32 %v1677_v19, %v1674_v50  ;;  %v1643_v29 = vunpack.c.l.b16 %v13363_v45  ;;  %v13379_v52 = vsel %vm733_vm1, %v2043_v18, %v2044_v3  ;;  %v1687_v4 = vor.u32 %v1686_v1, %v13332_v13  ;;  %v9515_v18 = vld [vmem:[#allocation7 + $0x68] sm:$0xf0]  ;;  %v1260_v1 = vpop.f32.mrf.mxu2  ;;  %v9571_v50 = vld [vmem:[#allocation7 + $0xd8] sm:$0xf0] }
 0x178   : > { %v1444_v36 = vpop.f32.mrf.mxu0  ;;  %v13382_v22 = vor.u32 %v1694_v24, %v1691_v60  ;;  %v1644_v41 = vunpack.c.h.b16 %v13363_v45  ;;  %v1473_v44 = vpop.f32.mrf.mxu1  ;;  %v9518_v8 = vor.u32 %v11771_v42, %v9515_v18  ;;  %v9582_v55 = vor.u32 %v11787_v49, %v9579_v33  ;;  %v9497_v19 = vld [vmem:[#allocation7 + $0x40] sm:$0xf]  ;;  %v9499_v42 = vld [vmem:[#allocation7 + $0x48] sm:$0xf0]  ;;  %v11766_v18 = vld [vmem:[#allocation7 + $0x34] sm:$0xf0] }
 0x179   : > { %v1491_v26 = vadd.f32 %v1444_v36, %v13312_v21  ;;  %v1679_v6 = vsel %vm543_vm0, %v1670_v20, %v13373_v39  ;;  %v13392_v13 = vpack.c.b16 %v1643_v29, %v1641_v59  ;;  %v1492_v35 = vadd.f32 %v1473_v44, %v13314_v34  ;;  %v9507_v34 = vld [vmem:[#allocation7 + $0x58] sm:$0xf0]  ;;  %v11768_v20 = vld [vmem:[#allocation7 + $0x44] sm:$0xf0]  ;;  %v9553_v49 = vld [vmem:[#allocation7 + $0xb0] sm:$0xf] }
 0x17a   : > { %1927 = vmatmul.bf16.vlgmr.msra.gmra.mxu2 %v1679_v6  ;;  %v1696_v21 = vsel %vm543_vm0, %v1687_v4, %v13382_v22  ;;  %1985 = vmatmul.bf16.vlgmr.msrb.gmra.mxu0 %v1679_v6  ;;  %v9506_v59 = vor.u32 %v11770_v54, %v9505_v2  ;;  %v9570_v0 = vor.u32 %v11786_v63, %v9569_v57  ;;  %v9489_v6 = vld [vmem:[#allocation7 + $0x30] sm:$0xf]  ;;  %v11782_v33 = vld [vmem:[#allocation7 + $0xb4] sm:$0xf0]  ;;  %v11765_v2 = vld [vmem:[#allocation7 + $0x34] sm:$0xf] }
 0x17b   : > { %v12502_v58 = vpop.eup %12501  ;;  %v1513_v48 = vadd.f32 %v13236_v37, %v1491_v26  ;;  %1956 = vmatmul.bf16.vlgmr.msra.gmra.mxu3 %v1696_v21  ;;  %2014 = vmatmul.bf16.vlgmr.msrb.gmra.mxu1 %v1696_v21  ;;  %v1514_v53 = vadd.f32 %v13239_v46, %v1492_v35  ;;  %v9510_v62 = vor.u32 %v11769_v15, %v9507_v34  ;;  %v11783_v26 = vld [vmem:[#allocation7 + $0xc4] sm:$0xf]  ;;  %v9491_v54 = vld [vmem:[#allocation7 + $0x38] sm:$0xf0]  ;;  %v11781_v57 = vld [vmem:[#allocation7 + $0xb4] sm:$0xf] }
 0x17c   : > { %v12504_v38 = vpop.eup %12503  ;;  %2285 = vmatpush.bf16.msra.mxu0 %v9518_v8  ;;  %2314 = vmatpush.bf16.msra.mxu1 %v9582_v55  ;;  %v9574_v24 = vor.u32 %v11785_v27, %v9571_v50  ;;  %v13405_v36 = vpack.c.b16 %v1644_v41, %v1642_v28  ;;  %v1304_v4 = vadd.f32 %v13343_v32, %v13327_v12  ;;  %v9563_v32 = vld [vmem:[#allocation7 + $0xc8] sm:$0xf0]  ;;  %v13432_v63 = vld [vmem:[#allocation7 + $0x20] sm:$0xf] }
 0x17d   : > { %v13399_v60 = vpack.c.bf16 %v12504_v38, %v12502_v58  ;;  %12505 = vtanh.f32 %v1513_v48  ;;  %v13412_v10 = vadd.f32 %v1260_v1, %v13338_v25  ;;  %v13415_v44 = vadd.f32 %v1289_v14, %v13341_v43  ;;  %2228 = vmatpush.bf16.msrb.mxu2 %v9506_v59  ;;  %2257 = vmatpush.bf16.msrb.mxu3 %v9570_v0  ;;  %v9555_v59 = vld [vmem:[#allocation7 + $0xb8] sm:$0xf0]  ;;  %v9545_v14 = vld [vmem:[#allocation7 + $0xa0] sm:$0xf] }
 0x17e   : > { %12507 = vtanh.f32 %v1514_v53  ;;  %v9498_v12 = vor.u32 %v11768_v20, %v9497_v19  ;;  %v9562_v25 = vor.u32 %v11784_v16, %v9561_v9  ;;  %v9502_v40 = vor.u32 %v11767_v31, %v9499_v42  ;;  %v11780_v19 = vld [vmem:[#allocation7 + $0xa4] sm:$0xf0] }
 0x17f   : > { %1547 = vst [vmem:[#allocation2 + $0x30] sm:$0xff] %v13399_v60  ;;  %v1645_v7 = vunpack.c.l.b16 %v13399_v60  ;;  %v1646_v28 = vunpack.c.h.b16 %v13399_v60  ;;  %v9566_v30 = vor.u32 %v11783_v26, %v9563_v32  ;;  %v9490_v1 = vor.u32 %v11766_v18, %v9489_v6  ;;  %v11777_v60 = vld [vmem:[#allocation7 + $0x94] sm:$0xf] }
 0x180   : > { %v1447_v61 = vpop.f32.mrf.mxu0  ;;  %v1476_v35 = vpop.f32.mrf.mxu1  ;;  %2286 = vmatpush.bf16.msra.mxu0 %v9510_v62  ;;  %2315 = vmatpush.bf16.msra.mxu1 %v9574_v24  ;;  %v9554_v48 = vor.u32 %v11782_v33, %v9553_v49  ;;  %v9494_v55 = vor.u32 %v11765_v2, %v9491_v54  ;;  %v9558_v27 = vor.u32 %v11781_v57, %v9555_v59  ;;  %v11763_v24 = vld [vmem:[#allocation7 + $0x24] sm:$0xf]  ;;  %v11778_v59 = vld [vmem:[#allocation7 + $0x94] sm:$0xf0] }
 0x181   : > { %v1493_v43 = vadd.f32 %v1447_v61, %v1304_v4  ;;  %v13424_v21 = vpack.c.b16 %v1645_v7, %v1643_v29  ;;  %v13430_v8 = vpack.c.b16 %v1646_v28, %v1644_v41  ;;  %v1494_v58 = vadd.f32 %v1476_v35, %v1305_v5  ;;  %v13434_v29 = vld [vmem:[#allocation7 + $0x24] sm:$0xf0]  ;;  %2229 = vmatpush.bf16.msrb.mxu2 %v9498_v12  ;;  %v9483_v4 = vld [vmem:[#allocation7 + $0x28] sm:$0xf0]  ;;  %v11779_v5 = vld [vmem:[#allocation7 + $0xa4] sm:$0xf] }
 0x182   : > { %2258 = vmatpush.bf16.msrb.mxu3 %v9562_v25  ;;  %v9482_v50 = vor.u32 %v13434_v29, %v13432_v63  ;;  %v9546_v26 = vor.u32 %v11780_v19, %v9545_v14  ;;  %v9547_v12 = vld [vmem:[#allocation7 + $0xa8] sm:$0xf0]  ;;  %v9486_v25 = vor.u32 %v11763_v24, %v9483_v4  ;;  %v11761_v63 = vld [vmem:[#allocation7 + $0x14] sm:$0xf]  ;;  %v9475_v29 = vld [vmem:[#allocation7 + $0x18] sm:$0xf0] }
 0x183   : > { %v12506_v15 = vpop.eup %12505  ;;  %v1515_v45 = vadd.f32 %v13236_v37, %v1493_v43  ;;  %v1698_v41 = vshrl.u32 %v13424_v21, 16  ;;  %v1701_v34 = vshll.u32 %v13424_v21, 16  ;;  %v1707_v38 = vshrl.u32 %v13430_v8, 16  ;;  %v11775_v24 = vld [vmem:[#allocation7 + $0x84] sm:$0xf] }
 0x184   : > { %v12508_v53 = vpop.eup %12507  ;;  %v1516_v0 = vadd.f32 %v13239_v46, %v1494_v58  ;;  %v1710_v62 = vshll.u32 %v13430_v8, 16  ;;  %2287 = vmatpush.bf16.msra.mxu0 %v9502_v40  ;;  %2316 = vmatpush.bf16.msra.mxu1 %v9566_v30  ;;  %v9550_v40 = vor.u32 %v11779_v5, %v9547_v12  ;;  %v2046_v30 = vrot.slane %v13424_v21, 3 }
 0x185   : > { %v13444_v20 = vpack.c.bf16 %v12508_v53, %v12506_v15  ;;  %12509 = vtanh.f32 %v1515_v45  ;;  %v1700_v9 = vrot.slane %v1698_v41, 3  ;;  %v1703_v16 = vrot.slane %v1701_v34, 4  ;;  %2230 = vmatpush.bf16.msrb.mxu2 %v9490_v1  ;;  %v9539_v45 = vld [vmem:[#allocation7 + $0x98] sm:$0xf0]  ;;  %v11760_v34 = vld [vmem:[#allocation7 + $0x4] sm:$0xf0] }
 0x186   : > { %12511 = vtanh.f32 %v1516_v0  ;;  %v1709_v31 = vrot.slane %v1707_v38, 3  ;;  %v1712_v42 = vrot.slane %v1710_v62, 4  ;;  %2259 = vmatpush.bf16.msrb.mxu3 %v9554_v48  ;;  %v2048_v33 = vrot.slane %v13430_v8, 3  ;;  %v9537_v48 = vld [vmem:[#allocation7 + $0x90] sm:$0xf] }
 0x187   : > { %1548 = vst [vmem:[#allocation2 + $0x38] sm:$0xff] %v13444_v20  ;;  %v13447_v32 = vor.u32 %v1703_v16, %v1700_v9  ;;  %v1647_v6 = vunpack.c.l.b16 %v13444_v20  ;;  %v1648_v61 = vunpack.c.h.b16 %v13444_v20  ;;  %v9538_v11 = vor.u32 %v11778_v59, %v9537_v48  ;;  %v11776_v38 = vld [vmem:[#allocation7 + $0x84] sm:$0xf0]  ;;  %v11759_v0 = vld [vmem:[#allocation7 + $0x4] sm:$0xf] }
 0x188   : > { %v1449_v18 = vpop.f32.mrf.mxu0  ;;  %v13451_v49 = vor.u32 %v1712_v42, %v1709_v31  ;;  %v1478_v35 = vpop.f32.mrf.mxu1  ;;  %2288 = vmatpush.bf16.msra.mxu0 %v9494_v55  ;;  %2317 = vmatpush.bf16.msra.mxu1 %v9558_v27  ;;  %v9542_v41 = vor.u32 %v11777_v60, %v9539_v45  ;;  %v9467_v62 = vld [vmem:[#allocation7 + $0x8] sm:$0xf0]  ;;  %v9713_v59 = vld [vmem:[#allocation7 + $0x2f0] sm:$0xf]  ;;  %v11837_v60 = vld [vmem:[#allocation7 + $0x274] sm:$0xf] }
 0x189   : > { %v1495_v43 = vadd.f32 %v1449_v18, %v13412_v10  ;;  %v1705_v2 = vsel %vm543_vm0, %v13373_v39, %v13447_v32  ;;  %v13463_v54 = vpack.c.b16 %v1647_v6, %v1645_v7  ;;  %v1496_v57 = vadd.f32 %v1478_v35, %v13415_v44  ;;  %v9473_v7 = vld [vmem:[#allocation7 + $0x10] sm:$0xf]  ;;  %v11762_v44 = vld [vmem:[#allocation7 + $0x14] sm:$0xf0]  ;;  %2231 = vmatpush.bf16.msrb.mxu2 %v9482_v50  ;;  %v9531_v9 = vld [vmem:[#allocation7 + $0x88] sm:$0xf0] }
 0x18a   : > { %1932 = vmatmul.bf16.gmra.mxu2 %v1705_v2  ;;  %v1714_v10 = vsel %vm543_vm0, %v13382_v22, %v13451_v49  ;;  %1990 = vmatmul.bf16.gmra.mxu0 %v1705_v2  ;;  %v13474_v39 = vsel %vm733_vm1, %v2041_v17, %v2046_v30  ;;  %v13482_v22 = vsel %vm733_vm1, %v2044_v3, %v2048_v33 }
 0x18b   : > { %v12510_v58 = vpop.eup %12509  ;;  %v1517_v1 = vadd.f32 %v13236_v37, %v1495_v43  ;;  %1961 = vmatmul.bf16.gmra.mxu3 %v1714_v10  ;;  %2019 = vmatmul.bf16.gmra.mxu1 %v1714_v10  ;;  %v13488_v51 = vpack.c.b16 %v1648_v61, %v1646_v28  ;;  %v1518_v37 = vadd.f32 %v13239_v46, %v1496_v57  ;;  %v9465_v28 = vld [vmem:[#allocation7] sm:$0xf] }
 0x18c   : > { %v12512_v17 = vpop.eup %12511  ;;  %2260 = vmatpush.bf16.msrb.mxu3 %v9546_v26  ;;  %v9474_v55 = vor.u32 %v11762_v44, %v9473_v7  ;;  %2289 = vmatpush.bf16.msra.mxu0 %v9486_v25  ;;  %v9478_v3 = vor.u32 %v11761_v63, %v9475_v29  ;;  %v9529_v46 = vld [vmem:[#allocation7 + $0x80] sm:$0xf]  ;;  %v9466_v27 = vor.u32 %v11760_v34, %v9465_v28  ;;  %v11854_v63 = vld [vmem:[#allocation7 + $0x2f4] sm:$0xf0]  ;;  %v9715_v34 = vld [vmem:[#allocation7 + $0x2f8] sm:$0xf0] }
 0x18d   : > { %v13491_v15 = vpack.c.bf16 %v12512_v17, %v12510_v58  ;;  %12513 = vtanh.f32 %v1517_v1  ;;  %2318 = vmatpush.bf16.msra.mxu1 %v9550_v40  ;;  %v9530_v50 = vor.u32 %v11776_v38, %v9529_v46  ;;  %v9470_v19 = vor.u32 %v11759_v0, %v9467_v62  ;;  %v13538_v29 = vld [vmem:[#allocation2 + $0x18] sm:$0xff]  ;;  %v9705_v0 = vld [vmem:[#allocation7 + $0x2e0] sm:$0xf]  ;;  %v3134_v62 = vld [vmem:[#allocation2 + $0x10] sm:$0xee] }
 0x18e   : > { %12515 = vtanh.f32 %v1518_v37  ;;  %2232 = vmatpush.bf16.msrb.mxu2 %v9474_v55  ;;  %v9534_v5 = vor.u32 %v11775_v24, %v9531_v9  ;;  %v9649_v37 = vld [vmem:[#allocation7 + $0x270] sm:$0xf]  ;;  %v11838_v55 = vld [vmem:[#allocation7 + $0x274] sm:$0xf0]  ;;  %v9714_v28 = vor.u32 %v11854_v63, %v9713_v59  ;;  %v9643_v24 = vld [vmem:[#allocation7 + $0x268] sm:$0xf0] }
 0x18f   : > { %1549 = vst [vmem:[#allocation2 + $0x40] sm:$0xff] %v13491_v15  ;;  %v1649_v14 = vunpack.c.l.b16 %v13491_v15  ;;  %v1650_v53 = vunpack.c.h.b16 %v13491_v15  ;;  %v9650_v45 = vor.u32 %v11838_v55, %v9649_v37  ;;  %v11855_v37 = vld [vmem:[#allocation2 + $0x24] sm:$0xf]  ;;  %v9723_v55 = vld [vmem:[#allocation2 + $0x28] sm:$0xf0] }
 0x190   : > { %2261 = vmatpush.bf16.msrb.mxu3 %v9538_v11  ;;  %2290 = vmatpush.bf16.msra.mxu0 %v9478_v3  ;;  %v9729_v63 = vld [vmem:[#allocation2 + $0x30] sm:$0xf] }
 0x191   : > { %v13498_v16 = vpack.c.b16 %v1649_v14, %v1647_v6  ;;  %v13502_v4 = vpack.c.b16 %v1650_v53, %v1648_v61  ;;  %2319 = vmatpush.bf16.msra.mxu1 %v9542_v41  ;;  %v9651_v41 = vld [vmem:[#allocation7 + $0x278] sm:$0xf0] }
 0x192   : > { %2233 = vmatpush.bf16.msrb.mxu2 %v9466_v27  ;;  %v9654_v46 = vor.u32 %v11837_v60, %v9651_v41  ;;  %v11834_v41 = vld [vmem:[#allocation7 + $0x254] sm:$0xf0] }
 0x193   : > { %v12514_v31 = vpop.eup %12513  ;;  %v1716_v42 = vshrl.u32 %v13498_v16, 16  ;;  %v1719_v26 = vshll.u32 %v13498_v16, 16  ;;  %v1725_v12 = vshrl.u32 %v13502_v4, 16  ;;  %v1728_v25 = vshll.u32 %v13502_v4, 16 }
 0x194   : > { %v12516_v18 = vpop.eup %12515  ;;  %2262 = vmatpush.bf16.msrb.mxu3 %v9530_v50  ;;  %v2050_v6 = vrot.slane %v13498_v16, 3  ;;  %v2052_v20 = vrot.slane %v13502_v4, 3  ;;  %2291 = vmatpush.bf16.msra.mxu0 %v9470_v19  ;;  %v11852_v50 = vld [vmem:[#allocation7 + $0x2e4] sm:$0xf0]  ;;  %v11835_v19 = vld [vmem:[#allocation7 + $0x264] sm:$0xf] }
 0x195   : > { %v1542_v61 = vpack.c.bf16 %v12516_v18, %v12514_v31  ;;  %v1718_v40 = vrot.slane %v1716_v42, 3  ;;  %v1721_v43 = vrot.slane %v1719_v26, 4  ;;  %v1727_v35 = vrot.slane %v1725_v12, 3  ;;  %2320 = vmatpush.bf16.msra.mxu1 %v9534_v5  ;;  %v11851_v42 = vld [vmem:[#allocation7 + $0x2e4] sm:$0xf] }
 0x196   : > { %v1730_v2 = vrot.slane %v1728_v25, 4  ;;  %v13515_v57 = vsel %vm733_vm1, %v2046_v30, %v2050_v6  ;;  %v13522_v10 = vsel %vm733_vm1, %v2048_v33, %v2052_v20  ;;  %2551 = vmatpush.bf16.msra.mxu2 %v9650_v45  ;;  %v9706_v31 = vor.u32 %v11852_v50, %v9705_v0  ;;  %v9707_v26 = vld [vmem:[#allocation7 + $0x2e8] sm:$0xf0]  ;;  %v9699_v50 = vld [vmem:[#allocation7 + $0x2d8] sm:$0xf0] }
 0x197   : > { %1550 = vst [vmem:[#allocation2 + $0x48] sm:$0xff] %v1542_v61  ;;  %v13524_v58 = vor.u32 %v1721_v43, %v1718_v40  ;;  %v1651_v1 = vunpack.c.l.b16 %v1542_v61  ;;  %v1652_v7 = vunpack.c.h.b16 %v1542_v61  ;;  %v2736_v12 = vunpack.c.l.b16 %v13538_v29  ;;  %v11856_v43 = vld [vmem:[#allocation2 + $0x24] sm:$0xf0]  ;;  %v9787_v4 = vld [vmem:[#allocation7 + $0x358] sm:$0xf0] }
 0x198   : > { %v13526_v44 = vor.u32 %v1730_v2, %v1727_v35  ;;  %2580 = vmatpush.bf16.msra.mxu3 %v9714_v28  ;;  %2609 = vmatpush.bf16.msrb.mxu0 %v9654_v46  ;;  %v9646_v61 = vor.u32 %v11835_v19, %v9643_v24  ;;  %v9710_v40 = vor.u32 %v11851_v42, %v9707_v26  ;;  %v3169_v35 = vunpack.c.l.b16 %v3134_v62  ;;  %v9633_v28 = vld [vmem:[#allocation7 + $0x250] sm:$0xf]  ;;  %v11833_v46 = vld [vmem:[#allocation7 + $0x254] sm:$0xf]  ;;  %v9625_v19 = vld [vmem:[#allocation7 + $0x240] sm:$0xf] }
 0x199   : > { %v1723_v21 = vsel %vm543_vm0, %v13447_v32, %v13524_v58  ;;  %v1661_v30 = vpack.c.b16 %v1651_v1, %v1651_v1  ;;  %v1662_v48 = vpack.c.b16 %v1652_v7, %v1652_v7  ;;  %v13531_v17 = vpack.c.b16 %v1651_v1, %v1649_v14  ;;  %v9641_v14 = vld [vmem:[#allocation7 + $0x260] sm:$0xf]  ;;  %v11848_v26 = vld [vmem:[#allocation7 + $0x2c4] sm:$0xf0] }
 0x19a   : > { %1937 = vmatmul.bf16.gmra.mxu2 %v1723_v21  ;;  %v1732_v8 = vsel %vm543_vm0, %v13451_v49, %v13526_v44  ;;  %1995 = vmatmul.bf16.gmra.mxu0 %v1723_v21  ;;  %v13536_v33 = vpack.c.b16 %v1652_v7, %v1650_v53  ;;  %v11853_v49 = vld [vmem:[#allocation7 + $0x2f4] sm:$0xf]  ;;  %v11836_v53 = vld [vmem:[#allocation7 + $0x264] sm:$0xf0]  ;;  %v9721_v1 = vld [vmem:[#allocation2 + $0x20] sm:$0xf]  ;;  %v3170_v45 = vunpack.c.h.b16 %v3134_v62 }
 0x19b   : > { %1966 = vmatmul.bf16.gmra.mxu3 %v1732_v8  ;;  %2024 = vmatmul.bf16.gmra.mxu1 %v1732_v8  ;;  %v1734_v32 = vshrl.u32 %v1661_v30, 16  ;;  %v1737_v15 = vshll.u32 %v1661_v30, 16  ;;  %v1743_v11 = vshrl.u32 %v1662_v48, 16  ;;  %v1746_v3 = vshll.u32 %v1662_v48, 16  ;;  %v11849_v62 = vld [vmem:[#allocation7 + $0x2d4] sm:$0xf] }
 0x19c   : > { %v9718_v38 = vor.u32 %v11853_v49, %v9715_v34  ;;  %v9642_v27 = vor.u32 %v11836_v53, %v9641_v14  ;;  %2581 = vmatpush.bf16.msra.mxu3 %v9706_v31  ;;  %2610 = vmatpush.bf16.msrb.mxu0 %v9646_v61  ;;  %v13541_v21 = vor.u32 %v11856_v43, %v9721_v1  ;;  %v2737_v48 = vunpack.c.h.b16 %v13538_v29  ;;  %v11850_v34 = vld [vmem:[#allocation7 + $0x2d4] sm:$0xf0]  ;;  %v11832_v31 = vld [vmem:[#allocation7 + $0x244] sm:$0xf0]  ;;  %v9689_v42 = vld [vmem:[#allocation7 + $0x2c0] sm:$0xf] }
 0x19d   : > { %v1736_v9 = vrot.slane %v1734_v32, 3  ;;  %v1739_v5 = vrot.slane %v1737_v15, 4  ;;  %v1745_v25 = vrot.slane %v1743_v11, 3  ;;  %v1748_v18 = vrot.slane %v1746_v3, 4  ;;  %v11858_v32 = vld [vmem:[#allocation2 + $0x34] sm:$0xf0] }
 0x19e   : > { %2638 = vmatpush.bf16.msrb.mxu1 %v9718_v38  ;;  %2552 = vmatpush.bf16.msra.mxu2 %v9642_v27  ;;  %v3171_v30 = vpack.c.b16 %v2736_v12, %v3169_v35  ;;  %v11857_v15 = vld [vmem:[#allocation2 + $0x34] sm:$0xf]  ;;  %v9731_v11 = vld [vmem:[#allocation2 + $0x38] sm:$0xf0]  ;;  %v3174_v60 = vrot.slane %v13541_v21, 1  ;;  %v9634_v49 = vor.u32 %v11834_v41, %v9633_v28  ;;  %v13551_v14 = vor.u32 %v11855_v37, %v9723_v55 }
 0x19f   : > { %v1740_v2 = vor.u32 %v1739_v5, %v1736_v9  ;;  %v1749_v7 = vor.u32 %v1748_v18, %v1745_v25  ;;  %v9635_v38 = vld [vmem:[#allocation7 + $0x258] sm:$0xf0]  ;;  %v3172_v53 = vpack.c.b16 %v2737_v48, %v3170_v45  ;;  %v13558_v24 = vor.u32 %v11858_v32, %v9729_v63  ;;  %v11831_v61 = vld [vmem:[#allocation7 + $0x244] sm:$0xf]  ;;  %v2691_v32 = vld [vmem:[#allocation2 + $0x50] sm:$0x11] }
 0x1a0   : > { %v3173_v3 = vrot.slane %v3171_v30, 1  ;;  %v9638_v27 = vor.u32 %v11833_v46, %v9635_v38  ;;  %v13560_v9 = vor.u32 %v11857_v15, %v9731_v11  ;;  %v9702_v5 = vor.u32 %v11849_v62, %v9699_v50  ;;  %v11847_v43 = vld [vmem:[#allocation7 + $0x2c4] sm:$0xf]  ;;  %v11860_v11 = vld [vmem:[#allocation2 + $0x44] sm:$0xf0] }
 0x1a1   : > { %v1741_v8 = vsel %vm543_vm0, %v13524_v58, %v1740_v2  ;;  %v1750_v59 = vsel %vm543_vm0, %v13526_v44, %v1749_v7  ;;  %v9697_v58 = vld [vmem:[#allocation7 + $0x2d0] sm:$0xf]  ;;  %v9626_v25 = vor.u32 %v11832_v31, %v9625_v19  ;;  %v9690_v18 = vor.u32 %v11848_v26, %v9689_v42  ;;  %v9691_v2 = vld [vmem:[#allocation7 + $0x2c8] sm:$0xf0]  ;;  %v9737_v28 = vld [vmem:[#allocation2 + $0x40] sm:$0xf] }
 0x1a2   : > { %2639 = vmatpush.bf16.msrb.mxu1 %v9710_v40  ;;  %v13554_v44 = vsel %vm1329_vm3, %v3173_v3, %v3174_v60  ;;  %v9698_v0 = vor.u32 %v11850_v34, %v9697_v58  ;;  %2553 = vmatpush.bf16.msra.mxu2 %v9634_v49  ;;  %v9627_v40 = vld [vmem:[#allocation7 + $0x248] sm:$0xf0]  ;;  %v3176_v1 = vrot.slane %v3172_v53, 1  ;;  %v9694_v7 = vor.u32 %v11847_v43, %v9691_v2  ;;  %v11859_v41 = vld [vmem:[#allocation2 + $0x44] sm:$0xf] }
 0x1a3   : > { %2611 = vmatpush.bf16.msrb.mxu0 %v9638_v27  ;;  %v9630_v35 = vor.u32 %v11831_v61, %v9627_v40  ;;  %v3177_v30 = vrot.slane %v13551_v14, 1  ;;  %v3181_v37 = vrot.slane %v13560_v9, 1  ;;  %v2750_v15 = vunpack.c.l.b16 %v2691_v32  ;;  %v9739_v3 = vld [vmem:[#allocation2 + $0x48] sm:$0xf0]  ;;  %v11830_v58 = vld [vmem:[#allocation7 + $0x234] sm:$0xf0] }
 0x1a4   : > { %2582 = vmatpush.bf16.msra.mxu3 %v9698_v0  ;;  %v2751_v45 = vunpack.c.h.b16 %v2691_v32  ;;  %v9681_v49 = vld [vmem:[#allocation7 + $0x2b0] sm:$0xf]  ;;  %v11846_v46 = vld [vmem:[#allocation7 + $0x2b4] sm:$0xf0]  ;;  %v11829_v38 = vld [vmem:[#allocation7 + $0x234] sm:$0xf]  ;;  %v13578_v0 = vor.u32 %v11860_v11, %v9737_v28  ;;  %v13580_v27 = vor.u32 %v11859_v41, %v9739_v3 }
 0x1a5   : > { %v13566_v55 = vsel %vm1329_vm3, %v3176_v1, %v3177_v30  ;;  %v13572_v63 = vsel %vm1329_vm3, %v3177_v30, %v3181_v37  ;;  %v9619_v53 = vld [vmem:[#allocation7 + $0x238] sm:$0xf0]  ;;  %v13582_v62 = vpack.c.b16 %v2750_v15, %v2750_v15  ;;  %v11845_v19 = vld [vmem:[#allocation7 + $0x2b4] sm:$0xf]  ;;  %v9609_v31 = vld [vmem:[#allocation7 + $0x220] sm:$0xf] }
 0x1a6   : > { %2640 = vmatpush.bf16.msrb.mxu1 %v9702_v5  ;;  %2554 = vmatpush.bf16.msra.mxu2 %v9626_v25  ;;  %v9622_v50 = vor.u32 %v11829_v38, %v9619_v53  ;;  %v9683_v5 = vld [vmem:[#allocation7 + $0x2b8] sm:$0xf0]  ;;  %v13584_v42 = vpack.c.b16 %v2751_v45, %v2751_v45  ;;  %v11828_v26 = vld [vmem:[#allocation7 + $0x224] sm:$0xf0]  ;;  %v9673_v25 = vld [vmem:[#allocation7 + $0x2a0] sm:$0xf] }
 0x1a7   : > { %2612 = vmatpush.bf16.msrb.mxu0 %v9630_v35  ;;  %v9610_v61 = vor.u32 %v11828_v26, %v9609_v31  ;;  %v11827_v43 = vld [vmem:[#allocation7 + $0x224] sm:$0xf]  ;;  %v9611_v35 = vld [vmem:[#allocation7 + $0x228] sm:$0xf0]  ;;  %v3183_v30 = vrot.slane %v13578_v0, 1  ;;  %v3185_v32 = vrot.slane %v13580_v27, 1 }
 0x1a8   : > { %2583 = vmatpush.bf16.msra.mxu3 %v9690_v18  ;;  %v11844_v18 = vld [vmem:[#allocation7 + $0x2a4] sm:$0xf0]  ;;  %v11843_v2 = vld [vmem:[#allocation7 + $0x2a4] sm:$0xf]  ;;  %v9614_v1 = vor.u32 %v11827_v43, %v9611_v35  ;;  %v3187_v15 = vrot.slane %v13582_v62, 1  ;;  %v3189_v3 = vrot.slane %v13584_v42, 1 }
 0x1a9   : > { %v9674_v40 = vor.u32 %v11844_v18, %v9673_v25  ;;  %v13594_v28 = vsel %vm1329_vm3, %v3181_v37, %v3185_v32  ;;  %v11826_v37 = vld [vmem:[#allocation7 + $0x214] sm:$0xf0]  ;;  %v9603_v38 = vld [vmem:[#allocation7 + $0x218] sm:$0xf0]  ;;  %v11840_v26 = vld [vmem:[#allocation7 + $0x284] sm:$0xf0] }
 0x1aa   : > { %1942 = vmatmul.bf16.gmra.mxu2 %v1741_v8  ;;  %2000 = vmatmul.bf16.gmra.mxu0 %v1741_v8  ;;  %v3179_v8 = vrot.slane %v13558_v24, 1  ;;  %v13597_v41 = vsel %vm1329_vm3, %v3183_v30, %v3187_v15  ;;  %v11823_v18 = vld [vmem:[#allocation7 + $0x204] sm:$0xf]  ;;  %v1559_v43 = vld [vmem:[#allocation2 + $0x48] sm:$0x77] }
 0x1ab   : > { %1971 = vmatmul.bf16.gmra.mxu3 %v1750_v59  ;;  %2029 = vmatmul.bf16.gmra.mxu1 %v1750_v59 }
 0x1ac   : > { %v13569_v59 = vsel %vm1329_vm3, %v3174_v60, %v3179_v8  ;;  %2641 = vmatpush.bf16.msrb.mxu1 %v9694_v7  ;;  %v9617_v60 = vld [vmem:[#allocation7 + $0x230] sm:$0xf]  ;;  %2613 = vmatpush.bf16.msrb.mxu0 %v9622_v50  ;;  %v9675_v7 = vld [vmem:[#allocation7 + $0x2a8] sm:$0xf0]  ;;  %v13591_v45 = vsel %vm1329_vm3, %v3179_v8, %v3183_v30  ;;  %v11841_v50 = vld [vmem:[#allocation7 + $0x294] sm:$0xf] }
 0x1ad   : > { %v9618_v34 = vor.u32 %v11830_v58, %v9617_v60  ;;  %v9678_v11 = vor.u32 %v11843_v2, %v9675_v7  ;;  %v13600_v60 = vsel %vm1329_vm3, %v3185_v32, %v3189_v3  ;;  %v9601_v8 = vld [vmem:[#allocation7 + $0x210] sm:$0xf]  ;;  %v9659_v2 = vld [vmem:[#allocation7 + $0x288] sm:$0xf0]  ;;  %v11876_v30 = vld [vmem:[#allocation7 + $0x374] sm:$0xf0]  ;;  %v2036_v3 = vunpack.c.l.b16 %v1559_v43 }
 0x1ae   : > { %v9665_v58 = vld [vmem:[#allocation7 + $0x290] sm:$0xf] }
 0x1af   : > { %2555 = vmatpush.bf16.msra.mxu2 %v9618_v34  ;;  %v11842_v34 = vld [vmem:[#allocation7 + $0x294] sm:$0xf0]  ;;  %v9801_v7 = vld [vmem:[#allocation7 + $0x370] sm:$0xf] }
 0x1b0   : > { %2614 = vmatpush.bf16.msrb.mxu0 %v9614_v1  ;;  %v9666_v53 = vor.u32 %v11842_v34, %v9665_v58  ;;  %v9865_v32 = vld [vmem:[#allocation7 + $0x3f0] sm:$0xf]  ;;  %v9802_v15 = vor.u32 %v11876_v30, %v9801_v7  ;;  %v11875_v58 = vld [vmem:[#allocation7 + $0x374] sm:$0xf]  ;;  %v11872_v7 = vld [vmem:[#allocation7 + $0x354] sm:$0xf0] }
 0x1b1   : > { %v11891_v34 = vld [vmem:[#allocation7 + $0x3f4] sm:$0xf]  ;;  %v9849_v30 = vld [vmem:[#allocation7 + $0x3d0] sm:$0xf] }
 0x1b3   : > { %2556 = vmatpush.bf16.msra.mxu2 %v9610_v61  ;;  %v9595_v61 = vld [vmem:[#allocation7 + $0x208] sm:$0xf0] }
 0x1b4   : > { %v9598_v35 = vor.u32 %v11823_v18, %v9595_v61  ;;  %v9795_v18 = vld [vmem:[#allocation7 + $0x368] sm:$0xf0]  ;;  %v11889_v61 = vld [vmem:[#allocation7 + $0x3e4] sm:$0xf] }
 0x1ba   : > { %2234 = vmatmul.bf16.vlgmr.msrb.gmra.mxu2 %v13368_v47  ;;  %2292 = vmatmul.bf16.vlgmr.msra.gmra.mxu0 %v13368_v47  ;;  %v9682_v47 = vor.u32 %v11846_v46, %v9681_v49  ;;  %v9602_v49 = vor.u32 %v11826_v37, %v9601_v8  ;;  %v11825_v46 = vld [vmem:[#allocation7 + $0x214] sm:$0xf]  ;;  %v2037_v37 = vunpack.c.h.b16 %v1559_v43 }
 0x1bb   : > { %2263 = vmatmul.bf16.vlgmr.msrb.gmra.mxu3 %v13379_v52  ;;  %2321 = vmatmul.bf16.vlgmr.msra.gmra.mxu1 %v13379_v52  ;;  %v9686_v52 = vor.u32 %v11845_v19, %v9683_v5  ;;  %v9667_v19 = vld [vmem:[#allocation7 + $0x298] sm:$0xf0]  ;;  %v9593_v5 = vld [vmem:[#allocation7 + $0x200] sm:$0xf] }
 0x1bc   : > { %2584 = vmatpush.bf16.msra.mxu3 %v9682_v47  ;;  %v9606_v47 = vor.u32 %v11825_v46, %v9603_v38  ;;  %2557 = vmatpush.bf16.msra.mxu2 %v9602_v49  ;;  %v9670_v31 = vor.u32 %v11841_v50, %v9667_v19  ;;  %v9803_v49 = vld [vmem:[#allocation7 + $0x378] sm:$0xf0]  ;;  %v2039_v46 = vpack.c.b16 %v2037_v37, %v2037_v37  ;;  %v11870_v37 = vld [vmem:[#allocation7 + $0x344] sm:$0xf0] }
 0x1bd   : > { %2642 = vmatpush.bf16.msrb.mxu1 %v9686_v52  ;;  %v11824_v52 = vld [vmem:[#allocation7 + $0x204] sm:$0xf0]  ;;  %v9806_v38 = vor.u32 %v11875_v58, %v9803_v49  ;;  %v9841_v49 = vld [vmem:[#allocation7 + $0x3c0] sm:$0xf] }
 0x1be   : > { %2615 = vmatpush.bf16.msrb.mxu0 %v9606_v47  ;;  %v11874_v47 = vld [vmem:[#allocation7 + $0x364] sm:$0xf0] }
 0x1c0   : > { %2585 = vmatpush.bf16.msra.mxu3 %v9674_v40  ;;  %v11839_v40 = vld [vmem:[#allocation7 + $0x284] sm:$0xf] }
 0x1c1   : > { %2643 = vmatpush.bf16.msrb.mxu1 %v9678_v11  ;;  %v9662_v1 = vor.u32 %v11839_v40, %v9659_v2  ;;  %v11892_v11 = vld [vmem:[#allocation7 + $0x3f4] sm:$0xf0] }
 0x1c2   : > { %2616 = vmatpush.bf16.msrb.mxu0 %v9598_v35  ;;  %v9866_v8 = vor.u32 %v11892_v11, %v9865_v32  ;;  %v9859_v35 = vld [vmem:[#allocation7 + $0x3e8] sm:$0xf0]  ;;  %v11887_v11 = vld [vmem:[#allocation7 + $0x3d4] sm:$0xf] }
 0x1c3   : > { %v9862_v2 = vor.u32 %v11889_v61, %v9859_v35 }
 0x1c4   : > { %2586 = vmatpush.bf16.msra.mxu3 %v9666_v53  ;;  %v9793_v53 = vld [vmem:[#allocation7 + $0x360] sm:$0xf] }
 0x1c5   : > { %2644 = vmatpush.bf16.msrb.mxu1 %v9670_v31  ;;  %v9794_v19 = vor.u32 %v11874_v47, %v9793_v53  ;;  %v11890_v31 = vld [vmem:[#allocation7 + $0x3e4] sm:$0xf0]  ;;  %v11869_v47 = vld [vmem:[#allocation7 + $0x344] sm:$0xf] }
 0x1c6   : > { %3060 = vmatpush.bf16.msra.mxu0 %v9806_v38 }
 0x1c9   : > { %2645 = vmatpush.bf16.msrb.mxu1 %v9662_v1  ;;  %v9785_v1 = vld [vmem:[#allocation7 + $0x350] sm:$0xf] }
 0x1ca   : > { %2239 = vmatmul.bf16.gmra.mxu2 %v13474_v39  ;;  %2297 = vmatmul.bf16.gmra.mxu0 %v13474_v39  ;;  %v9657_v39 = vld [vmem:[#allocation7 + $0x280] sm:$0xf]  ;;  %v9786_v16 = vor.u32 %v11872_v7, %v9785_v1  ;;  %v9771_v7 = vld [vmem:[#allocation7 + $0x338] sm:$0xf0] }
 0x1cb   : > { %2268 = vmatmul.bf16.gmra.mxu3 %v13482_v22  ;;  %2326 = vmatmul.bf16.gmra.mxu1 %v13482_v22  ;;  %v9594_v22 = vor.u32 %v11824_v52, %v9593_v5  ;;  %v9658_v25 = vor.u32 %v11840_v26, %v9657_v39  ;;  %v9857_v5 = vld [vmem:[#allocation7 + $0x3e0] sm:$0xf]  ;;  %v2056_v26 = vrot.slane %v2039_v46, 3 }
 0x1cc   : > { %v9858_v52 = vor.u32 %v11890_v31, %v9857_v5  ;;  %v9843_v31 = vld [vmem:[#allocation7 + $0x3c8] sm:$0xf0] }
 0x1cd   : > { %2558 = vmatpush.bf16.msra.mxu2 %v9594_v22  ;;  %2587 = vmatpush.bf16.msra.mxu3 %v9658_v25  ;;  %v11873_v25 = vld [vmem:[#allocation7 + $0x364] sm:$0xf]  ;;  %v2057_v40 = vsel %vm733_vm1, %v2052_v20, %v2056_v26  ;;  %v11868_v26 = vld [vmem:[#allocation7 + $0x334] sm:$0xf0] }
 0x1ce   : > { %v9798_v43 = vor.u32 %v11873_v25, %v9795_v18  ;;  %v11884_v18 = vld [vmem:[#allocation7 + $0x3b4] sm:$0xf0] }
 0x1d0   : > { %3061 = vmatpush.bf16.msra.mxu0 %v9798_v43 }
 0x1d1   : > { %3002 = vmatpush.bf16.msrb.mxu2 %v9802_v15  ;;  %3031 = vmatpush.bf16.msrb.mxu3 %v9866_v8  ;;  %v11871_v15 = vld [vmem:[#allocation7 + $0x354] sm:$0xf]  ;;  %v9777_v8 = vld [vmem:[#allocation7 + $0x340] sm:$0xf] }
 0x1d2   : > { %v9790_v20 = vor.u32 %v11871_v15, %v9787_v4  ;;  %v9778_v58 = vor.u32 %v11870_v37, %v9777_v8  ;;  %v11866_v15 = vld [vmem:[#allocation7 + $0x324] sm:$0xf0] }
 0x1d4   : > { %3062 = vmatpush.bf16.msra.mxu0 %v9790_v20  ;;  %v9825_v20 = vld [vmem:[#allocation7 + $0x3a0] sm:$0xf] }
 0x1d5   : > { %3003 = vmatpush.bf16.msrb.mxu2 %v9794_v19  ;;  %3032 = vmatpush.bf16.msrb.mxu3 %v9858_v52  ;;  %v11885_v19 = vld [vmem:[#allocation7 + $0x3c4] sm:$0xf] }
 0x1d6   : > { %v9846_v52 = vor.u32 %v11885_v19, %v9843_v31  ;;  %v9827_v19 = vld [vmem:[#allocation7 + $0x3a8] sm:$0xf0]  ;;  %v9753_v31 = vld [vmem:[#allocation7 + $0x310] sm:$0xf] }
 0x1d9   : > { %3004 = vmatpush.bf16.msrb.mxu2 %v9786_v16 }
 0x1da   : > { %2244 = vmatmul.bf16.gmra.mxu2 %v13515_v57  ;;  %2302 = vmatmul.bf16.gmra.mxu0 %v13515_v57  ;;  %v2038_v57 = vpack.c.b16 %v2036_v3, %v2036_v3  ;;  %v9851_v3 = vld [vmem:[#allocation7 + $0x3d8] sm:$0xf0] }
 0x1db   : > { %2273 = vmatmul.bf16.gmra.mxu3 %v13522_v10  ;;  %2331 = vmatmul.bf16.gmra.mxu1 %v13522_v10  ;;  %v9867_v10 = vld [vmem:[#allocation7 + $0x3f8] sm:$0xf0] }
 0x1dc   : > { %v9870_v50 = vor.u32 %v11891_v34, %v9867_v10  ;;  %v2054_v39 = vrot.slane %v2038_v57, 3  ;;  %v9854_v57 = vor.u32 %v11887_v11, %v9851_v3  ;;  %v11886_v34 = vld [vmem:[#allocation7 + $0x3c4] sm:$0xf0] }
 0x1dd   : > { %v9842_v46 = vor.u32 %v11886_v34, %v9841_v49  ;;  %3005 = vmatpush.bf16.msrb.mxu2 %v9778_v58  ;;  %v11882_v3 = vld [vmem:[#allocation7 + $0x3a4] sm:$0xf0] }
 0x1de   : > { %3089 = vmatpush.bf16.msra.mxu1 %v9870_v50  ;;  %v2055_v22 = vsel %vm733_vm1, %v2050_v6, %v2054_v39  ;;  %v11888_v6 = vld [vmem:[#allocation7 + $0x3d4] sm:$0xf0]  ;;  %v9779_v50 = vld [vmem:[#allocation7 + $0x348] sm:$0xf0]  ;;  %v9769_v39 = vld [vmem:[#allocation7 + $0x330] sm:$0xf]  ;;  %v9826_v8 = vor.u32 %v11882_v3, %v9825_v20 }
 0x1df   : > { %v9850_v32 = vor.u32 %v11888_v6, %v9849_v30  ;;  %v9782_v5 = vor.u32 %v11869_v47, %v9779_v50  ;;  %v9770_v25 = vor.u32 %v11868_v26, %v9769_v39  ;;  %v11883_v30 = vld [vmem:[#allocation7 + $0x3b4] sm:$0xf]  ;;  %v9835_v6 = vld [vmem:[#allocation7 + $0x3b8] sm:$0xf0]  ;;  %v11881_v47 = vld [vmem:[#allocation7 + $0x3a4] sm:$0xf] }
 0x1e0   : > { %v9838_v4 = vor.u32 %v11883_v30, %v9835_v6  ;;  %v9817_v39 = vld [vmem:[#allocation7 + $0x390] sm:$0xf]  ;;  %v9819_v30 = vld [vmem:[#allocation7 + $0x398] sm:$0xf0]  ;;  %v11862_v6 = vld [vmem:[#allocation7 + $0x304] sm:$0xf0] }
 0x1e1   : > { %3033 = vmatpush.bf16.msrb.mxu3 %v9850_v32  ;;  %3063 = vmatpush.bf16.msra.mxu0 %v9782_v5  ;;  %v9761_v32 = vld [vmem:[#allocation7 + $0x320] sm:$0xf]  ;;  %v9830_v5 = vor.u32 %v11881_v47, %v9827_v19  ;;  %v11877_v47 = vld [vmem:[#allocation7 + $0x384] sm:$0xf]  ;;  %v9811_v19 = vld [vmem:[#allocation7 + $0x388] sm:$0xf0] }
 0x1e2   : > { %3090 = vmatpush.bf16.msra.mxu1 %v9862_v2  ;;  %3006 = vmatpush.bf16.msrb.mxu2 %v9770_v25  ;;  %v9762_v11 = vor.u32 %v11866_v15, %v9761_v32 }
 0x1e5   : > { %3034 = vmatpush.bf16.msrb.mxu3 %v9842_v46 }
 0x1e6   : > { %3091 = vmatpush.bf16.msra.mxu1 %v9854_v57  ;;  %3007 = vmatpush.bf16.msrb.mxu2 %v9762_v11  ;;  %v11878_v11 = vld [vmem:[#allocation7 + $0x384] sm:$0xf0] }
 0x1ea   : > { %2249 = vmatmul.bf16.gmra.mxu2 %v2055_v22  ;;  %2307 = vmatmul.bf16.gmra.mxu0 %v2055_v22  ;;  %v9833_v22 = vld [vmem:[#allocation7 + $0x3b0] sm:$0xf] }
 0x1eb   : > { %2278 = vmatmul.bf16.gmra.mxu3 %v2057_v40  ;;  %2336 = vmatmul.bf16.gmra.mxu1 %v2057_v40  ;;  %v9834_v40 = vor.u32 %v11884_v18, %v9833_v22  ;;  %v11880_v22 = vld [vmem:[#allocation7 + $0x394] sm:$0xf0] }
 0x1ec   : > { %3092 = vmatpush.bf16.msra.mxu1 %v9846_v52  ;;  %v11864_v52 = vld [vmem:[#allocation7 + $0x314] sm:$0xf0]  ;;  %v9818_v18 = vor.u32 %v11880_v22, %v9817_v39 }
 0x1ed   : > { %3035 = vmatpush.bf16.msrb.mxu3 %v9834_v40  ;;  %v9754_v26 = vor.u32 %v11864_v52, %v9753_v31  ;;  %v11908_v31 = vld [vmem:[#allocation7 + $0x474] sm:$0xf0]  ;;  %v9814_v52 = vor.u32 %v11877_v47, %v9811_v19 }
 0x1ee   : > { %v11924_v22 = vld [vmem:[#allocation7 + $0x4f4] sm:$0xf0] }
 0x1ef   : > { %3008 = vmatpush.bf16.msrb.mxu2 %v9754_v26  ;;  %v9993_v26 = vld [vmem:[#allocation7 + $0x4f0] sm:$0xf] }
 0x1f0   : > { %3093 = vmatpush.bf16.msra.mxu1 %v9838_v4  ;;  %v9809_v4 = vld [vmem:[#allocation7 + $0x380] sm:$0xf] }
 0x1f1   : > { %3036 = vmatpush.bf16.msrb.mxu3 %v9826_v8  ;;  %v9810_v20 = vor.u32 %v11878_v11, %v9809_v4  ;;  %v9985_v11 = vld [vmem:[#allocation7 + $0x4e0] sm:$0xf] }
 0x1f4   : > { %3094 = vmatpush.bf16.msra.mxu1 %v9830_v5  ;;  %v9929_v5 = vld [vmem:[#allocation7 + $0x470] sm:$0xf] }
 0x1f5   : > { %3037 = vmatpush.bf16.msrb.mxu3 %v9818_v18  ;;  %v9930_v39 = vor.u32 %v11908_v31, %v9929_v5  ;;  %v9994_v18 = vor.u32 %v11924_v22, %v9993_v26  ;;  %v11905_v31 = vld [vmem:[#allocation7 + $0x464] sm:$0xf]  ;;  %v9987_v22 = vld [vmem:[#allocation7 + $0x4e8] sm:$0xf0] }
 0x1f7   : > { %v1986_v38 = vpop.f32.mrf.mxu0 }
 0x1f8   : > { %v2015_v10 = vpop.f32.mrf.mxu1 }
 0x1f9   : > { %v13616_v53 = vadd.f32 %v2015_v10, %v1986_v38  ;;  %v11865_v38 = vld [vmem:[#allocation7 + $0x324] sm:$0xf]  ;;  %v9763_v10 = vld [vmem:[#allocation7 + $0x328] sm:$0xf0]  ;;  %3038 = vmatpush.bf16.msrb.mxu3 %v9810_v20  ;;  %v11922_v20 = vld [vmem:[#allocation7 + $0x4e4] sm:$0xf0] }
 0x1fa   : > { %2559 = vmatmul.bf16.vlgmr.msra.gmra.mxu2 %v13301_v23  ;;  %2617 = vmatmul.bf16.vlgmr.msrb.gmra.mxu0 %v13301_v23  ;;  %v9766_v50 = vor.u32 %v11865_v38, %v9763_v10  ;;  %v11861_v38 = vld [vmem:[#allocation7 + $0x304] sm:$0xf]  ;;  %v9747_v10 = vld [vmem:[#allocation7 + $0x308] sm:$0xf0] }
 0x1fb   : > { %2588 = vmatmul.bf16.vlgmr.msra.gmra.mxu3 %v13303_v56  ;;  %2646 = vmatmul.bf16.vlgmr.msrb.gmra.mxu1 %v13303_v56  ;;  %v11867_v56 = vld [vmem:[#allocation7 + $0x334] sm:$0xf] }
 0x1fc   : > { %v9774_v16 = vor.u32 %v11867_v56, %v9771_v7  ;;  %v11879_v56 = vld [vmem:[#allocation7 + $0x394] sm:$0xf] }
 0x1fd   : > { %v1928_v61 = vpop.f32.mrf.mxu2  ;;  %v9822_v32 = vor.u32 %v11879_v56, %v9819_v30  ;;  %3388 = vmatpush.bf16.msra.mxu3 %v9994_v18  ;;  %v11923_v56 = vld [vmem:[#allocation7 + $0x4f4] sm:$0xf]  ;;  %v9995_v30 = vld [vmem:[#allocation7 + $0x4f8] sm:$0xf0]  ;;  %v11904_v18 = vld [vmem:[#allocation7 + $0x454] sm:$0xf0] }
 0x1fe   : > { %v1957_v43 = vpop.f32.mrf.mxu3  ;;  %3064 = vmatpush.bf16.msra.mxu0 %v9774_v16  ;;  %v9745_v16 = vld [vmem:[#allocation7 + $0x300] sm:$0xf] }
 0x1ff   : > { %v13622_v35 = vadd.f32 %v1957_v43, %v1928_v61  ;;  %v1988_v23 = vpop.f32.mrf.mxu0  ;;  %v9746_v15 = vor.u32 %v11862_v6, %v9745_v16  ;;  %3095 = vmatpush.bf16.msra.mxu1 %v9822_v32  ;;  %v9921_v16 = vld [vmem:[#allocation7 + $0x460] sm:$0xf]  ;;  %v11906_v6 = vld [vmem:[#allocation7 + $0x464] sm:$0xf0]  ;;  %v2683_v32 = vld [vmem:[#allocation2 + $0x10] sm:$0xff] }
 0x200   : > { %v2017_v2 = vpop.f32.mrf.mxu1  ;;  %v9922_v4 = vor.u32 %v11906_v6, %v9921_v16  ;;  %v2735_v5 = vunpack.c.h.b16 %v2683_v32 }
 0x201   : > { %v13624_v1 = vadd.f32 %v2017_v2, %v1988_v23  ;;  %v9755_v2 = vld [vmem:[#allocation7 + $0x318] sm:$0xf0]  ;;  %3009 = vmatpush.bf16.msrb.mxu2 %v9746_v15  ;;  %v9998_v15 = vor.u32 %v11923_v56, %v9995_v30 }
 0x202   : > { %3065 = vmatpush.bf16.msra.mxu0 %v9766_v50  ;;  %v9750_v50 = vor.u32 %v11861_v38, %v9747_v10  ;;  %v2734_v10 = vunpack.c.l.b16 %v2683_v32 }
 0x203   : > { %3096 = vmatpush.bf16.msra.mxu1 %v9814_v52  ;;  %v9923_v52 = vld [vmem:[#allocation7 + $0x468] sm:$0xf0] }
 0x204   : > { %v2752_v19 = vpack.c.b16 %v2736_v12, %v2734_v10  ;;  %v9926_v26 = vor.u32 %v11905_v31, %v9923_v52  ;;  %v9969_v31 = vld [vmem:[#allocation7 + $0x4c0] sm:$0xf]  ;;  %v11918_v52 = vld [vmem:[#allocation7 + $0x4c4] sm:$0xf0] }
 0x205   : > { %v1930_v37 = vpop.f32.mrf.mxu2  ;;  %3359 = vmatpush.bf16.msra.mxu2 %v9930_v39  ;;  %v11921_v39 = vld [vmem:[#allocation7 + $0x4e4] sm:$0xf] }
 0x206   : > { %v1959_v57 = vpop.f32.mrf.mxu3  ;;  %v9990_v12 = vor.u32 %v11921_v39, %v9987_v22 }
 0x207   : > { %v13626_v58 = vadd.f32 %v1959_v57, %v1930_v37  ;;  %v1991_v49 = vpop.f32.mrf.mxu0  ;;  %3446 = vmatpush.bf16.msrb.mxu1 %v9998_v15  ;;  %v2782_v15 = vshll.u32 %v13551_v14, 16 }
 0x208   : > { %v2020_v34 = vpop.f32.mrf.mxu1 }
 0x209   : > { %v13628_v46 = vadd.f32 %v2020_v34, %v1991_v49  ;;  %3360 = vmatpush.bf16.msra.mxu2 %v9922_v4  ;;  %v11903_v4 = vld [vmem:[#allocation7 + $0x454] sm:$0xf] }
 0x20a   : > { %2564 = vmatmul.bf16.gmra.mxu2 %v13392_v13  ;;  %2622 = vmatmul.bf16.gmra.mxu0 %v13392_v13 }
 0x20b   : > { %2593 = vmatmul.bf16.gmra.mxu3 %v13405_v36  ;;  %2651 = vmatmul.bf16.gmra.mxu1 %v13405_v36  ;;  %v11863_v36 = vld [vmem:[#allocation7 + $0x314] sm:$0xf] }
 0x20c   : > { %v9758_v7 = vor.u32 %v11863_v36, %v9755_v2  ;;  %v11907_v36 = vld [vmem:[#allocation7 + $0x474] sm:$0xf]  ;;  %v9931_v2 = vld [vmem:[#allocation7 + $0x478] sm:$0xf0]  ;;  %3447 = vmatpush.bf16.msrb.mxu1 %v9990_v12 }
 0x20d   : > { %v1933_v25 = vpop.f32.mrf.mxu2 }
 0x20e   : > { %v1962_v61 = vpop.f32.mrf.mxu3  ;;  %3066 = vmatpush.bf16.msra.mxu0 %v9758_v7  ;;  %v9934_v7 = vor.u32 %v11907_v36, %v9931_v2  ;;  %v11920_v36 = vld [vmem:[#allocation7 + $0x4d4] sm:$0xf0]  ;;  %v2765_v2 = vshll.u32 %v2752_v19, 16 }
 0x20f   : > { %v13634_v40 = vadd.f32 %v1962_v61, %v1933_v25  ;;  %v1993_v13 = vpop.f32.mrf.mxu0 }
 0x210   : > { %v2022_v43 = vpop.f32.mrf.mxu1  ;;  %v2767_v29 = vrot.slane %v2765_v2, 1 }
 0x211   : > { %v13636_v23 = vadd.f32 %v2022_v43, %v1993_v13 }
 0x212   : > { %3067 = vmatpush.bf16.msra.mxu0 %v9750_v50 }
 0x215   : > { %v1935_v3 = vpop.f32.mrf.mxu2 }
 0x216   : > { %v1964_v8 = vpop.f32.mrf.mxu3  ;;  %3417 = vmatpush.bf16.msrb.mxu0 %v9934_v7 }
 0x217   : > { %v13638_v37 = vadd.f32 %v1964_v8, %v1935_v3  ;;  %v1996_v57 = vpop.f32.mrf.mxu0  ;;  %v9986_v8 = vor.u32 %v11922_v20, %v9985_v11  ;;  %v9915_v11 = vld [vmem:[#allocation7 + $0x458] sm:$0xf0]  ;;  %v11919_v20 = vld [vmem:[#allocation7 + $0x4d4] sm:$0xf] }
 0x218   : > { %v2025_v49 = vpop.f32.mrf.mxu1 }
 0x219   : > { %v13640_v34 = vadd.f32 %v2025_v49, %v1996_v57  ;;  %3389 = vmatpush.bf16.msra.mxu3 %v9986_v8  ;;  %v9979_v8 = vld [vmem:[#allocation7 + $0x4d8] sm:$0xf0] }
 0x21a   : > { %2569 = vmatmul.bf16.gmra.mxu2 %v13463_v54  ;;  %2627 = vmatmul.bf16.gmra.mxu0 %v13463_v54 }
 0x21b   : > { %2598 = vmatmul.bf16.gmra.mxu3 %v13488_v51  ;;  %2656 = vmatmul.bf16.gmra.mxu1 %v13488_v51 }
 0x21c   : > { %3418 = vmatpush.bf16.msrb.mxu0 %v9926_v26  ;;  %v2763_v26 = vshrl.u32 %v2752_v19, 16 }
 0x21d   : > { %v1938_v25 = vpop.f32.mrf.mxu2 }
 0x21e   : > { %v1967_v61 = vpop.f32.mrf.mxu3 }
 0x21f   : > { %v13646_v54 = vadd.f32 %v1967_v61, %v1938_v25  ;;  %v1998_v13 = vpop.f32.mrf.mxu0  ;;  %v9913_v25 = vld [vmem:[#allocation7 + $0x450] sm:$0xf]  ;;  %v2753_v61 = vpack.c.b16 %v2737_v48, %v2735_v5  ;;  %v2770_v48 = vshll.u32 %v13541_v21, 16 }
 0x220   : > { %v2027_v43 = vpop.f32.mrf.mxu1 }
 0x221   : > { %v13648_v51 = vadd.f32 %v2027_v43, %v1998_v13  ;;  %v9914_v13 = vor.u32 %v11904_v18, %v9913_v25  ;;  %v9977_v43 = vld [vmem:[#allocation7 + $0x4d0] sm:$0xf]  ;;  %v2777_v6 = vshll.u32 %v2753_v61, 16  ;;  %v13668_v22 = vrot.slane %v2770_v48, 1  ;;  %v11917_v48 = vld [vmem:[#allocation7 + $0x4c4] sm:$0xf] }
 0x222   : > { %v9978_v56 = vor.u32 %v11920_v36, %v9977_v43  ;;  %v9970_v25 = vor.u32 %v11918_v52, %v9969_v31  ;;  %v2775_v12 = vshrl.u32 %v2753_v61, 16 }
 0x223   : > { %3361 = vmatpush.bf16.msra.mxu2 %v9914_v13  ;;  %v2779_v10 = vrot.slane %v2777_v6, 1  ;;  %v13670_v13 = vrot.slane %v2782_v15, 1  ;;  %v9907_v6 = vld [vmem:[#allocation7 + $0x448] sm:$0xf0] }
 0x224   : > { %3390 = vmatpush.bf16.msra.mxu3 %v9978_v56  ;;  %v9971_v15 = vld [vmem:[#allocation7 + $0x4c8] sm:$0xf0] }
 0x225   : > { %v1940_v3 = vpop.f32.mrf.mxu2 }
 0x226   : > { %v1969_v57 = vpop.f32.mrf.mxu3 }
 0x227   : > { %v13650_v49 = vadd.f32 %v1969_v57, %v1940_v3  ;;  %v2001_v38 = vpop.f32.mrf.mxu0  ;;  %v9918_v3 = vor.u32 %v11903_v4, %v9915_v11  ;;  %v9905_v57 = vld [vmem:[#allocation7 + $0x440] sm:$0xf]  ;;  %v11900_v4 = vld [vmem:[#allocation7 + $0x434] sm:$0xf0]  ;;  %v9974_v11 = vor.u32 %v11917_v48, %v9971_v15 }
 0x228   : > { %v2030_v47 = vpop.f32.mrf.mxu1  ;;  %3391 = vmatpush.bf16.msra.mxu3 %v9970_v25  ;;  %v2798_v25 = vshll.u32 %v13560_v9, 16 }
 0x229   : > { %v13652_v50 = vadd.f32 %v2030_v47, %v2001_v38  ;;  %v11902_v38 = vld [vmem:[#allocation7 + $0x444] sm:$0xf0]  ;;  %v9982_v47 = vor.u32 %v11919_v20, %v9979_v8  ;;  %3419 = vmatpush.bf16.msrb.mxu0 %v9918_v3  ;;  %v9961_v3 = vld [vmem:[#allocation7 + $0x4b0] sm:$0xf]  ;;  %v11916_v8 = vld [vmem:[#allocation7 + $0x4b4] sm:$0xf0] }
 0x22a   : > { %2574 = vmatmul.bf16.gmra.mxu2 %v13531_v17  ;;  %2632 = vmatmul.bf16.gmra.mxu0 %v13531_v17  ;;  %v9906_v5 = vor.u32 %v11902_v38, %v9905_v57  ;;  %v9962_v38 = vor.u32 %v11916_v8, %v9961_v3 }
 0x22b   : > { %2603 = vmatmul.bf16.gmra.mxu3 %v13536_v33  ;;  %2661 = vmatmul.bf16.gmra.mxu1 %v13536_v33 }
 0x22c   : > { %3448 = vmatpush.bf16.msrb.mxu1 %v9982_v47  ;;  %3362 = vmatpush.bf16.msra.mxu2 %v9906_v5 }
 0x22d   : > { %v1943_v17 = vpop.f32.mrf.mxu2  ;;  %3392 = vmatpush.bf16.msra.mxu3 %v9962_v38 }
 0x22e   : > { %v1972_v7 = vpop.f32.mrf.mxu3 }
 0x22f   : > { %v13662_v30 = vadd.f32 %v1972_v7, %v1943_v17  ;;  %v2003_v33 = vpop.f32.mrf.mxu0  ;;  %v2768_v17 = vor.u32 %v2767_v29, %v2763_v26  ;;  %v2780_v7 = vor.u32 %v2779_v10, %v2775_v12  ;;  %v2790_v26 = vshll.u32 %v13558_v24, 16  ;;  %v11899_v12 = vld [vmem:[#allocation7 + $0x434] sm:$0xf] }
 0x230   : > { %v2032_v16 = vpop.f32.mrf.mxu1  ;;  %3449 = vmatpush.bf16.msrb.mxu1 %v9974_v11  ;;  %v2794_v11 = vshrl.u32 %v13551_v14, 16 }
 0x231   : > { %v13664_v32 = vadd.f32 %v2032_v16, %v2003_v33  ;;  %v2773_v19 = vsel %vm1113_vm2, %v2768_v17, %v13668_v22  ;;  %v2785_v61 = vsel %vm1113_vm2, %v2780_v7, %v13670_v13  ;;  %v11901_v16 = vld [vmem:[#allocation7 + $0x444] sm:$0xf]  ;;  %v11915_v17 = vld [vmem:[#allocation7 + $0x4b4] sm:$0xf]  ;;  %v11898_v7 = vld [vmem:[#allocation7 + $0x424] sm:$0xf0] }
 0x232   : > { %v9910_v29 = vor.u32 %v11901_v16, %v9907_v6  ;;  %v9953_v16 = vld [vmem:[#allocation7 + $0x4a0] sm:$0xf]  ;;  %v11914_v6 = vld [vmem:[#allocation7 + $0x4a4] sm:$0xf0] }
 0x233   : > { %v9954_v15 = vor.u32 %v11914_v6, %v9953_v16 }
 0x234   : > { %3420 = vmatpush.bf16.msrb.mxu0 %v9910_v29  ;;  %v13690_v29 = vrot.slane %v2790_v26, 1  ;;  %v9881_v26 = vld [vmem:[#allocation7 + $0x410] sm:$0xf] }
 0x235   : > { %v1945_v39 = vpop.f32.mrf.mxu2  ;;  %3393 = vmatpush.bf16.msra.mxu3 %v9954_v15 }
 0x236   : > { %v1974_v18 = vpop.f32.mrf.mxu3 }
 0x237   : > { %v13672_v43 = vadd.f32 %v1974_v18, %v1945_v39  ;;  %v2293_v36 = vpop.f32.mrf.mxu0 }
 0x238   : > { %v2294_v2 = vadd.f32 %v2293_v36, %v13616_v53  ;;  %v2322_v56 = vpop.f32.mrf.mxu1  ;;  %v9897_v53 = vld [vmem:[#allocation7 + $0x430] sm:$0xf]  ;;  %v9899_v36 = vld [vmem:[#allocation7 + $0x438] sm:$0xf0] }
 0x239   : > { %v9898_v20 = vor.u32 %v11900_v4, %v9897_v53 }
 0x23a   : > { %v13677_v33 = vadd.f32 %v2322_v56, %v2294_v2  ;;  %3010 = vmatmul.bf16.vlgmr.msrb.gmra.mxu2 %v2773_v19  ;;  %3068 = vmatmul.bf16.vlgmr.msra.gmra.mxu0 %v2773_v19  ;;  %v9963_v2 = vld [vmem:[#allocation7 + $0x4b8] sm:$0xf0]  ;;  %v9889_v56 = vld [vmem:[#allocation7 + $0x420] sm:$0xf] }
 0x23b   : > { %3039 = vmatmul.bf16.vlgmr.msrb.gmra.mxu3 %v2785_v61  ;;  %3097 = vmatmul.bf16.vlgmr.msra.gmra.mxu1 %v2785_v61  ;;  %v9966_v19 = vor.u32 %v11915_v17, %v9963_v2  ;;  %v9890_v61 = vor.u32 %v11898_v7, %v9889_v56  ;;  %v11912_v17 = vld [vmem:[#allocation7 + $0x494] sm:$0xf0] }
 0x23c   : > { %3363 = vmatpush.bf16.msra.mxu2 %v9898_v20  ;;  %v13694_v20 = vrot.slane %v2798_v25, 1  ;;  %v11896_v25 = vld [vmem:[#allocation7 + $0x414] sm:$0xf0] }
 0x23d   : > { %v2235_v57 = vpop.f32.mrf.mxu2  ;;  %3450 = vmatpush.bf16.msrb.mxu1 %v9966_v19 }
 0x23e   : > { %v2236_v10 = vadd.f32 %v2235_v57, %v13622_v35  ;;  %v2264_v47 = vpop.f32.mrf.mxu3  ;;  %v9902_v35 = vor.u32 %v11899_v12, %v9899_v36  ;;  %v9882_v12 = vor.u32 %v11896_v25, %v9881_v26  ;;  %v9945_v36 = vld [vmem:[#allocation7 + $0x490] sm:$0xf]  ;;  %v2810_v26 = vshrl.u32 %v13560_v9, 16 }
 0x23f   : > { %v2295_v5 = vpop.f32.mrf.mxu0  ;;  %v9946_v2 = vor.u32 %v11912_v17, %v9945_v36 }
 0x240   : > { %v13682_v31 = vadd.f32 %v2264_v47, %v2236_v10  ;;  %v2296_v52 = vadd.f32 %v2295_v5, %v13624_v1  ;;  %v2324_v39 = vpop.f32.mrf.mxu1  ;;  %v2786_v1 = vshrl.u32 %v13541_v21, 16  ;;  %3421 = vmatpush.bf16.msrb.mxu0 %v9902_v35  ;;  %3364 = vmatpush.bf16.msra.mxu2 %v9890_v61  ;;  %v2796_v10 = vor.u32 %v2794_v11, %v13670_v13  ;;  %v11897_v5 = vld [vmem:[#allocation7 + $0x424] sm:$0xf]  ;;  %v11911_v11 = vld [vmem:[#allocation7 + $0x494] sm:$0xf] }
 0x241   : > { %3394 = vmatpush.bf16.msra.mxu3 %v9946_v2 }
 0x242   : > { %v13687_v18 = vadd.f32 %v2324_v39, %v2296_v52  ;;  %v2788_v8 = vor.u32 %v2786_v1, %v13668_v22  ;;  %v2801_v14 = vsel %vm1113_vm2, %v2796_v10, %v13694_v20  ;;  %v9891_v22 = vld [vmem:[#allocation7 + $0x428] sm:$0xf0]  ;;  %v11913_v52 = vld [vmem:[#allocation7 + $0x4a4] sm:$0xf]  ;;  %v2814_v1 = vshll.u32 %v13580_v27, 16 }
 0x243   : > { %v9894_v39 = vor.u32 %v11897_v5, %v9891_v22 }
 0x244   : > { %3365 = vmatpush.bf16.msra.mxu2 %v9882_v12  ;;  %v2816_v25 = vrot.slane %v2814_v1, 1 }
 0x245   : > { %v2237_v48 = vpop.f32.mrf.mxu2  ;;  %3422 = vmatpush.bf16.msrb.mxu0 %v9894_v39 }
 0x246   : > { %v2238_v53 = vadd.f32 %v2237_v48, %v13626_v58  ;;  %v2266_v4 = vpop.f32.mrf.mxu3  ;;  %v2793_v58 = vsel %vm1113_vm2, %v2788_v8, %v13690_v29  ;;  %v2806_v48 = vshll.u32 %v13578_v0, 16  ;;  %v9873_v8 = vld [vmem:[#allocation7 + $0x400] sm:$0xf] }
 0x247   : > { %v2298_v3 = vpop.f32.mrf.mxu0 }
 0x248   : > { %v13697_v57 = vadd.f32 %v2266_v4, %v2238_v53  ;;  %v2299_v21 = vadd.f32 %v2298_v3, %v13628_v46  ;;  %v2327_v38 = vpop.f32.mrf.mxu1  ;;  %v9955_v46 = vld [vmem:[#allocation7 + $0x4a8] sm:$0xf0]  ;;  %v11895_v53 = vld [vmem:[#allocation7 + $0x414] sm:$0xf]  ;;  %v9883_v4 = vld [vmem:[#allocation7 + $0x418] sm:$0xf0] }
 0x249   : > { %v9958_v13 = vor.u32 %v11913_v52, %v9955_v46  ;;  %v9947_v3 = vld [vmem:[#allocation7 + $0x498] sm:$0xf0]  ;;  %v2808_v22 = vrot.slane %v2806_v48, 1 }
 0x24a   : > { %v13703_v47 = vadd.f32 %v2327_v38, %v2299_v21  ;;  %3015 = vmatmul.bf16.gmra.mxu2 %v2793_v58  ;;  %3073 = vmatmul.bf16.gmra.mxu0 %v2793_v58  ;;  %v11894_v21 = vld [vmem:[#allocation7 + $0x404] sm:$0xf0]  ;;  %v9950_v38 = vor.u32 %v11911_v11, %v9947_v3  ;;  %v9937_v58 = vld [vmem:[#allocation7 + $0x480] sm:$0xf] }
 0x24b   : > { %3044 = vmatmul.bf16.gmra.mxu3 %v2801_v14  ;;  %3102 = vmatmul.bf16.gmra.mxu1 %v2801_v14  ;;  %v9874_v10 = vor.u32 %v11894_v21, %v9873_v8  ;;  %v11910_v14 = vld [vmem:[#allocation7 + $0x484] sm:$0xf0]  ;;  %v2830_v8 = vshll.u32 %v13584_v42, 16  ;;  %v2818_v21 = vshrl.u32 %v13578_v0, 16 }
 0x24c   : > { %3451 = vmatpush.bf16.msrb.mxu1 %v9958_v13  ;;  %v9938_v52 = vor.u32 %v11910_v14, %v9937_v58 }
 0x24d   : > { %v2240_v35 = vpop.f32.mrf.mxu2  ;;  %3366 = vmatpush.bf16.msra.mxu2 %v9874_v10  ;;  %v2820_v10 = vor.u32 %v2818_v21, %v2808_v22 }
 0x24e   : > { %v2241_v56 = vadd.f32 %v2240_v35, %v13634_v40  ;;  %v2269_v7 = vpop.f32.mrf.mxu3  ;;  %v9886_v40 = vor.u32 %v11895_v53, %v9883_v4  ;;  %3395 = vmatpush.bf16.msra.mxu3 %v9938_v52  ;;  %v2812_v35 = vor.u32 %v2810_v26, %v13694_v20  ;;  %v2832_v52 = vrot.slane %v2830_v8, 1 }
 0x24f   : > { %v2300_v19 = vpop.f32.mrf.mxu0 }
 0x250   : > { %v13708_v61 = vadd.f32 %v2269_v7, %v2241_v56  ;;  %v2301_v16 = vadd.f32 %v2300_v19, %v13636_v23  ;;  %v2329_v6 = vpop.f32.mrf.mxu1  ;;  %v2802_v23 = vshrl.u32 %v13558_v24, 16  ;;  %3423 = vmatpush.bf16.msrb.mxu0 %v9886_v40  ;;  %3452 = vmatpush.bf16.msrb.mxu1 %v9950_v38  ;;  %v2817_v9 = vsel %vm1113_vm2, %v2812_v35, %v2816_v25  ;;  %v11893_v56 = vld [vmem:[#allocation7 + $0x404] sm:$0xf] }
 0x251   : > { %v11909_v7 = vld [vmem:[#allocation7 + $0x484] sm:$0xf]  ;;  %v2822_v40 = vshll.u32 %v13582_v62, 16  ;;  %v2826_v38 = vshrl.u32 %v13580_v27, 16 }
 0x252   : > { %v13713_v15 = vadd.f32 %v2329_v6, %v2301_v16  ;;  %v2804_v12 = vor.u32 %v2802_v23, %v13690_v29  ;;  %v9875_v29 = vld [vmem:[#allocation7 + $0x408] sm:$0xf0] }
 0x253   : > { %v9878_v19 = vor.u32 %v11893_v56, %v9875_v29  ;;  %v9939_v16 = vld [vmem:[#allocation7 + $0x488] sm:$0xf0]  ;;  %v2824_v58 = vrot.slane %v2822_v40, 1  ;;  %v2828_v23 = vor.u32 %v2826_v38, %v2816_v25 }
 0x254   : > { %v2809_v2 = vsel %vm1113_vm2, %v2804_v12, %v2808_v22 }
 0x255   : > { %v2242_v5 = vpop.f32.mrf.mxu2  ;;  %3424 = vmatpush.bf16.msrb.mxu0 %v9878_v19  ;;  %v2825_v42 = vsel %vm1113_vm2, %v2820_v10, %v2824_v58  ;;  %v2833_v0 = vsel %vm1113_vm2, %v2828_v23, %v2832_v52 }
 0x256   : > { %v2243_v39 = vadd.f32 %v2242_v5, %v13638_v37  ;;  %v2271_v46 = vpop.f32.mrf.mxu3 }
 0x257   : > { %v2303_v13 = vpop.f32.mrf.mxu0 }
 0x258   : > { %v13719_v36 = vadd.f32 %v2271_v46, %v2243_v39  ;;  %v2304_v17 = vadd.f32 %v2303_v13, %v13640_v34  ;;  %v2332_v24 = vpop.f32.mrf.mxu1  ;;  %v9942_v34 = vor.u32 %v11909_v7, %v9939_v16 }
 0x25a   : > { %v13724_v37 = vadd.f32 %v2332_v24, %v2304_v17  ;;  %3020 = vmatmul.bf16.gmra.mxu2 %v2809_v2  ;;  %3078 = vmatmul.bf16.gmra.mxu0 %v2809_v2 }
 0x25b   : > { %3049 = vmatmul.bf16.gmra.mxu3 %v2817_v9  ;;  %3107 = vmatmul.bf16.gmra.mxu1 %v2817_v9 }
 0x25c   : > { %3453 = vmatpush.bf16.msrb.mxu1 %v9942_v34 }
 0x25d   : > { %v2245_v6 = vpop.f32.mrf.mxu2 }
 0x25e   : > { %v2246_v48 = vadd.f32 %v2245_v6, %v13646_v54  ;;  %v2274_v20 = vpop.f32.mrf.mxu3 }
 0x25f   : > { %v2305_v1 = vpop.f32.mrf.mxu0 }
 0x260   : > { %v13728_v53 = vadd.f32 %v2274_v20, %v2246_v48  ;;  %v2306_v4 = vadd.f32 %v2305_v1, %v13648_v51  ;;  %v2334_v11 = vpop.f32.mrf.mxu1 }
 0x262   : > { %v13732_v3 = vadd.f32 %v2334_v11, %v2306_v4 }
 0x265   : > { %v2247_v54 = vpop.f32.mrf.mxu2 }
 0x266   : > { %v2248_v14 = vadd.f32 %v2247_v54, %v13650_v49  ;;  %v2276_v5 = vpop.f32.mrf.mxu3 }
 0x267   : > { %v2308_v51 = vpop.f32.mrf.mxu0 }
 0x268   : > { %v13738_v39 = vadd.f32 %v2276_v5, %v2248_v14  ;;  %v2309_v62 = vadd.f32 %v2308_v51, %v13652_v50  ;;  %v2337_v46 = vpop.f32.mrf.mxu1 }
 0x26a   : > { %15789 = vst [vmem:[#allocation25_spill] sm:$0xff] %v13738_v39  ;;  %v13742_v26 = vadd.f32 %v2337_v46, %v2309_v62  ;;  %3025 = vmatmul.bf16.gmra.mxu2 %v2825_v42  ;;  %3083 = vmatmul.bf16.gmra.mxu0 %v2825_v42  ;;  %v10105_v39 = vld [vmem:[#allocation9 + $0x1d0] sm:$0xf] }
 0x26b   : > { %3054 = vmatmul.bf16.gmra.mxu3 %v2833_v0  ;;  %3112 = vmatmul.bf16.gmra.mxu1 %v2833_v0 }
 0x26d   : > { %v2250_v27 = vpop.f32.mrf.mxu2 }
 0x26e   : > { %v2251_v49 = vadd.f32 %v2250_v27, %v13662_v30  ;;  %v2279_v22 = vpop.f32.mrf.mxu3 }
 0x26f   : > { %v2310_v25 = vpop.f32.mrf.mxu0 }
 0x270   : > { %v13746_v13 = vadd.f32 %v2279_v22, %v2251_v49  ;;  %v2311_v50 = vadd.f32 %v2310_v25, %v13664_v32  ;;  %v2339_v12 = vpop.f32.mrf.mxu1 }
 0x272   : > { %v13749_v17 = vadd.f32 %v2339_v12, %v2311_v50 }
 0x274   : > { %15790 = vst [vmem:[#allocation26_spill] sm:$0xff] %v13749_v17 }
 0x275   : > { %v2252_v24 = vpop.f32.mrf.mxu2 }
 0x276   : > { %v2253_v35 = vadd.f32 %v2252_v24, %v13672_v43  ;;  %v2281_v2 = vpop.f32.mrf.mxu3 }
 0x277   : > { %v2618_v9 = vpop.f32.mrf.mxu0 }
 0x278   : > { %v13752_v56 = vadd.f32 %v2281_v2, %v2253_v35  ;;  %v2647_v29 = vpop.f32.mrf.mxu1 }
 0x279   : > { %v2648_v7 = vadd.f32 %v2647_v29, %v2618_v9 }
 0x27a   : > { %15791 = vst [vmem:[#allocation27_spill] sm:$0xff] %v13752_v56  ;;  %3367 = vmatmul.bf16.vlgmr.msra.gmra.mxu2 %v13554_v44  ;;  %3425 = vmatmul.bf16.vlgmr.msrb.gmra.mxu0 %v13554_v44  ;;  %v11986_v56 = vld [vmem:[#allocation9 + $0x1e4] sm:$0xf0] }
 0x27b   : > { %v13757_v30 = vadd.f32 %v2648_v7, %v13677_v33  ;;  %3396 = vmatmul.bf16.vlgmr.msra.gmra.mxu3 %v13566_v55  ;;  %3454 = vmatmul.bf16.vlgmr.msrb.gmra.mxu1 %v13566_v55 }
 0x27d   : > { %v2560_v32 = vpop.f32.mrf.mxu2 }
 0x27e   : > { %v2589_v19 = vpop.f32.mrf.mxu3 }
 0x27f   : > { %v2590_v43 = vadd.f32 %v2589_v19, %v2560_v32  ;;  %v13761_v16 = vpop.f32.mrf.mxu0 }
 0x280   : > { %v13763_v6 = vpop.f32.mrf.mxu1 }
 0x281   : > { %v13766_v34 = vadd.f32 %v2590_v43, %v13682_v31 }
 0x285   : > { %v13768_v48 = vpop.f32.mrf.mxu2 }
 0x286   : > { %v13770_v44 = vpop.f32.mrf.mxu3 }
 0x287   : > { %v2623_v33 = vpop.f32.mrf.mxu0 }
 0x288   : > { %v2652_v20 = vpop.f32.mrf.mxu1 }
 0x289   : > { %v2653_v1 = vadd.f32 %v2652_v20, %v2623_v33  ;;  %v10057_v33 = vld [vmem:[#allocation9 + $0x170] sm:$0xf]  ;;  %v11972_v20 = vld [vmem:[#allocation9 + $0x174] sm:$0xf0] }
 0x28a   : > { %3372 = vmatmul.bf16.gmra.mxu2 %v13569_v59  ;;  %3430 = vmatmul.bf16.gmra.mxu0 %v13569_v59 }
 0x28b   : > { %v13775_v55 = vadd.f32 %v2653_v1, %v13703_v47  ;;  %3401 = vmatmul.bf16.gmra.mxu3 %v13572_v63  ;;  %3459 = vmatmul.bf16.gmra.mxu1 %v13572_v63  ;;  %v10121_v1 = vld [vmem:[#allocation9 + $0x1f0] sm:$0xf] }
 0x28d   : > { %v2565_v31 = vpop.f32.mrf.mxu2 }
 0x28e   : > { %v2594_v4 = vpop.f32.mrf.mxu3 }
 0x28f   : > { %v2595_v11 = vadd.f32 %v2594_v4, %v2565_v31  ;;  %v13779_v40 = vpop.f32.mrf.mxu0  ;;  %v10058_v31 = vor.u32 %v11972_v20, %v10057_v33  ;;  %v11988_v4 = vld [vmem:[#allocation9 + $0x1f4] sm:$0xf0]  ;;  %v10049_v20 = vld [vmem:[#allocation9 + $0x160] sm:$0xf] }
 0x290   : > { %v13781_v8 = vpop.f32.mrf.mxu1 }
 0x291   : > { %v13784_v21 = vadd.f32 %v2595_v11, %v13708_v61  ;;  %3913 = vmatpush.bf16.msrb.mxu2 %v10058_v31  ;;  %v10113_v31 = vld [vmem:[#allocation9 + $0x1e0] sm:$0xf] }
 0x295   : > { %v13786_v38 = vpop.f32.mrf.mxu2 }
 0x296   : > { %v13788_v59 = vpop.f32.mrf.mxu3 }
 0x297   : > { %v2628_v47 = vpop.f32.mrf.mxu0 }
 0x298   : > { %v2657_v54 = vpop.f32.mrf.mxu1 }
 0x299   : > { %v2658_v10 = vadd.f32 %v2657_v54, %v2628_v47  ;;  %v10122_v47 = vor.u32 %v11988_v4, %v10121_v1  ;;  %v11970_v1 = vld [vmem:[#allocation9 + $0x164] sm:$0xf0] }
 0x29a   : > { %3377 = vmatmul.bf16.gmra.mxu2 %v13591_v45  ;;  %3435 = vmatmul.bf16.gmra.mxu0 %v13591_v45 }
 0x29b   : > { %v13793_v63 = vadd.f32 %v2658_v10, %v13724_v37  ;;  %3406 = vmatmul.bf16.gmra.mxu3 %v13594_v28  ;;  %3464 = vmatmul.bf16.gmra.mxu1 %v13594_v28 }
 0x29c   : > { %3942 = vmatpush.bf16.msrb.mxu3 %v10122_v47  ;;  %v10050_v47 = vor.u32 %v11970_v1, %v10049_v20  ;;  %v10115_v1 = vld [vmem:[#allocation9 + $0x1e8] sm:$0xf0] }
 0x29d   : > { %v2570_v61 = vpop.f32.mrf.mxu2 }
 0x29e   : > { %v2599_v58 = vpop.f32.mrf.mxu3  ;;  %3914 = vmatpush.bf16.msrb.mxu2 %v10050_v47 }
 0x29f   : > { %v2600_v14 = vadd.f32 %v2599_v58, %v2570_v61  ;;  %v13797_v5 = vpop.f32.mrf.mxu0  ;;  %v11971_v58 = vld [vmem:[#allocation9 + $0x174] sm:$0xf] }
 0x2a0   : > { %v13799_v23 = vpop.f32.mrf.mxu1 }
 0x2a1   : > { %v13802_v52 = vadd.f32 %v2600_v14, %v13728_v53  ;;  %v10059_v14 = vld [vmem:[#allocation9 + $0x178] sm:$0xf0] }
 0x2a3   : > { %15792 = vst [vmem:[#allocation23_spill] sm:$0xff] %v13802_v52  ;;  %v10051_v52 = vld [vmem:[#allocation9 + $0x168] sm:$0xf0] }
 0x2a5   : > { %v13804_v51 = vpop.f32.mrf.mxu2 }
 0x2a6   : > { %v13806_v45 = vpop.f32.mrf.mxu3 }
 0x2a7   : > { %v2633_v37 = vpop.f32.mrf.mxu0 }
 0x2a8   : > { %v2662_v62 = vpop.f32.mrf.mxu1 }
 0x2a9   : > { %v2663_v46 = vadd.f32 %v2662_v62, %v2633_v37  ;;  %v11987_v37 = vld [vmem:[#allocation9 + $0x1f4] sm:$0xf]  ;;  %v10062_v62 = vor.u32 %v11971_v58, %v10059_v14 }
 0x2aa   : > { %3382 = vmatmul.bf16.gmra.mxu2 %v13597_v41  ;;  %3440 = vmatmul.bf16.gmra.mxu0 %v13597_v41 }
 0x2ab   : > { %v13811_v28 = vadd.f32 %v2663_v46, %v13742_v26  ;;  %3411 = vmatmul.bf16.gmra.mxu3 %v13600_v60  ;;  %3469 = vmatmul.bf16.gmra.mxu1 %v13600_v60  ;;  %v10123_v46 = vld [vmem:[#allocation9 + $0x1f8] sm:$0xf0] }
 0x2ac   : > { %3971 = vmatpush.bf16.msra.mxu0 %v10062_v62 }
 0x2ad   : > { %15793 = vst [vmem:[#allocation24_spill] sm:$0xff] %v13811_v28  ;;  %v2575_v53 = vpop.f32.mrf.mxu2  ;;  %v11969_v28 = vld [vmem:[#allocation9 + $0x164] sm:$0xf] }
 0x2ae   : > { %v2604_v42 = vpop.f32.mrf.mxu3 }
 0x2af   : > { %v2605_v0 = vadd.f32 %v2604_v42, %v2575_v53  ;;  %v13815_v27 = vpop.f32.mrf.mxu0  ;;  %v10126_v53 = vor.u32 %v11987_v37, %v10123_v46 }
 0x2b0   : > { %v13817_v49 = vpop.f32.mrf.mxu1 }
 0x2b1   : > { %v13820_v22 = vadd.f32 %v2605_v0, %v13746_v13  ;;  %4000 = vmatpush.bf16.msra.mxu1 %v10126_v53 }
 0x2b3   : > { %15794 = vst [vmem:[#allocation28_spill] sm:$0xff] %v13820_v22  ;;  %v10114_v22 = vor.u32 %v11986_v56, %v10113_v31  ;;  %v10054_v56 = vor.u32 %v11969_v28, %v10051_v52  ;;  %v11968_v31 = vld [vmem:[#allocation9 + $0x154] sm:$0xf0]  ;;  %v11967_v28 = vld [vmem:[#allocation9 + $0x154] sm:$0xf] }
 0x2b5   : > { %v13822_v25 = vpop.f32.mrf.mxu2  ;;  %3943 = vmatpush.bf16.msrb.mxu3 %v10114_v22  ;;  %v10041_v22 = vld [vmem:[#allocation9 + $0x150] sm:$0xf]  ;;  %3972 = vmatpush.bf16.msra.mxu0 %v10054_v56 }
 0x2b6   : > { %15795 = vst [vmem:[#allocation29_spill] sm:$0xff] %v13822_v25  ;;  %v13824_v41 = vpop.f32.mrf.mxu3  ;;  %v10042_v17 = vor.u32 %v11968_v31, %v10041_v22  ;;  %v10033_v22 = vld [vmem:[#allocation9 + $0x140] sm:$0xf]  ;;  %v11966_v31 = vld [vmem:[#allocation9 + $0x144] sm:$0xf0] }
 0x2b7   : > { %15796 = vst [vmem:[#allocation30_spill] sm:$0xff] %v13824_v41  ;;  %v13826_v26 = vpop.f32.mrf.mxu0  ;;  %v11985_v41 = vld [vmem:[#allocation9 + $0x1e4] sm:$0xf] }
 0x2b8   : > { %v13828_v50 = vpop.f32.mrf.mxu1  ;;  %v10118_v25 = vor.u32 %v11985_v41, %v10115_v1  ;;  %3915 = vmatpush.bf16.msrb.mxu2 %v10042_v17  ;;  %v10107_v1 = vld [vmem:[#allocation9 + $0x1d8] sm:$0xf0]  ;;  %v10097_v17 = vld [vmem:[#allocation9 + $0x1c0] sm:$0xf] }
 0x2ba   : > { %4001 = vmatpush.bf16.msra.mxu1 %v10118_v25  ;;  %v10034_v25 = vor.u32 %v11966_v31, %v10033_v22 }
 0x2bc   : > { %3916 = vmatpush.bf16.msrb.mxu2 %v10034_v25 }
 0x2bd   : > { %v13830_v12 = vpop.f32.mrf.mxu2 }
 0x2be   : > { %v13832_v60 = vpop.f32.mrf.mxu3 }
 0x2bf   : > { %v13834_v24 = vpop.f32.mrf.mxu0 }
 0x2c0   : > { %v13836_v35 = vpop.f32.mrf.mxu1 }
 0x2c5   : > { %v13838_v2 = vpop.f32.mrf.mxu2 }
 0x2c6   : > { %v13840_v13 = vpop.f32.mrf.mxu3 }
 0x2c7   : > { %v13842_v9 = vpop.f32.mrf.mxu0 }
 0x2c8   : > { %v13844_v29 = vpop.f32.mrf.mxu1 }
 0x2cd   : > { %v13846_v7 = vpop.f32.mrf.mxu2 }
 0x2ce   : > { %v13848_v32 = vpop.f32.mrf.mxu3 }
 0x2cf   : > { %v13850_v19 = vpop.f32.mrf.mxu0 }
 0x2d0   : > { %v13852_v43 = vpop.f32.mrf.mxu1 }
 0x2d5   : > { %v13854_v11 = vpop.f32.mrf.mxu2 }
 0x2d6   : > { %v13856_v54 = vpop.f32.mrf.mxu3 }
 0x2d7   : > { %v13858_v10 = vpop.f32.mrf.mxu0 }
 0x2d8   : > { %v13860_v61 = vpop.f32.mrf.mxu1 }
 0x2dd   : > { %v13862_v42 = vpop.f32.mrf.mxu2 }
 0x2de   : > { %v13864_v0 = vpop.f32.mrf.mxu3 }
 0x2df   : > { %v13866_v33 = vpop.f32.mrf.mxu0 }
 0x2e0   : > { %v13868_v4 = vpop.f32.mrf.mxu1 }
 0x2e5   : > { %v13870_v58 = vpop.f32.mrf.mxu2 }
 0x2e6   : > { %15797 = vst [vmem:[#allocation31_spill] sm:$0xff] %v13870_v58  ;;  %v13872_v14 = vpop.f32.mrf.mxu3 }
 0x2e7   : > { %15798 = vst [vmem:[#allocation32_spill] sm:$0xff] %v13872_v14  ;;  %v13874_v37 = vpop.f32.mrf.mxu0  ;;  %v11983_v14 = vld [vmem:[#allocation9 + $0x1d4] sm:$0xf] }
 0x2e8   : > { %15799 = vst [vmem:[#allocation33_spill] sm:$0xff] %v13874_v37  ;;  %v13876_v62 = vpop.f32.mrf.mxu1  ;;  %v11984_v37 = vld [vmem:[#allocation9 + $0x1d4] sm:$0xf0] }
 0x2e9   : > { %15800 = vst [vmem:[#allocation34_spill] sm:$0xff] %v13876_v62  ;;  %v10106_v62 = vor.u32 %v11984_v37, %v10105_v39  ;;  %v10110_v39 = vor.u32 %v11983_v14, %v10107_v1  ;;  %v11982_v37 = vld [vmem:[#allocation9 + $0x1c4] sm:$0xf0]  ;;  %v2650_v14 = vadd.f32 %v13763_v6, %v13761_v16  ;;  %v10025_v16 = vld [vmem:[#allocation9 + $0x130] sm:$0xf] }
 0x2ea   : > { %v11964_v6 = vld [vmem:[#allocation9 + $0x134] sm:$0xf0] }
 0x2eb   : > { %3944 = vmatpush.bf16.msrb.mxu3 %v10106_v62  ;;  %4002 = vmatpush.bf16.msra.mxu1 %v10110_v39 }
 0x2ed   : > { %v13878_v46 = vpop.f32.mrf.mxu2 }
 0x2ee   : > { %15801 = vst [vmem:[#allocation35_spill] sm:$0xff] %v13878_v46  ;;  %v13880_v53 = vpop.f32.mrf.mxu3  ;;  %v10043_v46 = vld [vmem:[#allocation9 + $0x158] sm:$0xf0] }
 0x2ef   : > { %15802 = vst [vmem:[#allocation36_spill] sm:$0xff] %v13880_v53  ;;  %v13882_v20 = vpop.f32.mrf.mxu0  ;;  %v10046_v41 = vor.u32 %v11967_v28, %v10043_v46  ;;  %v3041_v46 = vadd.f32 %v13832_v60, %v13830_v12 }
 0x2f0   : > { %15803 = vst [vmem:[#allocation37_spill] sm:$0xff] %v13882_v20  ;;  %v13884_v47 = vpop.f32.mrf.mxu1  ;;  %v3099_v20 = vadd.f32 %v13828_v50, %v13826_v26  ;;  %v3491_v26 = vld [vmem:[%s15752_s7] sm:$0x3]  ;;  %v10098_v50 = vor.u32 %v11982_v37, %v10097_v17  ;;  %v10099_v17 = vld [vmem:[#allocation9 + $0x1c8] sm:$0xf0] }
 0x2f1   : > { %15804 = vst [vmem:[#allocation38_spill] sm:$0xff] %v13884_v47  ;;  %3973 = vmatpush.bf16.msra.mxu0 %v10046_v41  ;;  %v13900_v1 = vperm.slane %v3491_v26, 1  ;;  %v13902_v22 = vperm.slane %v3491_v26, 0  ;;  %v3101_v41 = vadd.f32 %v13836_v35, %v13834_v24  ;;  %v3118_v39 = vadd.f32 %v3041_v46, %v13766_v34  ;;  %v10089_v24 = vld [vmem:[#allocation9 + $0x1b0] sm:$0xf] }
 0x2f2   : > { %3945 = vmatpush.bf16.msrb.mxu3 %v10098_v50  ;;  %v10026_v50 = vor.u32 %v11964_v6, %v10025_v16  ;;  %v11980_v35 = vld [vmem:[#allocation9 + $0x1b4] sm:$0xf0]  ;;  %v10081_v6 = vld [vmem:[#allocation9 + $0x1a0] sm:$0xf] }
 0x2f3   : > { %v10090_v46 = vor.u32 %v11980_v35, %v10089_v24  ;;  %v2655_v24 = vadd.f32 %v13781_v8, %v13779_v40  ;;  %v3046_v35 = vadd.f32 %v13848_v32, %v13846_v7  ;;  %v10019_v40 = vld [vmem:[#allocation9 + $0x128] sm:$0xf0] }
 0x2f4   : > { %3917 = vmatpush.bf16.msrb.mxu2 %v10026_v50 }
 0x2f5   : > { %v13886_v53 = vpop.f32.mrf.mxu2  ;;  %v2674_v8 = vadd.f32 %v2655_v24, %v13713_v15  ;;  %v3122_v7 = vadd.f32 %v3046_v35, %v13784_v21  ;;  %v10073_v15 = vld [vmem:[#allocation9 + $0x190] sm:$0xf]  ;;  %v11975_v35 = vld [vmem:[#allocation9 + $0x194] sm:$0xf] }
 0x2f6   : > { %15805 = vst [vmem:[#allocation39_spill] sm:$0xff] %v13886_v53  ;;  %v13890_v52 = vpop.f32.mrf.mxu3  ;;  %v2592_v53 = vadd.f32 %v13770_v44, %v13768_v48  ;;  %3946 = vmatpush.bf16.msrb.mxu3 %v10090_v46  ;;  %v3104_v48 = vadd.f32 %v13844_v29, %v13842_v9 }
 0x2f7   : > { %15806 = vst [vmem:[#allocation40_spill] sm:$0xff] %v13890_v52  ;;  %v3426_v47 = vpop.f32.mrf.mxu0  ;;  %v3119_v52 = vadd.f32 %v3099_v20, %v13757_v30  ;;  %v11965_v30 = vld [vmem:[#allocation9 + $0x144] sm:$0xf]  ;;  %v10035_v20 = vld [vmem:[#allocation9 + $0x148] sm:$0xf0] }
 0x2f8   : > { %v3455_v56 = vpop.f32.mrf.mxu1  ;;  %v10038_v25 = vor.u32 %v11965_v30, %v10035_v20  ;;  %v11963_v20 = vld [vmem:[#allocation9 + $0x134] sm:$0xf] }
 0x2f9   : > { %v3456_v62 = vadd.f32 %v3455_v56, %v3426_v47  ;;  %v11981_v56 = vld [vmem:[#allocation9 + $0x1c4] sm:$0xf] }
 0x2fa   : > { %v10102_v26 = vor.u32 %v11981_v56, %v10099_v17  ;;  %3974 = vmatpush.bf16.msra.mxu0 %v10038_v25  ;;  %v11979_v56 = vld [vmem:[#allocation9 + $0x1b4] sm:$0xf]  ;;  %v11962_v25 = vld [vmem:[#allocation9 + $0x124] sm:$0xf0] }
 0x2fb   : > { %v3476_v28 = vadd.f32 %v3456_v62, %v3119_v52  ;;  %v2670_v52 = vadd.f32 %v2650_v14, %v13687_v18  ;;  %v3043_v18 = vadd.f32 %v13840_v13, %v13838_v2  ;;  %v10091_v13 = vld [vmem:[#allocation9 + $0x1b8] sm:$0xf0] }
 0x2fc   : > { %4003 = vmatpush.bf16.msra.mxu1 %v10102_v26  ;;  %v3123_v26 = vadd.f32 %v3104_v48, %v13775_v55  ;;  %v3106_v55 = vadd.f32 %v13852_v43, %v13850_v19  ;;  %v11977_v48 = vld [vmem:[#allocation9 + $0x1a4] sm:$0xf]  ;;  %v2660_v19 = vadd.f32 %v13799_v23, %v13797_v5 }
 0x2fd   : > { %v3368_v47 = vpop.f32.mrf.mxu2  ;;  %v3498_v37 = vadd.f32 %v13900_v1, %v3476_v28 }
 0x2fe   : > { %v3397_v31 = vpop.f32.mrf.mxu3 }
 0x2ff   : > { %v3398_v12 = vadd.f32 %v3397_v31, %v3368_v47  ;;  %v3428_v60 = vpop.f32.mrf.mxu0  ;;  %v3121_v47 = vadd.f32 %v3101_v41, %v2670_v52  ;;  %12517 = vtanh.f32 %v3498_v37  ;;  %v2669_v31 = vadd.f32 %v2592_v53, %v13697_v57  ;;  %v10027_v41 = vld [vmem:[#allocation9 + $0x138] sm:$0xf0]  ;;  %v11978_v52 = vld [vmem:[#allocation9 + $0x1a4] sm:$0xf0] }
 0x300   : > { %v3457_v62 = vpop.f32.mrf.mxu1  ;;  %v10030_v2 = vor.u32 %v11963_v20, %v10027_v41  ;;  %v10094_v57 = vor.u32 %v11979_v56, %v10091_v13  ;;  %v10082_v29 = vor.u32 %v11978_v52, %v10081_v6  ;;  %v10009_v20 = vld [vmem:[#allocation9 + $0x110] sm:$0xf]  ;;  %v2597_v41 = vadd.f32 %v13788_v59, %v13786_v38 }
 0x301   : > { %v3475_v58 = vadd.f32 %v3398_v12, %v3118_v39  ;;  %v3458_v34 = vadd.f32 %v3457_v62, %v3428_v60  ;;  %v3120_v39 = vadd.f32 %v3043_v18, %v2669_v31  ;;  %v3048_v38 = vadd.f32 %v13856_v54, %v13854_v11 }
 0x302   : > { %3975 = vmatpush.bf16.msra.mxu0 %v10030_v2  ;;  %4004 = vmatpush.bf16.msra.mxu1 %v10094_v57  ;;  %v3109_v59 = vadd.f32 %v13860_v61, %v13858_v10  ;;  %v2678_v6 = vadd.f32 %v2660_v19, %v13732_v3  ;;  %v2602_v11 = vadd.f32 %v13806_v45, %v13804_v51  ;;  %v15807_v51 = vld [vmem:[#allocation31_spill] sm:$0xff]  ;;  %v15808_v45 = vld [vmem:[#allocation32_spill] sm:$0xff] }
 0x303   : > { %v3497_v14 = vadd.f32 %v13902_v22, %v3475_v58  ;;  %v3478_v28 = vadd.f32 %v3458_v34, %v3121_v47  ;;  %v10017_v58 = vld [vmem:[#allocation9 + $0x120] sm:$0xf]  ;;  %3947 = vmatpush.bf16.msrb.mxu3 %v10082_v29  ;;  %v2665_v54 = vadd.f32 %v13817_v49, %v13815_v27  ;;  %v10011_v29 = vld [vmem:[#allocation9 + $0x118] sm:$0xf0]  ;;  %v15809_v27 = vld [vmem:[#allocation33_spill] sm:$0xff] }
 0x304   : > { %v10018_v53 = vor.u32 %v11962_v25, %v10017_v58  ;;  %v3127_v52 = vadd.f32 %v3109_v59, %v13793_v63  ;;  %v15810_v49 = vld [vmem:[#allocation34_spill] sm:$0xff] }
 0x305   : > { %12519 = vtanh.f32 %v3497_v14  ;;  %v3370_v30 = vpop.f32.mrf.mxu2  ;;  %v3500_v17 = vadd.f32 %v13900_v1, %v3478_v28  ;;  %v12518_v62 = vpop.eup %12517  ;;  %v11961_v28 = vld [vmem:[#allocation9 + $0x124] sm:$0xf] }
 0x306   : > { %v3399_v44 = vpop.f32.mrf.mxu3  ;;  %3918 = vmatpush.bf16.msrb.mxu2 %v10018_v53 }
 0x307   : > { %v3400_v12 = vadd.f32 %v3399_v44, %v3370_v30  ;;  %v3431_v60 = vpop.f32.mrf.mxu0  ;;  %12521 = vtanh.f32 %v3500_v17  ;;  %v10022_v30 = vor.u32 %v11961_v28, %v10019_v40  ;;  %v10083_v44 = vld [vmem:[#allocation9 + $0x1a8] sm:$0xf0]  ;;  %v3125_v17 = vadd.f32 %v3106_v55, %v2674_v8  ;;  %v11958_v8 = vld [vmem:[#allocation9 + $0x104] sm:$0xf0] }
 0x308   : > { %v3460_v16 = vpop.f32.mrf.mxu1 }
 0x309   : > { %v3477_v37 = vadd.f32 %v3400_v12, %v3120_v39  ;;  %v3461_v9 = vadd.f32 %v3460_v16, %v3431_v60  ;;  %v10086_v39 = vor.u32 %v11977_v48, %v10083_v44  ;;  %v11960_v12 = vld [vmem:[#allocation9 + $0x114] sm:$0xf0]  ;;  %3976 = vmatpush.bf16.msra.mxu0 %v10022_v30  ;;  %v2673_v16 = vadd.f32 %v2597_v41, %v13719_v36  ;;  %v15815_v41 = vld [vmem:[#allocation25_spill] sm:$0xff] }
 0x30a   : > { %v11976_v60 = vld [vmem:[#allocation9 + $0x194] sm:$0xf0]  ;;  %v10010_v13 = vor.u32 %v11960_v12, %v10009_v20  ;;  %v3051_v36 = vadd.f32 %v13864_v0, %v13862_v42  ;;  %v10001_v42 = vld [vmem:[#allocation9 + $0x100] sm:$0xf]  ;;  %v2677_v19 = vadd.f32 %v2602_v11, %v15815_v41 }
 0x30b   : > { %v12520_v50 = vpop.eup %12519  ;;  %v3499_v34 = vadd.f32 %v13902_v22, %v3477_v37  ;;  %v3480_v47 = vadd.f32 %v3461_v9, %v3123_v26  ;;  %v10074_v58 = vor.u32 %v11976_v60, %v10073_v15  ;;  %4005 = vmatpush.bf16.msra.mxu1 %v10086_v39  ;;  %v3124_v61 = vadd.f32 %v3048_v38, %v2673_v16  ;;  %v11959_v9 = vld [vmem:[#allocation9 + $0x114] sm:$0xf]  ;;  %v15811_v0 = vld [vmem:[#allocation35_spill] sm:$0xff]  ;;  %v15818_v12 = vld [vmem:[#allocation30_spill] sm:$0xff] }
 0x30c   : > { %v13924_v46 = vpack.c.bf16 %v12518_v62, %v12520_v50  ;;  %3919 = vmatpush.bf16.msrb.mxu2 %v10010_v13  ;;  %v3111_v37 = vadd.f32 %v13868_v4, %v13866_v33  ;;  %v3053_v62 = vadd.f32 %v15808_v45, %v15807_v51  ;;  %v3114_v26 = vadd.f32 %v15810_v49, %v15809_v27  ;;  %v15813_v4 = vld [vmem:[#allocation37_spill] sm:$0xff]  ;;  %v15819_v60 = vld [vmem:[#allocation23_spill] sm:$0xff]  ;;  %v15820_v38 = vld [vmem:[#allocation24_spill] sm:$0xff] }
 0x30d   : > { %12523 = vtanh.f32 %v3499_v34  ;;  %v3373_v18 = vpop.f32.mrf.mxu2  ;;  %v3502_v43 = vadd.f32 %v13900_v1, %v3480_v47  ;;  %v12522_v25 = vpop.eup %12521  ;;  %3948 = vmatpush.bf16.msrb.mxu3 %v10074_v58  ;;  %v10014_v63 = vor.u32 %v11959_v9, %v10011_v29  ;;  %v10075_v34 = vld [vmem:[#allocation9 + $0x198] sm:$0xf0]  ;;  %v15812_v47 = vld [vmem:[#allocation36_spill] sm:$0xff]  ;;  %v10002_v48 = vor.u32 %v11958_v8, %v10001_v42  ;;  %v15817_v39 = vld [vmem:[#allocation29_spill] sm:$0xff] }
 0x30e   : > { %3537 = vst [vmem:[#allocation3 + $0x10] sm:$0xff] %v13924_v46  ;;  %v3402_v14 = vpop.f32.mrf.mxu3  ;;  %v3056_v33 = vadd.f32 %v15812_v47, %v15811_v0  ;;  %v10078_v40 = vor.u32 %v11975_v35, %v10075_v34  ;;  %v13968_v15 = vadd.f32 %v15818_v12, %v15817_v39  ;;  %v3129_v13 = vadd.f32 %v3111_v37, %v2678_v6  ;;  %v11973_v45 = vld [vmem:[#allocation9 + $0x184] sm:$0xf]  ;;  %v3545_v27 = vld [vmem:[#allocation3 + $0x8] sm:$0x88] }
 0x30f   : > { %v3403_v32 = vadd.f32 %v3402_v14, %v3373_v18  ;;  %v3433_v31 = vpop.f32.mrf.mxu0  ;;  %12525 = vtanh.f32 %v3502_v43  ;;  %v15814_v18 = vld [vmem:[#allocation38_spill] sm:$0xff]  ;;  %3977 = vmatpush.bf16.msra.mxu0 %v10014_v63  ;;  %v13975_v59 = vadd.f32 %v3114_v26, %v15820_v38  ;;  %v3630_v35 = vunpack.c.h.b16 %v3545_v27  ;;  %v10185_v34 = vld [vmem:[#allocation9 + $0x70] sm:$0xf] }
 0x310   : > { %v3462_v56 = vpop.f32.mrf.mxu1  ;;  %v3116_v55 = vadd.f32 %v15814_v18, %v15813_v4  ;;  %v15816_v43 = vld [vmem:[#allocation26_spill] sm:$0xff]  ;;  %4006 = vmatpush.bf16.msra.mxu1 %v10078_v40  ;;  %3920 = vmatpush.bf16.msrb.mxu2 %v10002_v48  ;;  %v10249_v0 = vld [vmem:[#allocation9 + $0xf0] sm:$0xf] }
 0x311   : > { %v3479_v21 = vadd.f32 %v3403_v32, %v3122_v7  ;;  %v3463_v2 = vadd.f32 %v3462_v56, %v3433_v31  ;;  %v10065_v7 = vld [vmem:[#allocation9 + $0x180] sm:$0xf]  ;;  %v11974_v32 = vld [vmem:[#allocation9 + $0x184] sm:$0xf0]  ;;  %v2682_v56 = vadd.f32 %v2665_v54, %v15816_v43  ;;  %v11940_v42 = vld [vmem:[#allocation9 + $0x74] sm:$0xf0] }
 0x312   : > { %v10066_v44 = vor.u32 %v11974_v32, %v10065_v7  ;;  %v10186_v18 = vor.u32 %v11940_v42, %v10185_v34 }
 0x313   : > { %v12524_v5 = vpop.eup %12523  ;;  %v3501_v23 = vadd.f32 %v13902_v22, %v3479_v21  ;;  %v3482_v53 = vadd.f32 %v3463_v2, %v3125_v17  ;;  %v3126_v21 = vadd.f32 %v3051_v36, %v15819_v60  ;;  %v13972_v17 = vadd.f32 %v3053_v62, %v2677_v19  ;;  %v10067_v62 = vld [vmem:[#allocation9 + $0x188] sm:$0xf0] }
 0x314   : > { %v13942_v57 = vpack.c.bf16 %v12522_v25, %v12524_v5  ;;  %3949 = vmatpush.bf16.msrb.mxu3 %v10066_v44  ;;  %4220 = vmatpush.bf16.msra.mxu2 %v10186_v18 }
 0x315   : > { %12527 = vtanh.f32 %v3501_v23  ;;  %v3375_v10 = vpop.f32.mrf.mxu2  ;;  %v3504_v14 = vadd.f32 %v13900_v1, %v3482_v53  ;;  %v12526_v20 = vpop.eup %12525  ;;  %v15821_v23 = vld [vmem:[#allocation28_spill] sm:$0xff]  ;;  %v13982_v53 = vadd.f32 %v3116_v55, %v2682_v56  ;;  %v11956_v55 = vld [vmem:[#allocation9 + $0xf4] sm:$0xf0] }
 0x316   : > { %3538 = vst [vmem:[#allocation3 + $0x18] sm:$0xff] %v13942_v57  ;;  %v3404_v3 = vpop.f32.mrf.mxu3  ;;  %v13980_v16 = vadd.f32 %v3056_v33, %v15821_v23  ;;  %v3633_v36 = vunpack.c.l.b16 %v13942_v57  ;;  %v3634_v49 = vunpack.c.h.b16 %v13942_v57  ;;  %v10250_v44 = vor.u32 %v11956_v55, %v10249_v0  ;;  %v15822_v23 = vld [vmem:[#allocation39_spill] sm:$0xff]  ;;  %v10251_v0 = vld [vmem:[#allocation9 + $0xf8] sm:$0xf0] }
 0x317   : > { %v3405_v50 = vadd.f32 %v3404_v3, %v3375_v10  ;;  %v3436_v24 = vpop.f32.mrf.mxu0  ;;  %12529 = vtanh.f32 %v3504_v14  ;;  %v11957_v10 = vld [vmem:[#allocation9 + $0x104] sm:$0xf]  ;;  %v3632_v3 = vunpack.c.h.b16 %v13924_v46 }
 0x318   : > { %v3465_v28 = vpop.f32.mrf.mxu1  ;;  %4249 = vmatpush.bf16.msra.mxu3 %v10250_v44 }
 0x319   : > { %v3481_v31 = vadd.f32 %v3405_v50, %v3124_v61  ;;  %v3466_v30 = vadd.f32 %v3465_v28, %v3436_v24  ;;  %v10003_v61 = vld [vmem:[#allocation9 + $0x108] sm:$0xf0]  ;;  %v10070_v50 = vor.u32 %v11973_v45, %v10067_v62  ;;  %v3629_v24 = vunpack.c.l.b16 %v3545_v27 }
 0x31a   : > { %v10006_v51 = vor.u32 %v11957_v10, %v10003_v61  ;;  %v14006_v7 = vpack.c.b16 %v3632_v3, %v3630_v35 }
 0x31b   : > { %v12528_v2 = vpop.eup %12527  ;;  %v3503_v58 = vadd.f32 %v13902_v22, %v3481_v31  ;;  %v3484_v25 = vadd.f32 %v3466_v30, %v3127_v52  ;;  %v3631_v52 = vunpack.c.l.b16 %v13924_v46  ;;  %4007 = vmatpush.bf16.msra.mxu1 %v10070_v50 }
 0x31c   : > { %v13977_v5 = vpack.c.bf16 %v12526_v20, %v12528_v2  ;;  %3978 = vmatpush.bf16.msra.mxu0 %v10006_v51  ;;  %v10187_v51 = vld [vmem:[#allocation9 + $0x78] sm:$0xf0] }
 0x31d   : > { %12531 = vtanh.f32 %v3503_v58  ;;  %v3506_v6 = vadd.f32 %v13900_v1, %v3484_v25  ;;  %v3378_v11 = vpop.f32.mrf.mxu2  ;;  %v12530_v14 = vpop.eup %12529  ;;  %v14000_v28 = vpack.c.b16 %v3631_v52, %v3629_v24  ;;  %v3678_v25 = vshll.u32 %v14006_v7, 16  ;;  %v11955_v24 = vld [vmem:[#allocation9 + $0xf4] sm:$0xf] }
 0x31e   : > { %3539 = vst [vmem:[#allocation3 + $0x20] sm:$0xff] %v13977_v5  ;;  %v3407_v54 = vpop.f32.mrf.mxu3  ;;  %v3635_v37 = vunpack.c.l.b16 %v13977_v5  ;;  %v3636_v4 = vunpack.c.h.b16 %v13977_v5 }
 0x31f   : > { %12533 = vtanh.f32 %v3506_v6  ;;  %v3408_v9 = vadd.f32 %v3407_v54, %v3378_v11  ;;  %v3438_v29 = vpop.f32.mrf.mxu0  ;;  %v3658_v41 = vshrl.u32 %v14000_v28, 16  ;;  %v3661_v19 = vshll.u32 %v14000_v28, 16  ;;  %v15823_v6 = vld [vmem:[#allocation40_spill] sm:$0xff] }
 0x320   : > { %v3467_v26 = vpop.f32.mrf.mxu1  ;;  %v13995_v63 = vpack.c.b16 %v3635_v37, %v3633_v36  ;;  %v14013_v48 = vpack.c.b16 %v3636_v4, %v3634_v49  ;;  %v14026_v11 = vadd.f32 %v15823_v6, %v15822_v23  ;;  %v3680_v27 = vrot.slane %v3678_v25, 4 }
 0x321   : > { %v3483_v47 = vadd.f32 %v3408_v9, %v3126_v21  ;;  %v3468_v33 = vadd.f32 %v3467_v26, %v3438_v29  ;;  %v3675_v21 = vshrl.u32 %v14006_v7, 16  ;;  %v3663_v58 = vrot.slane %v3661_v19, 4  ;;  %v11939_v29 = vld [vmem:[#allocation9 + $0x74] sm:$0xf]  ;;  %v10179_v19 = vld [vmem:[#allocation9 + $0x68] sm:$0xf0] }
 0x322   : > { %v3666_v40 = vshrl.u32 %v13995_v63, 16  ;;  %v3669_v8 = vshll.u32 %v13995_v63, 16  ;;  %v3683_v38 = vshrl.u32 %v14013_v48, 16  ;;  %v3686_v50 = vshll.u32 %v14013_v48, 16 }
 0x323   : > { %v12532_v32 = vpop.eup %12531  ;;  %v3505_v31 = vadd.f32 %v13902_v22, %v3483_v47  ;;  %v3486_v30 = vadd.f32 %v3468_v33, %v3129_v13  ;;  %v3660_v13 = vrot.slane %v3658_v41, 3  ;;  %v3677_v9 = vrot.slane %v3675_v21, 3  ;;  %v10177_v47 = vld [vmem:[#allocation9 + $0x60] sm:$0xf]  ;;  %v11938_v33 = vld [vmem:[#allocation9 + $0x64] sm:$0xf0] }
 0x324   : > { %v14015_v20 = vpack.c.bf16 %v12530_v14, %v12532_v32  ;;  %v3668_v43 = vrot.slane %v3666_v40, 3  ;;  %v3671_v60 = vrot.slane %v3669_v8, 4  ;;  %v3685_v26 = vrot.slane %v3683_v38, 3  ;;  %v10241_v8 = vld [vmem:[#allocation9 + $0xe0] sm:$0xf] }
 0x325   : > { %v12534_v56 = vpop.eup %12533  ;;  %12535 = vtanh.f32 %v3505_v31  ;;  %v3508_v39 = vadd.f32 %v13900_v1, %v3486_v30  ;;  %v3380_v12 = vpop.f32.mrf.mxu2  ;;  %v3664_v62 = vor.u32 %v3663_v58, %v3660_v13  ;;  %v10190_v42 = vor.u32 %v11939_v29, %v10187_v51  ;;  %v11954_v32 = vld [vmem:[#allocation9 + $0xe4] sm:$0xf0]  ;;  %v11937_v41 = vld [vmem:[#allocation9 + $0x64] sm:$0xf]  ;;  %v10169_v58 = vld [vmem:[#allocation9 + $0x50] sm:$0xf] }
 0x326   : > { %3540 = vst [vmem:[#allocation3 + $0x28] sm:$0xff] %v14015_v20  ;;  %v3409_v2 = vpop.f32.mrf.mxu3  ;;  %v14028_v61 = vor.u32 %v3671_v60, %v3668_v43  ;;  %v3681_v55 = vor.u32 %v3680_v27, %v3677_v9  ;;  %v3688_v14 = vrot.slane %v3686_v50, 4  ;;  %v10254_v40 = vor.u32 %v11955_v24, %v10251_v0  ;;  %v11953_v43 = vld [vmem:[#allocation9 + $0xe4] sm:$0xf]  ;;  %v10171_v27 = vld [vmem:[#allocation9 + $0x58] sm:$0xf0] }
 0x327   : > { %v3410_v54 = vadd.f32 %v3409_v2, %v3380_v12  ;;  %v3441_v10 = vpop.f32.mrf.mxu0  ;;  %12537 = vtanh.f32 %v3508_v39  ;;  %v3637_v39 = vunpack.c.l.b16 %v14015_v20  ;;  %4278 = vmatpush.bf16.msrb.mxu0 %v10190_v42  ;;  %v10242_v21 = vor.u32 %v11954_v32, %v10241_v8  ;;  %v10243_v2 = vld [vmem:[#allocation9 + $0xe8] sm:$0xf0]  ;;  %v10235_v0 = vld [vmem:[#allocation9 + $0xd8] sm:$0xf0]  ;;  %v10225_v8 = vld [vmem:[#allocation9 + $0xc0] sm:$0xf] }
 0x328   : > { %v3470_v45 = vpop.f32.mrf.mxu1  ;;  %v3673_v18 = vsel %vm543_vm0, %v3664_v62, %v14028_v61  ;;  %v14039_v60 = vor.u32 %v3688_v14, %v3685_v26  ;;  %4307 = vmatpush.bf16.msrb.mxu1 %v10254_v40  ;;  %v3638_v13 = vunpack.c.h.b16 %v14015_v20  ;;  %v10182_v23 = vor.u32 %v11937_v41, %v10179_v19  ;;  %v11951_v26 = vld [vmem:[#allocation9 + $0xd4] sm:$0xf]  ;;  %v11950_v32 = vld [vmem:[#allocation9 + $0xc4] sm:$0xf0]  ;;  %v10163_v19 = vld [vmem:[#allocation9 + $0x48] sm:$0xf0] }
 0x329   : > { %v3485_v35 = vadd.f32 %v3410_v54, %v13972_v17  ;;  %v3471_v34 = vadd.f32 %v3470_v45, %v3441_v10  ;;  %3921 = vmatmul.bf16.vlgmr.msrb.gmra.mxu2 %v3673_v18  ;;  %3979 = vmatmul.bf16.vlgmr.msra.gmra.mxu0 %v3673_v18  ;;  %v10178_v17 = vor.u32 %v11938_v33, %v10177_v47  ;;  %v10233_v54 = vld [vmem:[#allocation9 + $0xd0] sm:$0xf]  ;;  %v11935_v10 = vld [vmem:[#allocation9 + $0x54] sm:$0xf]  ;;  %v10161_v47 = vld [vmem:[#allocation9 + $0x40] sm:$0xf] }
 0x32a   : > { %v10246_v6 = vor.u32 %v11953_v43, %v10243_v2  ;;  %v3690_v29 = vsel %vm543_vm0, %v3681_v55, %v14039_v60  ;;  %4250 = vmatpush.bf16.msra.mxu3 %v10242_v21  ;;  %v10174_v42 = vor.u32 %v11935_v10, %v10171_v27  ;;  %v11934_v33 = vld [vmem:[#allocation9 + $0x44] sm:$0xf0]  ;;  %v10238_v40 = vor.u32 %v11951_v26, %v10235_v0  ;;  %v11949_v43 = vld [vmem:[#allocation9 + $0xc4] sm:$0xf]  ;;  %v10227_v21 = vld [vmem:[#allocation9 + $0xc8] sm:$0xf0] }
 0x32b   : > { %v12536_v31 = vpop.eup %12535  ;;  %v3507_v30 = vadd.f32 %v13902_v22, %v3485_v35  ;;  %v3488_v44 = vadd.f32 %v3471_v34, %v13975_v59  ;;  %v11936_v59 = vld [vmem:[#allocation9 + $0x54] sm:$0xf0]  ;;  %4221 = vmatpush.bf16.msra.mxu2 %v10178_v17  ;;  %3950 = vmatmul.bf16.vlgmr.msrb.gmra.mxu3 %v3690_v29  ;;  %v10162_v17 = vor.u32 %v11934_v33, %v10161_v47 }
 0x32c   : > { %v14037_v12 = vpack.c.bf16 %v12534_v56, %v12536_v31  ;;  %v11952_v56 = vld [vmem:[#allocation9 + $0xd4] sm:$0xf0]  ;;  %v10170_v62 = vor.u32 %v11936_v59, %v10169_v58  ;;  %4008 = vmatmul.bf16.vlgmr.msra.gmra.mxu1 %v3690_v29  ;;  %4279 = vmatpush.bf16.msrb.mxu0 %v10182_v23  ;;  %v11933_v31 = vld [vmem:[#allocation9 + $0x44] sm:$0xf]  ;;  %v10226_v41 = vor.u32 %v11950_v32, %v10225_v8  ;;  %v11947_v8 = vld [vmem:[#allocation9 + $0xb4] sm:$0xf] }
 0x32d   : > { %12539 = vtanh.f32 %v3507_v30  ;;  %v3510_v25 = vadd.f32 %v13900_v1, %v3488_v44  ;;  %v3383_v38 = vpop.f32.mrf.mxu2  ;;  %v12538_v50 = vpop.eup %12537  ;;  %v10234_v34 = vor.u32 %v11952_v56, %v10233_v54  ;;  %4308 = vmatpush.bf16.msrb.mxu1 %v10246_v6  ;;  %v10166_v54 = vor.u32 %v11933_v31, %v10163_v19  ;;  %v11932_v10 = vld [vmem:[#allocation9 + $0x34] sm:$0xf0] }
 0x32e   : > { %3541 = vst [vmem:[#allocation3 + $0x30] sm:$0xff] %v14037_v12  ;;  %v3412_v9 = vpop.f32.mrf.mxu3  ;;  %v3639_v51 = vunpack.c.l.b16 %v14037_v12  ;;  %v3640_v45 = vunpack.c.h.b16 %v14037_v12  ;;  %v10230_v56 = vor.u32 %v11949_v43, %v10227_v21  ;;  %v11948_v29 = vld [vmem:[#allocation9 + $0xb4] sm:$0xf0]  ;;  %v10209_v21 = vld [vmem:[#allocation9 + $0xa0] sm:$0xf] }
 0x32f   : > { %v3413_v24 = vadd.f32 %v3412_v9, %v3383_v38  ;;  %v3443_v35 = vpop.f32.mrf.mxu0  ;;  %12541 = vtanh.f32 %v3510_v25  ;;  %4222 = vmatpush.bf16.msra.mxu2 %v10170_v62  ;;  %4251 = vmatpush.bf16.msra.mxu3 %v10234_v34  ;;  %v10153_v38 = vld [vmem:[#allocation9 + $0x30] sm:$0xf]  ;;  %v15824_v34 = vld [vmem:[#allocation27_spill] sm:$0xff] }
 0x330   : > { %v3472_v18 = vpop.f32.mrf.mxu1  ;;  %v14052_v55 = vpack.c.b16 %v3639_v51, %v3637_v39  ;;  %v14058_v14 = vpack.c.b16 %v3640_v45, %v3638_v13  ;;  %v10217_v9 = vld [vmem:[#allocation9 + $0xb0] sm:$0xf]  ;;  %4280 = vmatpush.bf16.msrb.mxu0 %v10174_v42  ;;  %v2681_v0 = vadd.f32 %v13968_v15, %v15824_v34 }
 0x331   : > { %v3487_v30 = vadd.f32 %v3413_v24, %v13980_v16  ;;  %v3473_v44 = vadd.f32 %v3472_v18, %v3443_v35  ;;  %4309 = vmatpush.bf16.msrb.mxu1 %v10238_v40  ;;  %v11931_v35 = vld [vmem:[#allocation9 + $0x34] sm:$0xf]  ;;  %v10155_v18 = vld [vmem:[#allocation9 + $0x38] sm:$0xf0]  ;;  %v10218_v42 = vor.u32 %v11948_v29, %v10217_v9  ;;  %v14096_v9 = vpack.c.b16 %v3634_v49, %v3632_v3  ;;  %v10201_v34 = vld [vmem:[#allocation9 + $0x90] sm:$0xf] }
 0x332   : > { %v3692_v2 = vshrl.u32 %v14052_v55, 16  ;;  %v3695_v58 = vshll.u32 %v14052_v55, 16  ;;  %v3701_v59 = vshrl.u32 %v14058_v14, 16  ;;  %v3704_v25 = vshll.u32 %v14058_v14, 16  ;;  %v10219_v40 = vld [vmem:[#allocation9 + $0xb8] sm:$0xf0] }
 0x333   : > { %v12540_v23 = vpop.eup %12539  ;;  %v3509_v16 = vadd.f32 %v13902_v22, %v3487_v30  ;;  %v3490_v6 = vadd.f32 %v3473_v44, %v13982_v53  ;;  %4223 = vmatpush.bf16.msra.mxu2 %v10162_v17  ;;  %v10154_v53 = vor.u32 %v11932_v10, %v10153_v38  ;;  %4252 = vmatpush.bf16.msra.mxu3 %v10226_v41  ;;  %v10145_v30 = vld [vmem:[#allocation9 + $0x20] sm:$0xf]  ;;  %v11930_v17 = vld [vmem:[#allocation9 + $0x24] sm:$0xf0]  ;;  %v4035_v3 = vrot.slane %v13995_v63, 3 }
 0x334   : > { %v14067_v62 = vpack.c.bf16 %v12538_v50, %v12540_v23  ;;  %v3694_v27 = vrot.slane %v3692_v2, 3  ;;  %v3697_v26 = vrot.slane %v3695_v58, 4  ;;  %v3703_v24 = vrot.slane %v3701_v59, 3  ;;  %v11946_v2 = vld [vmem:[#allocation9 + $0xa4] sm:$0xf0]  ;;  %4281 = vmatpush.bf16.msrb.mxu0 %v10166_v54 }
 0x335   : > { %12543 = vtanh.f32 %v3509_v16  ;;  %v3385_v47 = vpop.f32.mrf.mxu2  ;;  %v3706_v33 = vrot.slane %v3704_v25, 4  ;;  %v12542_v32 = vpop.eup %12541  ;;  %v3132_v44 = vadd.f32 %v14026_v11, %v2681_v0  ;;  %v3512_v15 = vadd.f32 %v13900_v1, %v3490_v6  ;;  %4310 = vmatpush.bf16.msrb.mxu1 %v10230_v56  ;;  %v11929_v25 = vld [vmem:[#allocation9 + $0x24] sm:$0xf]  ;;  %v10147_v23 = vld [vmem:[#allocation9 + $0x28] sm:$0xf0] }
 0x336   : > { %3542 = vst [vmem:[#allocation3 + $0x38] sm:$0xff] %v14067_v62  ;;  %v3414_v50 = vpop.f32.mrf.mxu3  ;;  %v14072_v31 = vor.u32 %v3697_v26, %v3694_v27  ;;  %v10158_v41 = vor.u32 %v11931_v35, %v10155_v18  ;;  %v10222_v59 = vor.u32 %v11947_v8, %v10219_v40  ;;  %v10146_v11 = vor.u32 %v11930_v17, %v10145_v30  ;;  %v11945_v16 = vld [vmem:[#allocation9 + $0xa4] sm:$0xf]  ;;  %v10211_v6 = vld [vmem:[#allocation9 + $0xa8] sm:$0xf0] }
 0x337   : > { %v3415_v19 = vadd.f32 %v3414_v50, %v3385_v47  ;;  %v14076_v43 = vor.u32 %v3706_v33, %v3703_v24  ;;  %4224 = vmatpush.bf16.msra.mxu2 %v10154_v53  ;;  %4253 = vmatpush.bf16.msra.mxu3 %v10218_v42  ;;  %v10210_v10 = vor.u32 %v11946_v2, %v10209_v21  ;;  %12545 = vtanh.f32 %v3512_v15  ;;  %v10137_v24 = vld [vmem:[#allocation9 + $0x10] sm:$0xf]  ;;  %v11928_v35 = vld [vmem:[#allocation9 + $0x14] sm:$0xf0]  ;;  %v11927_v33 = vld [vmem:[#allocation9 + $0x14] sm:$0xf] }
 0x338   : > { %v3699_v58 = vsel %vm543_vm0, %v14028_v61, %v14072_v31  ;;  %v14088_v61 = vpack.c.b16 %v3633_v36, %v3631_v52  ;;  %4282 = vmatpush.bf16.msrb.mxu0 %v10158_v41  ;;  %v10150_v52 = vor.u32 %v11929_v25, %v10147_v23  ;;  %v10214_v36 = vor.u32 %v11945_v16, %v10211_v6  ;;  %v11944_v47 = vld [vmem:[#allocation9 + $0x94] sm:$0xf0]  ;;  %v10139_v53 = vld [vmem:[#allocation9 + $0x18] sm:$0xf0]  ;;  %v10129_v42 = vld [vmem:[#allocation9] sm:$0xf] }
 0x339   : > { %v3489_v38 = vadd.f32 %v3415_v19, %v3132_v44  ;;  %v3708_v1 = vsel %vm543_vm0, %v14039_v60, %v14076_v43  ;;  %3926 = vmatmul.bf16.gmra.mxu2 %v3699_v58  ;;  %3984 = vmatmul.bf16.gmra.mxu0 %v3699_v58  ;;  %v3641_v60 = vunpack.c.l.b16 %v14067_v62  ;;  %v4034_v27 = vrot.slane %v14000_v28, 3  ;;  %v10203_v50 = vld [vmem:[#allocation9 + $0x98] sm:$0xf0]  ;;  %v11926_v2 = vld [vmem:[#allocation9 + $0x4] sm:$0xf0] }
 0x33a   : > { %4311 = vmatpush.bf16.msrb.mxu1 %v10222_v59  ;;  %v4037_v26 = vrot.slane %v14006_v7, 3  ;;  %v4038_v49 = vrot.slane %v14013_v48, 3  ;;  %v10138_v0 = vor.u32 %v11928_v35, %v10137_v24  ;;  %v10202_v18 = vor.u32 %v11944_v47, %v10201_v34  ;;  %v10193_v25 = vld [vmem:[#allocation9 + $0x80] sm:$0xf] }
 0x33b   : > { %v12544_v54 = vpop.eup %12543  ;;  %v3511_v56 = vadd.f32 %v13902_v22, %v3489_v38  ;;  %v3642_v22 = vunpack.c.h.b16 %v14067_v62  ;;  %4225 = vmatpush.bf16.msra.mxu2 %v10146_v11  ;;  %4254 = vmatpush.bf16.msra.mxu3 %v10210_v10  ;;  %v10142_v8 = vor.u32 %v11927_v33, %v10139_v53  ;;  %v14123_v40 = vsel %vm733_vm1, %v4034_v27, %v4035_v3  ;;  %v11942_v38 = vld [vmem:[#allocation9 + $0x84] sm:$0xf0]  ;;  %v10131_v10 = vld [vmem:[#allocation9 + $0x8] sm:$0xf0]  ;;  %v10369_v63 = vld [vmem:[#allocation9 + $0x2e0] sm:$0xf] }
 0x33c   : > { %v14098_v29 = vpack.c.bf16 %v12542_v32, %v12544_v54  ;;  %3955 = vmatmul.bf16.gmra.mxu3 %v3708_v1  ;;  %4013 = vmatmul.bf16.gmra.mxu1 %v3708_v1  ;;  %v11943_v32 = vld [vmem:[#allocation9 + $0x94] sm:$0xf]  ;;  %v14128_v30 = vsel %vm733_vm1, %v4037_v26, %v4038_v49  ;;  %v10130_v59 = vor.u32 %v11926_v2, %v10129_v42  ;;  %v11925_v1 = vld [vmem:[#allocation9 + $0x4] sm:$0xf]  ;;  %v10195_v27 = vld [vmem:[#allocation9 + $0x88] sm:$0xf0] }
 0x33d   : > { %12547 = vtanh.f32 %v3511_v56  ;;  %4283 = vmatpush.bf16.msrb.mxu0 %v10150_v52  ;;  %v12546_v44 = vpop.eup %12545  ;;  %v10206_v41 = vor.u32 %v11943_v32, %v10203_v50  ;;  %v10194_v56 = vor.u32 %v11942_v38, %v10193_v25  ;;  %v10134_v52 = vor.u32 %v11925_v1, %v10131_v10  ;;  %v12004_v25 = vld [vmem:[#allocation9 + $0x274] sm:$0xf0]  ;;  %v10377_v38 = vld [vmem:[#allocation9 + $0x2f0] sm:$0xf]  ;;  %v10385_v1 = vld [vmem:[#allocation3 + $0x20] sm:$0xf] }
 0x33e   : > { %3543 = vst [vmem:[#allocation3 + $0x40] sm:$0xff] %v14098_v29  ;;  %v3643_v46 = vunpack.c.l.b16 %v14098_v29  ;;  %v3644_v57 = vunpack.c.h.b16 %v14098_v29  ;;  %4312 = vmatpush.bf16.msrb.mxu1 %v10214_v36  ;;  %v11941_v36 = vld [vmem:[#allocation9 + $0x84] sm:$0xf]  ;;  %v14138_v26 = vpack.c.b16 %v3637_v39, %v3635_v37  ;;  %v14148_v33 = vpack.c.b16 %v3638_v13, %v3636_v4  ;;  %v14158_v4 = vld [vmem:[#allocation3 + $0x18] sm:$0xff] }
 0x33f   : > { %4226 = vmatpush.bf16.msra.mxu2 %v10138_v0  ;;  %4255 = vmatpush.bf16.msra.mxu3 %v10202_v18  ;;  %v10198_v0 = vor.u32 %v11941_v36, %v10195_v27  ;;  %v4042_v2 = vrot.slane %v14058_v14, 3  ;;  %v12021_v27 = vld [vmem:[#allocation3 + $0x24] sm:$0xf]  ;;  %v12024_v12 = vld [vmem:[#allocation3 + $0x34] sm:$0xf0] }
 0x340   : > { %v14112_v28 = vpack.c.b16 %v3643_v46, %v3641_v60  ;;  %v14118_v7 = vpack.c.b16 %v3644_v57, %v3642_v22  ;;  %v10395_v62 = vld [vmem:[#allocation3 + $0x38] sm:$0xf0]  ;;  %v12013_v14 = vld [vmem:[#allocation9 + $0x2c4] sm:$0xf] }
 0x341   : > { %4284 = vmatpush.bf16.msrb.mxu0 %v10142_v8 }
 0x342   : > { %v3710_v15 = vshrl.u32 %v14112_v28, 16  ;;  %v3713_v19 = vshll.u32 %v14112_v28, 16  ;;  %v3719_v17 = vshrl.u32 %v14118_v7, 16  ;;  %v3722_v21 = vshll.u32 %v14118_v7, 16  ;;  %4313 = vmatpush.bf16.msrb.mxu1 %v10206_v41  ;;  %v10387_v41 = vld [vmem:[#allocation3 + $0x28] sm:$0xf0] }
 0x343   : > { %v12548_v58 = vpop.eup %12547  ;;  %4227 = vmatpush.bf16.msra.mxu2 %v10130_v59  ;;  %4256 = vmatpush.bf16.msra.mxu3 %v10194_v56  ;;  %v10313_v59 = vld [vmem:[#allocation9 + $0x270] sm:$0xf]  ;;  %v12003_v56 = vld [vmem:[#allocation9 + $0x274] sm:$0xf] }
 0x344   : > { %v3536_v11 = vpack.c.bf16 %v12546_v44, %v12548_v58  ;;  %v3712_v23 = vrot.slane %v3710_v15, 3  ;;  %v3715_v16 = vrot.slane %v3713_v19, 4  ;;  %v3721_v6 = vrot.slane %v3719_v17, 3  ;;  %v5128_v44 = vld [vmem:[#allocation3 + $0x10] sm:$0xee] }
 0x345   : > { %v3724_v54 = vrot.slane %v3722_v21, 4  ;;  %4285 = vmatpush.bf16.msrb.mxu0 %v10134_v52  ;;  %v4730_v15 = vunpack.c.l.b16 %v14158_v4  ;;  %v4731_v19 = vunpack.c.h.b16 %v14158_v4  ;;  %v4040_v21 = vrot.slane %v14052_v55, 3  ;;  %v12022_v58 = vld [vmem:[#allocation3 + $0x24] sm:$0xf0]  ;;  %v10315_v52 = vld [vmem:[#allocation9 + $0x278] sm:$0xf0] }
 0x346   : > { %3544 = vst [vmem:[#allocation3 + $0x48] sm:$0xff] %v3536_v11  ;;  %v3716_v24 = vor.u32 %v3715_v16, %v3712_v23  ;;  %v14140_v35 = vunpack.c.l.b16 %v3536_v11  ;;  %v14142_v34 = vunpack.c.h.b16 %v3536_v11  ;;  %4314 = vmatpush.bf16.msrb.mxu1 %v10198_v0  ;;  %v5163_v11 = vunpack.c.l.b16 %v5128_v44  ;;  %v12014_v55 = vld [vmem:[#allocation9 + $0x2c4] sm:$0xf0] }
 0x347   : > { %v3725_v47 = vor.u32 %v3724_v54, %v3721_v6  ;;  %v5164_v23 = vunpack.c.h.b16 %v5128_v44  ;;  %v10314_v10 = vor.u32 %v12004_v25, %v10313_v59  ;;  %v12020_v54 = vld [vmem:[#allocation9 + $0x2f4] sm:$0xf0]  ;;  %v14171_v36 = vsel %vm733_vm1, %v4035_v3, %v4040_v21 }
 0x348   : > { %v3717_v37 = vsel %vm543_vm0, %v14072_v31, %v3716_v24  ;;  %v3655_v39 = vpack.c.b16 %v14140_v35, %v14140_v35  ;;  %v3656_v53 = vpack.c.b16 %v14142_v34, %v14142_v34  ;;  %v10378_v0 = vor.u32 %v12020_v54, %v10377_v38 }
 0x349   : > { %v3726_v18 = vsel %vm543_vm0, %v14076_v43, %v3725_v47  ;;  %3931 = vmatmul.bf16.gmra.mxu2 %v3717_v37  ;;  %3989 = vmatmul.bf16.gmra.mxu0 %v3717_v37  ;;  %v10318_v37 = vor.u32 %v12003_v56, %v10315_v52  ;;  %v14180_v3 = vor.u32 %v12022_v58, %v10385_v1  ;;  %v4044_v56 = vrot.slane %v14112_v28, 3  ;;  %v12038_v28 = vld [vmem:[#allocation9 + $0x354] sm:$0xf0] }
 0x34a   : > { %v3728_v8 = vshrl.u32 %v3655_v39, 16  ;;  %v3731_v5 = vshll.u32 %v3655_v39, 16  ;;  %v3737_v32 = vshrl.u32 %v3656_v53, 16  ;;  %v3740_v20 = vshll.u32 %v3656_v53, 16  ;;  %v12019_v39 = vld [vmem:[#allocation9 + $0x2f4] sm:$0xf]  ;;  %4545 = vmatpush.bf16.msrb.mxu2 %v10314_v10  ;;  %4574 = vmatpush.bf16.msrb.mxu3 %v10378_v0 }
 0x34b   : > { %v10379_v53 = vld [vmem:[#allocation9 + $0x2f8] sm:$0xf0]  ;;  %4603 = vmatpush.bf16.msra.mxu0 %v10318_v37  ;;  %v14198_v58 = vpack.c.b16 %v3642_v22, %v3640_v45  ;;  %v4046_v52 = vrot.slane %v14118_v7, 3  ;;  %v12000_v0 = vld [vmem:[#allocation9 + $0x254] sm:$0xf0] }
 0x34c   : > { %v3730_v13 = vrot.slane %v3728_v8, 3  ;;  %v3733_v31 = vrot.slane %v3731_v5, 4  ;;  %v3739_v50 = vrot.slane %v3737_v32, 3  ;;  %v3742_v42 = vrot.slane %v3740_v20, 4  ;;  %3960 = vmatmul.bf16.gmra.mxu3 %v3726_v18  ;;  %4018 = vmatmul.bf16.gmra.mxu1 %v3726_v18  ;;  %v10305_v18 = vld [vmem:[#allocation9 + $0x260] sm:$0xf] }
 0x34d   : > { %v12002_v8 = vld [vmem:[#allocation9 + $0x264] sm:$0xf0]  ;;  %v5165_v32 = vpack.c.b16 %v4730_v15, %v5163_v11  ;;  %v5166_v20 = vpack.c.b16 %v4731_v19, %v5164_v23  ;;  %v10393_v11 = vld [vmem:[#allocation3 + $0x30] sm:$0xf]  ;;  %v12053_v7 = vld [vmem:[#allocation9 + $0x3d4] sm:$0xf] }
 0x34e   : > { %v3734_v17 = vor.u32 %v3733_v31, %v3730_v13  ;;  %v3743_v43 = vor.u32 %v3742_v42, %v3739_v50  ;;  %v12018_v5 = vld [vmem:[#allocation9 + $0x2e4] sm:$0xf0]  ;;  %v10306_v13 = vor.u32 %v12002_v8, %v10305_v18  ;;  %v12001_v31 = vld [vmem:[#allocation9 + $0x264] sm:$0xf]  ;;  %v14186_v42 = vor.u32 %v12021_v27, %v10387_v41  ;;  %v10297_v27 = vld [vmem:[#allocation9 + $0x250] sm:$0xf] }
 0x34f   : > { %v10370_v48 = vor.u32 %v12018_v5, %v10369_v63  ;;  %v12017_v50 = vld [vmem:[#allocation9 + $0x2e4] sm:$0xf]  ;;  %v5167_v25 = vrot.slane %v5165_v32, 1  ;;  %v5168_v41 = vrot.slane %v14180_v3, 1  ;;  %v5170_v38 = vrot.slane %v5166_v20, 1 }
 0x350   : > { %v3735_v16 = vsel %vm543_vm0, %v3716_v24, %v3734_v17  ;;  %v3744_v6 = vsel %vm543_vm0, %v3725_v47, %v3743_v43  ;;  %v14178_v24 = vsel %vm733_vm1, %v4038_v49, %v4042_v2  ;;  %v10382_v47 = vor.u32 %v12019_v39, %v10379_v53  ;;  %v10307_v49 = vld [vmem:[#allocation9 + $0x268] sm:$0xf0]  ;;  %4546 = vmatpush.bf16.msrb.mxu2 %v10306_v13  ;;  %v10361_v37 = vld [vmem:[#allocation9 + $0x2d0] sm:$0xf]  ;;  %v12016_v18 = vld [vmem:[#allocation9 + $0x2d4] sm:$0xf0] }
 0x351   : > { %v10310_v44 = vor.u32 %v12001_v31, %v10307_v49  ;;  %v10371_v17 = vld [vmem:[#allocation9 + $0x2e8] sm:$0xf0]  ;;  %v14192_v43 = vpack.c.b16 %v3641_v60, %v3639_v51  ;;  %4575 = vmatpush.bf16.msrb.mxu3 %v10370_v48  ;;  %v5171_v1 = vrot.slane %v14186_v42, 1  ;;  %v14203_v51 = vsel %vm1329_vm3, %v5167_v25, %v5168_v41  ;;  %v12023_v60 = vld [vmem:[#allocation3 + $0x34] sm:$0xf] }
 0x352   : > { %4632 = vmatpush.bf16.msra.mxu1 %v10382_v47  ;;  %v10374_v59 = vor.u32 %v12017_v50, %v10371_v17  ;;  %v14208_v22 = vor.u32 %v12024_v12, %v10393_v11  ;;  %v14210_v23 = vor.u32 %v12023_v60, %v10395_v62  ;;  %v10298_v53 = vor.u32 %v12000_v0, %v10297_v27  ;;  %v11999_v47 = vld [vmem:[#allocation9 + $0x254] sm:$0xf]  ;;  %v10299_v8 = vld [vmem:[#allocation9 + $0x258] sm:$0xf0]  ;;  %v10289_v48 = vld [vmem:[#allocation9 + $0x240] sm:$0xf] }
 0x353   : > { %4604 = vmatpush.bf16.msra.mxu0 %v10310_v44  ;;  %v14206_v45 = vsel %vm1329_vm3, %v5170_v38, %v5171_v1  ;;  %v14238_v63 = vsel %vm733_vm1, %v4042_v2, %v4046_v52  ;;  %v10362_v5 = vor.u32 %v12016_v18, %v10361_v37  ;;  %v10302_v32 = vor.u32 %v11999_v47, %v10299_v8  ;;  %v12015_v20 = vld [vmem:[#allocation9 + $0x2d4] sm:$0xf]  ;;  %v10363_v13 = vld [vmem:[#allocation9 + $0x2d8] sm:$0xf0]  ;;  %v11998_v49 = vld [vmem:[#allocation9 + $0x244] sm:$0xf0] }
 0x354   : > { %v5173_v10 = vrot.slane %v14208_v22, 1  ;;  %v5175_v54 = vrot.slane %v14210_v23, 1  ;;  %4547 = vmatpush.bf16.msrb.mxu2 %v10298_v53  ;;  %v10366_v31 = vor.u32 %v12015_v20, %v10363_v13  ;;  %v10353_v50 = vld [vmem:[#allocation9 + $0x2c0] sm:$0xf]  ;;  %v11997_v17 = vld [vmem:[#allocation9 + $0x244] sm:$0xf]  ;;  %v14248_v38 = vpack.c.b16 %v14142_v34, %v3644_v57 }
 0x355   : > { %4576 = vmatpush.bf16.msrb.mxu3 %v10362_v5  ;;  %v10354_v44 = vor.u32 %v12014_v55, %v10353_v50  ;;  %v10355_v25 = vld [vmem:[#allocation9 + $0x2c8] sm:$0xf0]  ;;  %v10401_v11 = vld [vmem:[#allocation3 + $0x40] sm:$0xf]  ;;  %v12025_v12 = vld [vmem:[#allocation3 + $0x44] sm:$0xf] }
 0x356   : > { %4633 = vmatpush.bf16.msra.mxu1 %v10374_v59  ;;  %v14219_v39 = vsel %vm1329_vm3, %v5168_v41, %v5173_v10  ;;  %v10291_v59 = vld [vmem:[#allocation9 + $0x248] sm:$0xf0]  ;;  %v14243_v41 = vpack.c.b16 %v14140_v35, %v3643_v46  ;;  %v12026_v60 = vld [vmem:[#allocation3 + $0x44] sm:$0xf0]  ;;  %v4685_v27 = vld [vmem:[#allocation3 + $0x50] sm:$0x11] }
 0x357   : > { %4605 = vmatpush.bf16.msra.mxu0 %v10302_v32  ;;  %v10294_v2 = vor.u32 %v11997_v17, %v10291_v59  ;;  %v10403_v62 = vld [vmem:[#allocation3 + $0x48] sm:$0xf0]  ;;  %v14250_v0 = vor.u32 %v12026_v60, %v10401_v11  ;;  %v4744_v29 = vunpack.c.l.b16 %v4685_v27  ;;  %v4745_v46 = vunpack.c.h.b16 %v4685_v27  ;;  %v10281_v34 = vld [vmem:[#allocation9 + $0x230] sm:$0xf]  ;;  %v11996_v53 = vld [vmem:[#allocation9 + $0x234] sm:$0xf0] }
 0x358   : > { %v14252_v37 = vor.u32 %v12025_v12, %v10403_v62  ;;  %v10345_v18 = vld [vmem:[#allocation9 + $0x2b0] sm:$0xf]  ;;  %v10282_v8 = vor.u32 %v11996_v53, %v10281_v34  ;;  %v12012_v5 = vld [vmem:[#allocation9 + $0x2b4] sm:$0xf0]  ;;  %v11995_v32 = vld [vmem:[#allocation9 + $0x234] sm:$0xf] }
 0x359   : > { %3936 = vmatmul.bf16.gmra.mxu2 %v3735_v16  ;;  %3994 = vmatmul.bf16.gmra.mxu0 %v3735_v16  ;;  %v14224_v16 = vsel %vm1329_vm3, %v5171_v1, %v5175_v54  ;;  %v10358_v1 = vor.u32 %v12013_v14, %v10355_v25  ;;  %v5177_v57 = vrot.slane %v14250_v0, 1  ;;  %v10283_v20 = vld [vmem:[#allocation9 + $0x238] sm:$0xf0]  ;;  %v14270_v13 = vpack.c.b16 %v4744_v29, %v4744_v29  ;;  %v10273_v50 = vld [vmem:[#allocation9 + $0x220] sm:$0xf] }
 0x35a   : > { %4634 = vmatpush.bf16.msra.mxu1 %v10366_v31  ;;  %4577 = vmatpush.bf16.msrb.mxu3 %v10354_v44  ;;  %v5179_v35 = vrot.slane %v14252_v37, 1  ;;  %v12011_v31 = vld [vmem:[#allocation9 + $0x2b4] sm:$0xf]  ;;  %v14272_v55 = vpack.c.b16 %v4745_v46, %v4745_v46  ;;  %v10337_v44 = vld [vmem:[#allocation9 + $0x2a0] sm:$0xf] }
 0x35b   : > { %4606 = vmatpush.bf16.msra.mxu0 %v10294_v2  ;;  %v14263_v47 = vsel %vm1329_vm3, %v5173_v10, %v5177_v57  ;;  %v12010_v17 = vld [vmem:[#allocation9 + $0x2a4] sm:$0xf0]  ;;  %v11993_v14 = vld [vmem:[#allocation9 + $0x224] sm:$0xf]  ;;  %v10275_v2 = vld [vmem:[#allocation9 + $0x228] sm:$0xf0] }
 0x35c   : > { %3965 = vmatmul.bf16.gmra.mxu3 %v3744_v6  ;;  %4023 = vmatmul.bf16.gmra.mxu1 %v3744_v6  ;;  %v14231_v6 = vsel %vm733_vm1, %v4040_v21, %v4044_v56  ;;  %v10290_v21 = vor.u32 %v11998_v49, %v10289_v48  ;;  %v10286_v48 = vor.u32 %v11995_v32, %v10283_v20  ;;  %v10347_v49 = vld [vmem:[#allocation9 + $0x2b8] sm:$0xf0]  ;;  %v12009_v25 = vld [vmem:[#allocation9 + $0x2a4] sm:$0xf]  ;;  %v10339_v11 = vld [vmem:[#allocation9 + $0x2a8] sm:$0xf0] }
 0x35d   : > { %v10350_v10 = vor.u32 %v12011_v31, %v10347_v49  ;;  %v10338_v59 = vor.u32 %v12010_v17, %v10337_v44  ;;  %v5181_v12 = vrot.slane %v14270_v13, 1  ;;  %v10342_v60 = vor.u32 %v12009_v25, %v10339_v11  ;;  %v10265_v46 = vld [vmem:[#allocation9 + $0x210] sm:$0xf]  ;;  %v11992_v34 = vld [vmem:[#allocation9 + $0x214] sm:$0xf0] }
 0x35e   : > { %4548 = vmatpush.bf16.msrb.mxu2 %v10290_v21  ;;  %4635 = vmatpush.bf16.msra.mxu1 %v10358_v1  ;;  %v11994_v21 = vld [vmem:[#allocation9 + $0x224] sm:$0xf0]  ;;  %v10278_v1 = vor.u32 %v11993_v14, %v10275_v2  ;;  %v5183_v62 = vrot.slane %v14272_v55, 1  ;;  %v10329_v53 = vld [vmem:[#allocation9 + $0x290] sm:$0xf] }
 0x35f   : > { %4607 = vmatpush.bf16.msra.mxu0 %v10286_v48  ;;  %v14277_v27 = vsel %vm1329_vm3, %v5177_v57, %v5181_v12  ;;  %v12008_v57 = vld [vmem:[#allocation9 + $0x294] sm:$0xf0]  ;;  %v10257_v48 = vld [vmem:[#allocation9 + $0x200] sm:$0xf]  ;;  %v11990_v49 = vld [vmem:[#allocation9 + $0x204] sm:$0xf0] }
 0x360   : > { %v14280_v29 = vsel %vm1329_vm3, %v5179_v35, %v5183_v62  ;;  %v10330_v32 = vor.u32 %v12008_v57, %v10329_v53  ;;  %v11989_v17 = vld [vmem:[#allocation9 + $0x204] sm:$0xf]  ;;  %v10323_v2 = vld [vmem:[#allocation9 + $0x288] sm:$0xf0]  ;;  %v12042_v11 = vld [vmem:[#allocation9 + $0x374] sm:$0xf0] }
 0x361   : > { %v10529_v12 = vld [vmem:[#allocation9 + $0x3f0] sm:$0xf]  ;;  %v10467_v57 = vld [vmem:[#allocation9 + $0x378] sm:$0xf0] }
 0x362   : > { %4549 = vmatpush.bf16.msrb.mxu2 %v10282_v8  ;;  %4636 = vmatpush.bf16.msra.mxu1 %v10350_v10  ;;  %v11991_v8 = vld [vmem:[#allocation9 + $0x214] sm:$0xf] }
 0x363   : > { %4608 = vmatpush.bf16.msra.mxu0 %v10278_v1  ;;  %v10465_v1 = vld [vmem:[#allocation9 + $0x370] sm:$0xf] }
 0x364   : > { %v10466_v62 = vor.u32 %v12042_v11, %v10465_v1  ;;  %v12054_v1 = vld [vmem:[#allocation9 + $0x3d4] sm:$0xf0] }
 0x366   : > { %4637 = vmatpush.bf16.msra.mxu1 %v10342_v60 }
 0x369   : > { %4228 = vmatmul.bf16.vlgmr.msra.gmra.mxu2 %v14123_v40  ;;  %4286 = vmatmul.bf16.vlgmr.msrb.gmra.mxu0 %v14123_v40  ;;  %v14268_v40 = vsel %vm1329_vm3, %v5175_v54, %v5179_v35  ;;  %v10274_v54 = vor.u32 %v11994_v21, %v10273_v50  ;;  %v12007_v35 = vld [vmem:[#allocation9 + $0x294] sm:$0xf]  ;;  %v12006_v50 = vld [vmem:[#allocation9 + $0x284] sm:$0xf0] }
 0x36a   : > { %v3553_v21 = vld [vmem:[#allocation3 + $0x48] sm:$0x77] }
 0x36b   : > { %4550 = vmatpush.bf16.msrb.mxu2 %v10274_v54  ;;  %v4030_v44 = vunpack.c.l.b16 %v3553_v21  ;;  %v10259_v54 = vld [vmem:[#allocation9 + $0x208] sm:$0xf0] }
 0x36c   : > { %4257 = vmatmul.bf16.vlgmr.msra.gmra.mxu3 %v14128_v30  ;;  %4315 = vmatmul.bf16.vlgmr.msrb.gmra.mxu1 %v14128_v30  ;;  %v10346_v30 = vor.u32 %v12012_v5, %v10345_v18  ;;  %v10266_v18 = vor.u32 %v11992_v34, %v10265_v46  ;;  %v10267_v5 = vld [vmem:[#allocation9 + $0x218] sm:$0xf0]  ;;  %v10262_v14 = vor.u32 %v11989_v17, %v10259_v54  ;;  %v12058_v46 = vld [vmem:[#allocation9 + $0x3f4] sm:$0xf0]  ;;  %v4031_v34 = vunpack.c.h.b16 %v3553_v21  ;;  %v10459_v21 = vld [vmem:[#allocation9 + $0x368] sm:$0xf0] }
 0x36d   : > { %v10270_v20 = vor.u32 %v11991_v8, %v10267_v5  ;;  %v4032_v60 = vpack.c.b16 %v4030_v44, %v4030_v44  ;;  %v12057_v8 = vld [vmem:[#allocation9 + $0x3f4] sm:$0xf]  ;;  %v12055_v44 = vld [vmem:[#allocation9 + $0x3e4] sm:$0xf] }
 0x36e   : > { %4578 = vmatpush.bf16.msrb.mxu3 %v10346_v30  ;;  %v10331_v30 = vld [vmem:[#allocation9 + $0x298] sm:$0xf0]  ;;  %v4033_v5 = vpack.c.b16 %v4031_v34, %v4031_v34 }
 0x36f   : > { %4551 = vmatpush.bf16.msrb.mxu2 %v10266_v18  ;;  %v10334_v31 = vor.u32 %v12007_v35, %v10331_v30  ;;  %4609 = vmatpush.bf16.msra.mxu0 %v10270_v20  ;;  %v4048_v53 = vrot.slane %v4032_v60, 3  ;;  %v12041_v18 = vld [vmem:[#allocation9 + $0x374] sm:$0xf]  ;;  %v10457_v20 = vld [vmem:[#allocation9 + $0x360] sm:$0xf] }
 0x370   : > { %v12040_v35 = vld [vmem:[#allocation9 + $0x364] sm:$0xf0]  ;;  %v10451_v60 = vld [vmem:[#allocation9 + $0x358] sm:$0xf0] }
 0x371   : > { %4638 = vmatpush.bf16.msra.mxu1 %v10334_v31  ;;  %v10521_v31 = vld [vmem:[#allocation9 + $0x3e0] sm:$0xf] }
 0x372   : > { %4579 = vmatpush.bf16.msrb.mxu3 %v10338_v59  ;;  %v12005_v59 = vld [vmem:[#allocation9 + $0x284] sm:$0xf] }
 0x373   : > { %v10326_v25 = vor.u32 %v12005_v59, %v10323_v2  ;;  %4610 = vmatpush.bf16.msra.mxu0 %v10262_v14  ;;  %v10523_v59 = vld [vmem:[#allocation9 + $0x3e8] sm:$0xf0]  ;;  %v10449_v2 = vld [vmem:[#allocation9 + $0x350] sm:$0xf] }
 0x374   : > { %v10526_v14 = vor.u32 %v12055_v44, %v10523_v59  ;;  %v12050_v44 = vld [vmem:[#allocation9 + $0x3b4] sm:$0xf0] }
 0x375   : > { %4639 = vmatpush.bf16.msra.mxu1 %v10326_v25  ;;  %v10513_v25 = vld [vmem:[#allocation9 + $0x3d0] sm:$0xf] }
 0x376   : > { %4580 = vmatpush.bf16.msrb.mxu3 %v10330_v32  ;;  %v10470_v32 = vor.u32 %v12041_v18, %v10467_v57  ;;  %v10514_v11 = vor.u32 %v12054_v1, %v10513_v25  ;;  %v10505_v18 = vld [vmem:[#allocation9 + $0x3c0] sm:$0xf]  ;;  %v12052_v57 = vld [vmem:[#allocation9 + $0x3c4] sm:$0xf0]  ;;  %v12049_v25 = vld [vmem:[#allocation9 + $0x3b4] sm:$0xf] }
 0x378   : > { %5054 = vmatpush.bf16.msrb.mxu0 %v10470_v32 }
 0x379   : > { %4233 = vmatmul.bf16.gmra.mxu2 %v14171_v36  ;;  %4291 = vmatmul.bf16.gmra.mxu0 %v14171_v36  ;;  %v10321_v36 = vld [vmem:[#allocation9 + $0x280] sm:$0xf] }
 0x37a   : > { %v10322_v10 = vor.u32 %v12006_v50, %v10321_v36  ;;  %v4049_v50 = vsel %vm733_vm1, %v4044_v56, %v4048_v53  ;;  %v10450_v56 = vor.u32 %v12038_v28, %v10449_v2  ;;  %v12033_v28 = vld [vmem:[#allocation9 + $0x334] sm:$0xf] }
 0x37c   : > { %4262 = vmatmul.bf16.gmra.mxu3 %v14178_v24  ;;  %4320 = vmatmul.bf16.gmra.mxu1 %v14178_v24  ;;  %v10258_v24 = vor.u32 %v11990_v49, %v10257_v48  ;;  %v10458_v48 = vor.u32 %v12040_v35, %v10457_v20  ;;  %v12056_v49 = vld [vmem:[#allocation9 + $0x3e4] sm:$0xf0]  ;;  %v12035_v20 = vld [vmem:[#allocation9 + $0x344] sm:$0xf]  ;;  %v10443_v35 = vld [vmem:[#allocation9 + $0x348] sm:$0xf0] }
 0x37d   : > { %4581 = vmatpush.bf16.msrb.mxu3 %v10322_v10  ;;  %v10522_v36 = vor.u32 %v12056_v49, %v10521_v31  ;;  %v12039_v10 = vld [vmem:[#allocation9 + $0x364] sm:$0xf]  ;;  %v10446_v31 = vor.u32 %v12035_v20, %v10443_v35  ;;  %v10507_v49 = vld [vmem:[#allocation9 + $0x3c8] sm:$0xf0] }
 0x37e   : > { %4552 = vmatpush.bf16.msrb.mxu2 %v10258_v24  ;;  %v4050_v24 = vrot.slane %v4033_v5, 3  ;;  %v10462_v54 = vor.u32 %v12039_v10, %v10459_v21  ;;  %v10506_v5 = vor.u32 %v12052_v57, %v10505_v18  ;;  %v10497_v10 = vld [vmem:[#allocation9 + $0x3b0] sm:$0xf]  ;;  %v12047_v20 = vld [vmem:[#allocation9 + $0x3a4] sm:$0xf] }
 0x380   : > { %v4051_v17 = vsel %vm733_vm1, %v4046_v52, %v4050_v24  ;;  %5055 = vmatpush.bf16.msrb.mxu0 %v10462_v54  ;;  %v10515_v52 = vld [vmem:[#allocation9 + $0x3d8] sm:$0xf0]  ;;  %v12034_v24 = vld [vmem:[#allocation9 + $0x334] sm:$0xf0] }
 0x381   : > { %v10518_v34 = vor.u32 %v12053_v7, %v10515_v52  ;;  %v10489_v52 = vld [vmem:[#allocation9 + $0x3a0] sm:$0xf] }
 0x382   : > { %4996 = vmatpush.bf16.msra.mxu2 %v10466_v62 }
 0x386   : > { %4997 = vmatpush.bf16.msra.mxu2 %v10458_v48 }
 0x389   : > { %4238 = vmatmul.bf16.gmra.mxu2 %v14231_v6  ;;  %4296 = vmatmul.bf16.gmra.mxu0 %v14231_v6  ;;  %v10530_v6 = vor.u32 %v12058_v46, %v10529_v12  ;;  %v12037_v12 = vld [vmem:[#allocation9 + $0x354] sm:$0xf]  ;;  %v10441_v46 = vld [vmem:[#allocation9 + $0x340] sm:$0xf] }
 0x38a   : > { %4998 = vmatpush.bf16.msra.mxu2 %v10450_v56  ;;  %v10454_v62 = vor.u32 %v12037_v12, %v10451_v60  ;;  %v10425_v12 = vld [vmem:[#allocation9 + $0x320] sm:$0xf]  ;;  %v12032_v60 = vld [vmem:[#allocation9 + $0x324] sm:$0xf0] }
 0x38b   : > { %5025 = vmatpush.bf16.msra.mxu3 %v10530_v6  ;;  %v12036_v6 = vld [vmem:[#allocation9 + $0x344] sm:$0xf0] }
 0x38c   : > { %4267 = vmatmul.bf16.gmra.mxu3 %v14238_v63  ;;  %4325 = vmatmul.bf16.gmra.mxu1 %v14238_v63  ;;  %v10531_v63 = vld [vmem:[#allocation9 + $0x3f8] sm:$0xf0]  ;;  %v10442_v53 = vor.u32 %v12036_v6, %v10441_v46  ;;  %v12048_v46 = vld [vmem:[#allocation9 + $0x3a4] sm:$0xf0] }
 0x38d   : > { %v10534_v30 = vor.u32 %v12057_v8, %v10531_v63  ;;  %5056 = vmatpush.bf16.msrb.mxu0 %v10454_v62  ;;  %v10426_v62 = vor.u32 %v12032_v60, %v10425_v12 }
 0x38e   : > { %4999 = vmatpush.bf16.msra.mxu2 %v10442_v53 }
 0x38f   : > { %5083 = vmatpush.bf16.msrb.mxu1 %v10534_v30  ;;  %5026 = vmatpush.bf16.msra.mxu3 %v10522_v36  ;;  %v12051_v30 = vld [vmem:[#allocation9 + $0x3c4] sm:$0xf] }
 0x390   : > { %v10510_v36 = vor.u32 %v12051_v30, %v10507_v49  ;;  %v10417_v49 = vld [vmem:[#allocation9 + $0x310] sm:$0xf] }
 0x391   : > { %5057 = vmatpush.bf16.msrb.mxu0 %v10446_v31 }
 0x393   : > { %5084 = vmatpush.bf16.msrb.mxu1 %v10526_v14  ;;  %5027 = vmatpush.bf16.msra.mxu3 %v10514_v11  ;;  %v10499_v11 = vld [vmem:[#allocation9 + $0x3b8] sm:$0xf0] }
 0x394   : > { %v10502_v7 = vor.u32 %v12049_v25, %v10499_v11  ;;  %v12028_v11 = vld [vmem:[#allocation9 + $0x304] sm:$0xf0] }
 0x397   : > { %5085 = vmatpush.bf16.msrb.mxu1 %v10518_v34  ;;  %5028 = vmatpush.bf16.msra.mxu3 %v10506_v5  ;;  %v10490_v34 = vor.u32 %v12048_v46, %v10489_v52  ;;  %v12031_v5 = vld [vmem:[#allocation9 + $0x324] sm:$0xf] }
 0x399   : > { %4243 = vmatmul.bf16.gmra.mxu2 %v4049_v50  ;;  %4301 = vmatmul.bf16.gmra.mxu0 %v4049_v50  ;;  %v10433_v50 = vld [vmem:[#allocation9 + $0x330] sm:$0xf] }
 0x39b   : > { %5086 = vmatpush.bf16.msrb.mxu1 %v10510_v36  ;;  %v12030_v36 = vld [vmem:[#allocation9 + $0x314] sm:$0xf0] }
 0x39c   : > { %4272 = vmatmul.bf16.gmra.mxu3 %v4051_v17  ;;  %4330 = vmatmul.bf16.gmra.mxu1 %v4051_v17  ;;  %v10498_v17 = vor.u32 %v12050_v44, %v10497_v10  ;;  %v12046_v10 = vld [vmem:[#allocation9 + $0x394] sm:$0xf0] }
 0x39e   : > { %5029 = vmatpush.bf16.msra.mxu3 %v10498_v17 }
 0x39f   : > { %5087 = vmatpush.bf16.msrb.mxu1 %v10502_v7  ;;  %v10473_v7 = vld [vmem:[#allocation9 + $0x380] sm:$0xf] }
 0x3a2   : > { %5030 = vmatpush.bf16.msra.mxu3 %v10490_v34 }
 0x3a6   : > { %v3980_v8 = vpop.f32.mrf.mxu0 }
 0x3a9   : > { %4553 = vmatmul.bf16.vlgmr.msrb.gmra.mxu2 %v14088_v61  ;;  %4611 = vmatmul.bf16.vlgmr.msra.gmra.mxu0 %v14088_v61  ;;  %v4009_v32 = vpop.f32.mrf.mxu1  ;;  %v10434_v61 = vor.u32 %v12034_v24, %v10433_v50  ;;  %v10481_v50 = vld [vmem:[#allocation9 + $0x390] sm:$0xf] }
 0x3aa   : > { %v14298_v63 = vadd.f32 %v4009_v32, %v3980_v8  ;;  %v10427_v32 = vld [vmem:[#allocation9 + $0x328] sm:$0xf0] }
 0x3ab   : > { %5000 = vmatpush.bf16.msra.mxu2 %v10434_v61  ;;  %v10430_v30 = vor.u32 %v12031_v5, %v10427_v32  ;;  %v12027_v5 = vld [vmem:[#allocation9 + $0x304] sm:$0xf]  ;;  %v10411_v32 = vld [vmem:[#allocation9 + $0x308] sm:$0xf0] }
 0x3ac   : > { %v3922_v48 = vpop.f32.mrf.mxu2  ;;  %4582 = vmatmul.bf16.vlgmr.msrb.gmra.mxu3 %v14096_v9  ;;  %4640 = vmatmul.bf16.vlgmr.msra.gmra.mxu1 %v14096_v9  ;;  %v10435_v9 = vld [vmem:[#allocation9 + $0x338] sm:$0xf0] }
 0x3ad   : > { %v10438_v1 = vor.u32 %v12033_v28, %v10435_v9  ;;  %v12045_v28 = vld [vmem:[#allocation9 + $0x394] sm:$0xf] }
 0x3ae   : > { %v3982_v21 = vpop.f32.mrf.mxu0  ;;  %v3951_v54 = vpop.f32.mrf.mxu3 }
 0x3af   : > { %v14302_v59 = vadd.f32 %v3951_v54, %v3922_v48  ;;  %5058 = vmatpush.bf16.msrb.mxu0 %v10438_v1  ;;  %5001 = vmatpush.bf16.msra.mxu2 %v10426_v62  ;;  %v10491_v48 = vld [vmem:[#allocation9 + $0x3a8] sm:$0xf0]  ;;  %v10409_v1 = vld [vmem:[#allocation9 + $0x300] sm:$0xf]  ;;  %v12044_v62 = vld [vmem:[#allocation9 + $0x384] sm:$0xf0] }
 0x3b0   : > { %v10494_v31 = vor.u32 %v12047_v20, %v10491_v48  ;;  %v10410_v60 = vor.u32 %v12028_v11, %v10409_v1  ;;  %v10474_v46 = vor.u32 %v12044_v62, %v10473_v7  ;;  %v12043_v20 = vld [vmem:[#allocation9 + $0x384] sm:$0xf]  ;;  %v10475_v48 = vld [vmem:[#allocation9 + $0x388] sm:$0xf0]  ;;  %v10585_v1 = vld [vmem:[#allocation9 + $0x460] sm:$0xf] }
 0x3b1   : > { %v4011_v14 = vpop.f32.mrf.mxu1  ;;  %v12072_v11 = vld [vmem:[#allocation9 + $0x464] sm:$0xf0]  ;;  %v10649_v62 = vld [vmem:[#allocation9 + $0x4e0] sm:$0xf] }
 0x3b2   : > { %v14304_v2 = vadd.f32 %v4011_v14, %v3982_v21  ;;  %5088 = vmatpush.bf16.msrb.mxu1 %v10494_v31  ;;  %v10482_v21 = vor.u32 %v12046_v10, %v10481_v50  ;;  %v12029_v14 = vld [vmem:[#allocation9 + $0x314] sm:$0xf]  ;;  %v10478_v31 = vor.u32 %v12043_v20, %v10475_v48  ;;  %v10657_v50 = vld [vmem:[#allocation9 + $0x4f0] sm:$0xf]  ;;  %v10586_v7 = vor.u32 %v12072_v11, %v10585_v1  ;;  %v12071_v48 = vld [vmem:[#allocation9 + $0x464] sm:$0xf] }
 0x3b3   : > { %5059 = vmatpush.bf16.msrb.mxu0 %v10430_v30  ;;  %v10414_v30 = vor.u32 %v12027_v5, %v10411_v32 }
 0x3b4   : > { %v3924_v56 = vpop.f32.mrf.mxu2  ;;  %5031 = vmatpush.bf16.msra.mxu3 %v10482_v21 }
 0x3b6   : > { %v3985_v6 = vpop.f32.mrf.mxu0  ;;  %v3953_v53 = vpop.f32.mrf.mxu3 }
 0x3b7   : > { %v14306_v18 = vadd.f32 %v3953_v53, %v3924_v56  ;;  %v10483_v56 = vld [vmem:[#allocation9 + $0x398] sm:$0xf0] }
 0x3b8   : > { %v10486_v12 = vor.u32 %v12045_v28, %v10483_v56  ;;  %5032 = vmatpush.bf16.msra.mxu3 %v10474_v46  ;;  %v12089_v28 = vld [vmem:[#allocation9 + $0x4f4] sm:$0xf]  ;;  %v10659_v56 = vld [vmem:[#allocation9 + $0x4f8] sm:$0xf0] }
 0x3b9   : > { %4558 = vmatmul.bf16.gmra.mxu2 %v14138_v26  ;;  %4616 = vmatmul.bf16.gmra.mxu0 %v14138_v26  ;;  %v4014_v57 = vpop.f32.mrf.mxu1  ;;  %v10418_v26 = vor.u32 %v12030_v36, %v10417_v49  ;;  %v10593_v49 = vld [vmem:[#allocation9 + $0x470] sm:$0xf]  ;;  %v12074_v36 = vld [vmem:[#allocation9 + $0x474] sm:$0xf0] }
 0x3ba   : > { %v14310_v8 = vadd.f32 %v4014_v57, %v3985_v6  ;;  %5089 = vmatpush.bf16.msrb.mxu1 %v10486_v12  ;;  %v4677_v12 = vld [vmem:[#allocation3 + $0x10] sm:$0xff] }
 0x3bb   : > { %5002 = vmatpush.bf16.msra.mxu2 %v10418_v26  ;;  %v12090_v26 = vld [vmem:[#allocation9 + $0x4f4] sm:$0xf0]  ;;  %v4728_v5 = vunpack.c.l.b16 %v4677_v12 }
 0x3bc   : > { %v3927_v35 = vpop.f32.mrf.mxu2  ;;  %4587 = vmatmul.bf16.gmra.mxu3 %v14148_v33  ;;  %4645 = vmatmul.bf16.gmra.mxu1 %v14148_v33  ;;  %v10419_v33 = vld [vmem:[#allocation9 + $0x318] sm:$0xf0]  ;;  %v10658_v10 = vor.u32 %v12090_v26, %v10657_v50  ;;  %v4729_v50 = vunpack.c.h.b16 %v4677_v12 }
 0x3bd   : > { %v10422_v25 = vor.u32 %v12029_v14, %v10419_v33  ;;  %v12073_v33 = vld [vmem:[#allocation9 + $0x474] sm:$0xf] }
 0x3be   : > { %v3987_v24 = vpop.f32.mrf.mxu0  ;;  %5090 = vmatpush.bf16.msrb.mxu1 %v10478_v31  ;;  %5382 = vmatpush.bf16.msrb.mxu3 %v10658_v10  ;;  %v10587_v31 = vld [vmem:[#allocation9 + $0x468] sm:$0xf0]  ;;  %v10577_v10 = vld [vmem:[#allocation9 + $0x450] sm:$0xf] }
 0x3bf   : > { %v3956_v61 = vpop.f32.mrf.mxu3  ;;  %5060 = vmatpush.bf16.msrb.mxu0 %v10422_v25  ;;  %5003 = vmatpush.bf16.msra.mxu2 %v10410_v60  ;;  %v10662_v60 = vor.u32 %v12089_v28, %v10659_v56 }
 0x3c0   : > { %v14314_v44 = vadd.f32 %v3956_v61, %v3927_v35 }
 0x3c1   : > { %v4016_v17 = vpop.f32.mrf.mxu1 }
 0x3c2   : > { %v14316_v54 = vadd.f32 %v4016_v17, %v3987_v24  ;;  %5440 = vmatpush.bf16.msra.mxu1 %v10662_v60 }
 0x3c3   : > { %5061 = vmatpush.bf16.msrb.mxu0 %v10414_v30 }
 0x3c4   : > { %v3929_v9 = vpop.f32.mrf.mxu2 }
 0x3c6   : > { %v3990_v52 = vpop.f32.mrf.mxu0 }
 0x3c7   : > { %v3958_v6 = vpop.f32.mrf.mxu3 }
 0x3c8   : > { %v14318_v34 = vadd.f32 %v3958_v6, %v3929_v9 }
 0x3c9   : > { %4563 = vmatmul.bf16.gmra.mxu2 %v14192_v43  ;;  %4621 = vmatmul.bf16.gmra.mxu0 %v14192_v43  ;;  %v4019_v53 = vpop.f32.mrf.mxu1  ;;  %v10594_v43 = vor.u32 %v12074_v36, %v10593_v49  ;;  %v12087_v49 = vld [vmem:[#allocation9 + $0x4e4] sm:$0xf] }
 0x3ca   : > { %v14322_v57 = vadd.f32 %v4019_v53, %v3990_v52  ;;  %v12088_v52 = vld [vmem:[#allocation9 + $0x4e4] sm:$0xf0] }
 0x3cb   : > { %5353 = vmatpush.bf16.msrb.mxu2 %v10594_v43  ;;  %v10650_v6 = vor.u32 %v12088_v52, %v10649_v62  ;;  %v10651_v43 = vld [vmem:[#allocation9 + $0x4e8] sm:$0xf0]  ;;  %v4776_v62 = vshll.u32 %v14186_v42, 16  ;;  %v10579_v52 = vld [vmem:[#allocation9 + $0x458] sm:$0xf0] }
 0x3cc   : > { %v3932_v35 = vpop.f32.mrf.mxu2  ;;  %4592 = vmatmul.bf16.gmra.mxu3 %v14198_v58  ;;  %4650 = vmatmul.bf16.gmra.mxu1 %v14198_v58  ;;  %v10595_v58 = vld [vmem:[#allocation9 + $0x478] sm:$0xf0]  ;;  %v10654_v26 = vor.u32 %v12087_v49, %v10651_v43  ;;  %v10633_v49 = vld [vmem:[#allocation9 + $0x4c0] sm:$0xf] }
 0x3cd   : > { %v10598_v25 = vor.u32 %v12073_v33, %v10595_v58  ;;  %5383 = vmatpush.bf16.msrb.mxu3 %v10650_v6  ;;  %v4747_v58 = vpack.c.b16 %v4731_v19, %v4729_v50  ;;  %v12069_v19 = vld [vmem:[#allocation9 + $0x454] sm:$0xf] }
 0x3ce   : > { %v3992_v24 = vpop.f32.mrf.mxu0  ;;  %5441 = vmatpush.bf16.msra.mxu1 %v10654_v26 }
 0x3cf   : > { %v3961_v21 = vpop.f32.mrf.mxu3  ;;  %5411 = vmatpush.bf16.msra.mxu0 %v10598_v25  ;;  %5354 = vmatpush.bf16.msrb.mxu2 %v10586_v7  ;;  %v4771_v7 = vshll.u32 %v4747_v58, 16 }
 0x3d0   : > { %v14326_v61 = vadd.f32 %v3961_v21, %v3932_v35  ;;  %v4746_v35 = vpack.c.b16 %v4730_v15, %v4728_v5  ;;  %v10641_v21 = vld [vmem:[#allocation9 + $0x4d0] sm:$0xf]  ;;  %v4764_v15 = vshll.u32 %v14180_v3, 16  ;;  %v10643_v5 = vld [vmem:[#allocation9 + $0x4d8] sm:$0xf0] }
 0x3d1   : > { %v4021_v17 = vpop.f32.mrf.mxu1  ;;  %v4773_v43 = vrot.slane %v4771_v7, 1 }
 0x3d2   : > { %v14328_v14 = vadd.f32 %v4021_v17, %v3992_v24  ;;  %v10590_v24 = vor.u32 %v12071_v48, %v10587_v31  ;;  %v4759_v33 = vshll.u32 %v4746_v35, 16  ;;  %v14345_v60 = vrot.slane %v4764_v15, 1  ;;  %v12068_v48 = vld [vmem:[#allocation9 + $0x444] sm:$0xf0] }
 0x3d4   : > { %v3934_v9 = vpop.f32.mrf.mxu2  ;;  %5412 = vmatpush.bf16.msra.mxu0 %v10590_v24  ;;  %v4761_v12 = vrot.slane %v4759_v33, 1  ;;  %v14353_v33 = vrot.slane %v4776_v62, 1 }
 0x3d6   : > { %v3995_v46 = vpop.f32.mrf.mxu0 }
 0x3d7   : > { %v3963_v53 = vpop.f32.mrf.mxu3 }
 0x3d8   : > { %v14330_v32 = vadd.f32 %v3963_v53, %v3934_v9  ;;  %v12086_v9 = vld [vmem:[#allocation9 + $0x4d4] sm:$0xf0]  ;;  %v10582_v53 = vor.u32 %v12069_v19, %v10579_v52  ;;  %v10561_v52 = vld [vmem:[#allocation9 + $0x430] sm:$0xf] }
 0x3d9   : > { %4568 = vmatmul.bf16.gmra.mxu2 %v14243_v41  ;;  %4626 = vmatmul.bf16.gmra.mxu0 %v14243_v41  ;;  %v4024_v20 = vpop.f32.mrf.mxu1  ;;  %v12070_v41 = vld [vmem:[#allocation9 + $0x454] sm:$0xf0]  ;;  %v10642_v25 = vor.u32 %v12086_v9, %v10641_v21 }
 0x3da   : > { %v14336_v30 = vadd.f32 %v4024_v20, %v3995_v46  ;;  %v10578_v28 = vor.u32 %v12070_v41, %v10577_v10  ;;  %v12085_v46 = vld [vmem:[#allocation9 + $0x4d4] sm:$0xf]  ;;  %v10569_v20 = vld [vmem:[#allocation9 + $0x440] sm:$0xf]  ;;  %5413 = vmatpush.bf16.msra.mxu0 %v10582_v53 }
 0x3db   : > { %5384 = vmatpush.bf16.msrb.mxu3 %v10642_v25  ;;  %v10646_v31 = vor.u32 %v12085_v46, %v10643_v5  ;;  %v12066_v46 = vld [vmem:[#allocation9 + $0x434] sm:$0xf0]  ;;  %v4784_v5 = vshll.u32 %v14208_v22, 16 }
 0x3dc   : > { %v3937_v36 = vpop.f32.mrf.mxu2  ;;  %4597 = vmatmul.bf16.gmra.mxu3 %v14248_v38  ;;  %4655 = vmatmul.bf16.gmra.mxu1 %v14248_v38  ;;  %v4757_v38 = vshrl.u32 %v4746_v35, 16  ;;  %v10570_v35 = vor.u32 %v12068_v48, %v10569_v20  ;;  %v10562_v20 = vor.u32 %v12066_v46, %v10561_v52  ;;  %v12082_v48 = vld [vmem:[#allocation9 + $0x4b4] sm:$0xf0] }
 0x3dd   : > { %5355 = vmatpush.bf16.msrb.mxu2 %v10578_v28  ;;  %5442 = vmatpush.bf16.msra.mxu1 %v10646_v31 }
 0x3de   : > { %v3997_v17 = vpop.f32.mrf.mxu0  ;;  %v4762_v24 = vor.u32 %v4761_v12, %v4757_v38  ;;  %v12083_v38 = vld [vmem:[#allocation9 + $0x4c4] sm:$0xf] }
 0x3df   : > { %v3966_v56 = vpop.f32.mrf.mxu3 }
 0x3e0   : > { %v14343_v1 = vadd.f32 %v3966_v56, %v3937_v36  ;;  %v12084_v36 = vld [vmem:[#allocation9 + $0x4c4] sm:$0xf0]  ;;  %v4767_v21 = vsel %vm1113_vm2, %v4762_v24, %v14345_v60  ;;  %v12067_v56 = vld [vmem:[#allocation9 + $0x444] sm:$0xf]  ;;  %v14367_v24 = vrot.slane %v4784_v5, 1 }
 0x3e1   : > { %v4026_v11 = vpop.f32.mrf.mxu1  ;;  %v10634_v26 = vor.u32 %v12084_v36, %v10633_v49  ;;  %5356 = vmatpush.bf16.msrb.mxu2 %v10570_v35 }
 0x3e2   : > { %v14348_v4 = vadd.f32 %v4026_v11, %v3997_v17  ;;  %v4769_v17 = vshrl.u32 %v4747_v58, 16  ;;  %v10635_v58 = vld [vmem:[#allocation9 + $0x4c8] sm:$0xf0] }
 0x3e3   : > { %5385 = vmatpush.bf16.msrb.mxu3 %v10634_v26  ;;  %v10638_v19 = vor.u32 %v12083_v38, %v10635_v58 }
 0x3e4   : > { %v3939_v6 = vpop.f32.mrf.mxu2  ;;  %v4774_v9 = vor.u32 %v4773_v43, %v4769_v17  ;;  %v4792_v43 = vshll.u32 %v14210_v23, 16 }
 0x3e5   : > { %5443 = vmatpush.bf16.msra.mxu1 %v10638_v19  ;;  %5357 = vmatpush.bf16.msrb.mxu2 %v10562_v20 }
 0x3e6   : > { %v4287_v50 = vpop.f32.mrf.mxu0  ;;  %v4779_v11 = vsel %vm1113_vm2, %v4774_v9, %v14353_v33  ;;  %v10553_v9 = vld [vmem:[#allocation9 + $0x420] sm:$0xf] }
 0x3e7   : > { %v4288_v10 = vadd.f32 %v4287_v50, %v14298_v63  ;;  %v3968_v41 = vpop.f32.mrf.mxu3  ;;  %v10571_v63 = vld [vmem:[#allocation9 + $0x448] sm:$0xf0]  ;;  %v4780_v50 = vshrl.u32 %v14180_v3, 16  ;;  %v12080_v3 = vld [vmem:[#allocation9 + $0x4a4] sm:$0xf0] }
 0x3e8   : > { %v14355_v15 = vadd.f32 %v3968_v41, %v3939_v6  ;;  %v10574_v7 = vor.u32 %v12067_v56, %v10571_v63  ;;  %v10625_v6 = vld [vmem:[#allocation9 + $0x4b0] sm:$0xf]  ;;  %v10563_v41 = vld [vmem:[#allocation9 + $0x438] sm:$0xf0]  ;;  %v12064_v56 = vld [vmem:[#allocation9 + $0x424] sm:$0xf0] }
 0x3e9   : > { %5004 = vmatmul.bf16.vlgmr.msra.gmra.mxu2 %v4767_v21  ;;  %5062 = vmatmul.bf16.vlgmr.msrb.gmra.mxu0 %v4767_v21  ;;  %v4316_v28 = vpop.f32.mrf.mxu1  ;;  %v10626_v35 = vor.u32 %v12082_v48, %v10625_v6  ;;  %v12081_v21 = vld [vmem:[#allocation9 + $0x4b4] sm:$0xf]  ;;  %v4782_v58 = vor.u32 %v4780_v50, %v14345_v60  ;;  %v4788_v6 = vshrl.u32 %v14186_v42, 16  ;;  %v10555_v48 = vld [vmem:[#allocation9 + $0x428] sm:$0xf0] }
 0x3ea   : > { %v14357_v25 = vadd.f32 %v4316_v28, %v4288_v10  ;;  %5414 = vmatpush.bf16.msra.mxu0 %v10574_v7  ;;  %v12065_v10 = vld [vmem:[#allocation9 + $0x434] sm:$0xf]  ;;  %v10627_v28 = vld [vmem:[#allocation9 + $0x4b8] sm:$0xf0] }
 0x3eb   : > { %5386 = vmatpush.bf16.msrb.mxu3 %v10626_v35  ;;  %v10566_v17 = vor.u32 %v12065_v10, %v10563_v41  ;;  %v10630_v38 = vor.u32 %v12081_v21, %v10627_v28  ;;  %v4787_v46 = vsel %vm1113_vm2, %v4782_v58, %v14367_v24  ;;  %v4790_v5 = vor.u32 %v4788_v6, %v14353_v33  ;;  %v10545_v10 = vld [vmem:[#allocation9 + $0x410] sm:$0xf]  ;;  %v12062_v41 = vld [vmem:[#allocation9 + $0x414] sm:$0xf0]  ;;  %v12061_v58 = vld [vmem:[#allocation9 + $0x414] sm:$0xf] }
 0x3ec   : > { %v4229_v12 = vpop.f32.mrf.mxu2  ;;  %5033 = vmatmul.bf16.vlgmr.msra.gmra.mxu3 %v4779_v11  ;;  %5091 = vmatmul.bf16.vlgmr.msrb.gmra.mxu1 %v4779_v11  ;;  %v10554_v11 = vor.u32 %v12064_v56, %v10553_v9  ;;  %v10609_v21 = vld [vmem:[#allocation9 + $0x490] sm:$0xf]  ;;  %v12078_v28 = vld [vmem:[#allocation9 + $0x494] sm:$0xf0]  ;;  %v10537_v6 = vld [vmem:[#allocation9 + $0x400] sm:$0xf] }
 0x3ed   : > { %v4230_v62 = vadd.f32 %v4229_v12, %v14302_v59  ;;  %v10617_v12 = vld [vmem:[#allocation9 + $0x4a0] sm:$0xf]  ;;  %5444 = vmatpush.bf16.msra.mxu1 %v10630_v38  ;;  %v10610_v56 = vor.u32 %v12078_v28, %v10609_v21  ;;  %v12059_v28 = vld [vmem:[#allocation9 + $0x404] sm:$0xf] }
 0x3ee   : > { %v4289_v53 = vpop.f32.mrf.mxu0  ;;  %5415 = vmatpush.bf16.msra.mxu0 %v10566_v17  ;;  %5358 = vmatpush.bf16.msrb.mxu2 %v10554_v11  ;;  %v10546_v17 = vor.u32 %v12062_v41, %v10545_v10  ;;  %v4796_v11 = vshrl.u32 %v14208_v22, 16  ;;  %v4804_v10 = vshrl.u32 %v14210_v23, 16  ;;  %v10539_v23 = vld [vmem:[#allocation9 + $0x408] sm:$0xf0] }
 0x3ef   : > { %v4290_v31 = vadd.f32 %v4289_v53, %v14304_v2  ;;  %v4258_v49 = vpop.f32.mrf.mxu3 }
 0x3f0   : > { %v14364_v36 = vadd.f32 %v4258_v49, %v4230_v62  ;;  %v10618_v62 = vor.u32 %v12080_v3, %v10617_v12  ;;  %v4808_v3 = vshll.u32 %v14252_v37, 16 }
 0x3f1   : > { %v4318_v59 = vpop.f32.mrf.mxu1 }
 0x3f2   : > { %v14370_v26 = vadd.f32 %v4318_v59, %v4290_v31  ;;  %5387 = vmatpush.bf16.msrb.mxu3 %v10618_v62  ;;  %v12079_v31 = vld [vmem:[#allocation9 + $0x4a4] sm:$0xf]  ;;  %v10619_v59 = vld [vmem:[#allocation9 + $0x4a8] sm:$0xf0]  ;;  %5359 = vmatpush.bf16.msrb.mxu2 %v10546_v17  ;;  %v10547_v62 = vld [vmem:[#allocation9 + $0x418] sm:$0xf0] }
 0x3f3   : > { %v4810_v41 = vrot.slane %v4808_v3, 1 }
 0x3f4   : > { %v4231_v2 = vpop.f32.mrf.mxu2 }
 0x3f5   : > { %v4232_v63 = vadd.f32 %v4231_v2, %v14306_v18  ;;  %v14378_v18 = vrot.slane %v4792_v43, 1  ;;  %v10622_v43 = vor.u32 %v12079_v31, %v10619_v59  ;;  %v4800_v2 = vshll.u32 %v14250_v0, 16  ;;  %v10601_v31 = vld [vmem:[#allocation9 + $0x480] sm:$0xf] }
 0x3f6   : > { %v4292_v7 = vpop.f32.mrf.mxu0  ;;  %5388 = vmatpush.bf16.msrb.mxu3 %v10610_v56 }
 0x3f7   : > { %v4293_v19 = vadd.f32 %v4292_v7, %v14310_v8  ;;  %v4260_v52 = vpop.f32.mrf.mxu3  ;;  %v12063_v8 = vld [vmem:[#allocation9 + $0x424] sm:$0xf]  ;;  %v4795_v35 = vsel %vm1113_vm2, %v4790_v5, %v14378_v18  ;;  %5445 = vmatpush.bf16.msra.mxu1 %v10622_v43  ;;  %v4802_v12 = vrot.slane %v4800_v2, 1 }
 0x3f8   : > { %v14380_v53 = vadd.f32 %v4260_v52, %v4232_v63  ;;  %v10558_v42 = vor.u32 %v12063_v8, %v10555_v48 }
 0x3f9   : > { %5009 = vmatmul.bf16.gmra.mxu2 %v4787_v46  ;;  %5067 = vmatmul.bf16.gmra.mxu0 %v4787_v46  ;;  %v4321_v60 = vpop.f32.mrf.mxu1  ;;  %v10611_v46 = vld [vmem:[#allocation9 + $0x498] sm:$0xf0] }
 0x3fa   : > { %v14383_v20 = vadd.f32 %v4321_v60, %v4293_v19  ;;  %5416 = vmatpush.bf16.msra.mxu0 %v10558_v42  ;;  %v12077_v19 = vld [vmem:[#allocation9 + $0x494] sm:$0xf]  ;;  %v12060_v60 = vld [vmem:[#allocation9 + $0x404] sm:$0xf0] }
 0x3fb   : > { %v10614_v8 = vor.u32 %v12077_v19, %v10611_v46  ;;  %v10538_v48 = vor.u32 %v12060_v60, %v10537_v6  ;;  %v4824_v60 = vshll.u32 %v14272_v55, 16 }
 0x3fc   : > { %v4234_v49 = vpop.f32.mrf.mxu2  ;;  %5038 = vmatmul.bf16.gmra.mxu3 %v4795_v35  ;;  %5096 = vmatmul.bf16.gmra.mxu1 %v4795_v35  ;;  %v12076_v35 = vld [vmem:[#allocation9 + $0x484] sm:$0xf0] }
 0x3fd   : > { %v4235_v50 = vadd.f32 %v4234_v49, %v14314_v44  ;;  %v4798_v49 = vor.u32 %v4796_v11, %v14367_v24  ;;  %v10602_v42 = vor.u32 %v12076_v35, %v10601_v31  ;;  %5446 = vmatpush.bf16.msra.mxu1 %v10614_v8  ;;  %5360 = vmatpush.bf16.msrb.mxu2 %v10538_v48  ;;  %v4820_v8 = vshrl.u32 %v14252_v37, 16 }
 0x3fe   : > { %v4294_v33 = vpop.f32.mrf.mxu0  ;;  %v4806_v24 = vor.u32 %v4804_v10, %v14378_v18  ;;  %v4816_v18 = vshll.u32 %v14270_v13, 16 }
 0x3ff   : > { %v4295_v9 = vadd.f32 %v4294_v33, %v14316_v54  ;;  %v4263_v63 = vpop.f32.mrf.mxu3  ;;  %v10550_v54 = vor.u32 %v12061_v58, %v10547_v62  ;;  %v4803_v43 = vsel %vm1113_vm2, %v4798_v49, %v4802_v12  ;;  %5389 = vmatpush.bf16.msrb.mxu3 %v10602_v42  ;;  %v4822_v35 = vor.u32 %v4820_v8, %v4810_v41 }
 0x400   : > { %v14390_v38 = vadd.f32 %v4263_v63, %v4235_v50  ;;  %v10542_v63 = vor.u32 %v12059_v28, %v10539_v23  ;;  %v4818_v6 = vrot.slane %v4816_v18, 1 }
 0x401   : > { %v4323_v44 = vpop.f32.mrf.mxu1  ;;  %5417 = vmatpush.bf16.msra.mxu0 %v10550_v54 }
 0x402   : > { %v14394_v7 = vadd.f32 %v4323_v44, %v4295_v9  ;;  %v12075_v9 = vld [vmem:[#allocation9 + $0x484] sm:$0xf]  ;;  %v10603_v44 = vld [vmem:[#allocation9 + $0x488] sm:$0xf0] }
 0x403   : > { %v10606_v3 = vor.u32 %v12075_v9, %v10603_v44 }
 0x404   : > { %v4236_v52 = vpop.f32.mrf.mxu2 }
 0x405   : > { %v4237_v5 = vadd.f32 %v4236_v52, %v14318_v34  ;;  %5418 = vmatpush.bf16.msra.mxu0 %v10542_v63  ;;  %5447 = vmatpush.bf16.msra.mxu1 %v10606_v3  ;;  %v4812_v52 = vshrl.u32 %v14250_v0, 16 }
 0x406   : > { %v4297_v22 = vpop.f32.mrf.mxu0 }
 0x407   : > { %v4298_v59 = vadd.f32 %v4297_v22, %v14322_v57  ;;  %v4265_v50 = vpop.f32.mrf.mxu3  ;;  %v4811_v57 = vsel %vm1113_vm2, %v4806_v24, %v4810_v41  ;;  %v4814_v46 = vor.u32 %v4812_v52, %v4802_v12  ;;  %v4826_v22 = vrot.slane %v4824_v60, 1 }
 0x408   : > { %v14401_v34 = vadd.f32 %v4265_v50, %v4237_v5 }
 0x409   : > { %5014 = vmatmul.bf16.gmra.mxu2 %v4803_v43  ;;  %5072 = vmatmul.bf16.gmra.mxu0 %v4803_v43  ;;  %v4326_v21 = vpop.f32.mrf.mxu1  ;;  %v4819_v31 = vsel %vm1113_vm2, %v4814_v46, %v4818_v6  ;;  %v4827_v55 = vsel %vm1113_vm2, %v4822_v35, %v4826_v22 }
 0x40a   : > { %v14404_v33 = vadd.f32 %v4326_v21, %v4298_v59 }
 0x40c   : > { %v4239_v2 = vpop.f32.mrf.mxu2  ;;  %5043 = vmatmul.bf16.gmra.mxu3 %v4811_v57  ;;  %5101 = vmatmul.bf16.gmra.mxu1 %v4811_v57 }
 0x40d   : > { %v4240_v17 = vadd.f32 %v4239_v2, %v14326_v61 }
 0x40e   : > { %v4299_v56 = vpop.f32.mrf.mxu0 }
 0x40f   : > { %v4300_v11 = vadd.f32 %v4299_v56, %v14328_v14  ;;  %v4268_v58 = vpop.f32.mrf.mxu3 }
 0x410   : > { %v14410_v62 = vadd.f32 %v4268_v58, %v4240_v17 }
 0x411   : > { %v4328_v19 = vpop.f32.mrf.mxu1 }
 0x412   : > { %v14413_v61 = vadd.f32 %v4328_v19, %v4300_v11 }
 0x414   : > { %v4241_v54 = vpop.f32.mrf.mxu2 }
 0x415   : > { %v4242_v14 = vadd.f32 %v4241_v54, %v14330_v32 }
 0x416   : > { %v4302_v5 = vpop.f32.mrf.mxu0 }
 0x417   : > { %v4303_v13 = vadd.f32 %v4302_v5, %v14336_v30  ;;  %v4270_v48 = vpop.f32.mrf.mxu3 }
 0x418   : > { %v14420_v0 = vadd.f32 %v4270_v48, %v4242_v14 }
 0x419   : > { %5019 = vmatmul.bf16.gmra.mxu2 %v4819_v31  ;;  %5077 = vmatmul.bf16.gmra.mxu0 %v4819_v31  ;;  %v4331_v12 = vpop.f32.mrf.mxu1 }
 0x41a   : > { %15825 = vst [vmem:[#allocation31_spill] sm:$0xff] %v14420_v0  ;;  %v14422_v49 = vadd.f32 %v4331_v12, %v4303_v13  ;;  %v10769_v0 = vld [vmem:[#allocation10 + $0x1d0] sm:$0xf] }
 0x41c   : > { %v4244_v32 = vpop.f32.mrf.mxu2  ;;  %5048 = vmatmul.bf16.gmra.mxu3 %v4827_v55  ;;  %5106 = vmatmul.bf16.gmra.mxu1 %v4827_v55 }
 0x41d   : > { %v4245_v37 = vadd.f32 %v4244_v32, %v14343_v1 }
 0x41e   : > { %v4304_v30 = vpop.f32.mrf.mxu0 }
 0x41f   : > { %v4305_v42 = vadd.f32 %v4304_v30, %v14348_v4  ;;  %v4273_v59 = vpop.f32.mrf.mxu3 }
 0x420   : > { %v14427_v50 = vadd.f32 %v4273_v59, %v4245_v37 }
 0x421   : > { %v4333_v43 = vpop.f32.mrf.mxu1 }
 0x422   : > { %v14429_v10 = vadd.f32 %v4333_v43, %v4305_v42 }
 0x424   : > { %15826 = vst [vmem:[#allocation32_spill] sm:$0xff] %v14429_v10  ;;  %v4246_v41 = vpop.f32.mrf.mxu2 }
 0x425   : > { %v4247_v21 = vadd.f32 %v4246_v41, %v14355_v15 }
 0x426   : > { %v4612_v24 = vpop.f32.mrf.mxu0 }
 0x427   : > { %v4275_v57 = vpop.f32.mrf.mxu3 }
 0x428   : > { %v14432_v2 = vadd.f32 %v4275_v57, %v4247_v21 }
 0x429   : > { %5361 = vmatmul.bf16.vlgmr.msrb.gmra.mxu2 %v14203_v51  ;;  %5419 = vmatmul.bf16.vlgmr.msra.gmra.mxu0 %v14203_v51  ;;  %v4641_v1 = vpop.f32.mrf.mxu1 }
 0x42a   : > { %15827 = vst [vmem:[#allocation33_spill] sm:$0xff] %v14432_v2  ;;  %v4642_v17 = vadd.f32 %v4641_v1, %v4612_v24  ;;  %v12152_v2 = vld [vmem:[#allocation10 + $0x1e4] sm:$0xf0] }
 0x42c   : > { %v4554_v4 = vpop.f32.mrf.mxu2  ;;  %v14437_v28 = vadd.f32 %v4642_v17, %v14357_v25  ;;  %5390 = vmatmul.bf16.vlgmr.msrb.gmra.mxu3 %v14206_v45  ;;  %5448 = vmatmul.bf16.vlgmr.msra.gmra.mxu1 %v14206_v45 }
 0x42e   : > { %v14441_v23 = vpop.f32.mrf.mxu0 }
 0x42f   : > { %v4583_v15 = vpop.f32.mrf.mxu3 }
 0x430   : > { %v4584_v9 = vadd.f32 %v4583_v15, %v4554_v4 }
 0x431   : > { %v14443_v56 = vpop.f32.mrf.mxu1 }
 0x432   : > { %v14446_v63 = vadd.f32 %v4584_v9, %v14364_v36 }
 0x434   : > { %v14448_v51 = vpop.f32.mrf.mxu2 }
 0x436   : > { %v4617_v44 = vpop.f32.mrf.mxu0 }
 0x437   : > { %v14450_v11 = vpop.f32.mrf.mxu3 }
 0x439   : > { %5366 = vmatmul.bf16.gmra.mxu2 %v14219_v39  ;;  %5424 = vmatmul.bf16.gmra.mxu0 %v14219_v39  ;;  %v4646_v25 = vpop.f32.mrf.mxu1 }
 0x43a   : > { %v4647_v45 = vadd.f32 %v4646_v25, %v4617_v44  ;;  %v10721_v25 = vld [vmem:[#allocation10 + $0x170] sm:$0xf] }
 0x43c   : > { %v4559_v3 = vpop.f32.mrf.mxu2  ;;  %v14455_v58 = vadd.f32 %v4647_v45, %v14383_v20  ;;  %5395 = vmatmul.bf16.gmra.mxu3 %v14224_v16  ;;  %5453 = vmatmul.bf16.gmra.mxu1 %v14224_v16  ;;  %v12138_v45 = vld [vmem:[#allocation10 + $0x174] sm:$0xf0] }
 0x43e   : > { %v14459_v36 = vpop.f32.mrf.mxu0 }
 0x43f   : > { %v4588_v18 = vpop.f32.mrf.mxu3 }
 0x440   : > { %v4589_v19 = vadd.f32 %v4588_v18, %v4559_v3  ;;  %v10785_v3 = vld [vmem:[#allocation10 + $0x1f0] sm:$0xf] }
 0x441   : > { %v14461_v52 = vpop.f32.mrf.mxu1 }
 0x442   : > { %v14464_v54 = vadd.f32 %v4589_v19, %v14390_v38  ;;  %v10722_v19 = vor.u32 %v12138_v45, %v10721_v25  ;;  %v10713_v45 = vld [vmem:[#allocation10 + $0x160] sm:$0xf] }
 0x444   : > { %v14466_v39 = vpop.f32.mrf.mxu2  ;;  %5907 = vmatpush.bf16.msra.mxu2 %v10722_v19  ;;  %v10777_v19 = vld [vmem:[#allocation10 + $0x1e0] sm:$0xf] }
 0x446   : > { %v4622_v46 = vpop.f32.mrf.mxu0 }
 0x447   : > { %v14468_v6 = vpop.f32.mrf.mxu3 }
 0x449   : > { %5371 = vmatmul.bf16.gmra.mxu2 %v14263_v47  ;;  %5429 = vmatmul.bf16.gmra.mxu0 %v14263_v47  ;;  %v4651_v20 = vpop.f32.mrf.mxu1 }
 0x44a   : > { %v4652_v16 = vadd.f32 %v4651_v20, %v4622_v46  ;;  %v12154_v46 = vld [vmem:[#allocation10 + $0x1f4] sm:$0xf0] }
 0x44b   : > { %v10786_v20 = vor.u32 %v12154_v46, %v10785_v3  ;;  %v12136_v3 = vld [vmem:[#allocation10 + $0x164] sm:$0xf0] }
 0x44c   : > { %v4564_v60 = vpop.f32.mrf.mxu2  ;;  %v14473_v14 = vadd.f32 %v4652_v16, %v14404_v33  ;;  %5400 = vmatmul.bf16.gmra.mxu3 %v14268_v40  ;;  %5458 = vmatmul.bf16.gmra.mxu1 %v14268_v40 }
 0x44d   : > { %5936 = vmatpush.bf16.msra.mxu3 %v10786_v20  ;;  %v10714_v20 = vor.u32 %v12136_v3, %v10713_v45  ;;  %v10715_v45 = vld [vmem:[#allocation10 + $0x168] sm:$0xf0]  ;;  %v12151_v3 = vld [vmem:[#allocation10 + $0x1e4] sm:$0xf] }
 0x44e   : > { %v14477_v38 = vpop.f32.mrf.mxu0 }
 0x44f   : > { %v4593_v5 = vpop.f32.mrf.mxu3  ;;  %5908 = vmatpush.bf16.msra.mxu2 %v10714_v20  ;;  %v12134_v20 = vld [vmem:[#allocation10 + $0x154] sm:$0xf0] }
 0x450   : > { %v4594_v8 = vadd.f32 %v4593_v5, %v4564_v60  ;;  %v12137_v5 = vld [vmem:[#allocation10 + $0x174] sm:$0xf] }
 0x451   : > { %v14479_v13 = vpop.f32.mrf.mxu1 }
 0x452   : > { %v14482_v48 = vadd.f32 %v4594_v8, %v14410_v62  ;;  %v10723_v8 = vld [vmem:[#allocation10 + $0x178] sm:$0xf0] }
 0x454   : > { %15828 = vst [vmem:[#allocation34_spill] sm:$0xff] %v14482_v48  ;;  %v14484_v47 = vpop.f32.mrf.mxu2  ;;  %v12135_v48 = vld [vmem:[#allocation10 + $0x164] sm:$0xf] }
 0x456   : > { %v4627_v31 = vpop.f32.mrf.mxu0 }
 0x457   : > { %v14486_v35 = vpop.f32.mrf.mxu3 }
 0x459   : > { %5376 = vmatmul.bf16.gmra.mxu2 %v14277_v27  ;;  %5434 = vmatmul.bf16.gmra.mxu0 %v14277_v27  ;;  %v4656_v33 = vpop.f32.mrf.mxu1 }
 0x45a   : > { %v4657_v40 = vadd.f32 %v4656_v33, %v4627_v31  ;;  %v12153_v31 = vld [vmem:[#allocation10 + $0x1f4] sm:$0xf] }
 0x45c   : > { %v4569_v22 = vpop.f32.mrf.mxu2  ;;  %v14491_v12 = vadd.f32 %v4657_v40, %v14422_v49  ;;  %5405 = vmatmul.bf16.gmra.mxu3 %v14280_v29  ;;  %5463 = vmatmul.bf16.gmra.mxu1 %v14280_v29  ;;  %v10726_v40 = vor.u32 %v12137_v5, %v10723_v8 }
 0x45e   : > { %15829 = vst [vmem:[#allocation35_spill] sm:$0xff] %v14491_v12  ;;  %v14495_v62 = vpop.f32.mrf.mxu0  ;;  %5965 = vmatpush.bf16.msrb.mxu0 %v10726_v40 }
 0x45f   : > { %v4598_v55 = vpop.f32.mrf.mxu3 }
 0x460   : > { %v4599_v32 = vadd.f32 %v4598_v55, %v4569_v22  ;;  %v10787_v22 = vld [vmem:[#allocation10 + $0x1f8] sm:$0xf0] }
 0x461   : > { %v14497_v37 = vpop.f32.mrf.mxu1  ;;  %v10790_v55 = vor.u32 %v12153_v31, %v10787_v22 }
 0x462   : > { %v14500_v30 = vadd.f32 %v4599_v32, %v14427_v50 }
 0x463   : > { %5994 = vmatpush.bf16.msrb.mxu1 %v10790_v55 }
 0x464   : > { %15830 = vst [vmem:[#allocation36_spill] sm:$0xff] %v14500_v30  ;;  %v14502_v27 = vpop.f32.mrf.mxu2  ;;  %v10778_v30 = vor.u32 %v12152_v2, %v10777_v19  ;;  %v10718_v2 = vor.u32 %v12135_v48, %v10715_v45  ;;  %v10779_v19 = vld [vmem:[#allocation10 + $0x1e8] sm:$0xf0] }
 0x465   : > { %15831 = vst [vmem:[#allocation37_spill] sm:$0xff] %v14502_v27  ;;  %v10782_v27 = vor.u32 %v12151_v3, %v10779_v19  ;;  %v10697_v19 = vld [vmem:[#allocation10 + $0x140] sm:$0xf] }
 0x466   : > { %v14504_v42 = vpop.f32.mrf.mxu0  ;;  %5937 = vmatpush.bf16.msra.mxu3 %v10778_v30  ;;  %5966 = vmatpush.bf16.msrb.mxu0 %v10718_v2 }
 0x467   : > { %v14506_v59 = vpop.f32.mrf.mxu3  ;;  %5995 = vmatpush.bf16.msrb.mxu1 %v10782_v27  ;;  %v12148_v27 = vld [vmem:[#allocation10 + $0x1c4] sm:$0xf0] }
 0x468   : > { %15832 = vst [vmem:[#allocation38_spill] sm:$0xff] %v14506_v59  ;;  %v10705_v59 = vld [vmem:[#allocation10 + $0x150] sm:$0xf] }
 0x469   : > { %v14508_v49 = vpop.f32.mrf.mxu1  ;;  %v10706_v10 = vor.u32 %v12134_v20, %v10705_v59  ;;  %v10771_v59 = vld [vmem:[#allocation10 + $0x1d8] sm:$0xf0]  ;;  %v12132_v20 = vld [vmem:[#allocation10 + $0x144] sm:$0xf0] }
 0x46a   : > { %v5093_v48 = vadd.f32 %v14508_v49, %v14504_v42 }
 0x46b   : > { %5909 = vmatpush.bf16.msra.mxu2 %v10706_v10 }
 0x46c   : > { %v14510_v43 = vpop.f32.mrf.mxu2  ;;  %v5113_v49 = vadd.f32 %v5093_v48, %v14437_v28  ;;  %v12131_v48 = vld [vmem:[#allocation10 + $0x144] sm:$0xf] }
 0x46e   : > { %v14512_v29 = vpop.f32.mrf.mxu0 }
 0x46f   : > { %v14514_v41 = vpop.f32.mrf.mxu3 }
 0x471   : > { %v14516_v21 = vpop.f32.mrf.mxu1 }
 0x474   : > { %v14518_v24 = vpop.f32.mrf.mxu2 }
 0x476   : > { %v14520_v50 = vpop.f32.mrf.mxu0 }
 0x477   : > { %v14522_v57 = vpop.f32.mrf.mxu3 }
 0x479   : > { %v14524_v1 = vpop.f32.mrf.mxu1 }
 0x47c   : > { %v14526_v17 = vpop.f32.mrf.mxu2 }
 0x47e   : > { %v14528_v4 = vpop.f32.mrf.mxu0 }
 0x47f   : > { %v14530_v15 = vpop.f32.mrf.mxu3 }
 0x481   : > { %v14532_v9 = vpop.f32.mrf.mxu1 }
 0x484   : > { %v14534_v44 = vpop.f32.mrf.mxu2 }
 0x486   : > { %v14536_v18 = vpop.f32.mrf.mxu0 }
 0x487   : > { %v14538_v16 = vpop.f32.mrf.mxu3 }
 0x489   : > { %v14540_v60 = vpop.f32.mrf.mxu1 }
 0x48c   : > { %v14542_v33 = vpop.f32.mrf.mxu2 }
 0x48e   : > { %v14544_v32 = vpop.f32.mrf.mxu0 }
 0x48f   : > { %v14546_v25 = vpop.f32.mrf.mxu3 }
 0x491   : > { %v14548_v46 = vpop.f32.mrf.mxu1 }
 0x492   : > { %15833 = vst [vmem:[#allocation25_spill] sm:$0xff] %v14548_v46 }
 0x494   : > { %v14550_v12 = vpop.f32.mrf.mxu2 }
 0x495   : > { %15834 = vst [vmem:[#allocation26_spill] sm:$0xff] %v14550_v12 }
 0x496   : > { %v14552_v5 = vpop.f32.mrf.mxu0 }
 0x497   : > { %15835 = vst [vmem:[#allocation29_spill] sm:$0xff] %v14552_v5  ;;  %v14554_v8 = vpop.f32.mrf.mxu3  ;;  %v12150_v5 = vld [vmem:[#allocation10 + $0x1d4] sm:$0xf0] }
 0x498   : > { %15836 = vst [vmem:[#allocation30_spill] sm:$0xff] %v14554_v8  ;;  %v10707_v8 = vld [vmem:[#allocation10 + $0x158] sm:$0xf0] }
 0x499   : > { %v14556_v31 = vpop.f32.mrf.mxu1 }
 0x49a   : > { %15837 = vst [vmem:[#allocation23_spill] sm:$0xff] %v14556_v31  ;;  %v10770_v31 = vor.u32 %v12150_v5, %v10769_v0  ;;  %v10698_v5 = vor.u32 %v12132_v20, %v10697_v19  ;;  %v12147_v20 = vld [vmem:[#allocation10 + $0x1c4] sm:$0xf] }
 0x49c   : > { %v14558_v40 = vpop.f32.mrf.mxu2  ;;  %5938 = vmatpush.bf16.msra.mxu3 %v10770_v31  ;;  %v5485_v31 = vld [vmem:[%s15753_s8] sm:$0x3]  ;;  %5910 = vmatpush.bf16.msra.mxu2 %v10698_v5  ;;  %v10689_v5 = vld [vmem:[#allocation10 + $0x130] sm:$0xf] }
 0x49d   : > { %15838 = vst [vmem:[#allocation24_spill] sm:$0xff] %v14558_v40  ;;  %v14582_v19 = vperm.slane %v5485_v31, 0 }
 0x49e   : > { %v14560_v22 = vpop.f32.mrf.mxu0 }
 0x49f   : > { %15839 = vst [vmem:[#allocation28_spill] sm:$0xff] %v14560_v22  ;;  %v14562_v55 = vpop.f32.mrf.mxu3 }
 0x4a0   : > { %15840 = vst [vmem:[#allocation39_spill] sm:$0xff] %v14562_v55  ;;  %v12133_v55 = vld [vmem:[#allocation10 + $0x154] sm:$0xf] }
 0x4a1   : > { %v14564_v30 = vpop.f32.mrf.mxu1  ;;  %v10710_v3 = vor.u32 %v12133_v55, %v10707_v8  ;;  %v5035_v8 = vadd.f32 %v14514_v41, %v14510_v43  ;;  %v4644_v55 = vadd.f32 %v14443_v56, %v14441_v23  ;;  %v12130_v23 = vld [vmem:[#allocation10 + $0x134] sm:$0xf0] }
 0x4a2   : > { %15841 = vst [vmem:[#allocation40_spill] sm:$0xff] %v14564_v30  ;;  %v12149_v30 = vld [vmem:[#allocation10 + $0x1d4] sm:$0xf] }
 0x4a3   : > { %v10774_v0 = vor.u32 %v12149_v30, %v10771_v59  ;;  %5967 = vmatpush.bf16.msrb.mxu0 %v10710_v3  ;;  %v10699_v3 = vld [vmem:[#allocation10 + $0x148] sm:$0xf0]  ;;  %v4664_v56 = vadd.f32 %v4644_v55, %v14370_v26  ;;  %v5037_v26 = vadd.f32 %v14522_v57, %v14518_v24  ;;  %v10755_v24 = vld [vmem:[#allocation10 + $0x1b8] sm:$0xf0]  ;;  %v10681_v57 = vld [vmem:[#allocation10 + $0x120] sm:$0xf] }
 0x4a4   : > { %v14566_v40 = vpop.f32.mrf.mxu2  ;;  %v10702_v41 = vor.u32 %v12131_v48, %v10699_v3  ;;  %v12145_v3 = vld [vmem:[#allocation10 + $0x1b4] sm:$0xf] }
 0x4a5   : > { %15842 = vst [vmem:[#allocation27_spill] sm:$0xff] %v14566_v40  ;;  %v10761_v40 = vld [vmem:[#allocation10 + $0x1c0] sm:$0xf]  ;;  %5996 = vmatpush.bf16.msrb.mxu1 %v10774_v0  ;;  %v10763_v0 = vld [vmem:[#allocation10 + $0x1c8] sm:$0xf0] }
 0x4a6   : > { %v5420_v22 = vpop.f32.mrf.mxu0  ;;  %v10762_v42 = vor.u32 %v12148_v27, %v10761_v40  ;;  %v5095_v40 = vadd.f32 %v14516_v21, %v14512_v29  ;;  %v12146_v29 = vld [vmem:[#allocation10 + $0x1b4] sm:$0xf0]  ;;  %v4586_v21 = vadd.f32 %v14450_v11, %v14448_v51  ;;  %v5098_v51 = vadd.f32 %v14524_v1, %v14520_v50 }
 0x4a7   : > { %v14570_v45 = vpop.f32.mrf.mxu3  ;;  %5968 = vmatpush.bf16.msrb.mxu0 %v10702_v41 }
 0x4a8   : > { %15843 = vst [vmem:[#allocation41_spill] sm:$0xff] %v14570_v45  ;;  %5939 = vmatpush.bf16.msra.mxu3 %v10762_v42  ;;  %v10690_v42 = vor.u32 %v12130_v23, %v10689_v5  ;;  %v4663_v48 = vadd.f32 %v4586_v21, %v14380_v53  ;;  %v10745_v53 = vld [vmem:[#allocation10 + $0x1a0] sm:$0xf]  ;;  %v12144_v23 = vld [vmem:[#allocation10 + $0x1a4] sm:$0xf0] }
 0x4a9   : > { %v5449_v2 = vpop.f32.mrf.mxu1  ;;  %v10746_v50 = vor.u32 %v12144_v23, %v10745_v53 }
 0x4aa   : > { %v5450_v10 = vadd.f32 %v5449_v2, %v5420_v22  ;;  %v14580_v22 = vperm.slane %v5485_v31, 1  ;;  %v5112_v2 = vadd.f32 %v5035_v8, %v14446_v63  ;;  %v10766_v31 = vor.u32 %v12147_v20, %v10763_v0  ;;  %5911 = vmatpush.bf16.msra.mxu2 %v10690_v42 }
 0x4ab   : > { %v5114_v20 = vadd.f32 %v5037_v26, %v4663_v48  ;;  %v10758_v0 = vor.u32 %v12145_v3, %v10755_v24  ;;  %v10747_v48 = vld [vmem:[#allocation10 + $0x1a8] sm:$0xf0]  ;;  %v12126_v3 = vld [vmem:[#allocation10 + $0x114] sm:$0xf0] }
 0x4ac   : > { %v5362_v45 = vpop.f32.mrf.mxu2  ;;  %v5470_v30 = vadd.f32 %v5450_v10, %v5113_v49  ;;  %v10753_v49 = vld [vmem:[#allocation10 + $0x1b0] sm:$0xf]  ;;  %5997 = vmatpush.bf16.msrb.mxu1 %v10766_v31 }
 0x4ad   : > { %v10754_v63 = vor.u32 %v12146_v29, %v10753_v49  ;;  %v4649_v49 = vadd.f32 %v14461_v52, %v14459_v36  ;;  %v5040_v29 = vadd.f32 %v14530_v15, %v14526_v17  ;;  %v10683_v36 = vld [vmem:[#allocation10 + $0x128] sm:$0xf0] }
 0x4ae   : > { %v5422_v59 = vpop.f32.mrf.mxu0  ;;  %v5492_v27 = vadd.f32 %v14580_v22, %v5470_v30 }
 0x4af   : > { %v5391_v28 = vpop.f32.mrf.mxu3  ;;  %5940 = vmatpush.bf16.msra.mxu3 %v10754_v63  ;;  %v4668_v52 = vadd.f32 %v4649_v49, %v14394_v7  ;;  %v5116_v17 = vadd.f32 %v5040_v29, %v14464_v54  ;;  %v12142_v7 = vld [vmem:[#allocation10 + $0x194] sm:$0xf0]  ;;  %v10739_v29 = vld [vmem:[#allocation10 + $0x198] sm:$0xf0] }
 0x4b0   : > { %v5392_v43 = vadd.f32 %v5391_v28, %v5362_v45  ;;  %v5115_v45 = vadd.f32 %v5095_v40, %v4664_v56  ;;  %12549 = vtanh.f32 %v5492_v27  ;;  %v10691_v40 = vld [vmem:[#allocation10 + $0x138] sm:$0xf0]  ;;  %5998 = vmatpush.bf16.msrb.mxu1 %v10758_v0 }
 0x4b1   : > { %v5451_v10 = vpop.f32.mrf.mxu1 }
 0x4b2   : > { %v5469_v12 = vadd.f32 %v5392_v43, %v5112_v2  ;;  %v5452_v46 = vadd.f32 %v5451_v10, %v5422_v59  ;;  %v12129_v59 = vld [vmem:[#allocation10 + $0x134] sm:$0xf]  ;;  %v5117_v10 = vadd.f32 %v5098_v51, %v14455_v58  ;;  %v5100_v58 = vadd.f32 %v14532_v9, %v14528_v4  ;;  %v10673_v51 = vld [vmem:[#allocation10 + $0x110] sm:$0xf] }
 0x4b3   : > { %v10694_v43 = vor.u32 %v12129_v59, %v10691_v40  ;;  %5941 = vmatpush.bf16.msra.mxu3 %v10746_v50  ;;  %v4654_v4 = vadd.f32 %v14479_v13, %v14477_v38 }
 0x4b4   : > { %v5364_v8 = vpop.f32.mrf.mxu2  ;;  %v5491_v55 = vadd.f32 %v14582_v19, %v5469_v12  ;;  %v5472_v30 = vadd.f32 %v5452_v46, %v5115_v45  ;;  %v12128_v12 = vld [vmem:[#allocation10 + $0x124] sm:$0xf0] }
 0x4b5   : > { %v10682_v5 = vor.u32 %v12128_v12, %v10681_v57  ;;  %5969 = vmatpush.bf16.msrb.mxu0 %v10694_v43  ;;  %v10674_v43 = vor.u32 %v12126_v3, %v10673_v51  ;;  %v5119_v12 = vadd.f32 %v5100_v58, %v4668_v52  ;;  %v4672_v23 = vadd.f32 %v4654_v4, %v14413_v61  ;;  %v12125_v61 = vld [vmem:[#allocation10 + $0x114] sm:$0xf]  ;;  %v12124_v52 = vld [vmem:[#allocation10 + $0x104] sm:$0xf0]  ;;  %v15853_v4 = vld [vmem:[#allocation31_spill] sm:$0xff] }
 0x4b6   : > { %v5425_v28 = vpop.f32.mrf.mxu0  ;;  %12551 = vtanh.f32 %v5491_v55  ;;  %v5494_v41 = vadd.f32 %v14580_v22, %v5472_v30  ;;  %v12550_v1 = vpop.eup %12549  ;;  %v12127_v55 = vld [vmem:[#allocation10 + $0x124] sm:$0xf]  ;;  %v15855_v3 = vld [vmem:[#allocation37_spill] sm:$0xff] }
 0x4b7   : > { %v5393_v11 = vpop.f32.mrf.mxu3  ;;  %5912 = vmatpush.bf16.msra.mxu2 %v10682_v5  ;;  %v10686_v30 = vor.u32 %v12127_v55, %v10683_v36 }
 0x4b8   : > { %v5394_v2 = vadd.f32 %v5393_v11, %v5364_v8  ;;  %12553 = vtanh.f32 %v5494_v41  ;;  %v4591_v11 = vadd.f32 %v14468_v6, %v14466_v39  ;;  %v5042_v39 = vadd.f32 %v14538_v16, %v14534_v44 }
 0x4b9   : > { %v5454_v46 = vpop.f32.mrf.mxu1  ;;  %5970 = vmatpush.bf16.msrb.mxu0 %v10686_v30  ;;  %v5103_v6 = vadd.f32 %v14540_v60, %v14536_v18  ;;  %v4596_v44 = vadd.f32 %v14486_v35, %v14484_v47  ;;  %v4659_v18 = vadd.f32 %v14497_v37, %v14495_v62  ;;  %v15846_v47 = vld [vmem:[#allocation30_spill] sm:$0xff]  ;;  %v15848_v62 = vld [vmem:[#allocation23_spill] sm:$0xff] }
 0x4ba   : > { %v5471_v56 = vadd.f32 %v5394_v2, %v5114_v20  ;;  %v5455_v27 = vadd.f32 %v5454_v46, %v5425_v28  ;;  %v12143_v28 = vld [vmem:[#allocation10 + $0x1a4] sm:$0xf]  ;;  %v10737_v20 = vld [vmem:[#allocation10 + $0x190] sm:$0xf]  ;;  %v4667_v46 = vadd.f32 %v4591_v11, %v14401_v34  ;;  %v5045_v34 = vadd.f32 %v14546_v25, %v14542_v33  ;;  %v15849_v33 = vld [vmem:[#allocation24_spill] sm:$0xff] }
 0x4bb   : > { %v10750_v40 = vor.u32 %v12143_v28, %v10747_v48  ;;  %v10738_v24 = vor.u32 %v12142_v7, %v10737_v20  ;;  %5913 = vmatpush.bf16.msra.mxu2 %v10674_v43  ;;  %v5121_v60 = vadd.f32 %v5103_v6, %v14473_v14  ;;  %v12141_v14 = vld [vmem:[#allocation10 + $0x194] sm:$0xf]  ;;  %v15850_v25 = vld [vmem:[#allocation39_spill] sm:$0xff]  ;;  %v15856_v20 = vld [vmem:[#allocation38_spill] sm:$0xff] }
 0x4bc   : > { %v5367_v31 = vpop.f32.mrf.mxu2  ;;  %v12552_v42 = vpop.eup %12551  ;;  %v5493_v21 = vadd.f32 %v14582_v19, %v5471_v56  ;;  %v5474_v45 = vadd.f32 %v5455_v27, %v5117_v10  ;;  %v5118_v16 = vadd.f32 %v5042_v39, %v4667_v46  ;;  %v15844_v56 = vld [vmem:[#allocation25_spill] sm:$0xff]  ;;  %v15845_v10 = vld [vmem:[#allocation26_spill] sm:$0xff]  ;;  %v10742_v36 = vor.u32 %v12141_v14, %v10739_v29 }
 0x4bd   : > { %v14604_v63 = vpack.c.bf16 %v12550_v1, %v12552_v42  ;;  %5999 = vmatpush.bf16.msrb.mxu1 %v10750_v40  ;;  %5942 = vmatpush.bf16.msra.mxu3 %v10738_v24  ;;  %v5105_v27 = vadd.f32 %v15844_v56, %v14544_v32  ;;  %v10675_v1 = vld [vmem:[#allocation10 + $0x118] sm:$0xf0]  ;;  %v5047_v35 = vadd.f32 %v15846_v47, %v15845_v10  ;;  %v15851_v32 = vld [vmem:[#allocation28_spill] sm:$0xff]  ;;  %v12139_v10 = vld [vmem:[#allocation10 + $0x184] sm:$0xf] }
 0x4be   : > { %v5427_v8 = vpop.f32.mrf.mxu0  ;;  %12555 = vtanh.f32 %v5493_v21  ;;  %v5496_v9 = vadd.f32 %v14580_v22, %v5474_v45  ;;  %v12554_v57 = vpop.eup %12553  ;;  %v10678_v49 = vor.u32 %v12125_v61, %v10675_v1  ;;  %v10665_v21 = vld [vmem:[#allocation10 + $0x100] sm:$0xf]  ;;  %v5050_v45 = vadd.f32 %v15850_v25, %v15849_v33  ;;  %v10731_v47 = vld [vmem:[#allocation10 + $0x188] sm:$0xf0]  ;;  %v10849_v29 = vld [vmem:[#allocation10 + $0x70] sm:$0xf] }
 0x4bf   : > { %5531 = vst [vmem:[#allocation2 + $0x10] sm:$0xff] %v14604_v63  ;;  %v5396_v26 = vpop.f32.mrf.mxu3  ;;  %v10666_v48 = vor.u32 %v12124_v52, %v10665_v21  ;;  %v14648_v7 = vadd.f32 %v15856_v20, %v15855_v3  ;;  %v12106_v21 = vld [vmem:[#allocation10 + $0x74] sm:$0xf0]  ;;  %v10913_v33 = vld [vmem:[#allocation10 + $0xf0] sm:$0xf] }
 0x4c0   : > { %v5397_v15 = vadd.f32 %v5396_v26, %v5367_v31  ;;  %12557 = vtanh.f32 %v5496_v9  ;;  %v15847_v31 = vld [vmem:[#allocation29_spill] sm:$0xff]  ;;  %5971 = vmatpush.bf16.msrb.mxu0 %v10678_v49  ;;  %v4671_v9 = vadd.f32 %v4596_v44, %v15853_v4 }
 0x4c1   : > { %v5456_v59 = vpop.f32.mrf.mxu1  ;;  %v5108_v37 = vadd.f32 %v15848_v62, %v15847_v31  ;;  %6000 = vmatpush.bf16.msrb.mxu1 %v10742_v36  ;;  %5914 = vmatpush.bf16.msra.mxu2 %v10666_v48 }
 0x4c2   : > { %v5473_v2 = vadd.f32 %v5397_v15, %v5116_v17  ;;  %v5457_v54 = vadd.f32 %v5456_v59, %v5427_v8  ;;  %v15852_v8 = vld [vmem:[#allocation40_spill] sm:$0xff]  ;;  %v10729_v17 = vld [vmem:[#allocation10 + $0x180] sm:$0xf]  ;;  %v14652_v6 = vadd.f32 %v5047_v35, %v4671_v9 }
 0x4c3   : > { %v5110_v58 = vadd.f32 %v15852_v8, %v15851_v32  ;;  %v12140_v15 = vld [vmem:[#allocation10 + $0x184] sm:$0xf0]  ;;  %v10850_v8 = vor.u32 %v12106_v21, %v10849_v29 }
 0x4c4   : > { %v5369_v38 = vpop.f32.mrf.mxu2  ;;  %v12556_v13 = vpop.eup %12555  ;;  %v5495_v41 = vadd.f32 %v14582_v19, %v5473_v2  ;;  %v5476_v5 = vadd.f32 %v5457_v54, %v5119_v12  ;;  %v10730_v51 = vor.u32 %v12140_v15, %v10729_v17  ;;  %v15854_v59 = vld [vmem:[#allocation32_spill] sm:$0xff]  ;;  %v15857_v2 = vld [vmem:[#allocation34_spill] sm:$0xff] }
 0x4c5   : > { %v14622_v0 = vpack.c.bf16 %v12554_v57, %v12556_v13  ;;  %v4676_v40 = vadd.f32 %v4659_v18, %v15854_v59  ;;  %v5120_v54 = vadd.f32 %v5045_v34, %v15857_v2  ;;  %v5123_v57 = vadd.f32 %v5105_v27, %v4672_v23  ;;  %v5539_v35 = vld [vmem:[#allocation2 + $0x8] sm:$0x88]  ;;  %6214 = vmatpush.bf16.msrb.mxu2 %v10850_v8 }
 0x4c6   : > { %v5430_v53 = vpop.f32.mrf.mxu0  ;;  %12559 = vtanh.f32 %v5495_v41  ;;  %v5498_v26 = vadd.f32 %v14580_v22, %v5476_v5  ;;  %v12558_v11 = vpop.eup %12557  ;;  %5943 = vmatpush.bf16.msra.mxu3 %v10730_v51  ;;  %v15859_v5 = vld [vmem:[#allocation36_spill] sm:$0xff]  ;;  %v5625_v34 = vunpack.c.l.b16 %v14604_v63  ;;  %v5624_v14 = vunpack.c.h.b16 %v5539_v35 }
 0x4c7   : > { %5532 = vst [vmem:[#allocation2 + $0x18] sm:$0xff] %v14622_v0  ;;  %v5398_v50 = vpop.f32.mrf.mxu3  ;;  %v14662_v44 = vadd.f32 %v5110_v58, %v4676_v40  ;;  %v5627_v56 = vunpack.c.l.b16 %v14622_v0  ;;  %v5628_v31 = vunpack.c.h.b16 %v14622_v0  ;;  %v12122_v58 = vld [vmem:[#allocation10 + $0xf4] sm:$0xf0] }
 0x4c8   : > { %v5399_v42 = vadd.f32 %v5398_v50, %v5369_v38  ;;  %v15858_v38 = vld [vmem:[#allocation35_spill] sm:$0xff]  ;;  %12561 = vtanh.f32 %v5498_v26  ;;  %v5626_v50 = vunpack.c.h.b16 %v14604_v63 }
 0x4c9   : > { %v5459_v55 = vpop.f32.mrf.mxu1  ;;  %v14655_v13 = vadd.f32 %v5108_v37, %v15858_v38  ;;  %v10734_v37 = vor.u32 %v12139_v10, %v10731_v47 }
 0x4ca   : > { %v5475_v30 = vadd.f32 %v5399_v42, %v5118_v16  ;;  %v5460_v28 = vadd.f32 %v5459_v55, %v5430_v53  ;;  %v14660_v53 = vadd.f32 %v5050_v45, %v15859_v5  ;;  %v12123_v16 = vld [vmem:[#allocation10 + $0x104] sm:$0xf]  ;;  %v5623_v42 = vunpack.c.l.b16 %v5539_v35  ;;  %v15861_v5 = vld [vmem:[#allocation41_spill] sm:$0xff] }
 0x4cb   : > { %6001 = vmatpush.bf16.msrb.mxu1 %v10734_v37  ;;  %v14686_v15 = vpack.c.b16 %v5626_v50, %v5624_v14 }
 0x4cc   : > { %v5372_v43 = vpop.f32.mrf.mxu2  ;;  %v12560_v24 = vpop.eup %12559  ;;  %v5497_v12 = vadd.f32 %v14582_v19, %v5475_v30  ;;  %v5478_v39 = vadd.f32 %v5460_v28, %v5121_v60  ;;  %v10667_v60 = vld [vmem:[#allocation10 + $0x108] sm:$0xf0]  ;;  %v14680_v36 = vpack.c.b16 %v5625_v34, %v5623_v42  ;;  %v12121_v42 = vld [vmem:[#allocation10 + $0xf4] sm:$0xf] }
 0x4cd   : > { %v14657_v41 = vpack.c.bf16 %v12558_v11, %v12560_v24  ;;  %v10670_v1 = vor.u32 %v12123_v16, %v10667_v60  ;;  %v10914_v11 = vor.u32 %v12122_v58, %v10913_v33  ;;  %v10915_v33 = vld [vmem:[#allocation10 + $0xf8] sm:$0xf0] }
 0x4ce   : > { %v5432_v46 = vpop.f32.mrf.mxu0  ;;  %12563 = vtanh.f32 %v5497_v12  ;;  %v5500_v23 = vadd.f32 %v14580_v22, %v5478_v39  ;;  %v12562_v26 = vpop.eup %12561  ;;  %v5652_v59 = vshrl.u32 %v14680_v36, 16  ;;  %v5655_v40 = vshll.u32 %v14680_v36, 16 }
 0x4cf   : > { %5533 = vst [vmem:[#allocation2 + $0x20] sm:$0xff] %v14657_v41  ;;  %v5401_v18 = vpop.f32.mrf.mxu3  ;;  %v5629_v27 = vunpack.c.l.b16 %v14657_v41  ;;  %5972 = vmatpush.bf16.msrb.mxu0 %v10670_v1  ;;  %v5630_v32 = vunpack.c.h.b16 %v14657_v41  ;;  %6243 = vmatpush.bf16.msrb.mxu3 %v10914_v11  ;;  %v5672_v39 = vshll.u32 %v14686_v15, 16  ;;  %v10851_v1 = vld [vmem:[#allocation10 + $0x78] sm:$0xf0] }
 0x4d0   : > { %12565 = vtanh.f32 %v5500_v23  ;;  %v5402_v61 = vadd.f32 %v5401_v18, %v5372_v43  ;;  %v5669_v43 = vshrl.u32 %v14686_v15, 16  ;;  %v5657_v12 = vrot.slane %v5655_v40, 4  ;;  %v12119_v40 = vld [vmem:[#allocation10 + $0xe4] sm:$0xf] }
 0x4d1   : > { %v5461_v62 = vpop.f32.mrf.mxu1  ;;  %v14675_v49 = vpack.c.b16 %v5629_v27, %v5627_v56  ;;  %v14693_v51 = vpack.c.b16 %v5630_v32, %v5628_v31  ;;  %v5674_v35 = vrot.slane %v5672_v39, 4 }
 0x4d2   : > { %v5477_v25 = vadd.f32 %v5402_v61, %v5120_v54  ;;  %v5462_v45 = vadd.f32 %v5461_v62, %v5432_v46  ;;  %v15860_v46 = vld [vmem:[#allocation27_spill] sm:$0xff]  ;;  %v5671_v60 = vrot.slane %v5669_v43, 3  ;;  %v12105_v61 = vld [vmem:[#allocation10 + $0x74] sm:$0xf] }
 0x4d3   : > { %v5660_v52 = vshrl.u32 %v14675_v49, 16  ;;  %v5663_v17 = vshll.u32 %v14675_v49, 16  ;;  %v5677_v38 = vshrl.u32 %v14693_v51, 16  ;;  %v14706_v23 = vadd.f32 %v15861_v5, %v15860_v46  ;;  %v10897_v5 = vld [vmem:[#allocation10 + $0xd0] sm:$0xf] }
 0x4d4   : > { %v5374_v55 = vpop.f32.mrf.mxu2  ;;  %v12564_v30 = vpop.eup %12563  ;;  %v5499_v28 = vadd.f32 %v14582_v19, %v5477_v25  ;;  %v5480_v48 = vadd.f32 %v5462_v45, %v5123_v57  ;;  %v5654_v57 = vrot.slane %v5652_v59, 3  ;;  %v5680_v37 = vshll.u32 %v14693_v51, 16  ;;  %v10841_v25 = vld [vmem:[#allocation10 + $0x60] sm:$0xf]  ;;  %v12104_v45 = vld [vmem:[#allocation10 + $0x64] sm:$0xf0] }
 0x4d5   : > { %v14695_v4 = vpack.c.bf16 %v12562_v26, %v12564_v30  ;;  %v5662_v3 = vrot.slane %v5660_v52, 3  ;;  %v5665_v54 = vrot.slane %v5663_v17, 4  ;;  %v5679_v62 = vrot.slane %v5677_v38, 3  ;;  %v10905_v17 = vld [vmem:[#allocation10 + $0xe0] sm:$0xf] }
 0x4d6   : > { %v5435_v9 = vpop.f32.mrf.mxu0  ;;  %v12566_v20 = vpop.eup %12565  ;;  %12567 = vtanh.f32 %v5499_v28  ;;  %v5502_v2 = vadd.f32 %v14580_v22, %v5480_v48  ;;  %v5658_v47 = vor.u32 %v5657_v12, %v5654_v57  ;;  %v10854_v21 = vor.u32 %v12105_v61, %v10851_v1  ;;  %v12120_v30 = vld [vmem:[#allocation10 + $0xe4] sm:$0xf0]  ;;  %v10843_v59 = vld [vmem:[#allocation10 + $0x68] sm:$0xf0]  ;;  %v10833_v12 = vld [vmem:[#allocation10 + $0x50] sm:$0xf] }
 0x4d7   : > { %5534 = vst [vmem:[#allocation2 + $0x28] sm:$0xff] %v14695_v4  ;;  %v5403_v24 = vpop.f32.mrf.mxu3  ;;  %v14708_v16 = vor.u32 %v5665_v54, %v5662_v3  ;;  %v5675_v26 = vor.u32 %v5674_v35, %v5671_v60  ;;  %v10918_v52 = vor.u32 %v12121_v42, %v10915_v33  ;;  %v5631_v3 = vunpack.c.l.b16 %v14695_v4  ;;  %v10899_v33 = vld [vmem:[#allocation10 + $0xd8] sm:$0xf0] }
 0x4d8   : > { %v5404_v18 = vadd.f32 %v5403_v24, %v5374_v55  ;;  %12569 = vtanh.f32 %v5502_v2  ;;  %v5682_v55 = vrot.slane %v5680_v37, 4  ;;  %6272 = vmatpush.bf16.msra.mxu0 %v10854_v21  ;;  %v10906_v43 = vor.u32 %v12120_v30, %v10905_v17  ;;  %v10907_v24 = vld [vmem:[#allocation10 + $0xe8] sm:$0xf0]  ;;  %v12117_v37 = vld [vmem:[#allocation10 + $0xd4] sm:$0xf] }
 0x4d9   : > { %v5464_v10 = vpop.f32.mrf.mxu1  ;;  %v5667_v58 = vsel %vm543_vm0, %v5658_v47, %v14708_v16  ;;  %6301 = vmatpush.bf16.msra.mxu1 %v10918_v52  ;;  %v5632_v57 = vunpack.c.h.b16 %v14695_v4  ;;  %v10910_v46 = vor.u32 %v12119_v40, %v10907_v24  ;;  %v10889_v52 = vld [vmem:[#allocation10 + $0xc0] sm:$0xf]  ;;  %v12116_v17 = vld [vmem:[#allocation10 + $0xc4] sm:$0xf0]  ;;  %v12099_v30 = vld [vmem:[#allocation10 + $0x44] sm:$0xf] }
 0x4da   : > { %v5479_v14 = vadd.f32 %v5404_v18, %v14652_v6  ;;  %v5465_v29 = vadd.f32 %v5464_v10, %v5435_v9  ;;  %5915 = vmatmul.bf16.vlgmr.msra.gmra.mxu2 %v5667_v58  ;;  %5973 = vmatmul.bf16.vlgmr.msrb.gmra.mxu0 %v5667_v58  ;;  %v10842_v6 = vor.u32 %v12104_v45, %v10841_v25  ;;  %v12103_v9 = vld [vmem:[#allocation10 + $0x64] sm:$0xf]  ;;  %v12118_v18 = vld [vmem:[#allocation10 + $0xd4] sm:$0xf0]  ;;  %v10825_v25 = vld [vmem:[#allocation10 + $0x40] sm:$0xf] }
 0x4db   : > { %v14719_v54 = vor.u32 %v5682_v55, %v5679_v62  ;;  %v10846_v38 = vor.u32 %v12103_v9, %v10843_v59  ;;  %6244 = vmatpush.bf16.msrb.mxu3 %v10906_v43  ;;  %v10835_v62 = vld [vmem:[#allocation10 + $0x58] sm:$0xf0]  ;;  %v12100_v45 = vld [vmem:[#allocation10 + $0x44] sm:$0xf0]  ;;  %v10902_v55 = vor.u32 %v12117_v37, %v10899_v33  ;;  %v10827_v9 = vld [vmem:[#allocation10 + $0x48] sm:$0xf0] }
 0x4dc   : > { %v5377_v8 = vpop.f32.mrf.mxu2  ;;  %v12568_v28 = vpop.eup %12567  ;;  %v5501_v48 = vadd.f32 %v14582_v19, %v5479_v14  ;;  %v5482_v11 = vadd.f32 %v5465_v29, %v14655_v13  ;;  %v12102_v13 = vld [vmem:[#allocation10 + $0x54] sm:$0xf0]  ;;  %6215 = vmatpush.bf16.msrb.mxu2 %v10842_v6  ;;  %v10898_v29 = vor.u32 %v12118_v18, %v10897_v5  ;;  %v10890_v6 = vor.u32 %v12116_v17, %v10889_v52  ;;  %v12115_v59 = vld [vmem:[#allocation10 + $0xc4] sm:$0xf]  ;;  %v10891_v40 = vld [vmem:[#allocation10 + $0xc8] sm:$0xf0] }
 0x4dd   : > { %v14717_v2 = vpack.c.bf16 %v12566_v20, %v12568_v28  ;;  %v12101_v20 = vld [vmem:[#allocation10 + $0x54] sm:$0xf]  ;;  %v5684_v1 = vsel %vm543_vm0, %v5675_v26, %v14719_v54  ;;  %v10834_v35 = vor.u32 %v12102_v13, %v10833_v12  ;;  %6273 = vmatpush.bf16.msra.mxu0 %v10846_v38  ;;  %6302 = vmatpush.bf16.msra.mxu1 %v10910_v46 }
 0x4de   : > { %12571 = vtanh.f32 %v5501_v48  ;;  %v5504_v39 = vadd.f32 %v14580_v22, %v5482_v11  ;;  %v5437_v61 = vpop.f32.mrf.mxu0  ;;  %v12570_v42 = vpop.eup %12569  ;;  %5944 = vmatmul.bf16.vlgmr.msra.gmra.mxu3 %v5684_v1  ;;  %6002 = vmatmul.bf16.vlgmr.msrb.gmra.mxu1 %v5684_v1  ;;  %v10838_v21 = vor.u32 %v12101_v20, %v10835_v62  ;;  %v10826_v11 = vor.u32 %v12100_v45, %v10825_v25  ;;  %v12098_v20 = vld [vmem:[#allocation10 + $0x34] sm:$0xf0]  ;;  %v15862_v33 = vld [vmem:[#allocation33_spill] sm:$0xff] }
 0x4df   : > { %5535 = vst [vmem:[#allocation2 + $0x30] sm:$0xff] %v14717_v2  ;;  %v5406_v60 = vpop.f32.mrf.mxu3  ;;  %v5633_v10 = vunpack.c.l.b16 %v14717_v2  ;;  %v5634_v47 = vunpack.c.h.b16 %v14717_v2  ;;  %6245 = vmatpush.bf16.msrb.mxu3 %v10898_v29  ;;  %v10830_v5 = vor.u32 %v12099_v30, %v10827_v9  ;;  %v10894_v18 = vor.u32 %v12115_v59, %v10891_v40  ;;  %v12097_v29 = vld [vmem:[#allocation10 + $0x34] sm:$0xf]  ;;  %v10873_v40 = vld [vmem:[#allocation10 + $0xa0] sm:$0xf] }
 0x4e0   : > { %v5407_v14 = vadd.f32 %v5406_v60, %v5377_v8  ;;  %12573 = vtanh.f32 %v5504_v39  ;;  %6216 = vmatpush.bf16.msrb.mxu2 %v10834_v35  ;;  %v10817_v39 = vld [vmem:[#allocation10 + $0x30] sm:$0xf]  ;;  %v4675_v25 = vadd.f32 %v14648_v7, %v15862_v33  ;;  %v12113_v52 = vld [vmem:[#allocation10 + $0xb4] sm:$0xf]  ;;  %v12094_v33 = vld [vmem:[#allocation10 + $0x14] sm:$0xf0] }
 0x4e1   : > { %v5466_v58 = vpop.f32.mrf.mxu1  ;;  %v14732_v26 = vpack.c.b16 %v5633_v10, %v5631_v3  ;;  %v14738_v8 = vpack.c.b16 %v5634_v47, %v5632_v57  ;;  %v10881_v60 = vld [vmem:[#allocation10 + $0xb0] sm:$0xf]  ;;  %6274 = vmatpush.bf16.msra.mxu0 %v10838_v21  ;;  %6303 = vmatpush.bf16.msra.mxu1 %v10902_v55  ;;  %v10883_v21 = vld [vmem:[#allocation10 + $0xb8] sm:$0xf0]  ;;  %v10809_v55 = vld [vmem:[#allocation10 + $0x20] sm:$0xf] }
 0x4e2   : > { %v5481_v28 = vadd.f32 %v5407_v14, %v14660_v53  ;;  %v5467_v48 = vadd.f32 %v5466_v58, %v5437_v61  ;;  %v12114_v61 = vld [vmem:[#allocation10 + $0xb4] sm:$0xf0]  ;;  %v10819_v58 = vld [vmem:[#allocation10 + $0x38] sm:$0xf0]  ;;  %v12093_v4 = vld [vmem:[#allocation10 + $0x14] sm:$0xf] }
 0x4e3   : > { %v5686_v43 = vshrl.u32 %v14732_v26, 16  ;;  %v5689_v24 = vshll.u32 %v14732_v26, 16  ;;  %v5695_v12 = vshrl.u32 %v14738_v8, 16  ;;  %v5698_v13 = vshll.u32 %v14738_v8, 16  ;;  %6246 = vmatpush.bf16.msrb.mxu3 %v10890_v6 }
 0x4e4   : > { %v12572_v38 = vpop.eup %12571  ;;  %v5503_v53 = vadd.f32 %v14582_v19, %v5481_v28  ;;  %v5484_v46 = vadd.f32 %v5467_v48, %v14662_v44  ;;  %v5379_v35 = vpop.f32.mrf.mxu2  ;;  %6217 = vmatpush.bf16.msrb.mxu2 %v10826_v11  ;;  %v10818_v44 = vor.u32 %v12098_v20, %v10817_v39  ;;  %v10882_v28 = vor.u32 %v12114_v61, %v10881_v60  ;;  %v12096_v11 = vld [vmem:[#allocation10 + $0x24] sm:$0xf0]  ;;  %v10811_v39 = vld [vmem:[#allocation10 + $0x28] sm:$0xf0] }
 0x4e5   : > { %v14747_v1 = vpack.c.bf16 %v12570_v42, %v12572_v38  ;;  %v5688_v62 = vrot.slane %v5686_v43, 3  ;;  %v5691_v37 = vrot.slane %v5689_v24, 4  ;;  %v5697_v14 = vrot.slane %v5695_v12, 3  ;;  %v12112_v43 = vld [vmem:[#allocation10 + $0xa4] sm:$0xf0]  ;;  %6275 = vmatpush.bf16.msra.mxu0 %v10830_v5  ;;  %6304 = vmatpush.bf16.msra.mxu1 %v10894_v18 }
 0x4e6   : > { %12575 = vtanh.f32 %v5503_v53  ;;  %v5700_v45 = vrot.slane %v5698_v13, 4  ;;  %v12574_v17 = vpop.eup %12573  ;;  %v5126_v48 = vadd.f32 %v14706_v23, %v4675_v25  ;;  %v5506_v7 = vadd.f32 %v14580_v22, %v5484_v46  ;;  %v12095_v13 = vld [vmem:[#allocation10 + $0x24] sm:$0xf]  ;;  %v10875_v20 = vld [vmem:[#allocation10 + $0xa8] sm:$0xf0] }
 0x4e7   : > { %5536 = vst [vmem:[#allocation2 + $0x38] sm:$0xff] %v14747_v1  ;;  %v5408_v42 = vpop.f32.mrf.mxu3  ;;  %v14752_v30 = vor.u32 %v5691_v37, %v5688_v62  ;;  %v10822_v6 = vor.u32 %v12097_v29, %v10819_v58  ;;  %v10886_v12 = vor.u32 %v12113_v52, %v10883_v21  ;;  %v10810_v23 = vor.u32 %v12096_v11, %v10809_v55  ;;  %v12111_v46 = vld [vmem:[#allocation10 + $0xa4] sm:$0xf]  ;;  %v10801_v29 = vld [vmem:[#allocation10 + $0x10] sm:$0xf] }
 0x4e8   : > { %v5409_v9 = vadd.f32 %v5408_v42, %v5379_v35  ;;  %v14756_v59 = vor.u32 %v5700_v45, %v5697_v14  ;;  %6218 = vmatpush.bf16.msrb.mxu2 %v10818_v44  ;;  %v10874_v53 = vor.u32 %v12112_v43, %v10873_v40  ;;  %6247 = vmatpush.bf16.msrb.mxu3 %v10882_v28  ;;  %v6029_v5 = vrot.slane %v14675_v49, 3  ;;  %v10865_v25 = vld [vmem:[#allocation10 + $0x90] sm:$0xf]  ;;  %v12109_v58 = vld [vmem:[#allocation10 + $0x94] sm:$0xf] }
 0x4e9   : > { %v5693_v24 = vsel %vm543_vm0, %v14708_v16, %v14752_v30  ;;  %v10814_v60 = vor.u32 %v12095_v13, %v10811_v39  ;;  %v6028_v16 = vrot.slane %v14680_v36, 3  ;;  %v6031_v18 = vrot.slane %v14686_v15, 3  ;;  %6276 = vmatpush.bf16.msra.mxu0 %v10822_v6  ;;  %6305 = vmatpush.bf16.msra.mxu1 %v10886_v12  ;;  %v10867_v52 = vld [vmem:[#allocation10 + $0x98] sm:$0xf0]  ;;  %v10857_v43 = vld [vmem:[#allocation10 + $0x80] sm:$0xf] }
 0x4ea   : > { %v5483_v38 = vadd.f32 %v5409_v9, %v5126_v48  ;;  %v5702_v22 = vsel %vm543_vm0, %v14719_v54, %v14756_v59  ;;  %5920 = vmatmul.bf16.gmra.mxu2 %v5693_v24  ;;  %5978 = vmatmul.bf16.gmra.mxu0 %v5693_v24  ;;  %v6032_v54 = vrot.slane %v14693_v51, 3  ;;  %v14773_v62 = vpack.c.b16 %v5627_v56, %v5625_v34  ;;  %v12108_v24 = vld [vmem:[#allocation10 + $0x84] sm:$0xf0]  ;;  %v12091_v6 = vld [vmem:[#allocation10 + $0x4] sm:$0xf] }
 0x4eb   : > { %v14779_v36 = vpack.c.b16 %v5628_v31, %v5626_v50  ;;  %12577 = vtanh.f32 %v5506_v7  ;;  %v14786_v37 = vsel %vm733_vm1, %v6028_v16, %v6029_v5  ;;  %v5635_v34 = vunpack.c.l.b16 %v14747_v1  ;;  %v12092_v7 = vld [vmem:[#allocation10 + $0x4] sm:$0xf0] }
 0x4ec   : > { %v12576_v61 = vpop.eup %12575  ;;  %v5505_v35 = vadd.f32 %v14582_v19, %v5483_v38  ;;  %v10878_v19 = vor.u32 %v12111_v46, %v10875_v20  ;;  %v5636_v63 = vunpack.c.h.b16 %v14747_v1  ;;  %6219 = vmatpush.bf16.msrb.mxu2 %v10810_v23  ;;  %v14793_v0 = vsel %vm733_vm1, %v6031_v18, %v6032_v54  ;;  %6248 = vmatpush.bf16.msrb.mxu3 %v10874_v53  ;;  %v12107_v20 = vld [vmem:[#allocation10 + $0x84] sm:$0xf]  ;;  %v12169_v1 = vld [vmem:[#allocation10 + $0x274] sm:$0xf] }
 0x4ed   : > { %v14781_v15 = vpack.c.bf16 %v12574_v17, %v12576_v61  ;;  %v14802_v31 = vpack.c.b16 %v5631_v3, %v5629_v27  ;;  %v14808_v14 = vpack.c.b16 %v5632_v57, %v5630_v32  ;;  %6277 = vmatpush.bf16.msra.mxu0 %v10814_v60  ;;  %v10802_v27 = vor.u32 %v12094_v33, %v10801_v29  ;;  %v12110_v32 = vld [vmem:[#allocation10 + $0x94] sm:$0xf0]  ;;  %v10803_v3 = vld [vmem:[#allocation10 + $0x18] sm:$0xf0]  ;;  %v10793_v17 = vld [vmem:[#allocation10] sm:$0xf] }
 0x4ee   : > { %12579 = vtanh.f32 %v5505_v35  ;;  %5949 = vmatmul.bf16.gmra.mxu3 %v5702_v22  ;;  %6007 = vmatmul.bf16.gmra.mxu1 %v5702_v22  ;;  %v10866_v57 = vor.u32 %v12110_v32, %v10865_v25  ;;  %v10806_v44 = vor.u32 %v12093_v4, %v10803_v3  ;;  %v10870_v11 = vor.u32 %v12109_v58, %v10867_v52  ;;  %v10795_v22 = vld [vmem:[#allocation10 + $0x8] sm:$0xf0] }
 0x4ef   : > { %5537 = vst [vmem:[#allocation2 + $0x40] sm:$0xff] %v14781_v15  ;;  %v5637_v56 = vunpack.c.l.b16 %v14781_v15  ;;  %v5638_v50 = vunpack.c.h.b16 %v14781_v15  ;;  %6306 = vmatpush.bf16.msra.mxu1 %v10878_v19  ;;  %v10794_v40 = vor.u32 %v12092_v7, %v10793_v17  ;;  %v10858_v53 = vor.u32 %v12108_v24, %v10857_v43  ;;  %v10859_v60 = vld [vmem:[#allocation10 + $0x88] sm:$0xf0]  ;;  %v10977_v7 = vld [vmem:[#allocation10 + $0x270] sm:$0xf] }
 0x4f0   : > { %6220 = vmatpush.bf16.msrb.mxu2 %v10802_v27  ;;  %6249 = vmatpush.bf16.msrb.mxu3 %v10866_v57  ;;  %v10798_v46 = vor.u32 %v12091_v6, %v10795_v22  ;;  %v10862_v35 = vor.u32 %v12107_v20, %v10859_v60  ;;  %v6034_v27 = vrot.slane %v14732_v26, 3  ;;  %v6036_v4 = vrot.slane %v14738_v8, 3  ;;  %v12184_v20 = vld [vmem:[#allocation10 + $0x2e4] sm:$0xf0] }
 0x4f1   : > { %v14814_v45 = vpack.c.b16 %v5637_v56, %v5635_v34  ;;  %v14820_v41 = vpack.c.b16 %v5638_v50, %v5636_v63  ;;  %v12578_v42 = vpop.eup %12577  ;;  %6278 = vmatpush.bf16.msra.mxu0 %v10806_v44  ;;  %v14860_v49 = vpack.c.b16 %v5635_v34, %v5633_v10  ;;  %v14866_v51 = vpack.c.b16 %v5636_v63, %v5634_v47  ;;  %v12186_v34 = vld [vmem:[#allocation10 + $0x2f4] sm:$0xf0]  ;;  %v10979_v47 = vld [vmem:[#allocation10 + $0x278] sm:$0xf0] }
 0x4f2   : > { %v10982_v6 = vor.u32 %v12169_v1, %v10979_v47 }
 0x4f3   : > { %v5704_v28 = vshrl.u32 %v14814_v45, 16  ;;  %v5707_v21 = vshll.u32 %v14814_v45, 16  ;;  %v5713_v55 = vshrl.u32 %v14820_v41, 16  ;;  %v5716_v48 = vshll.u32 %v14820_v41, 16  ;;  %6307 = vmatpush.bf16.msra.mxu1 %v10870_v11  ;;  %v11041_v11 = vld [vmem:[#allocation10 + $0x2f0] sm:$0xf] }
 0x4f4   : > { %v12580_v9 = vpop.eup %12579  ;;  %6221 = vmatpush.bf16.msrb.mxu2 %v10794_v40  ;;  %6250 = vmatpush.bf16.msrb.mxu3 %v10858_v53  ;;  %v11049_v40 = vld [vmem:[#allocation2 + $0x20] sm:$0xf]  ;;  %v11042_v63 = vor.u32 %v12186_v34, %v11041_v11  ;;  %v12168_v53 = vld [vmem:[#allocation10 + $0x264] sm:$0xf0] }
 0x4f5   : > { %v5530_v12 = vpack.c.bf16 %v12578_v42, %v12580_v9  ;;  %v5706_v13 = vrot.slane %v5704_v28, 3  ;;  %v5709_v39 = vrot.slane %v5707_v21, 4  ;;  %v5715_v38 = vrot.slane %v5713_v55, 3  ;;  %6279 = vmatpush.bf16.msra.mxu0 %v10798_v46  ;;  %v14854_v21 = vld [vmem:[#allocation2 + $0x18] sm:$0xff]  ;;  %v11033_v46 = vld [vmem:[#allocation10 + $0x2e0] sm:$0xf] }
 0x4f6   : > { %v5718_v23 = vrot.slane %v5716_v48, 4  ;;  %v12170_v9 = vld [vmem:[#allocation10 + $0x274] sm:$0xf0]  ;;  %v6724_v43 = vunpack.c.l.b16 %v14854_v21 }
 0x4f7   : > { %5538 = vst [vmem:[#allocation2 + $0x48] sm:$0xff] %v5530_v12  ;;  %v5710_v16 = vor.u32 %v5709_v39, %v5706_v13  ;;  %v14826_v18 = vunpack.c.l.b16 %v5530_v12  ;;  %v14828_v61 = vunpack.c.h.b16 %v5530_v12  ;;  %6308 = vmatpush.bf16.msra.mxu1 %v10862_v35  ;;  %v10978_v2 = vor.u32 %v12170_v9, %v10977_v7  ;;  %v12185_v12 = vld [vmem:[#allocation10 + $0x2f4] sm:$0xf]  ;;  %v11043_v13 = vld [vmem:[#allocation10 + $0x2f8] sm:$0xf0] }
 0x4f8   : > { %v5719_v19 = vor.u32 %v5718_v23, %v5715_v38  ;;  %v10969_v39 = vld [vmem:[#allocation10 + $0x260] sm:$0xf]  ;;  %v11051_v38 = vld [vmem:[#allocation2 + $0x28] sm:$0xf0]  ;;  %v11046_v23 = vor.u32 %v12185_v12, %v11043_v13  ;;  %6568 = vmatpush.bf16.msra.mxu3 %v11042_v63 }
 0x4f9   : > { %v5711_v29 = vsel %vm543_vm0, %v14752_v30, %v5710_v16  ;;  %v5649_v33 = vpack.c.b16 %v14826_v18, %v14826_v18  ;;  %v5650_v25 = vpack.c.b16 %v14828_v61, %v14828_v61  ;;  %v14845_v30 = vsel %vm733_vm1, %v6029_v5, %v6034_v27  ;;  %v12188_v5 = vld [vmem:[#allocation2 + $0x24] sm:$0xf0]  ;;  %6539 = vmatpush.bf16.msra.mxu2 %v10978_v2 }
 0x4fa   : > { %v5720_v32 = vsel %vm543_vm0, %v14756_v59, %v5719_v19  ;;  %5925 = vmatmul.bf16.gmra.mxu2 %v5711_v29  ;;  %5983 = vmatmul.bf16.gmra.mxu0 %v5711_v29  ;;  %v14852_v59 = vsel %vm733_vm1, %v6032_v54, %v6036_v4  ;;  %v7122_v54 = vld [vmem:[#allocation2 + $0x10] sm:$0xee]  ;;  %v14873_v60 = vor.u32 %v12188_v5, %v11049_v40  ;;  %v12167_v29 = vld [vmem:[#allocation10 + $0x264] sm:$0xf]  ;;  %v6038_v40 = vrot.slane %v14814_v45, 3 }
 0x4fb   : > { %v5722_v3 = vshrl.u32 %v5649_v33, 16  ;;  %v5725_v57 = vshll.u32 %v5649_v33, 16  ;;  %v5731_v44 = vshrl.u32 %v5650_v25, 16  ;;  %v5734_v58 = vshll.u32 %v5650_v25, 16  ;;  %6597 = vmatpush.bf16.msrb.mxu0 %v10982_v6  ;;  %v10971_v33 = vld [vmem:[#allocation10 + $0x268] sm:$0xf0]  ;;  %6626 = vmatpush.bf16.msrb.mxu1 %v11046_v23 }
 0x4fc   : > { %v7157_v22 = vunpack.c.l.b16 %v7122_v54  ;;  %v10970_v35 = vor.u32 %v12168_v53, %v10969_v39  ;;  %v12183_v25 = vld [vmem:[#allocation10 + $0x2e4] sm:$0xf]  ;;  %v7162_v5 = vrot.slane %v14873_v60, 1  ;;  %v6040_v2 = vrot.slane %v14820_v41, 3  ;;  %v10961_v39 = vld [vmem:[#allocation10 + $0x250] sm:$0xf] }
 0x4fd   : > { %v5724_v52 = vrot.slane %v5722_v3, 3  ;;  %v5727_v17 = vrot.slane %v5725_v57, 4  ;;  %v5733_v42 = vrot.slane %v5731_v44, 3  ;;  %v5736_v28 = vrot.slane %v5734_v58, 4  ;;  %v11035_v57 = vld [vmem:[#allocation10 + $0x2e8] sm:$0xf0] }
 0x4fe   : > { %5954 = vmatmul.bf16.gmra.mxu3 %v5720_v32  ;;  %6012 = vmatmul.bf16.gmra.mxu1 %v5720_v32  ;;  %v7159_v32 = vpack.c.b16 %v6724_v43, %v7157_v22  ;;  %v10974_v3 = vor.u32 %v12167_v29, %v10971_v33  ;;  %v12190_v44 = vld [vmem:[#allocation2 + $0x34] sm:$0xf0]  ;;  %v7158_v58 = vunpack.c.h.b16 %v7122_v54  ;;  %v14897_v1 = vsel %vm733_vm1, %v6034_v27, %v6038_v40  ;;  %v11025_v22 = vld [vmem:[#allocation10 + $0x2d0] sm:$0xf]  ;;  %v10953_v29 = vld [vmem:[#allocation10 + $0x240] sm:$0xf] }
 0x4ff   : > { %v5728_v55 = vor.u32 %v5727_v17, %v5724_v52  ;;  %v5737_v48 = vor.u32 %v5736_v28, %v5733_v42  ;;  %v11038_v52 = vor.u32 %v12183_v25, %v11035_v57  ;;  %v12187_v17 = vld [vmem:[#allocation2 + $0x24] sm:$0xf]  ;;  %v11059_v42 = vld [vmem:[#allocation2 + $0x38] sm:$0xf0]  ;;  %6540 = vmatpush.bf16.msra.mxu2 %v10970_v35  ;;  %v14904_v47 = vsel %vm733_vm1, %v6036_v4, %v6040_v2  ;;  %v12182_v53 = vld [vmem:[#allocation10 + $0x2d4] sm:$0xf0] }
 0x500   : > { %v14878_v28 = vor.u32 %v12187_v17, %v11051_v38  ;;  %6598 = vmatpush.bf16.msrb.mxu0 %v10974_v3  ;;  %v7161_v54 = vrot.slane %v7159_v32, 1  ;;  %v14921_v4 = vpack.c.b16 %v14826_v18, %v5637_v56  ;;  %v12166_v38 = vld [vmem:[#allocation10 + $0x254] sm:$0xf0]  ;;  %v11026_v35 = vor.u32 %v12182_v53, %v11025_v22  ;;  %v12181_v56 = vld [vmem:[#allocation10 + $0x2d4] sm:$0xf] }
 0x501   : > { %v5729_v24 = vsel %vm543_vm0, %v5710_v16, %v5728_v55  ;;  %v14871_v10 = vsel %vm543_vm0, %v5719_v19, %v5737_v48  ;;  %v6725_v16 = vunpack.c.h.b16 %v14854_v21  ;;  %v11034_v19 = vor.u32 %v12184_v20, %v11033_v46  ;;  %v11057_v55 = vld [vmem:[#allocation2 + $0x30] sm:$0xf]  ;;  %v12189_v48 = vld [vmem:[#allocation2 + $0x34] sm:$0xf]  ;;  %6627 = vmatpush.bf16.msrb.mxu1 %v11038_v52  ;;  %v10963_v20 = vld [vmem:[#allocation10 + $0x258] sm:$0xf0] }
 0x502   : > { %v14883_v9 = vor.u32 %v12190_v44, %v11057_v55  ;;  %v14885_v11 = vor.u32 %v12189_v48, %v11059_v42  ;;  %v14890_v34 = vsel %vm1329_vm3, %v7161_v54, %v7162_v5  ;;  %v7165_v6 = vrot.slane %v14878_v28, 1  ;;  %v12165_v46 = vld [vmem:[#allocation10 + $0x254] sm:$0xf]  ;;  %v11027_v18 = vld [vmem:[#allocation10 + $0x2d8] sm:$0xf0] }
 0x503   : > { %v7160_v7 = vpack.c.b16 %v6725_v16, %v7158_v58  ;;  %6569 = vmatpush.bf16.msra.mxu3 %v11034_v19  ;;  %v10962_v23 = vor.u32 %v12166_v38, %v10961_v39  ;;  %v10966_v19 = vor.u32 %v12165_v46, %v10963_v20  ;;  %v11030_v15 = vor.u32 %v12181_v56, %v11027_v18  ;;  %v12180_v33 = vld [vmem:[#allocation10 + $0x2c4] sm:$0xf0]  ;;  %v12163_v32 = vld [vmem:[#allocation10 + $0x244] sm:$0xf]  ;;  %v10955_v3 = vld [vmem:[#allocation10 + $0x248] sm:$0xf0] }
 0x504   : > { %v7167_v12 = vrot.slane %v14883_v9, 1  ;;  %v7169_v13 = vrot.slane %v14885_v11, 1  ;;  %v12179_v57 = vld [vmem:[#allocation10 + $0x2c4] sm:$0xf]  ;;  %v10958_v44 = vor.u32 %v12163_v32, %v10955_v3  ;;  %v11019_v58 = vld [vmem:[#allocation10 + $0x2c8] sm:$0xf0] }
 0x505   : > { %v7164_v63 = vrot.slane %v7160_v7, 1  ;;  %6541 = vmatpush.bf16.msra.mxu2 %v10962_v23  ;;  %6599 = vmatpush.bf16.msrb.mxu0 %v10966_v19  ;;  %v11065_v52 = vld [vmem:[#allocation2 + $0x40] sm:$0xf]  ;;  %v12192_v17 = vld [vmem:[#allocation2 + $0x44] sm:$0xf0]  ;;  %v11022_v42 = vor.u32 %v12179_v57, %v11019_v58 }
 0x506   : > { %v14913_v27 = vsel %vm1329_vm3, %v7162_v5, %v7167_v12  ;;  %v14916_v8 = vsel %vm1329_vm3, %v7165_v6, %v7169_v13  ;;  %6628 = vmatpush.bf16.msrb.mxu1 %v11030_v15  ;;  %v14930_v55 = vor.u32 %v12192_v17, %v11065_v52  ;;  %v12191_v48 = vld [vmem:[#allocation2 + $0x44] sm:$0xf]  ;;  %v11067_v5 = vld [vmem:[#allocation2 + $0x48] sm:$0xf0]  ;;  %v6679_v7 = vld [vmem:[#allocation2 + $0x50] sm:$0x11] }
 0x507   : > { %v14910_v26 = vsel %vm1329_vm3, %v7164_v63, %v7165_v6  ;;  %6570 = vmatpush.bf16.msra.mxu3 %v11026_v35  ;;  %v14932_v54 = vor.u32 %v12191_v48, %v11067_v5  ;;  %v6738_v63 = vunpack.c.l.b16 %v6679_v7  ;;  %v6739_v6 = vunpack.c.h.b16 %v6679_v7  ;;  %v10945_v56 = vld [vmem:[#allocation10 + $0x230] sm:$0xf]  ;;  %v12162_v18 = vld [vmem:[#allocation10 + $0x234] sm:$0xf0]  ;;  %v10937_v32 = vld [vmem:[#allocation10 + $0x220] sm:$0xf] }
 0x508   : > { %v7171_v38 = vrot.slane %v14930_v55, 1  ;;  %v12178_v15 = vld [vmem:[#allocation10 + $0x2b4] sm:$0xf0]  ;;  %v12160_v57 = vld [vmem:[#allocation10 + $0x224] sm:$0xf0] }
 0x509   : > { %6600 = vmatpush.bf16.msrb.mxu0 %v10958_v44  ;;  %v14934_v39 = vpack.c.b16 %v6738_v63, %v6738_v63  ;;  %v14937_v22 = vpack.c.b16 %v6739_v6, %v6739_v6  ;;  %v7173_v23 = vrot.slane %v14932_v54, 1  ;;  %v11001_v44 = vld [vmem:[#allocation10 + $0x2a0] sm:$0xf]  ;;  %v10938_v58 = vor.u32 %v12160_v57, %v10937_v32  ;;  %v12159_v17 = vld [vmem:[#allocation10 + $0x224] sm:$0xf] }
 0x50a   : > { %5930 = vmatmul.bf16.gmra.mxu2 %v5729_v24  ;;  %5988 = vmatmul.bf16.gmra.mxu0 %v5729_v24  ;;  %v14926_v24 = vpack.c.b16 %v14828_v61, %v5638_v50  ;;  %v12164_v50 = vld [vmem:[#allocation10 + $0x244] sm:$0xf0]  ;;  %v11017_v61 = vld [vmem:[#allocation10 + $0x2c0] sm:$0xf]  ;;  %v14944_v46 = vsel %vm1329_vm3, %v7167_v12, %v7171_v38  ;;  %v10947_v12 = vld [vmem:[#allocation10 + $0x238] sm:$0xf0] }
 0x50b   : > { %v11018_v25 = vor.u32 %v12180_v33, %v11017_v61  ;;  %6629 = vmatpush.bf16.msrb.mxu1 %v11022_v42  ;;  %v7175_v53 = vrot.slane %v14934_v39, 1  ;;  %v14947_v20 = vsel %vm1329_vm3, %v7169_v13, %v7173_v23  ;;  %v7177_v19 = vrot.slane %v14937_v22, 1  ;;  %v10939_v42 = vld [vmem:[#allocation10 + $0x228] sm:$0xf0]  ;;  %v12175_v48 = vld [vmem:[#allocation10 + $0x2a4] sm:$0xf] }
 0x50c   : > { %v10942_v5 = vor.u32 %v12159_v17, %v10939_v42  ;;  %v11003_v7 = vld [vmem:[#allocation10 + $0x2a8] sm:$0xf0]  ;;  %v10929_v6 = vld [vmem:[#allocation10 + $0x210] sm:$0xf]  ;;  %v12155_v57 = vld [vmem:[#allocation10 + $0x204] sm:$0xf] }
 0x50d   : > { %6571 = vmatpush.bf16.msra.mxu3 %v11018_v25  ;;  %v14950_v35 = vsel %vm1329_vm3, %v7171_v38, %v7175_v53  ;;  %v14956_v61 = vsel %vm1329_vm3, %v7173_v23, %v7177_v19  ;;  %v11011_v25 = vld [vmem:[#allocation10 + $0x2b8] sm:$0xf0]  ;;  %v11006_v63 = vor.u32 %v12175_v48, %v11003_v7  ;;  %v12158_v38 = vld [vmem:[#allocation10 + $0x214] sm:$0xf0]  ;;  %v10993_v23 = vld [vmem:[#allocation10 + $0x290] sm:$0xf] }
 0x50e   : > { %5959 = vmatmul.bf16.gmra.mxu3 %v14871_v10  ;;  %6017 = vmatmul.bf16.gmra.mxu1 %v14871_v10  ;;  %v10954_v10 = vor.u32 %v12164_v50, %v10953_v29  ;;  %v10946_v29 = vor.u32 %v12162_v18, %v10945_v56  ;;  %v12161_v50 = vld [vmem:[#allocation10 + $0x234] sm:$0xf]  ;;  %v10930_v53 = vor.u32 %v12158_v38, %v10929_v6  ;;  %v12174_v19 = vld [vmem:[#allocation10 + $0x294] sm:$0xf0]  ;;  %v10931_v18 = vld [vmem:[#allocation10 + $0x218] sm:$0xf0] }
 0x50f   : > { %v10950_v33 = vor.u32 %v12161_v50, %v10947_v12  ;;  %v12157_v56 = vld [vmem:[#allocation10 + $0x214] sm:$0xf]  ;;  %v10995_v50 = vld [vmem:[#allocation10 + $0x298] sm:$0xf0]  ;;  %v10921_v12 = vld [vmem:[#allocation10 + $0x200] sm:$0xf] }
 0x510   : > { %6542 = vmatpush.bf16.msra.mxu2 %v10954_v10  ;;  %v12177_v10 = vld [vmem:[#allocation10 + $0x2b4] sm:$0xf]  ;;  %v5547_v32 = vld [vmem:[#allocation2 + $0x48] sm:$0x77]  ;;  %v11129_v42 = vld [vmem:[#allocation10 + $0x370] sm:$0xf] }
 0x511   : > { %v11014_v3 = vor.u32 %v12177_v10, %v11011_v25  ;;  %6601 = vmatpush.bf16.msrb.mxu0 %v10950_v33  ;;  %v12156_v33 = vld [vmem:[#allocation10 + $0x204] sm:$0xf0]  ;;  %v12208_v48 = vld [vmem:[#allocation10 + $0x374] sm:$0xf0]  ;;  %v6025_v38 = vunpack.c.h.b16 %v5547_v32  ;;  %v12219_v41 = vld [vmem:[#allocation10 + $0x3d4] sm:$0xf] }
 0x512   : > { %v12172_v10 = vld [vmem:[#allocation10 + $0x284] sm:$0xf0]  ;;  %v12224_v6 = vld [vmem:[#allocation10 + $0x3f4] sm:$0xf0] }
 0x513   : > { %6630 = vmatpush.bf16.msrb.mxu1 %v11014_v3  ;;  %v6024_v3 = vunpack.c.l.b16 %v5547_v32  ;;  %v11123_v32 = vld [vmem:[#allocation10 + $0x368] sm:$0xf0]  ;;  %v12204_v45 = vld [vmem:[#allocation10 + $0x354] sm:$0xf0] }
 0x514   : > { %6543 = vmatpush.bf16.msra.mxu2 %v10946_v29  ;;  %v10934_v29 = vor.u32 %v12157_v56, %v10931_v18  ;;  %v12223_v56 = vld [vmem:[#allocation10 + $0x3f4] sm:$0xf]  ;;  %v6027_v18 = vpack.c.b16 %v6025_v38, %v6025_v38 }
 0x515   : > { %6602 = vmatpush.bf16.msrb.mxu0 %v10942_v5  ;;  %v11193_v5 = vld [vmem:[#allocation10 + $0x3f0] sm:$0xf]  ;;  %v6026_v7 = vpack.c.b16 %v6024_v3, %v6024_v3  ;;  %v12221_v3 = vld [vmem:[#allocation10 + $0x3e4] sm:$0xf] }
 0x517   : > { %6631 = vmatpush.bf16.msrb.mxu1 %v11006_v63  ;;  %v11130_v63 = vor.u32 %v12208_v48, %v11129_v42  ;;  %v12220_v42 = vld [vmem:[#allocation10 + $0x3d4] sm:$0xf0] }
 0x518   : > { %6544 = vmatpush.bf16.msra.mxu2 %v10938_v58 }
 0x519   : > { %6603 = vmatpush.bf16.msrb.mxu0 %v10934_v29  ;;  %v11121_v29 = vld [vmem:[#allocation10 + $0x360] sm:$0xf] }
 0x51a   : > { %6222 = vmatmul.bf16.vlgmr.msrb.gmra.mxu2 %v14786_v37  ;;  %6280 = vmatmul.bf16.vlgmr.msra.gmra.mxu0 %v14786_v37  ;;  %v11009_v37 = vld [vmem:[#allocation10 + $0x2b0] sm:$0xf] }
 0x51b   : > { %v11010_v13 = vor.u32 %v12178_v15, %v11009_v37  ;;  %v10994_v37 = vor.u32 %v12174_v19, %v10993_v23  ;;  %v12173_v15 = vld [vmem:[#allocation10 + $0x294] sm:$0xf]  ;;  %v6042_v23 = vrot.slane %v6026_v7, 3  ;;  %v11131_v19 = vld [vmem:[#allocation10 + $0x378] sm:$0xf0] }
 0x51c   : > { %6545 = vmatpush.bf16.msra.mxu2 %v10930_v53  ;;  %v12207_v53 = vld [vmem:[#allocation10 + $0x374] sm:$0xf]  ;;  %v11115_v7 = vld [vmem:[#allocation10 + $0x358] sm:$0xf0] }
 0x51d   : > { %6572 = vmatpush.bf16.msra.mxu3 %v11010_v13  ;;  %v10998_v13 = vor.u32 %v12173_v15, %v10995_v50  ;;  %v12206_v15 = vld [vmem:[#allocation10 + $0x364] sm:$0xf0] }
 0x51e   : > { %6251 = vmatmul.bf16.vlgmr.msrb.gmra.mxu3 %v14793_v0  ;;  %6309 = vmatmul.bf16.vlgmr.msra.gmra.mxu1 %v14793_v0  ;;  %v12176_v0 = vld [vmem:[#allocation10 + $0x2a4] sm:$0xf0] }
 0x51f   : > { %v11002_v52 = vor.u32 %v12176_v0, %v11001_v44  ;;  %6632 = vmatpush.bf16.msrb.mxu1 %v10998_v13  ;;  %v10923_v44 = vld [vmem:[#allocation10 + $0x208] sm:$0xf0]  ;;  %v12171_v0 = vld [vmem:[#allocation10 + $0x284] sm:$0xf]  ;;  %v11185_v13 = vld [vmem:[#allocation10 + $0x3e0] sm:$0xf] }
 0x520   : > { %v10926_v58 = vor.u32 %v12155_v57, %v10923_v44 }
 0x521   : > { %6573 = vmatpush.bf16.msra.mxu3 %v11002_v52  ;;  %v10987_v52 = vld [vmem:[#allocation10 + $0x288] sm:$0xf0] }
 0x522   : > { %v10990_v17 = vor.u32 %v12171_v0, %v10987_v52  ;;  %6604 = vmatpush.bf16.msrb.mxu0 %v10926_v58  ;;  %v11187_v0 = vld [vmem:[#allocation10 + $0x3e8] sm:$0xf0]  ;;  %v11113_v52 = vld [vmem:[#allocation10 + $0x350] sm:$0xf] }
 0x523   : > { %v11190_v58 = vor.u32 %v12221_v3, %v11187_v0  ;;  %v12216_v3 = vld [vmem:[#allocation10 + $0x3b4] sm:$0xf0] }
 0x524   : > { %6633 = vmatpush.bf16.msrb.mxu1 %v10990_v17  ;;  %v11177_v17 = vld [vmem:[#allocation10 + $0x3d0] sm:$0xf] }
 0x525   : > { %6574 = vmatpush.bf16.msra.mxu3 %v10994_v37  ;;  %v11134_v37 = vor.u32 %v12207_v53, %v11131_v19  ;;  %v11178_v48 = vor.u32 %v12220_v42, %v11177_v17  ;;  %v11169_v53 = vld [vmem:[#allocation10 + $0x3c0] sm:$0xf]  ;;  %v12218_v19 = vld [vmem:[#allocation10 + $0x3c4] sm:$0xf0]  ;;  %v12215_v17 = vld [vmem:[#allocation10 + $0x3b4] sm:$0xf] }
 0x527   : > { %7048 = vmatpush.bf16.msra.mxu0 %v11134_v37 }
 0x52a   : > { %6227 = vmatmul.bf16.gmra.mxu2 %v14845_v30  ;;  %6285 = vmatmul.bf16.gmra.mxu0 %v14845_v30  ;;  %v10985_v30 = vld [vmem:[#allocation10 + $0x280] sm:$0xf] }
 0x52b   : > { %v10986_v25 = vor.u32 %v12172_v10, %v10985_v30  ;;  %v6043_v10 = vsel %vm733_vm1, %v6038_v40, %v6042_v23  ;;  %v11114_v40 = vor.u32 %v12204_v45, %v11113_v52  ;;  %v12199_v45 = vld [vmem:[#allocation10 + $0x334] sm:$0xf] }
 0x52d   : > { %6575 = vmatpush.bf16.msra.mxu3 %v10986_v25  ;;  %v12205_v25 = vld [vmem:[#allocation10 + $0x364] sm:$0xf] }
 0x52e   : > { %6256 = vmatmul.bf16.gmra.mxu3 %v14852_v59  ;;  %6314 = vmatmul.bf16.gmra.mxu1 %v14852_v59  ;;  %v10922_v59 = vor.u32 %v12156_v33, %v10921_v12  ;;  %v11122_v12 = vor.u32 %v12206_v15, %v11121_v29  ;;  %v12222_v33 = vld [vmem:[#allocation10 + $0x3e4] sm:$0xf0]  ;;  %v11126_v44 = vor.u32 %v12205_v25, %v11123_v32  ;;  %v12201_v29 = vld [vmem:[#allocation10 + $0x344] sm:$0xf]  ;;  %v11107_v15 = vld [vmem:[#allocation10 + $0x348] sm:$0xf0] }
 0x52f   : > { %v11186_v30 = vor.u32 %v12222_v33, %v11185_v13  ;;  %v11110_v13 = vor.u32 %v12201_v29, %v11107_v15  ;;  %v11171_v33 = vld [vmem:[#allocation10 + $0x3c8] sm:$0xf0]  ;;  %v11161_v25 = vld [vmem:[#allocation10 + $0x3b0] sm:$0xf]  ;;  %v12213_v29 = vld [vmem:[#allocation10 + $0x3a4] sm:$0xf] }
 0x530   : > { %6546 = vmatpush.bf16.msra.mxu2 %v10922_v59  ;;  %v6044_v59 = vrot.slane %v6027_v18, 3  ;;  %7049 = vmatpush.bf16.msra.mxu0 %v11126_v44  ;;  %v11170_v18 = vor.u32 %v12218_v19, %v11169_v53 }
 0x532   : > { %v6045_v57 = vsel %vm733_vm1, %v6040_v2, %v6044_v59  ;;  %v11179_v2 = vld [vmem:[#allocation10 + $0x3d8] sm:$0xf0]  ;;  %v12200_v59 = vld [vmem:[#allocation10 + $0x334] sm:$0xf0] }
 0x533   : > { %v11182_v38 = vor.u32 %v12219_v41, %v11179_v2  ;;  %v11153_v2 = vld [vmem:[#allocation10 + $0x3a0] sm:$0xf] }
 0x534   : > { %6990 = vmatpush.bf16.msrb.mxu2 %v11130_v63 }
 0x538   : > { %6991 = vmatpush.bf16.msrb.mxu2 %v11122_v12 }
 0x53a   : > { %6232 = vmatmul.bf16.gmra.mxu2 %v14897_v1  ;;  %6290 = vmatmul.bf16.gmra.mxu0 %v14897_v1  ;;  %v11194_v1 = vor.u32 %v12224_v6, %v11193_v5  ;;  %v12203_v5 = vld [vmem:[#allocation10 + $0x354] sm:$0xf]  ;;  %v11105_v6 = vld [vmem:[#allocation10 + $0x340] sm:$0xf] }
 0x53b   : > { %v11118_v63 = vor.u32 %v12203_v5, %v11115_v7  ;;  %v11089_v5 = vld [vmem:[#allocation10 + $0x320] sm:$0xf]  ;;  %v12198_v7 = vld [vmem:[#allocation10 + $0x324] sm:$0xf0] }
 0x53c   : > { %7019 = vmatpush.bf16.msrb.mxu3 %v11194_v1  ;;  %6992 = vmatpush.bf16.msrb.mxu2 %v11114_v40  ;;  %v12202_v1 = vld [vmem:[#allocation10 + $0x344] sm:$0xf0] }
 0x53d   : > { %v11106_v23 = vor.u32 %v12202_v1, %v11105_v6  ;;  %7050 = vmatpush.bf16.msra.mxu0 %v11118_v63  ;;  %v11090_v63 = vor.u32 %v12198_v7, %v11089_v5  ;;  %v12214_v6 = vld [vmem:[#allocation10 + $0x3a4] sm:$0xf0] }
 0x53e   : > { %6261 = vmatmul.bf16.gmra.mxu3 %v14904_v47  ;;  %6319 = vmatmul.bf16.gmra.mxu1 %v14904_v47  ;;  %v11195_v47 = vld [vmem:[#allocation10 + $0x3f8] sm:$0xf0] }
 0x53f   : > { %v11198_v50 = vor.u32 %v12223_v56, %v11195_v47 }
 0x540   : > { %7020 = vmatpush.bf16.msrb.mxu3 %v11186_v30  ;;  %6993 = vmatpush.bf16.msrb.mxu2 %v11106_v23 }
 0x541   : > { %7077 = vmatpush.bf16.msra.mxu1 %v11198_v50  ;;  %v12217_v50 = vld [vmem:[#allocation10 + $0x3c4] sm:$0xf]  ;;  %7051 = vmatpush.bf16.msra.mxu0 %v11110_v13 }
 0x542   : > { %v11174_v30 = vor.u32 %v12217_v50, %v11171_v33  ;;  %v11081_v33 = vld [vmem:[#allocation10 + $0x310] sm:$0xf] }
 0x544   : > { %7021 = vmatpush.bf16.msrb.mxu3 %v11178_v48  ;;  %v11163_v48 = vld [vmem:[#allocation10 + $0x3b8] sm:$0xf0] }
 0x545   : > { %7078 = vmatpush.bf16.msra.mxu1 %v11190_v58  ;;  %v11166_v41 = vor.u32 %v12215_v17, %v11163_v48  ;;  %v12194_v48 = vld [vmem:[#allocation10 + $0x304] sm:$0xf0] }
 0x548   : > { %7022 = vmatpush.bf16.msrb.mxu3 %v11170_v18  ;;  %v12197_v18 = vld [vmem:[#allocation10 + $0x324] sm:$0xf] }
 0x549   : > { %7079 = vmatpush.bf16.msra.mxu1 %v11182_v38  ;;  %v11154_v38 = vor.u32 %v12214_v6, %v11153_v2 }
 0x54a   : > { %6237 = vmatmul.bf16.gmra.mxu2 %v6043_v10  ;;  %6295 = vmatmul.bf16.gmra.mxu0 %v6043_v10  ;;  %v11097_v10 = vld [vmem:[#allocation10 + $0x330] sm:$0xf] }
 0x54d   : > { %7080 = vmatpush.bf16.msra.mxu1 %v11174_v30  ;;  %v12196_v30 = vld [vmem:[#allocation10 + $0x314] sm:$0xf0] }
 0x54e   : > { %6266 = vmatmul.bf16.gmra.mxu3 %v6045_v57  ;;  %6324 = vmatmul.bf16.gmra.mxu1 %v6045_v57  ;;  %v11162_v57 = vor.u32 %v12216_v3, %v11161_v25  ;;  %v12212_v25 = vld [vmem:[#allocation10 + $0x394] sm:$0xf0] }
 0x550   : > { %7023 = vmatpush.bf16.msrb.mxu3 %v11162_v57 }
 0x551   : > { %7081 = vmatpush.bf16.msra.mxu1 %v11166_v41  ;;  %v11137_v41 = vld [vmem:[#allocation10 + $0x380] sm:$0xf] }
 0x554   : > { %7024 = vmatpush.bf16.msrb.mxu3 %v11154_v38 }
 0x557   : > { %v5974_v56 = vpop.f32.mrf.mxu0 }
 0x55a   : > { %6547 = vmatmul.bf16.vlgmr.msra.gmra.mxu2 %v14773_v62  ;;  %6605 = vmatmul.bf16.vlgmr.msrb.gmra.mxu0 %v14773_v62  ;;  %v11098_v62 = vor.u32 %v12200_v59, %v11097_v10  ;;  %v11145_v10 = vld [vmem:[#allocation10 + $0x390] sm:$0xf] }
 0x55b   : > { %v6003_v37 = vpop.f32.mrf.mxu1 }
 0x55c   : > { %v14974_v47 = vadd.f32 %v6003_v37, %v5974_v56  ;;  %6994 = vmatpush.bf16.msrb.mxu2 %v11098_v62  ;;  %v11091_v37 = vld [vmem:[#allocation10 + $0x328] sm:$0xf0] }
 0x55d   : > { %v5916_v12 = vpop.f32.mrf.mxu2  ;;  %v11094_v50 = vor.u32 %v12197_v18, %v11091_v37  ;;  %v12193_v18 = vld [vmem:[#allocation10 + $0x304] sm:$0xf]  ;;  %v11075_v37 = vld [vmem:[#allocation10 + $0x308] sm:$0xf0] }
 0x55e   : > { %6576 = vmatmul.bf16.vlgmr.msra.gmra.mxu3 %v14779_v36  ;;  %6634 = vmatmul.bf16.vlgmr.msrb.gmra.mxu1 %v14779_v36  ;;  %v11099_v36 = vld [vmem:[#allocation10 + $0x338] sm:$0xf0] }
 0x55f   : > { %v5976_v32 = vpop.f32.mrf.mxu0  ;;  %v11102_v42 = vor.u32 %v12199_v45, %v11099_v36  ;;  %v12211_v45 = vld [vmem:[#allocation10 + $0x394] sm:$0xf] }
 0x560   : > { %6995 = vmatpush.bf16.msrb.mxu2 %v11090_v63  ;;  %v12210_v63 = vld [vmem:[#allocation10 + $0x384] sm:$0xf0] }
 0x561   : > { %v5945_v44 = vpop.f32.mrf.mxu3  ;;  %7052 = vmatpush.bf16.msra.mxu0 %v11102_v42  ;;  %v11073_v42 = vld [vmem:[#allocation10 + $0x300] sm:$0xf]  ;;  %v11138_v6 = vor.u32 %v12210_v63, %v11137_v41 }
 0x562   : > { %v14978_v0 = vadd.f32 %v5945_v44, %v5916_v12  ;;  %v11155_v12 = vld [vmem:[#allocation10 + $0x3a8] sm:$0xf0]  ;;  %v11074_v7 = vor.u32 %v12194_v48, %v11073_v42  ;;  %v11249_v42 = vld [vmem:[#allocation10 + $0x460] sm:$0xf]  ;;  %v12238_v48 = vld [vmem:[#allocation10 + $0x464] sm:$0xf0] }
 0x563   : > { %v6005_v58 = vpop.f32.mrf.mxu1  ;;  %v11158_v13 = vor.u32 %v12213_v29, %v11155_v12  ;;  %v12209_v29 = vld [vmem:[#allocation10 + $0x384] sm:$0xf]  ;;  %v11139_v12 = vld [vmem:[#allocation10 + $0x388] sm:$0xf0]  ;;  %v11250_v41 = vor.u32 %v12238_v48, %v11249_v42  ;;  %v11313_v63 = vld [vmem:[#allocation10 + $0x4e0] sm:$0xf] }
 0x564   : > { %v14980_v52 = vadd.f32 %v6005_v58, %v5976_v32  ;;  %v11146_v32 = vor.u32 %v12212_v25, %v11145_v10  ;;  %v12195_v58 = vld [vmem:[#allocation10 + $0x314] sm:$0xf]  ;;  %v11321_v10 = vld [vmem:[#allocation10 + $0x4f0] sm:$0xf] }
 0x565   : > { %v5918_v40 = vpop.f32.mrf.mxu2  ;;  %7053 = vmatpush.bf16.msra.mxu0 %v11094_v50  ;;  %7082 = vmatpush.bf16.msra.mxu1 %v11158_v13  ;;  %v11078_v50 = vor.u32 %v12193_v18, %v11075_v37  ;;  %v11142_v13 = vor.u32 %v12209_v29, %v11139_v12  ;;  %v12237_v12 = vld [vmem:[#allocation10 + $0x464] sm:$0xf] }
 0x566   : > { %7025 = vmatpush.bf16.msrb.mxu3 %v11146_v32 }
 0x567   : > { %v5979_v1 = vpop.f32.mrf.mxu0 }
 0x569   : > { %v5947_v23 = vpop.f32.mrf.mxu3 }
 0x56a   : > { %v14982_v53 = vadd.f32 %v5947_v23, %v5918_v40  ;;  %6552 = vmatmul.bf16.gmra.mxu2 %v14802_v31  ;;  %6610 = vmatmul.bf16.gmra.mxu0 %v14802_v31  ;;  %v11082_v31 = vor.u32 %v12196_v30, %v11081_v33  ;;  %v11147_v40 = vld [vmem:[#allocation10 + $0x398] sm:$0xf0]  ;;  %v11257_v33 = vld [vmem:[#allocation10 + $0x470] sm:$0xf]  ;;  %v12240_v30 = vld [vmem:[#allocation10 + $0x474] sm:$0xf0] }
 0x56b   : > { %v6008_v19 = vpop.f32.mrf.mxu1  ;;  %v11150_v5 = vor.u32 %v12211_v45, %v11147_v40  ;;  %7026 = vmatpush.bf16.msrb.mxu3 %v11138_v6  ;;  %v12255_v45 = vld [vmem:[#allocation10 + $0x4f4] sm:$0xf]  ;;  %v11323_v40 = vld [vmem:[#allocation10 + $0x4f8] sm:$0xf0] }
 0x56c   : > { %v14986_v56 = vadd.f32 %v6008_v19, %v5979_v1  ;;  %6996 = vmatpush.bf16.msrb.mxu2 %v11082_v31  ;;  %v12256_v31 = vld [vmem:[#allocation10 + $0x4f4] sm:$0xf0] }
 0x56d   : > { %v5921_v15 = vpop.f32.mrf.mxu2  ;;  %7083 = vmatpush.bf16.msra.mxu1 %v11150_v5  ;;  %v11322_v25 = vor.u32 %v12256_v31, %v11321_v10  ;;  %v6671_v5 = vld [vmem:[#allocation2 + $0x10] sm:$0xff] }
 0x56e   : > { %6581 = vmatmul.bf16.gmra.mxu3 %v14808_v14  ;;  %6639 = vmatmul.bf16.gmra.mxu1 %v14808_v14  ;;  %v11083_v14 = vld [vmem:[#allocation10 + $0x318] sm:$0xf0]  ;;  %v6722_v18 = vunpack.c.l.b16 %v6671_v5  ;;  %v6723_v10 = vunpack.c.h.b16 %v6671_v5 }
 0x56f   : > { %v5981_v59 = vpop.f32.mrf.mxu0  ;;  %v11086_v17 = vor.u32 %v12195_v58, %v11083_v14  ;;  %7376 = vmatpush.bf16.msra.mxu3 %v11322_v25  ;;  %v12239_v14 = vld [vmem:[#allocation10 + $0x474] sm:$0xf]  ;;  %v11241_v25 = vld [vmem:[#allocation10 + $0x450] sm:$0xf] }
 0x570   : > { %6997 = vmatpush.bf16.msrb.mxu2 %v11074_v7  ;;  %v11326_v7 = vor.u32 %v12255_v45, %v11323_v40 }
 0x571   : > { %v5950_v62 = vpop.f32.mrf.mxu3  ;;  %7054 = vmatpush.bf16.msra.mxu0 %v11086_v17  ;;  %7084 = vmatpush.bf16.msra.mxu1 %v11142_v13  ;;  %v11251_v13 = vld [vmem:[#allocation10 + $0x468] sm:$0xf0] }
 0x572   : > { %v14990_v3 = vadd.f32 %v5950_v62, %v5921_v15 }
 0x573   : > { %v6010_v57 = vpop.f32.mrf.mxu1 }
 0x574   : > { %v14992_v44 = vadd.f32 %v6010_v57, %v5981_v59 }
 0x575   : > { %v5923_v36 = vpop.f32.mrf.mxu2  ;;  %7055 = vmatpush.bf16.msra.mxu0 %v11078_v50  ;;  %7434 = vmatpush.bf16.msrb.mxu1 %v11326_v7 }
 0x577   : > { %v5984_v2 = vpop.f32.mrf.mxu0 }
 0x579   : > { %v5952_v1 = vpop.f32.mrf.mxu3 }
 0x57a   : > { %v14994_v38 = vadd.f32 %v5952_v1, %v5923_v36  ;;  %6557 = vmatmul.bf16.gmra.mxu2 %v14860_v49  ;;  %6615 = vmatmul.bf16.gmra.mxu0 %v14860_v49  ;;  %v11258_v49 = vor.u32 %v12240_v30, %v11257_v33  ;;  %v12253_v33 = vld [vmem:[#allocation10 + $0x4e4] sm:$0xf] }
 0x57b   : > { %v6013_v23 = vpop.f32.mrf.mxu1 }
 0x57c   : > { %v14998_v19 = vadd.f32 %v6013_v23, %v5984_v2  ;;  %7347 = vmatpush.bf16.msra.mxu2 %v11258_v49  ;;  %v12254_v2 = vld [vmem:[#allocation10 + $0x4e4] sm:$0xf0]  ;;  %v11315_v49 = vld [vmem:[#allocation10 + $0x4e8] sm:$0xf0] }
 0x57d   : > { %v5926_v15 = vpop.f32.mrf.mxu2  ;;  %v11314_v1 = vor.u32 %v12254_v2, %v11313_v63  ;;  %v11318_v31 = vor.u32 %v12253_v33, %v11315_v49  ;;  %v6770_v63 = vshll.u32 %v14878_v28, 16  ;;  %v11243_v2 = vld [vmem:[#allocation10 + $0x458] sm:$0xf0]  ;;  %v11297_v33 = vld [vmem:[#allocation10 + $0x4c0] sm:$0xf] }
 0x57e   : > { %6586 = vmatmul.bf16.gmra.mxu3 %v14866_v51  ;;  %6644 = vmatmul.bf16.gmra.mxu1 %v14866_v51  ;;  %v11259_v51 = vld [vmem:[#allocation10 + $0x478] sm:$0xf0] }
 0x57f   : > { %v5986_v59 = vpop.f32.mrf.mxu0  ;;  %v11262_v17 = vor.u32 %v12239_v14, %v11259_v51  ;;  %7377 = vmatpush.bf16.msra.mxu3 %v11314_v1  ;;  %v6741_v51 = vpack.c.b16 %v6725_v16, %v6723_v10  ;;  %7435 = vmatpush.bf16.msrb.mxu1 %v11318_v31  ;;  %v12235_v16 = vld [vmem:[#allocation10 + $0x454] sm:$0xf] }
 0x580   : > { %7348 = vmatpush.bf16.msra.mxu2 %v11250_v41 }
 0x581   : > { %v5955_v32 = vpop.f32.mrf.mxu3  ;;  %7405 = vmatpush.bf16.msrb.mxu0 %v11262_v17  ;;  %v6765_v41 = vshll.u32 %v6741_v51, 16 }
 0x582   : > { %v15002_v62 = vadd.f32 %v5955_v32, %v5926_v15  ;;  %v6740_v15 = vpack.c.b16 %v6724_v43, %v6722_v18  ;;  %v11305_v32 = vld [vmem:[#allocation10 + $0x4d0] sm:$0xf]  ;;  %v6758_v43 = vshll.u32 %v14873_v60, 16  ;;  %v11307_v18 = vld [vmem:[#allocation10 + $0x4d8] sm:$0xf0] }
 0x583   : > { %v6015_v57 = vpop.f32.mrf.mxu1  ;;  %v6767_v49 = vrot.slane %v6765_v41, 1 }
 0x584   : > { %v15004_v58 = vadd.f32 %v6015_v57, %v5986_v59  ;;  %v11254_v59 = vor.u32 %v12237_v12, %v11251_v13  ;;  %v6753_v14 = vshll.u32 %v6740_v15, 16  ;;  %v15021_v7 = vrot.slane %v6758_v43, 1  ;;  %v12234_v12 = vld [vmem:[#allocation10 + $0x444] sm:$0xf0] }
 0x585   : > { %v5928_v36 = vpop.f32.mrf.mxu2 }
 0x586   : > { %7406 = vmatpush.bf16.msrb.mxu0 %v11254_v59  ;;  %v6755_v5 = vrot.slane %v6753_v14, 1  ;;  %v15029_v14 = vrot.slane %v6770_v63, 1 }
 0x587   : > { %v5989_v6 = vpop.f32.mrf.mxu0 }
 0x589   : > { %v5957_v23 = vpop.f32.mrf.mxu3 }
 0x58a   : > { %v15006_v37 = vadd.f32 %v5957_v23, %v5928_v36  ;;  %6562 = vmatmul.bf16.gmra.mxu2 %v14921_v4  ;;  %6620 = vmatmul.bf16.gmra.mxu0 %v14921_v4  ;;  %v12236_v4 = vld [vmem:[#allocation10 + $0x454] sm:$0xf0]  ;;  %v11246_v23 = vor.u32 %v12235_v16, %v11243_v2  ;;  %v11225_v2 = vld [vmem:[#allocation10 + $0x430] sm:$0xf] }
 0x58b   : > { %v6018_v29 = vpop.f32.mrf.mxu1  ;;  %v11242_v45 = vor.u32 %v12236_v4, %v11241_v25  ;;  %v12252_v36 = vld [vmem:[#allocation10 + $0x4d4] sm:$0xf0] }
 0x58c   : > { %v15012_v50 = vadd.f32 %v6018_v29, %v5989_v6  ;;  %v11306_v17 = vor.u32 %v12252_v36, %v11305_v32  ;;  %v12251_v6 = vld [vmem:[#allocation10 + $0x4d4] sm:$0xf]  ;;  %v11233_v29 = vld [vmem:[#allocation10 + $0x440] sm:$0xf]  ;;  %7407 = vmatpush.bf16.msrb.mxu0 %v11246_v23 }
 0x58d   : > { %v5931_v30 = vpop.f32.mrf.mxu2  ;;  %7349 = vmatpush.bf16.msra.mxu2 %v11242_v45  ;;  %v11310_v13 = vor.u32 %v12251_v6, %v11307_v18  ;;  %v12232_v6 = vld [vmem:[#allocation10 + $0x434] sm:$0xf0]  ;;  %v6778_v18 = vshll.u32 %v14883_v9, 16 }
 0x58e   : > { %6591 = vmatmul.bf16.gmra.mxu3 %v14926_v24  ;;  %6649 = vmatmul.bf16.gmra.mxu1 %v14926_v24  ;;  %v6751_v24 = vshrl.u32 %v6740_v15, 16  ;;  %v11234_v15 = vor.u32 %v12234_v12, %v11233_v29  ;;  %v11226_v29 = vor.u32 %v12232_v6, %v11225_v2  ;;  %v12248_v12 = vld [vmem:[#allocation10 + $0x4b4] sm:$0xf0] }
 0x58f   : > { %v5991_v57 = vpop.f32.mrf.mxu0  ;;  %7378 = vmatpush.bf16.msra.mxu3 %v11306_v17  ;;  %7436 = vmatpush.bf16.msrb.mxu1 %v11310_v13 }
 0x590   : > { %v6756_v59 = vor.u32 %v6755_v5, %v6751_v24  ;;  %v12249_v24 = vld [vmem:[#allocation10 + $0x4c4] sm:$0xf] }
 0x591   : > { %v5960_v40 = vpop.f32.mrf.mxu3  ;;  %7350 = vmatpush.bf16.msra.mxu2 %v11234_v15 }
 0x592   : > { %v15019_v42 = vadd.f32 %v5960_v40, %v5931_v30  ;;  %v12250_v30 = vld [vmem:[#allocation10 + $0x4c4] sm:$0xf0]  ;;  %v6761_v32 = vsel %vm1113_vm2, %v6756_v59, %v15021_v7  ;;  %v12233_v40 = vld [vmem:[#allocation10 + $0x444] sm:$0xf]  ;;  %v15043_v59 = vrot.slane %v6778_v18, 1 }
 0x593   : > { %v6020_v48 = vpop.f32.mrf.mxu1  ;;  %v11298_v31 = vor.u32 %v12250_v30, %v11297_v33 }
 0x594   : > { %v15024_v21 = vadd.f32 %v6020_v48, %v5991_v57  ;;  %v6763_v57 = vshrl.u32 %v6741_v51, 16  ;;  %v11299_v51 = vld [vmem:[#allocation10 + $0x4c8] sm:$0xf0] }
 0x595   : > { %v5933_v1 = vpop.f32.mrf.mxu2  ;;  %7379 = vmatpush.bf16.msra.mxu3 %v11298_v31  ;;  %v11302_v16 = vor.u32 %v12249_v24, %v11299_v51  ;;  %7351 = vmatpush.bf16.msra.mxu2 %v11226_v29 }
 0x596   : > { %v6768_v36 = vor.u32 %v6767_v49, %v6763_v57  ;;  %v6786_v49 = vshll.u32 %v14885_v11, 16 }
 0x597   : > { %v6281_v10 = vpop.f32.mrf.mxu0  ;;  %7437 = vmatpush.bf16.msrb.mxu1 %v11302_v16 }
 0x598   : > { %v6282_v25 = vadd.f32 %v6281_v10, %v14974_v47  ;;  %v11235_v47 = vld [vmem:[#allocation10 + $0x448] sm:$0xf0]  ;;  %v6773_v48 = vsel %vm1113_vm2, %v6768_v36, %v15029_v14  ;;  %v6774_v10 = vshrl.u32 %v14873_v60, 16  ;;  %v11217_v36 = vld [vmem:[#allocation10 + $0x420] sm:$0xf] }
 0x599   : > { %v5962_v4 = vpop.f32.mrf.mxu3  ;;  %v11238_v41 = vor.u32 %v12233_v40, %v11235_v47  ;;  %v12230_v40 = vld [vmem:[#allocation10 + $0x424] sm:$0xf0] }
 0x59a   : > { %v15031_v43 = vadd.f32 %v5962_v4, %v5933_v1  ;;  %6998 = vmatmul.bf16.vlgmr.msrb.gmra.mxu2 %v6761_v32  ;;  %7056 = vmatmul.bf16.vlgmr.msra.gmra.mxu0 %v6761_v32  ;;  %v11289_v1 = vld [vmem:[#allocation10 + $0x4b0] sm:$0xf]  ;;  %v11227_v4 = vld [vmem:[#allocation10 + $0x438] sm:$0xf0]  ;;  %v12247_v32 = vld [vmem:[#allocation10 + $0x4b4] sm:$0xf]  ;;  %v6776_v51 = vor.u32 %v6774_v10, %v15021_v7 }
 0x59b   : > { %v6310_v45 = vpop.f32.mrf.mxu1  ;;  %7408 = vmatpush.bf16.msrb.mxu0 %v11238_v41  ;;  %v11290_v15 = vor.u32 %v12248_v12, %v11289_v1  ;;  %v12246_v60 = vld [vmem:[#allocation10 + $0x4a4] sm:$0xf0]  ;;  %v6782_v1 = vshrl.u32 %v14878_v28, 16  ;;  %v11219_v12 = vld [vmem:[#allocation10 + $0x428] sm:$0xf0] }
 0x59c   : > { %v15033_v17 = vadd.f32 %v6310_v45, %v6282_v25  ;;  %v12231_v25 = vld [vmem:[#allocation10 + $0x434] sm:$0xf]  ;;  %v11291_v45 = vld [vmem:[#allocation10 + $0x4b8] sm:$0xf0]  ;;  %v6781_v6 = vsel %vm1113_vm2, %v6776_v51, %v15043_v59 }
 0x59d   : > { %v6223_v5 = vpop.f32.mrf.mxu2  ;;  %7380 = vmatpush.bf16.msra.mxu3 %v11290_v15  ;;  %v11230_v57 = vor.u32 %v12231_v25, %v11227_v4  ;;  %v11294_v24 = vor.u32 %v12247_v32, %v11291_v45  ;;  %v6784_v18 = vor.u32 %v6782_v1, %v15029_v14  ;;  %v11209_v25 = vld [vmem:[#allocation10 + $0x410] sm:$0xf]  ;;  %v12228_v4 = vld [vmem:[#allocation10 + $0x414] sm:$0xf0]  ;;  %v12227_v51 = vld [vmem:[#allocation10 + $0x414] sm:$0xf] }
 0x59e   : > { %7027 = vmatmul.bf16.vlgmr.msrb.gmra.mxu3 %v6773_v48  ;;  %7085 = vmatmul.bf16.vlgmr.msra.gmra.mxu1 %v6773_v48  ;;  %v6224_v63 = vadd.f32 %v6223_v5, %v14978_v0  ;;  %v11218_v48 = vor.u32 %v12230_v40, %v11217_v36  ;;  %v11281_v5 = vld [vmem:[#allocation10 + $0x4a0] sm:$0xf]  ;;  %v11273_v32 = vld [vmem:[#allocation10 + $0x490] sm:$0xf]  ;;  %v12244_v45 = vld [vmem:[#allocation10 + $0x494] sm:$0xf0] }
 0x59f   : > { %v6283_v23 = vpop.f32.mrf.mxu0  ;;  %7409 = vmatpush.bf16.msrb.mxu0 %v11230_v57  ;;  %7438 = vmatpush.bf16.msrb.mxu1 %v11294_v24  ;;  %v11210_v57 = vor.u32 %v12228_v4, %v11209_v25  ;;  %v11274_v40 = vor.u32 %v12244_v45, %v11273_v32  ;;  %v11201_v1 = vld [vmem:[#allocation10 + $0x400] sm:$0xf]  ;;  %v6798_v25 = vshrl.u32 %v14885_v11, 16  ;;  %v12225_v45 = vld [vmem:[#allocation10 + $0x404] sm:$0xf] }
 0x5a0   : > { %v6284_v13 = vadd.f32 %v6283_v23, %v14980_v52  ;;  %7352 = vmatpush.bf16.msra.mxu2 %v11218_v48  ;;  %v6790_v48 = vshrl.u32 %v14883_v9, 16  ;;  %v11203_v11 = vld [vmem:[#allocation10 + $0x408] sm:$0xf0] }
 0x5a1   : > { %v6252_v33 = vpop.f32.mrf.mxu3 }
 0x5a2   : > { %v15040_v30 = vadd.f32 %v6252_v33, %v6224_v63  ;;  %v11282_v63 = vor.u32 %v12246_v60, %v11281_v5  ;;  %v6802_v60 = vshll.u32 %v14932_v54, 16 }
 0x5a3   : > { %v6312_v0 = vpop.f32.mrf.mxu1 }
 0x5a4   : > { %v15046_v31 = vadd.f32 %v6312_v0, %v6284_v13  ;;  %7381 = vmatpush.bf16.msra.mxu3 %v11282_v63  ;;  %v12245_v13 = vld [vmem:[#allocation10 + $0x4a4] sm:$0xf]  ;;  %v11283_v0 = vld [vmem:[#allocation10 + $0x4a8] sm:$0xf0]  ;;  %7353 = vmatpush.bf16.msra.mxu2 %v11210_v57  ;;  %v11211_v63 = vld [vmem:[#allocation10 + $0x418] sm:$0xf0] }
 0x5a5   : > { %v6225_v52 = vpop.f32.mrf.mxu2  ;;  %v6804_v4 = vrot.slane %v6802_v60, 1 }
 0x5a6   : > { %v6226_v47 = vadd.f32 %v6225_v52, %v14982_v53  ;;  %v15054_v53 = vrot.slane %v6786_v49, 1  ;;  %v11286_v49 = vor.u32 %v12245_v13, %v11283_v0  ;;  %v6794_v52 = vshll.u32 %v14930_v55, 16  ;;  %v11265_v13 = vld [vmem:[#allocation10 + $0x480] sm:$0xf] }
 0x5a7   : > { %v6286_v41 = vpop.f32.mrf.mxu0 }
 0x5a8   : > { %v6287_v16 = vadd.f32 %v6286_v41, %v14986_v56  ;;  %v12229_v56 = vld [vmem:[#allocation10 + $0x424] sm:$0xf]  ;;  %v6789_v15 = vsel %vm1113_vm2, %v6784_v18, %v15054_v53  ;;  %7439 = vmatpush.bf16.msrb.mxu1 %v11286_v49  ;;  %7382 = vmatpush.bf16.msra.mxu3 %v11274_v40  ;;  %v6796_v5 = vrot.slane %v6794_v52, 1 }
 0x5a9   : > { %v6254_v2 = vpop.f32.mrf.mxu3  ;;  %v11222_v28 = vor.u32 %v12229_v56, %v11219_v12 }
 0x5aa   : > { %v15056_v23 = vadd.f32 %v6254_v2, %v6226_v47  ;;  %7003 = vmatmul.bf16.gmra.mxu2 %v6781_v6  ;;  %7061 = vmatmul.bf16.gmra.mxu0 %v6781_v6  ;;  %v11275_v6 = vld [vmem:[#allocation10 + $0x498] sm:$0xf0] }
 0x5ab   : > { %v6315_v7 = vpop.f32.mrf.mxu1  ;;  %7410 = vmatpush.bf16.msrb.mxu0 %v11222_v28 }
 0x5ac   : > { %v15059_v29 = vadd.f32 %v6315_v7, %v6287_v16  ;;  %v12243_v16 = vld [vmem:[#allocation10 + $0x494] sm:$0xf]  ;;  %v12226_v7 = vld [vmem:[#allocation10 + $0x404] sm:$0xf0] }
 0x5ad   : > { %v6228_v33 = vpop.f32.mrf.mxu2  ;;  %v11278_v56 = vor.u32 %v12243_v16, %v11275_v6  ;;  %v11202_v12 = vor.u32 %v12226_v7, %v11201_v1  ;;  %v6818_v7 = vshll.u32 %v14937_v22, 16 }
 0x5ae   : > { %7032 = vmatmul.bf16.gmra.mxu3 %v6789_v15  ;;  %7090 = vmatmul.bf16.gmra.mxu1 %v6789_v15  ;;  %v6229_v10 = vadd.f32 %v6228_v33, %v14990_v3  ;;  %v12242_v15 = vld [vmem:[#allocation10 + $0x484] sm:$0xf0]  ;;  %v6792_v33 = vor.u32 %v6790_v48, %v15043_v59  ;;  %v6800_v59 = vor.u32 %v6798_v25, %v15054_v53  ;;  %v6810_v53 = vshll.u32 %v14934_v39, 16 }
 0x5af   : > { %v6288_v14 = vpop.f32.mrf.mxu0  ;;  %v11266_v28 = vor.u32 %v12242_v15, %v11265_v13  ;;  %7440 = vmatpush.bf16.msrb.mxu1 %v11278_v56  ;;  %7354 = vmatpush.bf16.msra.mxu2 %v11202_v12  ;;  %v6814_v56 = vshrl.u32 %v14932_v54, 16 }
 0x5b0   : > { %v6289_v36 = vadd.f32 %v6288_v14, %v14992_v44  ;;  %v11214_v44 = vor.u32 %v12227_v51, %v11211_v63  ;;  %v6797_v49 = vsel %vm1113_vm2, %v6792_v33, %v6796_v5  ;;  %v6812_v1 = vrot.slane %v6810_v53, 1 }
 0x5b1   : > { %v6257_v47 = vpop.f32.mrf.mxu3  ;;  %7383 = vmatpush.bf16.msra.mxu3 %v11266_v28  ;;  %v6816_v15 = vor.u32 %v6814_v56, %v6804_v4 }
 0x5b2   : > { %v15066_v24 = vadd.f32 %v6257_v47, %v6229_v10  ;;  %7411 = vmatpush.bf16.msrb.mxu0 %v11214_v44  ;;  %v11206_v47 = vor.u32 %v12225_v45, %v11203_v11 }
 0x5b3   : > { %v6317_v3 = vpop.f32.mrf.mxu1 }
 0x5b4   : > { %v15070_v41 = vadd.f32 %v6317_v3, %v6289_v36  ;;  %v12241_v36 = vld [vmem:[#allocation10 + $0x484] sm:$0xf]  ;;  %v11267_v3 = vld [vmem:[#allocation10 + $0x488] sm:$0xf0] }
 0x5b5   : > { %v6230_v2 = vpop.f32.mrf.mxu2  ;;  %v11270_v60 = vor.u32 %v12241_v36, %v11267_v3 }
 0x5b6   : > { %v6231_v18 = vadd.f32 %v6230_v2, %v14994_v38  ;;  %7412 = vmatpush.bf16.msrb.mxu0 %v11206_v47  ;;  %v6806_v2 = vshrl.u32 %v14930_v55, 16 }
 0x5b7   : > { %v6291_v9 = vpop.f32.mrf.mxu0  ;;  %7441 = vmatpush.bf16.msrb.mxu1 %v11270_v60 }
 0x5b8   : > { %v6292_v0 = vadd.f32 %v6291_v9, %v14998_v19  ;;  %v6805_v19 = vsel %vm1113_vm2, %v6800_v59, %v6804_v4  ;;  %v6808_v6 = vor.u32 %v6806_v2, %v6796_v5  ;;  %v6820_v9 = vrot.slane %v6818_v7, 1 }
 0x5b9   : > { %v6259_v10 = vpop.f32.mrf.mxu3 }
 0x5ba   : > { %v15077_v38 = vadd.f32 %v6259_v10, %v6231_v18  ;;  %7008 = vmatmul.bf16.gmra.mxu2 %v6797_v49  ;;  %7066 = vmatmul.bf16.gmra.mxu0 %v6797_v49  ;;  %v6813_v13 = vsel %vm1113_vm2, %v6808_v6, %v6812_v1  ;;  %v6821_v22 = vsel %vm1113_vm2, %v6816_v15, %v6820_v9 }
 0x5bb   : > { %v6320_v32 = vpop.f32.mrf.mxu1 }
 0x5bc   : > { %v15080_v14 = vadd.f32 %v6320_v32, %v6292_v0 }
 0x5bd   : > { %v6233_v52 = vpop.f32.mrf.mxu2 }
 0x5be   : > { %7037 = vmatmul.bf16.gmra.mxu3 %v6805_v19  ;;  %7095 = vmatmul.bf16.gmra.mxu1 %v6805_v19  ;;  %v6234_v57 = vadd.f32 %v6233_v52, %v15002_v62 }
 0x5bf   : > { %v6293_v40 = vpop.f32.mrf.mxu0 }
 0x5c0   : > { %v6294_v48 = vadd.f32 %v6293_v40, %v15004_v58 }
 0x5c1   : > { %v6262_v51 = vpop.f32.mrf.mxu3 }
 0x5c2   : > { %v15086_v63 = vadd.f32 %v6262_v51, %v6234_v57 }
 0x5c3   : > { %v6322_v16 = vpop.f32.mrf.mxu1 }
 0x5c4   : > { %v15089_v62 = vadd.f32 %v6322_v16, %v6294_v48 }
 0x5c5   : > { %v6235_v44 = vpop.f32.mrf.mxu2 }
 0x5c6   : > { %v6236_v58 = vadd.f32 %v6235_v44, %v15006_v37 }
 0x5c7   : > { %v6296_v18 = vpop.f32.mrf.mxu0 }
 0x5c8   : > { %v6297_v39 = vadd.f32 %v6296_v18, %v15012_v50 }
 0x5c9   : > { %v6264_v12 = vpop.f32.mrf.mxu3 }
 0x5ca   : > { %v15096_v55 = vadd.f32 %v6264_v12, %v6236_v58  ;;  %7013 = vmatmul.bf16.gmra.mxu2 %v6813_v13  ;;  %7071 = vmatmul.bf16.gmra.mxu0 %v6813_v13 }
 0x5cb   : > { %v6325_v5 = vpop.f32.mrf.mxu1 }
 0x5cc   : > { %v15098_v33 = vadd.f32 %v6325_v5, %v6297_v39 }
 0x5cd   : > { %v6238_v37 = vpop.f32.mrf.mxu2 }
 0x5ce   : > { %7042 = vmatmul.bf16.gmra.mxu3 %v6821_v22  ;;  %7100 = vmatmul.bf16.gmra.mxu1 %v6821_v22  ;;  %v6239_v54 = vadd.f32 %v6238_v37, %v15019_v42 }
 0x5cf   : > { %v6298_v50 = vpop.f32.mrf.mxu0 }
 0x5d0   : > { %v6299_v28 = vadd.f32 %v6298_v50, %v15024_v21 }
 0x5d1   : > { %v6267_v0 = vpop.f32.mrf.mxu3 }
 0x5d2   : > { %v15103_v10 = vadd.f32 %v6267_v0, %v6239_v54 }
 0x5d3   : > { %v6327_v49 = vpop.f32.mrf.mxu1 }
 0x5d4   : > { %v15105_v25 = vadd.f32 %v6327_v49, %v6299_v28 }
 0x5d5   : > { %v6240_v4 = vpop.f32.mrf.mxu2 }
 0x5d6   : > { %15863 = vst [vmem:[#allocation25_spill] sm:$0xff] %v15105_v25  ;;  %v6241_v32 = vadd.f32 %v6240_v4, %v15031_v43  ;;  %v12277_v25 = vld [vmem:[#allocation12 + $0xa0] sm:$0xff] }
 0x5d7   : > { %v6606_v59 = vpop.f32.mrf.mxu0 }
 0x5d9   : > { %v6269_v19 = vpop.f32.mrf.mxu3 }
 0x5da   : > { %v15108_v52 = vadd.f32 %v6269_v19, %v6241_v32  ;;  %7355 = vmatmul.bf16.vlgmr.msra.gmra.mxu2 %v14890_v34  ;;  %7413 = vmatmul.bf16.vlgmr.msrb.gmra.mxu0 %v14890_v34 }
 0x5db   : > { %v6635_v42 = vpop.f32.mrf.mxu1 }
 0x5dc   : > { %15864 = vst [vmem:[#allocation26_spill] sm:$0xff] %v15108_v52  ;;  %v6636_v57 = vadd.f32 %v6635_v42, %v6606_v59  ;;  %v12286_v52 = vld [vmem:[#allocation12 + $0xe8] sm:$0xff] }
 0x5dd   : > { %v6548_v21 = vpop.f32.mrf.mxu2 }
 0x5de   : > { %v15113_v45 = vadd.f32 %v6636_v57, %v15033_v17  ;;  %7384 = vmatmul.bf16.vlgmr.msra.gmra.mxu3 %v14910_v26  ;;  %7442 = vmatmul.bf16.vlgmr.msrb.gmra.mxu1 %v14910_v26 }
 0x5df   : > { %v15117_v11 = vpop.f32.mrf.mxu0 }
 0x5e1   : > { %v6577_v43 = vpop.f32.mrf.mxu3 }
 0x5e2   : > { %v6578_v36 = vadd.f32 %v6577_v43, %v6548_v21 }
 0x5e3   : > { %v15119_v40 = vpop.f32.mrf.mxu1 }
 0x5e4   : > { %v15122_v47 = vadd.f32 %v6578_v36, %v15040_v30 }
 0x5e5   : > { %v15124_v34 = vpop.f32.mrf.mxu2 }
 0x5e7   : > { %v6611_v3 = vpop.f32.mrf.mxu0 }
 0x5e9   : > { %v15126_v48 = vpop.f32.mrf.mxu3 }
 0x5ea   : > { %7360 = vmatmul.bf16.gmra.mxu2 %v14913_v27  ;;  %7418 = vmatmul.bf16.gmra.mxu0 %v14913_v27 }
 0x5eb   : > { %v6640_v17 = vpop.f32.mrf.mxu1 }
 0x5ec   : > { %v6641_v26 = vadd.f32 %v6640_v17, %v6611_v3  ;;  %v12280_v17 = vld [vmem:[#allocation12 + $0xb8] sm:$0xff] }
 0x5ed   : > { %v6553_v60 = vpop.f32.mrf.mxu2  ;;  %7837 = vmatpush.bf16.msrb.mxu2 %v12280_v17 }
 0x5ee   : > { %v15131_v51 = vadd.f32 %v6641_v26, %v15059_v29  ;;  %7389 = vmatmul.bf16.gmra.mxu3 %v14916_v8  ;;  %7447 = vmatmul.bf16.gmra.mxu1 %v14916_v8  ;;  %v12288_v26 = vld [vmem:[#allocation12 + $0xf8] sm:$0xff] }
 0x5ef   : > { %v15135_v30 = vpop.f32.mrf.mxu0  ;;  %7866 = vmatpush.bf16.msrb.mxu3 %v12288_v26  ;;  %v12278_v26 = vld [vmem:[#allocation12 + $0xa8] sm:$0xff] }
 0x5f1   : > { %v6582_v53 = vpop.f32.mrf.mxu3 }
 0x5f2   : > { %v6583_v16 = vadd.f32 %v6582_v53, %v6553_v60 }
 0x5f3   : > { %v15137_v2 = vpop.f32.mrf.mxu1 }
 0x5f4   : > { %v15140_v44 = vadd.f32 %v6583_v16, %v15066_v24 }
 0x5f5   : > { %v15142_v27 = vpop.f32.mrf.mxu2 }
 0x5f7   : > { %v6616_v6 = vpop.f32.mrf.mxu0 }
 0x5f9   : > { %v15144_v1 = vpop.f32.mrf.mxu3 }
 0x5fa   : > { %7365 = vmatmul.bf16.gmra.mxu2 %v14944_v46  ;;  %7423 = vmatmul.bf16.gmra.mxu0 %v14944_v46 }
 0x5fb   : > { %v6645_v29 = vpop.f32.mrf.mxu1 }
 0x5fc   : > { %v6646_v8 = vadd.f32 %v6645_v29, %v6616_v6 }
 0x5fd   : > { %v6558_v7 = vpop.f32.mrf.mxu2 }
 0x5fe   : > { %v15149_v58 = vadd.f32 %v6646_v8, %v15080_v14  ;;  %7394 = vmatmul.bf16.gmra.mxu3 %v14947_v20  ;;  %7452 = vmatmul.bf16.gmra.mxu1 %v14947_v20 }
 0x5ff   : > { %v15153_v24 = vpop.f32.mrf.mxu0 }
 0x601   : > { %v6587_v18 = vpop.f32.mrf.mxu3 }
 0x602   : > { %v6588_v56 = vadd.f32 %v6587_v18, %v6558_v7  ;;  %v12279_v7 = vld [vmem:[#allocation12 + $0xb0] sm:$0xff] }
 0x603   : > { %v15155_v39 = vpop.f32.mrf.mxu1  ;;  %v12287_v18 = vld [vmem:[#allocation12 + $0xf0] sm:$0xff]  ;;  %7838 = vmatpush.bf16.msrb.mxu2 %v12279_v7 }
 0x604   : > { %v15158_v12 = vadd.f32 %v6588_v56, %v15086_v63  ;;  %7867 = vmatpush.bf16.msrb.mxu3 %v12287_v18 }
 0x605   : > { %v15160_v46 = vpop.f32.mrf.mxu2 }
 0x607   : > { %v6621_v13 = vpop.f32.mrf.mxu0  ;;  %7839 = vmatpush.bf16.msrb.mxu2 %v12278_v26 }
 0x608   : > { %7868 = vmatpush.bf16.msrb.mxu3 %v12286_v52 }
 0x609   : > { %v15162_v15 = vpop.f32.mrf.mxu3 }
 0x60a   : > { %7370 = vmatmul.bf16.gmra.mxu2 %v14950_v35  ;;  %7428 = vmatmul.bf16.gmra.mxu0 %v14950_v35 }
 0x60b   : > { %v6650_v14 = vpop.f32.mrf.mxu1  ;;  %7840 = vmatpush.bf16.msrb.mxu2 %v12277_v25  ;;  %v12264_v25 = vld [vmem:[#allocation12 + $0x38] sm:$0xff] }
 0x60c   : > { %v6651_v20 = vadd.f32 %v6650_v14, %v6621_v13  ;;  %8022 = vmatpush.bf16.msra.mxu0 %v12264_v25 }
 0x60d   : > { %v6563_v9 = vpop.f32.mrf.mxu2 }
 0x60e   : > { %v15167_v5 = vadd.f32 %v6651_v20, %v15098_v33  ;;  %7399 = vmatmul.bf16.gmra.mxu3 %v14956_v61  ;;  %7457 = vmatmul.bf16.gmra.mxu1 %v14956_v61 }
 0x60f   : > { %v15171_v63 = vpop.f32.mrf.mxu0 }
 0x610   : > { %15865 = vst [vmem:[#allocation30_spill] sm:$0xff] %v15167_v5  ;;  %v12285_v5 = vld [vmem:[#allocation12 + $0xe0] sm:$0xff] }
 0x611   : > { %15866 = vst [vmem:[#allocation29_spill] sm:$0xff] %v15171_v63  ;;  %v6592_v22 = vpop.f32.mrf.mxu3  ;;  %7869 = vmatpush.bf16.msrb.mxu3 %v12285_v5  ;;  %v12272_v5 = vld [vmem:[#allocation12 + $0x78] sm:$0xff] }
 0x612   : > { %v6593_v37 = vadd.f32 %v6592_v22, %v6563_v9  ;;  %8051 = vmatpush.bf16.msra.mxu1 %v12272_v5  ;;  %v12261_v5 = vld [vmem:[#allocation12 + $0x20] sm:$0xff] }
 0x613   : > { %v15173_v54 = vpop.f32.mrf.mxu1 }
 0x614   : > { %15867 = vst [vmem:[#allocation23_spill] sm:$0xff] %v15173_v54  ;;  %v15176_v50 = vadd.f32 %v6593_v37, %v15103_v10 }
 0x615   : > { %v15178_v35 = vpop.f32.mrf.mxu2 }
 0x616   : > { %15868 = vst [vmem:[#allocation24_spill] sm:$0xff] %v15176_v50 }
 0x617   : > { %15869 = vst [vmem:[#allocation39_spill] sm:$0xff] %v15178_v35  ;;  %v7057_v28 = vpop.f32.mrf.mxu0 }
 0x619   : > { %v15180_v0 = vpop.f32.mrf.mxu3 }
 0x61a   : > { %15870 = vst [vmem:[#allocation28_spill] sm:$0xff] %v15180_v0 }
 0x61b   : > { %v7086_v33 = vpop.f32.mrf.mxu1 }
 0x61c   : > { %v7087_v0 = vadd.f32 %v7086_v33, %v7057_v28 }
 0x61d   : > { %v6999_v49 = vpop.f32.mrf.mxu2 }
 0x61f   : > { %v7059_v4 = vpop.f32.mrf.mxu0 }
 0x621   : > { %v7028_v32 = vpop.f32.mrf.mxu3 }
 0x622   : > { %v7029_v52 = vadd.f32 %v7028_v32, %v6999_v49 }
 0x623   : > { %v7088_v59 = vpop.f32.mrf.mxu1 }
 0x625   : > { %v15182_v61 = vpop.f32.mrf.mxu2 }
 0x627   : > { %v15184_v19 = vpop.f32.mrf.mxu0 }
 0x629   : > { %v15186_v42 = vpop.f32.mrf.mxu3 }
 0x62b   : > { %v15188_v57 = vpop.f32.mrf.mxu1 }
 0x62d   : > { %v15190_v10 = vpop.f32.mrf.mxu2 }
 0x62f   : > { %v15192_v21 = vpop.f32.mrf.mxu0 }
 0x631   : > { %v15194_v43 = vpop.f32.mrf.mxu3 }
 0x633   : > { %v15196_v36 = vpop.f32.mrf.mxu1 }
 0x635   : > { %v15198_v3 = vpop.f32.mrf.mxu2 }
 0x637   : > { %v15200_v60 = vpop.f32.mrf.mxu0 }
 0x639   : > { %v15202_v53 = vpop.f32.mrf.mxu3 }
 0x63b   : > { %v15204_v16 = vpop.f32.mrf.mxu1 }
 0x63d   : > { %v15206_v6 = vpop.f32.mrf.mxu2 }
 0x63f   : > { %v15208_v29 = vpop.f32.mrf.mxu0 }
 0x641   : > { %v15210_v8 = vpop.f32.mrf.mxu3 }
 0x643   : > { %v15212_v56 = vpop.f32.mrf.mxu1 }
 0x645   : > { %v15214_v13 = vpop.f32.mrf.mxu2 }
 0x647   : > { %v15216_v14 = vpop.f32.mrf.mxu0 }
 0x648   : > { %15871 = vst [vmem:[#allocation40_spill] sm:$0xff] %v15216_v14 }
 0x649   : > { %v15218_v20 = vpop.f32.mrf.mxu3 }
 0x64b   : > { %v15220_v9 = vpop.f32.mrf.mxu1 }
 0x64c   : > { %15872 = vst [vmem:[#allocation31_spill] sm:$0xff] %v15220_v9 }
 0x64d   : > { %v15222_v22 = vpop.f32.mrf.mxu2 }
 0x64e   : > { %15873 = vst [vmem:[#allocation32_spill] sm:$0xff] %v15222_v22  ;;  %v7089_v22 = vadd.f32 %v7088_v59, %v7059_v4  ;;  %v6580_v4 = vadd.f32 %v15126_v48, %v15124_v34  ;;  %v7092_v34 = vadd.f32 %v15188_v57, %v15184_v19 }
 0x64f   : > { %v15224_v37 = vpop.f32.mrf.mxu0 }
 0x650   : > { %15874 = vst [vmem:[#allocation37_spill] sm:$0xff] %v15224_v37  ;;  %v7111_v19 = vadd.f32 %v7092_v34, %v15131_v51  ;;  %v7094_v51 = vadd.f32 %v15196_v36, %v15192_v21  ;;  %v6585_v21 = vadd.f32 %v15144_v1, %v15142_v27 }
 0x651   : > { %v15226_v17 = vpop.f32.mrf.mxu3 }
 0x652   : > { %15875 = vst [vmem:[#allocation38_spill] sm:$0xff] %v15226_v17  ;;  %v7479_v17 = vld [vmem:[%s15754_s9] sm:$0x3] }
 0x653   : > { %v15228_v50 = vpop.f32.mrf.mxu1  ;;  %v15240_v33 = vperm.slane %v7479_v17, 1  ;;  %v15243_v14 = vperm.slane %v7479_v17, 0 }
 0x654   : > { %15876 = vst [vmem:[#allocation34_spill] sm:$0xff] %v15228_v50  ;;  %v7107_v50 = vadd.f32 %v7087_v0, %v15113_v45  ;;  %v12284_v45 = vld [vmem:[#allocation12 + $0xd8] sm:$0xff] }
 0x655   : > { %v15230_v7 = vpop.f32.mrf.mxu2  ;;  %7870 = vmatpush.bf16.msrb.mxu3 %v12284_v45 }
 0x656   : > { %15877 = vst [vmem:[#allocation35_spill] sm:$0xff] %v15230_v7  ;;  %v6638_v7 = vadd.f32 %v15119_v40, %v15117_v11  ;;  %v12263_v40 = vld [vmem:[#allocation12 + $0x30] sm:$0xff] }
 0x657   : > { %v7414_v18 = vpop.f32.mrf.mxu0  ;;  %8023 = vmatpush.bf16.msra.mxu0 %v12263_v40  ;;  %v6643_v40 = vadd.f32 %v15137_v2, %v15135_v30  ;;  %v12282_v2 = vld [vmem:[#allocation12 + $0xc8] sm:$0xff] }
 0x658   : > { %v6658_v0 = vadd.f32 %v6638_v7, %v15046_v31 }
 0x659   : > { %v15232_v35 = vpop.f32.mrf.mxu3 }
 0x65a   : > { %15878 = vst [vmem:[#allocation36_spill] sm:$0xff] %v15232_v35 }
 0x65b   : > { %v7443_v54 = vpop.f32.mrf.mxu1 }
 0x65c   : > { %v7444_v37 = vadd.f32 %v7443_v54, %v7414_v18  ;;  %v12276_v54 = vld [vmem:[#allocation12 + $0x98] sm:$0xff]  ;;  %v7106_v18 = vadd.f32 %v7029_v52, %v15122_v47  ;;  %v7109_v47 = vadd.f32 %v7089_v22, %v6658_v0  ;;  %v12275_v22 = vld [vmem:[#allocation12 + $0x90] sm:$0xff] }
 0x65d   : > { %v7356_v26 = vpop.f32.mrf.mxu2  ;;  %7841 = vmatpush.bf16.msrb.mxu2 %v12276_v54  ;;  %v12269_v54 = vld [vmem:[#allocation12 + $0x60] sm:$0xff] }
 0x65e   : > { %v7464_v28 = vadd.f32 %v7444_v37, %v7107_v50  ;;  %v12271_v50 = vld [vmem:[#allocation12 + $0x70] sm:$0xff]  ;;  %v7031_v37 = vadd.f32 %v15186_v42, %v15182_v61 }
 0x65f   : > { %v7416_v35 = vpop.f32.mrf.mxu0  ;;  %8052 = vmatpush.bf16.msra.mxu1 %v12271_v50  ;;  %v12283_v61 = vld [vmem:[#allocation12 + $0xd0] sm:$0xff] }
 0x660   : > { %v7486_v49 = vadd.f32 %v15240_v33, %v7464_v28  ;;  %7871 = vmatpush.bf16.msrb.mxu3 %v12283_v61 }
 0x661   : > { %v7385_v63 = vpop.f32.mrf.mxu3  ;;  %7842 = vmatpush.bf16.msrb.mxu2 %v12275_v22  ;;  %v7036_v22 = vadd.f32 %v15202_v53, %v15198_v3  ;;  %v7099_v3 = vadd.f32 %v15212_v56, %v15208_v29  ;;  %v12258_v53 = vld [vmem:[#allocation12 + $0x8] sm:$0xff]  ;;  %v12257_v29 = vld [vmem:[#allocation12] sm:$0xff] }
 0x662   : > { %v7386_v9 = vadd.f32 %v7385_v63, %v7356_v26  ;;  %12581 = vtanh.f32 %v7486_v49  ;;  %v6657_v26 = vadd.f32 %v6580_v4, %v15056_v23  ;;  %v7034_v49 = vadd.f32 %v15194_v43, %v15190_v10  ;;  %v12260_v10 = vld [vmem:[#allocation12 + $0x18] sm:$0xff]  ;;  %v12265_v56 = vld [vmem:[#allocation12 + $0x40] sm:$0xff] }
 0x663   : > { %v7445_v11 = vpop.f32.mrf.mxu1  ;;  %v12268_v43 = vld [vmem:[#allocation12 + $0x58] sm:$0xff] }
 0x664   : > { %v7463_v32 = vadd.f32 %v7386_v9, %v7106_v18  ;;  %v7446_v59 = vadd.f32 %v7445_v11, %v7416_v35  ;;  %v12262_v35 = vld [vmem:[#allocation12 + $0x28] sm:$0xff]  ;;  %v7108_v52 = vadd.f32 %v7031_v37, %v6657_v26  ;;  %v6662_v37 = vadd.f32 %v6643_v40, %v15070_v41  ;;  %v12267_v26 = vld [vmem:[#allocation12 + $0x50] sm:$0xff]  ;;  %7872 = vmatpush.bf16.msrb.mxu3 %v12282_v2 }
 0x665   : > { %v7358_v63 = vpop.f32.mrf.mxu2  ;;  %v12270_v9 = vld [vmem:[#allocation12 + $0x68] sm:$0xff]  ;;  %8024 = vmatpush.bf16.msra.mxu0 %v12262_v35  ;;  %v6648_v41 = vadd.f32 %v15155_v39, %v15153_v24  ;;  %v6590_v24 = vadd.f32 %v15162_v15, %v15160_v46  ;;  %v7039_v39 = vadd.f32 %v15210_v8, %v15206_v6 }
 0x666   : > { %v7485_v31 = vadd.f32 %v15243_v14, %v7463_v32  ;;  %v7466_v17 = vadd.f32 %v7446_v59, %v7109_v47  ;;  %8053 = vmatpush.bf16.msra.mxu1 %v12270_v9  ;;  %v12274_v47 = vld [vmem:[#allocation12 + $0x88] sm:$0xff] }
 0x667   : > { %v7419_v7 = vpop.f32.mrf.mxu0  ;;  %7843 = vmatpush.bf16.msrb.mxu2 %v12274_v47  ;;  %v6666_v46 = vadd.f32 %v6648_v41, %v15089_v62  ;;  %v15292_v40 = vadd.f32 %v6590_v24, %v15096_v55  ;;  %v7114_v62 = vadd.f32 %v7039_v39, %v15158_v12  ;;  %v7041_v47 = vadd.f32 %v15218_v20, %v15214_v13  ;;  %v15880_v55 = vld [vmem:[#allocation31_spill] sm:$0xff] }
 0x668   : > { %12583 = vtanh.f32 %v7485_v31  ;;  %v7488_v42 = vadd.f32 %v15240_v33, %v7466_v17  ;;  %v12582_v45 = vpop.eup %12581 }
 0x669   : > { %v7387_v48 = vpop.f32.mrf.mxu3  ;;  %8025 = vmatpush.bf16.msra.mxu0 %v12261_v5 }
 0x66a   : > { %v7388_v28 = vadd.f32 %v7387_v48, %v7358_v63  ;;  %12585 = vtanh.f32 %v7488_v42  ;;  %8054 = vmatpush.bf16.msra.mxu1 %v12269_v54  ;;  %v7110_v63 = vadd.f32 %v7034_v49, %v15140_v44  ;;  %v7113_v44 = vadd.f32 %v7094_v51, %v6662_v37 }
 0x66b   : > { %v7448_v25 = vpop.f32.mrf.mxu1  ;;  %v6661_v42 = vadd.f32 %v6585_v21, %v15077_v38 }
 0x66c   : > { %v7465_v18 = vadd.f32 %v7388_v28, %v7108_v52  ;;  %v7449_v23 = vadd.f32 %v7448_v25, %v7419_v7  ;;  %v12259_v7 = vld [vmem:[#allocation12 + $0x10] sm:$0xff]  ;;  %v7097_v28 = vadd.f32 %v15204_v16, %v15200_v60  ;;  %v12266_v16 = vld [vmem:[#allocation12 + $0x48] sm:$0xff]  ;;  %v12273_v25 = vld [vmem:[#allocation12 + $0x80] sm:$0xff] }
 0x66d   : > { %v7361_v57 = vpop.f32.mrf.mxu2  ;;  %8026 = vmatpush.bf16.msra.mxu0 %v12260_v10  ;;  %v7112_v5 = vadd.f32 %v7036_v22, %v6661_v42  ;;  %7844 = vmatpush.bf16.msrb.mxu2 %v12273_v25 }
 0x66e   : > { %v12584_v0 = vpop.eup %12583  ;;  %v7487_v11 = vadd.f32 %v15243_v14, %v7465_v18  ;;  %v7468_v4 = vadd.f32 %v7449_v23, %v7111_v19  ;;  %8055 = vmatpush.bf16.msra.mxu1 %v12268_v43  ;;  %v12281_v18 = vld [vmem:[#allocation12 + $0xc0] sm:$0xff]  ;;  %v7115_v15 = vadd.f32 %v7097_v28, %v15149_v58  ;;  %v7117_v58 = vadd.f32 %v7099_v3, %v6666_v46 }
 0x66f   : > { %v15262_v50 = vpack.c.bf16 %v12582_v45, %v12584_v0  ;;  %v7421_v32 = vpop.f32.mrf.mxu0  ;;  %v7533_v45 = vld [vmem:[#allocation3 + $0x8] sm:$0x88]  ;;  %7873 = vmatpush.bf16.msrb.mxu3 %v12281_v18 }
 0x670   : > { %12587 = vtanh.f32 %v7487_v11  ;;  %v7490_v31 = vadd.f32 %v15240_v33, %v7468_v4  ;;  %v12586_v48 = vpop.eup %12585  ;;  %v7617_v0 = vunpack.c.l.b16 %v7533_v45  ;;  %v7618_v49 = vunpack.c.h.b16 %v7533_v45 }
 0x671   : > { %7525 = vst [vmem:[#allocation3 + $0x10] sm:$0xff] %v15262_v50  ;;  %v7390_v59 = vpop.f32.mrf.mxu3  ;;  %8027 = vmatpush.bf16.msra.mxu0 %v12259_v7  ;;  %v7619_v38 = vunpack.c.l.b16 %v15262_v50  ;;  %v7620_v23 = vunpack.c.h.b16 %v15262_v50 }
 0x672   : > { %v7391_v30 = vadd.f32 %v7390_v59, %v7361_v57  ;;  %12589 = vtanh.f32 %v7490_v31  ;;  %8056 = vmatpush.bf16.msra.mxu1 %v12267_v26 }
 0x673   : > { %v7450_v17 = vpop.f32.mrf.mxu1  ;;  %v7635_v10 = vpack.c.b16 %v7619_v38, %v7617_v0  ;;  %v7636_v43 = vpack.c.b16 %v7620_v23, %v7618_v49  ;;  %v15881_v0 = vld [vmem:[#allocation29_spill] sm:$0xff]  ;;  %v15882_v49 = vld [vmem:[#allocation23_spill] sm:$0xff] }
 0x674   : > { %v7467_v36 = vadd.f32 %v7391_v30, %v7110_v63  ;;  %v7451_v34 = vadd.f32 %v7450_v17, %v7421_v32  ;;  %v15879_v63 = vld [vmem:[#allocation40_spill] sm:$0xff] }
 0x675   : > { %v7363_v35 = vpop.f32.mrf.mxu2  ;;  %8028 = vmatpush.bf16.msra.mxu0 %v12258_v53  ;;  %v15304_v30 = vadd.f32 %v15880_v55, %v15879_v63  ;;  %v7646_v26 = vshrl.u32 %v7635_v10, 16  ;;  %v7649_v21 = vshll.u32 %v7635_v10, 16  ;;  %v7903_v28 = vrot.slane %v7636_v43, 3  ;;  %v12294_v55 = vld [vmem:[#allocation12 + $0x128] sm:$0xff] }
 0x676   : > { %v12588_v9 = vpop.eup %12587  ;;  %v7489_v52 = vadd.f32 %v15243_v14, %v7467_v36  ;;  %v7470_v1 = vadd.f32 %v7451_v34, %v7113_v44  ;;  %8057 = vmatpush.bf16.msra.mxu1 %v12266_v16  ;;  %v12296_v36 = vld [vmem:[#allocation12 + $0x138] sm:$0xff]  ;;  %v7900_v44 = vrot.slane %v7635_v10, 3 }
 0x677   : > { %v7518_v27 = vpack.c.bf16 %v12586_v48, %v12588_v9  ;;  %v7424_v61 = vpop.f32.mrf.mxu0  ;;  %v12304_v34 = vld [vmem:[#allocation12 + $0x178] sm:$0xff]  ;;  %v7666_v9 = vshll.u32 %v7636_v43, 16  ;;  %8225 = vmatpush.bf16.msra.mxu2 %v12296_v36  ;;  %v7651_v42 = vrot.slane %v7649_v21, 4  ;;  %v12302_v21 = vld [vmem:[#allocation12 + $0x168] sm:$0xff] }
 0x678   : > { %12591 = vtanh.f32 %v7489_v52  ;;  %v7492_v6 = vadd.f32 %v15240_v33, %v7470_v1  ;;  %v12590_v11 = vpop.eup %12589  ;;  %8254 = vmatpush.bf16.msra.mxu3 %v12304_v34  ;;  %v12318_v36 = vld [vmem:[#allocation12 + $0x1b8] sm:$0xff] }
 0x679   : > { %7526 = vst [vmem:[#allocation3 + $0x18] sm:$0xff] %v7518_v27  ;;  %v7392_v60 = vpop.f32.mrf.mxu3  ;;  %8029 = vmatpush.bf16.msra.mxu0 %v12257_v29  ;;  %v15309_v31 = vunpack.c.l.b16 %v7518_v27  ;;  %v15311_v17 = vunpack.c.h.b16 %v7518_v27  ;;  %v7668_v46 = vrot.slane %v7666_v9, 4  ;;  %v12326_v34 = vld [vmem:[#allocation12 + $0x1f8] sm:$0xff] }
 0x67a   : > { %v7393_v54 = vadd.f32 %v7392_v60, %v7363_v35  ;;  %12593 = vtanh.f32 %v7492_v6  ;;  %8058 = vmatpush.bf16.msra.mxu1 %v12265_v56  ;;  %v7663_v35 = vshrl.u32 %v7636_v43, 16 }
 0x67b   : > { %v7453_v8 = vpop.f32.mrf.mxu1  ;;  %v15355_v9 = vpack.c.b16 %v15309_v31, %v7619_v38  ;;  %v15886_v38 = vld [vmem:[#allocation37_spill] sm:$0xff] }
 0x67c   : > { %v7469_v19 = vadd.f32 %v7393_v54, %v7112_v5  ;;  %v7454_v57 = vadd.f32 %v7453_v8, %v7424_v61  ;;  %v7648_v61 = vrot.slane %v7646_v26, 3  ;;  %v7665_v16 = vrot.slane %v7663_v35, 3 }
 0x67d   : > { %v7366_v4 = vpop.f32.mrf.mxu2  ;;  %8546 = vmatpush.bf16.msrb.mxu0 %v12318_v36 }
 0x67e   : > { %v12592_v32 = vpop.eup %12591  ;;  %v7491_v51 = vadd.f32 %v15243_v14, %v7469_v19  ;;  %v7472_v59 = vadd.f32 %v7454_v57, %v7115_v15  ;;  %v7652_v10 = vor.u32 %v7651_v42, %v7648_v61  ;;  %v15885_v61 = vld [vmem:[#allocation38_spill] sm:$0xff]  ;;  %8575 = vmatpush.bf16.msrb.mxu1 %v12326_v34 }
 0x67f   : > { %v15306_v12 = vpack.c.bf16 %v12590_v11, %v12592_v32  ;;  %v7426_v2 = vpop.f32.mrf.mxu0  ;;  %v6653_v11 = vadd.f32 %v15882_v49, %v15881_v0  ;;  %v12295_v32 = vld [vmem:[#allocation12 + $0x130] sm:$0xff]  ;;  %v15889_v49 = vld [vmem:[#allocation39_spill] sm:$0xff] }
 0x680   : > { %12595 = vtanh.f32 %v7491_v51  ;;  %v7494_v37 = vadd.f32 %v15240_v33, %v7472_v59  ;;  %v12594_v24 = vpop.eup %12593  ;;  %v12303_v51 = vld [vmem:[#allocation12 + $0x170] sm:$0xff]  ;;  %8226 = vmatpush.bf16.msra.mxu2 %v12295_v32 }
 0x681   : > { %7527 = vst [vmem:[#allocation3 + $0x20] sm:$0xff] %v15306_v12  ;;  %v7395_v13 = vpop.f32.mrf.mxu3  ;;  %v7623_v20 = vunpack.c.l.b16 %v15306_v12  ;;  %v7624_v7 = vunpack.c.h.b16 %v15306_v12  ;;  %8255 = vmatpush.bf16.msra.mxu3 %v12303_v51  ;;  %v12325_v0 = vld [vmem:[#allocation12 + $0x1f0] sm:$0xff]  ;;  %v12316_v51 = vld [vmem:[#allocation12 + $0x1a8] sm:$0xff] }
 0x682   : > { %v7396_v48 = vadd.f32 %v7395_v13, %v7366_v4  ;;  %12597 = vtanh.f32 %v7494_v37  ;;  %8576 = vmatpush.bf16.msrb.mxu1 %v12325_v0  ;;  %v12290_v12 = vld [vmem:[#allocation12 + $0x108] sm:$0xff] }
 0x683   : > { %v7455_v41 = vpop.f32.mrf.mxu1  ;;  %v15319_v22 = vpack.c.b16 %v7623_v20, %v15309_v31  ;;  %v15324_v52 = vpack.c.b16 %v7624_v7, %v15311_v17 }
 0x684   : > { %v7471_v27 = vadd.f32 %v7396_v48, %v7114_v62  ;;  %v7456_v1 = vadd.f32 %v7455_v41, %v7426_v2  ;;  %v7116_v62 = vadd.f32 %v7041_v47, %v15292_v40  ;;  %v15883_v2 = vld [vmem:[#allocation30_spill] sm:$0xff]  ;;  %v7669_v40 = vor.u32 %v7668_v46, %v7665_v16  ;;  %8227 = vmatpush.bf16.msra.mxu2 %v12294_v55 }
 0x685   : > { %v7368_v39 = vpop.f32.mrf.mxu2  ;;  %v7901_v3 = vrot.slane %v15319_v22, 3  ;;  %v7904_v60 = vrot.slane %v15324_v52, 3  ;;  %v7654_v53 = vshrl.u32 %v15319_v22, 16  ;;  %v7657_v18 = vshll.u32 %v15319_v22, 16  ;;  %8256 = vmatpush.bf16.msra.mxu3 %v12302_v21 }
 0x686   : > { %v12596_v25 = vpop.eup %12595  ;;  %v7493_v5 = vadd.f32 %v15243_v14, %v7471_v27  ;;  %v7474_v54 = vadd.f32 %v7456_v1, %v7117_v58  ;;  %v7671_v19 = vshrl.u32 %v15324_v52, 16  ;;  %v7674_v4 = vshll.u32 %v15324_v52, 16  ;;  %v15884_v1 = vld [vmem:[#allocation32_spill] sm:$0xff]  ;;  %v12323_v52 = vld [vmem:[#allocation12 + $0x1e0] sm:$0xff] }
 0x687   : > { %v15331_v15 = vpack.c.bf16 %v12594_v24, %v12596_v25  ;;  %v7429_v6 = vpop.f32.mrf.mxu0  ;;  %v7902_v8 = vsel %vm733_vm1, %v7900_v44, %v7901_v3  ;;  %v7905_v29 = vsel %vm733_vm1, %v7903_v28, %v7904_v60  ;;  %v7656_v56 = vrot.slane %v7654_v53, 3  ;;  %v15887_v53 = vld [vmem:[#allocation34_spill] sm:$0xff] }
 0x688   : > { %12599 = vtanh.f32 %v7493_v5  ;;  %8030 = vmatmul.bf16.vlgmr.msra.gmra.mxu0 %v7902_v8  ;;  %8059 = vmatmul.bf16.vlgmr.msra.gmra.mxu1 %v7905_v29  ;;  %v7659_v45 = vrot.slane %v7657_v18, 4  ;;  %v12598_v57 = vpop.eup %12597  ;;  %v7673_v63 = vrot.slane %v7671_v19, 3  ;;  %v7119_v37 = vadd.f32 %v15304_v30, %v15883_v2  ;;  %v12301_v5 = vld [vmem:[#allocation12 + $0x160] sm:$0xff]  ;;  %v12292_v2 = vld [vmem:[#allocation12 + $0x118] sm:$0xff] }
 0x689   : > { %7528 = vst [vmem:[#allocation3 + $0x28] sm:$0xff] %v15331_v15  ;;  %v7397_v58 = vpop.f32.mrf.mxu3  ;;  %v7496_v13 = vadd.f32 %v15240_v33, %v7474_v54  ;;  %v7676_v47 = vrot.slane %v7674_v4, 4  ;;  %v15362_v28 = vpack.c.b16 %v15311_v17, %v7620_v23  ;;  %v7044_v42 = vadd.f32 %v15885_v61, %v15884_v1  ;;  %v12293_v23 = vld [vmem:[#allocation12 + $0x120] sm:$0xff]  ;;  %v15888_v54 = vld [vmem:[#allocation25_spill] sm:$0xff]  ;;  %8257 = vmatpush.bf16.msra.mxu3 %v12301_v5 }
 0x68a   : > { %v7398_v59 = vadd.f32 %v7397_v58, %v7368_v39  ;;  %v15345_v43 = vor.u32 %v7659_v45, %v7656_v56  ;;  %v7104_v16 = vadd.f32 %v15887_v53, %v15886_v38  ;;  %v6670_v18 = vadd.f32 %v6653_v11, %v15888_v54  ;;  %v15890_v11 = vld [vmem:[#allocation28_spill] sm:$0xff]  ;;  %8228 = vmatpush.bf16.msra.mxu2 %v12293_v23  ;;  %v12291_v5 = vld [vmem:[#allocation12 + $0x110] sm:$0xff] }
 0x68b   : > { %v7458_v26 = vpop.f32.mrf.mxu1  ;;  %v15357_v41 = vor.u32 %v7676_v47, %v7673_v63  ;;  %12601 = vtanh.f32 %v7496_v13  ;;  %v7625_v56 = vunpack.c.l.b16 %v15331_v15  ;;  %v7626_v19 = vunpack.c.h.b16 %v15331_v15  ;;  %v15891_v58 = vld [vmem:[#allocation24_spill] sm:$0xff]  ;;  %v15892_v13 = vld [vmem:[#allocation35_spill] sm:$0xff]  ;;  %v12299_v54 = vld [vmem:[#allocation12 + $0x150] sm:$0xff] }
 0x68c   : > { %v7473_v48 = vadd.f32 %v7398_v59, %v7116_v62  ;;  %v7459_v44 = vadd.f32 %v7458_v26, %v7429_v6  ;;  %v7661_v35 = vsel %vm543_vm0, %v7652_v10, %v15345_v43  ;;  %v12317_v6 = vld [vmem:[#allocation12 + $0x1b0] sm:$0xff]  ;;  %v6595_v62 = vadd.f32 %v15890_v11, %v15889_v49  ;;  %v15893_v26 = vld [vmem:[#allocation36_spill] sm:$0xff]  ;;  %v12314_v11 = vld [vmem:[#allocation12 + $0x198] sm:$0xff] }
 0x68d   : > { %v7371_v30 = vpop.f32.mrf.mxu2  ;;  %7845 = vmatmul.bf16.vlgmr.msrb.gmra.mxu2 %v7661_v35  ;;  %v7678_v50 = vsel %vm543_vm0, %v7669_v40, %v15357_v41  ;;  %v7118_v4 = vadd.f32 %v7044_v42, %v15891_v58  ;;  %8547 = vmatpush.bf16.msrb.mxu0 %v12317_v6  ;;  %v7121_v59 = vadd.f32 %v7104_v16, %v6670_v18  ;;  %v15894_v18 = vld [vmem:[#allocation26_spill] sm:$0xff] }
 0x68e   : > { %v12600_v27 = vpop.eup %12599  ;;  %v7495_v24 = vadd.f32 %v15243_v14, %v7473_v48  ;;  %v7476_v39 = vadd.f32 %v7459_v44, %v7119_v37  ;;  %7874 = vmatmul.bf16.vlgmr.msrb.gmra.mxu3 %v7678_v50  ;;  %v12300_v37 = vld [vmem:[#allocation12 + $0x158] sm:$0xff]  ;;  %v7046_v40 = vadd.f32 %v15893_v26, %v15892_v13  ;;  %8229 = vmatpush.bf16.msra.mxu2 %v12292_v2  ;;  %v8612_v13 = vld [vmem:[#allocation3 + $0x10] sm:$0xee]  ;;  %v12289_v26 = vld [vmem:[#allocation12 + $0x100] sm:$0xff] }
 0x68f   : > { %v15369_v25 = vpack.c.bf16 %v12598_v57, %v12600_v27  ;;  %v7431_v29 = vpop.f32.mrf.mxu0  ;;  %8258 = vmatpush.bf16.msra.mxu3 %v12300_v37 }
 0x690   : > { %12603 = vtanh.f32 %v7495_v24  ;;  %v7498_v46 = vadd.f32 %v15240_v33, %v7476_v39  ;;  %v12315_v39 = vld [vmem:[#allocation12 + $0x1a0] sm:$0xff] }
 0x691   : > { %7529 = vst [vmem:[#allocation3 + $0x30] sm:$0xff] %v15369_v25  ;;  %v7400_v8 = vpop.f32.mrf.mxu3  ;;  %v7627_v45 = vunpack.c.l.b16 %v15369_v25  ;;  %v7628_v57 = vunpack.c.h.b16 %v15369_v25  ;;  %v12602_v36 = vpop.eup %12601  ;;  %8548 = vmatpush.bf16.msrb.mxu0 %v12316_v51  ;;  %v15430_v51 = vpack.c.b16 %v7625_v56, %v7623_v20  ;;  %v12298_v20 = vld [vmem:[#allocation12 + $0x148] sm:$0xff] }
 0x692   : > { %v7401_v32 = vadd.f32 %v7400_v8, %v7371_v30  ;;  %12605 = vtanh.f32 %v7498_v46  ;;  %v12324_v30 = vld [vmem:[#allocation12 + $0x1e8] sm:$0xff]  ;;  %v6669_v46 = vadd.f32 %v6595_v62, %v15894_v18  ;;  %8230 = vmatpush.bf16.msra.mxu2 %v12291_v5  ;;  %v12311_v18 = vld [vmem:[#allocation12 + $0x180] sm:$0xff] }
 0x693   : > { %v7460_v10 = vpop.f32.mrf.mxu1  ;;  %v15387_v63 = vpack.c.b16 %v7627_v45, %v7625_v56  ;;  %v15393_v55 = vpack.c.b16 %v7628_v57, %v7626_v19  ;;  %8577 = vmatpush.bf16.msrb.mxu1 %v12324_v30  ;;  %8259 = vmatpush.bf16.msra.mxu3 %v12299_v54 }
 0x694   : > { %v7475_v47 = vadd.f32 %v7401_v32, %v7118_v4  ;;  %v7461_v21 = vadd.f32 %v7460_v10, %v7431_v29  ;;  %v12322_v10 = vld [vmem:[#allocation12 + $0x1d8] sm:$0xff] }
 0x695   : > { %v7906_v34 = vrot.slane %v15387_v63, 3  ;;  %v7908_v48 = vrot.slane %v15393_v55, 3  ;;  %v7680_v44 = vshrl.u32 %v15387_v63, 16  ;;  %v7683_v35 = vshll.u32 %v15387_v63, 16  ;;  %v7373_v53 = vpop.f32.mrf.mxu2  ;;  %8549 = vmatpush.bf16.msrb.mxu0 %v12315_v39 }
 0x696   : > { %v12604_v27 = vpop.eup %12603  ;;  %v7497_v1 = vadd.f32 %v15243_v14, %v7475_v47  ;;  %v7478_v61 = vadd.f32 %v7461_v21, %v7121_v59  ;;  %v7689_v42 = vshrl.u32 %v15393_v55, 16  ;;  %v7692_v24 = vshll.u32 %v15393_v55, 16  ;;  %8231 = vmatpush.bf16.msra.mxu2 %v12290_v12  ;;  %v12319_v55 = vld [vmem:[#allocation12 + $0x1c0] sm:$0xff] }
 0x697   : > { %v15404_v38 = vpack.c.bf16 %v12602_v36, %v12604_v27  ;;  %v7907_v16 = vsel %vm733_vm1, %v7901_v3, %v7906_v34  ;;  %v7909_v50 = vsel %vm733_vm1, %v7904_v60, %v7908_v48  ;;  %v7682_v23 = vrot.slane %v7680_v44, 3  ;;  %8578 = vmatpush.bf16.msrb.mxu1 %v12323_v52  ;;  %8260 = vmatpush.bf16.msra.mxu3 %v12298_v20  ;;  %v12312_v36 = vld [vmem:[#allocation12 + $0x188] sm:$0xff] }
 0x698   : > { %12607 = vtanh.f32 %v7497_v1  ;;  %8035 = vmatmul.bf16.gmra.mxu0 %v7907_v16  ;;  %8064 = vmatmul.bf16.gmra.mxu1 %v7909_v50  ;;  %v7685_v6 = vrot.slane %v7683_v35, 4  ;;  %v7691_v22 = vrot.slane %v7689_v42, 3  ;;  %v7694_v8 = vrot.slane %v7692_v24, 4  ;;  %v12606_v29 = vpop.eup %12605  ;;  %v12320_v24 = vld [vmem:[#allocation12 + $0x1c8] sm:$0xff] }
 0x699   : > { %7530 = vst [vmem:[#allocation3 + $0x38] sm:$0xff] %v15404_v38  ;;  %v7402_v3 = vpop.f32.mrf.mxu3  ;;  %v7120_v60 = vadd.f32 %v7046_v40, %v6669_v46  ;;  %v7500_v62 = vadd.f32 %v15240_v33, %v7478_v61  ;;  %v15436_v33 = vpack.c.b16 %v7626_v19, %v7624_v7  ;;  %8550 = vmatpush.bf16.msrb.mxu0 %v12314_v11  ;;  %v12313_v7 = vld [vmem:[#allocation12 + $0x190] sm:$0xff]  ;;  %v7629_v15 = vunpack.c.l.b16 %v15404_v38  ;;  %v12297_v40 = vld [vmem:[#allocation12 + $0x140] sm:$0xff]  ;;  %v12306_v46 = vld [vmem:[#allocation3 + $0x24] sm:$0xf0] }
 0x69a   : > { %v7403_v0 = vadd.f32 %v7402_v3, %v7373_v53  ;;  %v15418_v49 = vor.u32 %v7685_v6, %v7682_v23  ;;  %v15421_v58 = vor.u32 %v7694_v8, %v7691_v22  ;;  %v7630_v56 = vunpack.c.h.b16 %v15404_v38  ;;  %8232 = vmatpush.bf16.msra.mxu2 %v12289_v26  ;;  %v11523_v6 = vld [vmem:[#allocation3 + $0x28] sm:$0xf0] }
 0x69b   : > { %12609 = vtanh.f32 %v7500_v62  ;;  %8579 = vmatpush.bf16.msrb.mxu1 %v12322_v10  ;;  %v8647_v44 = vunpack.c.l.b16 %v8612_v13  ;;  %v8648_v35 = vunpack.c.h.b16 %v8612_v13  ;;  %8261 = vmatpush.bf16.msra.mxu3 %v12297_v40 }
 0x69c   : > { %v7477_v4 = vadd.f32 %v7403_v0, %v7120_v60  ;;  %v7687_v32 = vsel %vm543_vm0, %v15345_v43, %v15418_v49  ;;  %v7696_v59 = vsel %vm543_vm0, %v15357_v41, %v15421_v58 }
 0x69d   : > { %7850 = vmatmul.bf16.gmra.mxu2 %v7687_v32  ;;  %8551 = vmatpush.bf16.msrb.mxu0 %v12313_v7  ;;  %v8649_v63 = vpack.c.b16 %v15309_v31, %v8647_v44  ;;  %v8650_v60 = vpack.c.b16 %v15311_v17, %v8648_v35  ;;  %v15495_v17 = vpack.c.b16 %v7629_v15, %v7627_v45  ;;  %v12334_v44 = vld [vmem:[#allocation12 + $0x238] sm:$0xff] }
 0x69e   : > { %v12608_v43 = vpop.eup %12607  ;;  %v7499_v2 = vadd.f32 %v15243_v14, %v7477_v4  ;;  %7879 = vmatmul.bf16.gmra.mxu3 %v7696_v59  ;;  %v12321_v14 = vld [vmem:[#allocation12 + $0x1d0] sm:$0xff]  ;;  %v12342_v35 = vld [vmem:[#allocation12 + $0x278] sm:$0xff]  ;;  %8773 = vmatpush.bf16.msrb.mxu2 %v12334_v44 }
 0x69f   : > { %v15442_v37 = vpack.c.bf16 %v12606_v29, %v12608_v43  ;;  %8580 = vmatpush.bf16.msrb.mxu1 %v12321_v14  ;;  %v12305_v29 = vld [vmem:[#allocation3 + $0x24] sm:$0xf]  ;;  %v8651_v43 = vrot.slane %v8649_v63, 1  ;;  %v15501_v14 = vpack.c.b16 %v7630_v56, %v7628_v57  ;;  %8802 = vmatpush.bf16.msrb.mxu3 %v12342_v35 }
 0x6a0   : > { %12611 = vtanh.f32 %v7499_v2  ;;  %v15483_v4 = vor.u32 %v12305_v29, %v11523_v6 }
 0x6a1   : > { %7531 = vst [vmem:[#allocation3 + $0x40] sm:$0xff] %v15442_v37  ;;  %v7631_v41 = vunpack.c.l.b16 %v15442_v37  ;;  %v7632_v19 = vunpack.c.h.b16 %v15442_v37  ;;  %v12610_v30 = vpop.eup %12609  ;;  %8552 = vmatpush.bf16.msrb.mxu0 %v12312_v36 }
 0x6a2   : > { %v8655_v13 = vrot.slane %v15483_v4, 1 }
 0x6a3   : > { %v15451_v47 = vpack.c.b16 %v7631_v41, %v7629_v15  ;;  %v15457_v21 = vpack.c.b16 %v7632_v19, %v7630_v56  ;;  %8581 = vmatpush.bf16.msrb.mxu1 %v12320_v24  ;;  %v12308_v24 = vld [vmem:[#allocation3 + $0x34] sm:$0xf0] }
 0x6a5   : > { %v7910_v27 = vrot.slane %v15451_v47, 3  ;;  %v7912_v1 = vrot.slane %v15457_v21, 3  ;;  %v7698_v61 = vshrl.u32 %v15451_v47, 16  ;;  %v7701_v42 = vshll.u32 %v15451_v47, 16  ;;  %8553 = vmatpush.bf16.msrb.mxu0 %v12311_v18 }
 0x6a6   : > { %v12612_v39 = vpop.eup %12611  ;;  %v7707_v53 = vshrl.u32 %v15457_v21, 16  ;;  %v7710_v16 = vshll.u32 %v15457_v21, 16 }
 0x6a7   : > { %v7524_v50 = vpack.c.bf16 %v12610_v30, %v12612_v39  ;;  %v7911_v23 = vsel %vm733_vm1, %v7906_v34, %v7910_v27  ;;  %v7913_v5 = vsel %vm733_vm1, %v7908_v48, %v7912_v1  ;;  %v7700_v54 = vrot.slane %v7698_v61, 3  ;;  %v11521_v48 = vld [vmem:[#allocation3 + $0x20] sm:$0xf]  ;;  %8582 = vmatpush.bf16.msrb.mxu1 %v12319_v55  ;;  %v12333_v39 = vld [vmem:[#allocation12 + $0x230] sm:$0xff] }
 0x6a8   : > { %8040 = vmatmul.bf16.gmra.mxu0 %v7911_v23  ;;  %8069 = vmatmul.bf16.gmra.mxu1 %v7913_v5  ;;  %v7703_v22 = vrot.slane %v7701_v42, 4  ;;  %v7709_v3 = vrot.slane %v7707_v53, 3  ;;  %v7712_v8 = vrot.slane %v7710_v16, 4  ;;  %v15481_v62 = vor.u32 %v12306_v46, %v11521_v48  ;;  %v11529_v42 = vld [vmem:[#allocation3 + $0x30] sm:$0xf] }
 0x6a9   : > { %7532 = vst [vmem:[#allocation3 + $0x48] sm:$0xff] %v7524_v50  ;;  %v15476_v34 = vunpack.c.l.b16 %v7524_v50  ;;  %v15478_v52 = vunpack.c.h.b16 %v7524_v50  ;;  %v12341_v53 = vld [vmem:[#allocation12 + $0x270] sm:$0xff]  ;;  %v15511_v16 = vor.u32 %v12308_v24, %v11529_v42  ;;  %v11531_v50 = vld [vmem:[#allocation3 + $0x38] sm:$0xf0]  ;;  %8774 = vmatpush.bf16.msrb.mxu2 %v12333_v39 }
 0x6aa   : > { %v7704_v0 = vor.u32 %v7703_v22, %v7700_v54  ;;  %v7713_v11 = vor.u32 %v7712_v8, %v7709_v3  ;;  %v12307_v46 = vld [vmem:[#allocation3 + $0x34] sm:$0xf]  ;;  %8803 = vmatpush.bf16.msrb.mxu3 %v12341_v53 }
 0x6ab   : > { %v7643_v31 = vpack.c.b16 %v15476_v34, %v15476_v34  ;;  %v7644_v32 = vpack.c.b16 %v15478_v52, %v15478_v52  ;;  %v15515_v6 = vor.u32 %v12307_v46, %v11531_v50  ;;  %v8657_v22 = vrot.slane %v15511_v16, 1  ;;  %v12329_v46 = vld [vmem:[#allocation12 + $0x210] sm:$0xff] }
 0x6ac   : > { %v7705_v59 = vsel %vm543_vm0, %v15418_v49, %v7704_v0  ;;  %v7714_v10 = vsel %vm543_vm0, %v15421_v58, %v7713_v11  ;;  %v8652_v49 = vrot.slane %v15481_v62, 1  ;;  %v8654_v58 = vrot.slane %v8650_v60, 1 }
 0x6ad   : > { %7855 = vmatmul.bf16.gmra.mxu2 %v7705_v59  ;;  %v7716_v2 = vshrl.u32 %v7643_v31, 16  ;;  %v7719_v12 = vshll.u32 %v7643_v31, 16  ;;  %v7725_v20 = vshrl.u32 %v7644_v32, 16  ;;  %v7728_v7 = vshll.u32 %v7644_v32, 16 }
 0x6ae   : > { %7884 = vmatmul.bf16.gmra.mxu3 %v7714_v10  ;;  %v15506_v30 = vsel %vm1329_vm3, %v8651_v43, %v8652_v49  ;;  %v15509_v25 = vsel %vm1329_vm3, %v8654_v58, %v8655_v13  ;;  %v15519_v63 = vsel %vm1329_vm3, %v8652_v49, %v8657_v22  ;;  %v8659_v29 = vrot.slane %v15515_v6, 1  ;;  %v8299_v10 = vld [vmem:[#allocation3 + $0x50] sm:$0x11]  ;;  %v12331_v58 = vld [vmem:[#allocation12 + $0x220] sm:$0xff] }
 0x6af   : > { %v7718_v45 = vrot.slane %v7716_v2, 3  ;;  %v7721_v15 = vrot.slane %v7719_v12, 4  ;;  %v7727_v26 = vrot.slane %v7725_v20, 3  ;;  %v7730_v40 = vrot.slane %v7728_v7, 4  ;;  %v12332_v12 = vld [vmem:[#allocation12 + $0x228] sm:$0xff] }
 0x6b0   : > { %v7541_v36 = vld [vmem:[#allocation3 + $0x48] sm:$0x77]  ;;  %v15529_v60 = vsel %vm1329_vm3, %v8655_v13, %v8659_v29  ;;  %v8385_v31 = vshll.u32 %v15362_v28, 16  ;;  %v15537_v47 = vpack.c.b16 %v15476_v34, %v7631_v41  ;;  %v15542_v21 = vpack.c.b16 %v15478_v52, %v7632_v19  ;;  %v11537_v34 = vld [vmem:[#allocation3 + $0x40] sm:$0xf]  ;;  %8775 = vmatpush.bf16.msrb.mxu2 %v12332_v12 }
 0x6b1   : > { %v7896_v57 = vunpack.c.l.b16 %v7541_v36  ;;  %v7897_v38 = vunpack.c.h.b16 %v7541_v36  ;;  %v7722_v56 = vor.u32 %v7721_v15, %v7718_v45  ;;  %v7731_v61 = vor.u32 %v7730_v40, %v7727_v26  ;;  %v12340_v41 = vld [vmem:[#allocation12 + $0x268] sm:$0xff]  ;;  %v12309_v19 = vld [vmem:[#allocation3 + $0x44] sm:$0xf] }
 0x6b2   : > { %v8383_v59 = vshrl.u32 %v15362_v28, 16  ;;  %v8387_v2 = vrot.slane %v8385_v31, 1  ;;  %v8358_v20 = vunpack.c.l.b16 %v8299_v10  ;;  %v8359_v37 = vunpack.c.h.b16 %v8299_v10  ;;  %v12310_v7 = vld [vmem:[#allocation3 + $0x44] sm:$0xf0]  ;;  %v11539_v52 = vld [vmem:[#allocation3 + $0x48] sm:$0xf0]  ;;  %8804 = vmatpush.bf16.msrb.mxu3 %v12340_v41 }
 0x6b3   : > { %v7898_v23 = vpack.c.b16 %v7896_v57, %v7896_v57  ;;  %v7899_v5 = vpack.c.b16 %v7897_v38, %v7897_v38  ;;  %v7723_v54 = vsel %vm543_vm0, %v7704_v0, %v7722_v56  ;;  %v7732_v18 = vsel %vm543_vm0, %v7713_v11, %v7731_v61  ;;  %v12339_v13 = vld [vmem:[#allocation12 + $0x260] sm:$0xff]  ;;  %v12336_v31 = vld [vmem:[#allocation12 + $0x248] sm:$0xff] }
 0x6b4   : > { %v8373_v0 = vshll.u32 %v15355_v9, 16  ;;  %v8378_v11 = vshll.u32 %v15481_v62, 16  ;;  %v15547_v45 = vor.u32 %v12310_v7, %v11537_v34  ;;  %v15549_v15 = vor.u32 %v12309_v19, %v11539_v52  ;;  %8776 = vmatpush.bf16.msrb.mxu2 %v12331_v58 }
 0x6b5   : > { %v7914_v3 = vrot.slane %v7898_v23, 3  ;;  %v7916_v8 = vrot.slane %v7899_v5, 3  ;;  %v15551_v26 = vpack.c.b16 %v8358_v20, %v8358_v20  ;;  %v15553_v40 = vpack.c.b16 %v8359_v37, %v8359_v37 }
 0x6b6   : > { %v8375_v32 = vrot.slane %v8373_v0, 1  ;;  %v8380_v43 = vrot.slane %v8378_v11, 1  ;;  %v8388_v44 = vor.u32 %v8387_v2, %v8383_v59  ;;  %v8661_v35 = vrot.slane %v15547_v45, 1  ;;  %8805 = vmatpush.bf16.msrb.mxu3 %v12339_v13 }
 0x6b7   : > { %v7915_v55 = vsel %vm733_vm1, %v7910_v27, %v7914_v3  ;;  %v7917_v48 = vsel %vm733_vm1, %v7912_v1, %v7916_v8  ;;  %v8390_v27 = vshll.u32 %v15483_v4, 16  ;;  %v8371_v1 = vshrl.u32 %v15355_v9, 16 }
 0x6b8   : > { %8045 = vmatmul.bf16.gmra.mxu0 %v7915_v55  ;;  %8074 = vmatmul.bf16.gmra.mxu1 %v7917_v48  ;;  %v8663_v57 = vrot.slane %v15549_v15, 1  ;;  %v8665_v38 = vrot.slane %v15551_v26, 1  ;;  %v8667_v56 = vrot.slane %v15553_v40, 1  ;;  %v15562_v24 = vsel %vm1329_vm3, %v8657_v22, %v8661_v35  ;;  %v12337_v22 = vld [vmem:[#allocation12 + $0x250] sm:$0xff] }
 0x6b9   : > { %v8392_v49 = vrot.slane %v8390_v27, 1  ;;  %v8376_v36 = vor.u32 %v8375_v32, %v8371_v1  ;;  %v8398_v23 = vshll.u32 %v15511_v16, 16  ;;  %v8406_v5 = vshll.u32 %v15515_v6, 16  ;;  %v12327_v27 = vld [vmem:[#allocation12 + $0x200] sm:$0xff] }
 0x6ba   : > { %v15565_v39 = vsel %vm1329_vm3, %v8659_v29, %v8663_v57  ;;  %v15568_v53 = vsel %vm1329_vm3, %v8661_v35, %v8665_v38  ;;  %v15571_v50 = vsel %vm1329_vm3, %v8663_v57, %v8667_v56  ;;  %v8394_v3 = vshrl.u32 %v15481_v62, 16  ;;  %v12335_v1 = vld [vmem:[#allocation12 + $0x240] sm:$0xff] }
 0x6bb   : > { %v8381_v61 = vsel %vm1113_vm2, %v8376_v36, %v8380_v43  ;;  %v8393_v42 = vsel %vm1113_vm2, %v8388_v44, %v8392_v49  ;;  %v8400_v8 = vrot.slane %v8398_v23, 1  ;;  %v8402_v55 = vshrl.u32 %v15483_v4, 16  ;;  %v12328_v4 = vld [vmem:[#allocation12 + $0x208] sm:$0xff] }
 0x6bc   : > { %v8408_v48 = vrot.slane %v8406_v5, 1  ;;  %v8396_v29 = vor.u32 %v8394_v3, %v8380_v43  ;;  %v8414_v11 = vshll.u32 %v15547_v45, 16  ;;  %v8422_v62 = vshll.u32 %v15549_v15, 16 }
 0x6bd   : > { %7860 = vmatmul.bf16.gmra.mxu2 %v7723_v54  ;;  %v12330_v54 = vld [vmem:[#allocation12 + $0x218] sm:$0xff]  ;;  %v8410_v32 = vshrl.u32 %v15511_v16, 16  ;;  %v8418_v10 = vshrl.u32 %v15515_v6, 16  ;;  %v8430_v41 = vshll.u32 %v15551_v26, 16  ;;  %v8438_v16 = vshll.u32 %v15553_v40, 16 }
 0x6be   : > { %7889 = vmatmul.bf16.gmra.mxu3 %v7732_v18  ;;  %v12338_v18 = vld [vmem:[#allocation12 + $0x258] sm:$0xff]  ;;  %8777 = vmatpush.bf16.msrb.mxu2 %v12330_v54  ;;  %v8401_v0 = vsel %vm1113_vm2, %v8396_v29, %v8400_v8  ;;  %v8416_v59 = vrot.slane %v8414_v11, 1  ;;  %v8424_v43 = vrot.slane %v8422_v62, 1  ;;  %v8426_v6 = vshrl.u32 %v15547_v45, 16 }
 0x6bf   : > { %8806 = vmatpush.bf16.msrb.mxu3 %v12338_v18  ;;  %v8412_v2 = vor.u32 %v8410_v32, %v8400_v8  ;;  %v8434_v34 = vshrl.u32 %v15549_v15, 16  ;;  %v8432_v37 = vrot.slane %v8430_v41, 1  ;;  %v8440_v19 = vrot.slane %v8438_v16, 1 }
 0x6c0   : > { %v8428_v20 = vor.u32 %v8426_v6, %v8416_v59 }
 0x6c1   : > { %v8417_v12 = vsel %vm1113_vm2, %v8412_v2, %v8416_v59  ;;  %v8436_v7 = vor.u32 %v8434_v34, %v8424_v43 }
 0x6c2   : > { %8778 = vmatpush.bf16.msrb.mxu2 %v12329_v46  ;;  %v8433_v52 = vsel %vm1113_vm2, %v8428_v20, %v8432_v37 }
 0x6c3   : > { %8807 = vmatpush.bf16.msrb.mxu3 %v12337_v22 }
 0x6c6   : > { %8779 = vmatpush.bf16.msrb.mxu2 %v12328_v4 }
 0x6c7   : > { %8808 = vmatpush.bf16.msrb.mxu3 %v12336_v31 }
 0x6c8   : > { %8554 = vmatmul.bf16.vlgmr.msrb.gmra.mxu0 %v8381_v61  ;;  %8583 = vmatmul.bf16.vlgmr.msrb.gmra.mxu1 %v8393_v42 }
 0x6ca   : > { %8780 = vmatpush.bf16.msrb.mxu2 %v12327_v27 }
 0x6cb   : > { %8809 = vmatpush.bf16.msrb.mxu3 %v12335_v1 }
 0x6cd   : > { %8233 = vmatmul.bf16.vlgmr.msra.gmra.mxu2 %v15355_v9  ;;  %v8404_v9 = vor.u32 %v8402_v55, %v8392_v49  ;;  %v8441_v49 = vsel %vm1113_vm2, %v8436_v7, %v8440_v19 }
 0x6ce   : > { %8262 = vmatmul.bf16.vlgmr.msra.gmra.mxu3 %v15362_v28 }
 0x6cf   : > { %v8409_v28 = vsel %vm1113_vm2, %v8404_v9, %v8408_v48 }
 0x6d8   : > { %8559 = vmatmul.bf16.gmra.mxu0 %v8401_v0  ;;  %8588 = vmatmul.bf16.gmra.mxu1 %v8409_v28 }
 0x6dd   : > { %8238 = vmatmul.bf16.gmra.mxu2 %v15430_v51  ;;  %v8420_v51 = vor.u32 %v8418_v10, %v8408_v48 }
 0x6de   : > { %8267 = vmatmul.bf16.gmra.mxu3 %v15436_v33 }
 0x6df   : > { %v8425_v33 = vsel %vm1113_vm2, %v8420_v51, %v8424_v43 }
 0x6e8   : > { %8564 = vmatmul.bf16.gmra.mxu0 %v8417_v12  ;;  %8593 = vmatmul.bf16.gmra.mxu1 %v8425_v33 }
 0x6ed   : > { %8243 = vmatmul.bf16.gmra.mxu2 %v15495_v17 }
 0x6ee   : > { %8272 = vmatmul.bf16.gmra.mxu3 %v15501_v14 }
 0x6f8   : > { %8569 = vmatmul.bf16.gmra.mxu0 %v8433_v52  ;;  %8598 = vmatmul.bf16.gmra.mxu1 %v8441_v49 }
 0x6fd   : > { %8248 = vmatmul.bf16.gmra.mxu2 %v15537_v47 }
 0x6fe   : > { %8277 = vmatmul.bf16.gmra.mxu3 %v15542_v21 }
 0x705   : > { %v8060_v35 = vpop.f32.mrf.mxu1 }
 0x70d   : > { %8781 = vmatmul.bf16.vlgmr.msrb.gmra.mxu2 %v15506_v30  ;;  %v8062_v56 = vpop.f32.mrf.mxu1 }
 0x70e   : > { %8810 = vmatmul.bf16.vlgmr.msrb.gmra.mxu3 %v15509_v25  ;;  %v8031_v25 = vpop.f32.mrf.mxu0 }
 0x710   : > { %v7846_v17 = vpop.f32.mrf.mxu2 }
 0x711   : > { %v7875_v14 = vpop.f32.mrf.mxu3 }
 0x712   : > { %v7876_v58 = vadd.f32 %v7875_v14, %v7846_v17 }
 0x714   : > { %v8032_v34 = vadd.f32 %v8031_v25, %v7876_v58  ;;  %v15666_v58 = vld [vmem:[%s15755_s10] ss:$0 sm:$0xff] }
 0x716   : > { %v8061_v52 = vadd.f32 %v8060_v35, %v8032_v34 }
 0x718   : > { %v7848_v13 = vpop.f32.mrf.mxu2 }
 0x719   : > { %v7877_v45 = vpop.f32.mrf.mxu3 }
 0x71a   : > { %v15601_v15 = vadd.f32 %v7877_v45, %v7848_v13 }
 0x71d   : > { %8786 = vmatmul.bf16.gmra.mxu2 %v15519_v63 }
 0x71e   : > { %8815 = vmatmul.bf16.gmra.mxu3 %v15529_v60  ;;  %v8033_v60 = vpop.f32.mrf.mxu0 }
 0x71f   : > { %v8034_v14 = vadd.f32 %v8033_v60, %v15601_v15 }
 0x720   : > { %v7851_v26 = vpop.f32.mrf.mxu2 }
 0x721   : > { %v7880_v40 = vpop.f32.mrf.mxu3 }
 0x722   : > { %v15605_v47 = vadd.f32 %v7880_v40, %v7851_v26 }
 0x726   : > { %v8036_v5 = vpop.f32.mrf.mxu0 }
 0x727   : > { %v8037_v60 = vadd.f32 %v8036_v5, %v15605_v47 }
 0x728   : > { %v7853_v21 = vpop.f32.mrf.mxu2 }
 0x729   : > { %v7882_v36 = vpop.f32.mrf.mxu3 }
 0x72a   : > { %v15607_v30 = vadd.f32 %v7882_v36, %v7853_v21 }
 0x72d   : > { %8791 = vmatmul.bf16.gmra.mxu2 %v15562_v24 }
 0x72e   : > { %8820 = vmatmul.bf16.gmra.mxu3 %v15565_v39  ;;  %v15619_v39 = vpop.f32.mrf.mxu1  ;;  %v15623_v3 = vpop.f32.mrf.mxu0 }
 0x72f   : > { %v8039_v47 = vadd.f32 %v15623_v3, %v15607_v30 }
 0x730   : > { %v7856_v44 = vpop.f32.mrf.mxu2 }
 0x731   : > { %v7885_v57 = vpop.f32.mrf.mxu3 }
 0x732   : > { %v15611_v38 = vadd.f32 %v7885_v57, %v7856_v44  ;;  %v8063_v44 = vadd.f32 %v8062_v56, %v8034_v14  ;;  %v8066_v56 = vadd.f32 %v15619_v39, %v8037_v60 }
 0x736   : > { %v15625_v8 = vpop.f32.mrf.mxu1 }
 0x738   : > { %v7858_v63 = vpop.f32.mrf.mxu2 }
 0x739   : > { %v7887_v61 = vpop.f32.mrf.mxu3 }
 0x73a   : > { %v15613_v42 = vadd.f32 %v7887_v61, %v7858_v63 }
 0x73d   : > { %8796 = vmatmul.bf16.gmra.mxu2 %v15568_v53  ;;  %v15627_v53 = vpop.f32.mrf.mxu0 }
 0x73e   : > { %8825 = vmatmul.bf16.gmra.mxu3 %v15571_v50  ;;  %v15629_v29 = vpop.f32.mrf.mxu1  ;;  %v8042_v30 = vadd.f32 %v15627_v53, %v15611_v38 }
 0x740   : > { %v7861_v23 = vpop.f32.mrf.mxu2 }
 0x741   : > { %v7890_v24 = vpop.f32.mrf.mxu3 }
 0x742   : > { %v15617_v54 = vadd.f32 %v7890_v24, %v7861_v23 }
 0x745   : > { %v15631_v28 = vpop.f32.mrf.mxu0 }
 0x746   : > { %v15633_v11 = vpop.f32.mrf.mxu1 }
 0x748   : > { %v7863_v18 = vpop.f32.mrf.mxu2 }
 0x749   : > { %v7892_v46 = vpop.f32.mrf.mxu3 }
 0x74a   : > { %v15621_v22 = vadd.f32 %v7892_v46, %v7863_v18 }
 0x74d   : > { %v15635_v27 = vpop.f32.mrf.mxu0 }
 0x74e   : > { %v15637_v1 = vpop.f32.mrf.mxu1 }
 0x750   : > { %v8234_v55 = vpop.f32.mrf.mxu2 }
 0x751   : > { %v8263_v48 = vpop.f32.mrf.mxu3 }
 0x752   : > { %v8264_v19 = vadd.f32 %v8263_v48, %v8234_v55 }
 0x754   : > { %v8283_v49 = vadd.f32 %v8264_v19, %v8061_v52 }
 0x755   : > { %v15643_v10 = vpop.f32.mrf.mxu0 }
 0x756   : > { %v15645_v43 = vpop.f32.mrf.mxu1 }
 0x758   : > { %v8236_v50 = vpop.f32.mrf.mxu2 }
 0x759   : > { %v8265_v9 = vpop.f32.mrf.mxu3 }
 0x75a   : > { %v8266_v40 = vadd.f32 %v8265_v9, %v8236_v50 }
 0x75c   : > { %v8284_v57 = vadd.f32 %v8266_v40, %v8063_v44 }
 0x75d   : > { %v8555_v12 = vpop.f32.mrf.mxu0 }
 0x75e   : > { %v8584_v41 = vpop.f32.mrf.mxu1 }
 0x75f   : > { %v8585_v13 = vadd.f32 %v8584_v41, %v8555_v12 }
 0x760   : > { %v8239_v0 = vpop.f32.mrf.mxu2 }
 0x761   : > { %v8268_v62 = vpop.f32.mrf.mxu3  ;;  %v8604_v21 = vadd.f32 %v8585_v13, %v8283_v49 }
 0x762   : > { %v8269_v24 = vadd.f32 %v8268_v62, %v8239_v0 }
 0x764   : > { %v8285_v9 = vadd.f32 %v8269_v24, %v8066_v56 }
 0x765   : > { %v8557_v20 = vpop.f32.mrf.mxu0 }
 0x766   : > { %v8586_v37 = vpop.f32.mrf.mxu1 }
 0x767   : > { %v8587_v61 = vadd.f32 %v8586_v37, %v8557_v20  ;;  %v8068_v37 = vadd.f32 %v15625_v8, %v8039_v47  ;;  %v8071_v8 = vadd.f32 %v15629_v29, %v8042_v30 }
 0x768   : > { %v8241_v4 = vpop.f32.mrf.mxu2 }
 0x769   : > { %v8270_v31 = vpop.f32.mrf.mxu3  ;;  %v8605_v18 = vadd.f32 %v8587_v61, %v8284_v57 }
 0x76a   : > { %v8271_v20 = vadd.f32 %v8270_v31, %v8241_v4 }
 0x76c   : > { %v8286_v52 = vadd.f32 %v8271_v20, %v8068_v37 }
 0x76d   : > { %v8560_v26 = vpop.f32.mrf.mxu0 }
 0x76e   : > { %v8589_v25 = vpop.f32.mrf.mxu1 }
 0x76f   : > { %v8590_v5 = vadd.f32 %v8589_v25, %v8560_v26  ;;  %v8044_v25 = vadd.f32 %v15631_v28, %v15613_v42  ;;  %v8047_v42 = vadd.f32 %v15635_v27, %v15617_v54  ;;  %v8049_v54 = vadd.f32 %v15643_v10, %v15621_v22 }
 0x770   : > { %v15639_v32 = vpop.f32.mrf.mxu2 }
 0x771   : > { %v15641_v59 = vpop.f32.mrf.mxu3  ;;  %v8606_v0 = vadd.f32 %v8590_v5, %v8285_v9  ;;  %v8073_v29 = vadd.f32 %v15633_v11, %v8044_v25  ;;  %v8076_v11 = vadd.f32 %v15637_v1, %v8047_v42  ;;  %v8078_v1 = vadd.f32 %v15645_v43, %v8049_v54 }
 0x772   : > { %v8274_v4 = vadd.f32 %v15641_v59, %v15639_v32 }
 0x774   : > { %v8287_v40 = vadd.f32 %v8274_v4, %v8071_v8 }
 0x775   : > { %v8562_v55 = vpop.f32.mrf.mxu0 }
 0x776   : > { %v8591_v50 = vpop.f32.mrf.mxu1 }
 0x777   : > { %v8592_v3 = vadd.f32 %v8591_v50, %v8562_v55 }
 0x778   : > { %v15647_v2 = vpop.f32.mrf.mxu2 }
 0x779   : > { %v15649_v51 = vpop.f32.mrf.mxu3  ;;  %v8607_v31 = vadd.f32 %v8592_v3, %v8286_v52 }
 0x77a   : > { %v8276_v32 = vadd.f32 %v15649_v51, %v15647_v2 }
 0x77d   : > { %v8565_v39 = vpop.f32.mrf.mxu0 }
 0x77e   : > { %v8594_v14 = vpop.f32.mrf.mxu1 }
 0x77f   : > { %v8595_v38 = vadd.f32 %v8594_v14, %v8565_v39 }
 0x780   : > { %v15651_v33 = vpop.f32.mrf.mxu2 }
 0x781   : > { %v15653_v16 = vpop.f32.mrf.mxu3  ;;  %v8608_v59 = vadd.f32 %v8595_v38, %v8287_v40 }
 0x782   : > { %v8279_v24 = vadd.f32 %v15653_v16, %v15651_v33 }
 0x784   : > { %v8289_v56 = vadd.f32 %v8279_v24, %v8076_v11 }
 0x785   : > { %v8567_v53 = vpop.f32.mrf.mxu0 }
 0x786   : > { %v8596_v44 = vpop.f32.mrf.mxu1 }
 0x787   : > { %v8597_v28 = vadd.f32 %v8596_v44, %v8567_v53 }
 0x788   : > { %v15655_v6 = vpop.f32.mrf.mxu2 }
 0x789   : > { %v15657_v7 = vpop.f32.mrf.mxu3 }
 0x78a   : > { %v8281_v33 = vadd.f32 %v15657_v7, %v15655_v6 }
 0x790   : > { %v8782_v17 = vpop.f32.mrf.mxu2 }
 0x791   : > { %v8811_v45 = vpop.f32.mrf.mxu3 }
 0x792   : > { %v8812_v36 = vadd.f32 %v8811_v45, %v8782_v17 }
 0x794   : > { %v8831_v35 = vadd.f32 %v8812_v36, %v8604_v21 }
 0x796   : > { %v8843_v63 = vadd.f32 %v15666_v58, %v8831_v35 }
 0x798   : > { %v8784_v15 = vpop.f32.mrf.mxu2  ;;  %8851 = vst [vmem:[%s15670_s4] sm:$0xff] %v8843_v63 }
 0x799   : > { %v8813_v23 = vpop.f32.mrf.mxu3 }
 0x79a   : > { %v8814_v46 = vadd.f32 %v8813_v23, %v8784_v15  ;;  %v8288_v15 = vadd.f32 %v8276_v32, %v8073_v29 }
 0x79c   : > { %v8832_v48 = vadd.f32 %v8814_v46, %v8605_v18  ;;  %v8609_v2 = vadd.f32 %v8597_v28, %v8288_v15  ;;  %v8570_v18 = vpop.f32.mrf.mxu0  ;;  %v8599_v46 = vpop.f32.mrf.mxu1 }
 0x79d   : > { %v8600_v27 = vadd.f32 %v8599_v46, %v8570_v18 }
 0x79e   : > { %v8844_v12 = vadd.f32 %v15666_v58, %v8832_v48 }
 0x79f   : > { %v8610_v16 = vadd.f32 %v8600_v27, %v8289_v56 }
 0x7a0   : > { %v8787_v41 = vpop.f32.mrf.mxu2  ;;  %8852 = vst [vmem:[%s15670_s4 + $0x8] sm:$0xff] %v8844_v12 }
 0x7a1   : > { %v8816_v34 = vpop.f32.mrf.mxu3 }
 0x7a2   : > { %v8817_v62 = vadd.f32 %v8816_v34, %v8787_v41  ;;  %v8290_v34 = vadd.f32 %v8281_v33, %v8078_v1 }
 0x7a4   : > { %v8833_v19 = vadd.f32 %v8817_v62, %v8606_v0  ;;  %v8572_v47 = vpop.f32.mrf.mxu0  ;;  %v8601_v5 = vpop.f32.mrf.mxu1 }
 0x7a5   : > { %v8602_v20 = vadd.f32 %v8601_v5, %v8572_v47 }
 0x7a6   : > { %v8845_v49 = vadd.f32 %v15666_v58, %v8833_v19 }
 0x7a7   : > { %v8611_v7 = vadd.f32 %v8602_v20, %v8290_v34 }
 0x7a8   : > { %v8789_v17 = vpop.f32.mrf.mxu2  ;;  %8853 = vst [vmem:[%s15670_s4 + $0x10] sm:$0xff] %v8845_v49 }
 0x7a9   : > { %v8818_v13 = vpop.f32.mrf.mxu3 }
 0x7aa   : > { %v8819_v45 = vadd.f32 %v8818_v13, %v8789_v17 }
 0x7ac   : > { %v8834_v26 = vadd.f32 %v8819_v45, %v8607_v31 }
 0x7ae   : > { %v8846_v21 = vadd.f32 %v15666_v58, %v8834_v26 }
 0x7b0   : > { %v8792_v36 = vpop.f32.mrf.mxu2  ;;  %8854 = vst [vmem:[%s15670_s4 + $0x18] sm:$0xff] %v8846_v21 }
 0x7b1   : > { %v8821_v35 = vpop.f32.mrf.mxu3 }
 0x7b2   : > { %v8822_v57 = vadd.f32 %v8821_v35, %v8792_v36 }
 0x7b4   : > { %v8835_v63 = vadd.f32 %v8822_v57, %v8608_v59 }
 0x7b6   : > { %v8847_v60 = vadd.f32 %v15666_v58, %v8835_v63 }
 0x7b8   : > { %v8794_v61 = vpop.f32.mrf.mxu2  ;;  %8855 = vst [vmem:[%s15670_s4 + $0x20] sm:$0xff] %v8847_v60 }
 0x7b9   : > { %v8823_v23 = vpop.f32.mrf.mxu3 }
 0x7ba   : > { %v8824_v51 = vadd.f32 %v8823_v23, %v8794_v61 }
 0x7bc   : > { %v8836_v55 = vadd.f32 %v8824_v51, %v8609_v2 }
 0x7be   : > { %v8848_v48 = vadd.f32 %v15666_v58, %v8836_v55 }
 0x7c0   : > { %v8797_v50 = vpop.f32.mrf.mxu2  ;;  %8856 = vst [vmem:[%s15670_s4 + $0x28] sm:$0xff] %v8848_v48 }
 0x7c1   : > { %v8826_v9 = vpop.f32.mrf.mxu3 }
 0x7c2   : > { %v8827_v12 = vadd.f32 %v8826_v9, %v8797_v50 }
 0x7c4   : > { %v8837_v41 = vadd.f32 %v8827_v12, %v8610_v16 }
 0x7c6   : > { %v8849_v22 = vadd.f32 %v15666_v58, %v8837_v41 }
 0x7c8   : > { %v8799_v10 = vpop.f32.mrf.mxu2  ;;  %8857 = vst [vmem:[%s15670_s4 + $0x30] sm:$0xff] %v8849_v22 }
 0x7c9   : > { %v8828_v6 = vpop.f32.mrf.mxu3 }
 0x7ca   : > { %v8829_v43 = vadd.f32 %v8828_v6, %v8799_v10 }
 0x7cc   : > { %v8838_v0 = vadd.f32 %v8829_v43, %v8611_v7 }
 0x7ce   : > { %v8850_v62 = vadd.f32 %v15666_v58, %v8838_v0 }
 0x7d0   : > { %8858 = vst [vmem:[%s15670_s4 + $0x38] sm:$0xff] %v8850_v62 }
 0x7d1   : > { %12790 = shalt.err (!%p12787_p8)
}
 0x7d2   : > { %s12856_s26 = smov 128   ;;  %s12857_s16 = smov 8  }
 0x7d3   : > { %12407 = dma.vmem_to_hbm [thread:$0]  (%p12956_p5), %s8873_s22, 1024, %s8875_s30, %s8860_s21, %s12856_s26, %s12856_s26, %s12857_s16  }
 0x7d4 PF: > { %s15895_s24 = sld [smem:[#allocation18_spill]]  ;;  %p12439_p9 = scmp.ge.s32.totalorder %s12844_s20, 2 }
 0x7d6   : > { %p12426_p10 = pnand %p12439_p9, %p12960_p6 }
 0x7d8   : > { %p12427_p11 = pneg %p12426_p10 }
 0x7da   : > { %s8889_s17 = sand.u32 1, %s15895_s24  }
 0x7db   : > { %s8890_s23 = scalar_lea.sflag [#allocation6], %s8889_s17 }
 0x7dc   : > { %12820 = dma.done.wait (%p12427_p11), %s8890_s23, 1024  }
 0x7dd   : > { %12822 = vsyncadd (%p12427_p11), %s8890_s23, 4294966272  ;;  %s15897_s20 = sld [smem:[#allocation20_spill]]  ;;  %s15900_s17 = smov %s12836_s18 }
 0x7de   : > { %s15898_s28 = sld [smem:[#allocation19_spill]] }
 0x7df   : > { %s15899_s19 = sld [smem:[#allocation21_spill]] }
 0x7e3   : > { %p24_p12 = scmp.ge.s32.totalorder %s15897_s20, 4  }
 0x7e4   : > { %s15901_s18 = smov %s15898_s28 }
 0x7e5   :  { %26 = sbr.rel (!%p24_p12) target bundleno = 9 (0x9), region = 140 }
 0x7ea   :  { %8896 = vsyncpa [#allocation5], 1 }
 0x7eb   :  { %8898 = vsyncpa [#allocation5 + $0x1], 1 }
 0x7ec   :  { %8899 = vsyncpa [#allocation8], 1 }
 0x7ed   :  { %8900 = vsyncpa [#allocation11], 1 }
 0x7ee   :  { %8901 = vsyncpa [#allocation6], 1 }
 0x7ef   :  { %8903 = vsyncpa [#allocation6 + $0x1], 1 }

</bundles_post_ra>
